<compile_context>
chip_gen: v7x
topology: tpu7x:2x2x1
jax: 0.10.0
libtpu: 0.0.40
codegen_flags: <defaults>
</compile_context>

<pallas_src>
import numpy as np
import jax
import jax.numpy as jnp
from jax.experimental import pallas as pl
from jax.experimental.pallas import tpu as pltpu


# ----------------------------------------------------------------------------
# Pallas kernel: WB windows per grid step, all heads batched.
# ----------------------------------------------------------------------------
def _make_kernel(num_heads, head_dim, windows_per_block, mask_windows):
    H, D, WB, nW = num_heads, head_dim, windows_per_block, mask_windows
    G = WB // nW  # mask groups per block (WB % nW == 0 enforced by wrapper)

    def kernel(x_ref, wqkv_ref, bqkv_ref, bm_ref, wp_ref, bp_ref, o_ref,
               merge_ref):
        N = x_ref.shape[1]
        C = x_ref.shape[2]
        M = WB * N

        # (WB, N, C) bf16 -> (M, C): leading-dim reshape, lane-dense rows.
        xf = x_ref[...].reshape(M, C)

        # --- Fused QKV projection: ONE (M, C) x (C, 3C) GEMM, f32 accumulate.
        # `scale` is already folded into the q columns / bias wrapper-side.
        qkv = jnp.dot(xf, wqkv_ref[...],
                      preferred_element_type=jnp.float32) + bqkv_ref[...]
        qkv = qkv.astype(jnp.bfloat16)                        # (M, 3C)

        # --- Head split without general transposes (static lane slices +
        # concat on a major axis).  Batch order is (window, head) so the bias
        # add below matches the precombined (nW*H, N, N) table.
        def split_heads(col0):                                # -> (WB*H, N, D)
            parts = [qkv[:, col0 + h * D:col0 + (h + 1) * D]
                     .reshape(WB, 1, N, D) for h in range(H)]
            return jnp.concatenate(parts, axis=1).reshape(WB * H, N, D)

        q = split_heads(0)
        k = split_heads(C)
        v = split_heads(2 * C)

        # --- Attention scores: one dot_general batched over (window, head).
        s = jnp.einsum('bqd,bkd->bqk', q, k,
                       preferred_element_type=jnp.float32)    # (WB*H, N, N)

        # + relative-position bias + shift mask (precombined, VMEM-resident).
        # batch b = w*H + h = (g*nW + nw)*H + h  ->  (G, nW*H, N, N).
        s = s.reshape(G, nW * H, N, N) + bm_ref[...].astype(jnp.float32)[None]
        s = s.reshape(WB * H, N, N)

        # --- Softmax in f32; reciprocal on the EUP slot.
        # TODO(synk): with tiny windows (N=8) these ops run at 8/128 lane
        # occupancy; for production Swin windows pad keys to a multiple of 128
        # (masked) or pack several windows block-diagonally into a dense tile.
        s = s - jnp.max(s, axis=-1, keepdims=True)
        p = jnp.exp(s)
        p = p * pl.reciprocal(jnp.sum(p, axis=-1, keepdims=True), approx=True)

        # TODO(synk): attn_drop / proj_drop are identity (p=0.0 / eval mode).

        # --- attn @ V: one dot_general batched over (window, head).
        o = jnp.einsum('bqk,bkd->bqd', p.astype(jnp.bfloat16), v,
                       preferred_element_type=jnp.float32)    # (WB*H, N, D)

        # --- Head merge in torch concat order (columns h*D+d) via lane-offset
        # stores into VMEM scratch, then ONE (M, C) x (C, C) projection GEMM.
        o = o.astype(jnp.bfloat16).reshape(WB, H, N, D)
        for h in range(H):
            merge_ref[:, h * D:(h + 1) * D] = o[:, h].reshape(M, D)
        y = jnp.dot(merge_ref[...], wp_ref[...],
                    preferred_element_type=jnp.float32) + bp_ref[...]

        o_ref[...] = y.reshape(WB, N, C).astype(o_ref.dtype)

    return kernel


# ----------------------------------------------------------------------------
# Wrapper: parameter re-layout + pallas_call.
# ----------------------------------------------------------------------------
def _prep_kernel_params(params, mask, num_heads):
    """Rearrange torch-layout params into fused, MXU-friendly layouts."""
    w_qkv = params["w_qkv"]            # (3C, C)  torch Linear (out, in)
    b_qkv = params["b_qkv"]            # (3C,)
    w_proj = params["w_proj"]          # (C, C)
    b_proj = params["b_proj"]          # (C,)
    rel_bias = params["rel_bias"]      # (H, N, N) f32 (already gathered)

    C = w_proj.shape[0]
    H = num_heads
    D = C // H
    scale = D ** (-0.5)

    # Fold `scale` into the q rows BEFORE the bf16 cast (single quantization;
    # do not reorder this multiply with the .astype below).
    row_scale = jnp.concatenate([jnp.full((C,), scale, jnp.float32),
                                 jnp.ones((2 * C,), jnp.float32)])
    wqkv = (w_qkv * row_scale[:, None]).T.astype(jnp.bfloat16)   # (C, 3C)
    bqkv = (b_qkv * row_scale).reshape(1, 3 * C).astype(jnp.float32)

    wp = w_proj.T.astype(jnp.bfloat16)                           # (C, C)
    bp = b_proj.reshape(1, C).astype(jnp.float32)

    # Precombine relative-position bias + shift mask, ordered (nw, h) to match
    # the kernel's (window, head) batch; stored bf16, added to f32 scores.
    # TODO(synk): for production shapes stream the shift mask per block
    # (scalar-prefetched mask id) instead of materializing (nW*H, N, N).
    nW, N = mask.shape[0], mask.shape[1]
    bm = mask[:, None, :, :] + rel_bias[None, :, :, :]           # (nW, H, N, N)
    bm = bm.reshape(nW * H, N, N).astype(jnp.bfloat16)
    return wqkv, bqkv, bm, wp, bp


def window_attention_pallas(x, mask, params, num_heads, *,
                            windows_per_block=None):
    """x: (B, N, C) f32 ; mask: (nW, N, N) f32 or None.  Returns bf16."""
    B, N, C = x.shape
    if mask is None:
        mask = jnp.zeros((1, N, N), jnp.float32)
    nW = mask.shape[0]
    H = num_heads
    D = C // H

    # Windows per grid step: WB*N is the M dim of the fused GEMMs (target
    # >=256 rows for the v6e/v7x 256-deep MXU, >=128 suffices on v5e) while
    # keeping an even grid of >=8 steps so the software pipeline and v7x
    # megacore both have work.  Re-derive WB against the 64 MiB VMEM budget on
    # v7x at production C.
    if windows_per_block is None:
        windows_per_block = nW
    WB = windows_per_block
    assert C % H == 0
    assert WB % nW == 0, "windows_per_block must be a multiple of nW"
    assert B % WB == 0, "B must be divisible by windows_per_block"

    wqkv, bqkv, bm, wp, bp = _prep_kernel_params(params, mask, H)
    kernel = _make_kernel(H, D, WB, nW)

    # bf16 I/O: halves the streamed HBM bytes and the x/out block VMEM.
    x_bf = x.astype(jnp.bfloat16)

    # Constant-index (weight-like) operands: single-buffered, VMEM-resident.
    def const_spec(shape):
        return pl.BlockSpec(shape, lambda i: (0,) * len(shape),
                            pipeline_mode=pl.Buffered(1))

    grid_spec = pltpu.PrefetchScalarGridSpec(
        num_scalar_prefetch=0,
        grid=(B // WB,),
        in_specs=[
            pl.BlockSpec((WB, N, C), lambda i: (i, 0, 0)),    # x (streamed)
            const_spec((C, 3 * C)),                           # fused W_qkv
            const_spec((1, 3 * C)),                           # b_qkv (q scaled)
            const_spec((nW * H, N, N)),                       # bias + mask
            const_spec((C, C)),                               # W_proj
            const_spec((1, C)),                               # b_proj
        ],
        out_specs=pl.BlockSpec((WB, N, C), lambda i: (i, 0, 0)),
        scratch_shapes=[pltpu.VMEM((WB * N, C), jnp.bfloat16)],  # head merge
    )

    return pl.pallas_call(
        kernel,
        out_shape=jax.ShapeDtypeStruct((B, N, C), jnp.bfloat16),
        grid_spec=grid_spec,
        compiler_params=pltpu.CompilerParams(
            dimension_semantics=("parallel",),
            vmem_limit_bytes=32 * 1024 * 1024),
    )(x_bf, wqkv, bqkv, bm, wp, bp)


# ----------------------------------------------------------------------------
# Parameter construction (deterministic, synthetic) + pure-JAX reference.
# ----------------------------------------------------------------------------
def make_relative_position_index(window_size):
    """3D relative position index, exactly as in the PyTorch __init__."""
    wd, wh, ww = window_size
    coords = np.stack(np.meshgrid(np.arange(wd), np.arange(wh), np.arange(ww),
                                  indexing="ij"))                # (3,wd,wh,ww)
    coords_flatten = coords.reshape(3, -1)                       # (3, N)
    rel = coords_flatten[:, :, None] - coords_flatten[:, None, :]
    rel = rel.transpose(1, 2, 0).astype(np.int64)                # (N, N, 3)
    rel[:, :, 0] += wd - 1
    rel[:, :, 1] += wh - 1
    rel[:, :, 2] += ww - 1
    rel[:, :, 0] *= (2 * wh - 1) * (2 * ww - 1)
    rel[:, :, 1] *= (2 * ww - 1)
    return rel.sum(-1)                                           # (N, N)


def init_params(key, dim, num_heads, window_size, n):
    """Deterministic synthetic parameters in torch layout + gathered bias."""
    wd, wh, ww = window_size
    table_len = (2 * wd - 1) * (2 * wh - 1) * (2 * ww - 1)
    k1, k2, k3, k4, k5 = jax.random.split(key, 5)

    w_qkv = jax.random.normal(k1, (3 * dim, dim), jnp.float32) * 0.05
    b_qkv = jax.random.normal(k2, (3 * dim,), jnp.float32) * 0.05
    w_proj = jax.random.normal(k3, (dim, dim), jnp.float32) * 0.05
    b_proj = jax.random.normal(k4, (dim,), jnp.float32) * 0.05
    table = jax.random.normal(k5, (table_len, num_heads), jnp.float32) * 0.02

    rel_index = jnp.asarray(make_relative_position_index(window_size))
    rel_bias = table[rel_index[:n, :n].reshape(-1)].reshape(n, n, num_heads)
    rel_bias = jnp.transpose(rel_bias, (2, 0, 1))                # (H, N, N)

    return {"w_qkv": w_qkv, "b_qkv": b_qkv,
            "w_proj": w_proj, "b_proj": b_proj,
            "rel_bias": rel_bias}


def window_attention_reference(x, mask, params, num_heads):
    """Pure-JAX f32 reference mirroring the PyTorch forward (eval mode)."""
    B, N, C = x.shape
    nW = mask.shape[0]
    D = C // num_heads
    scale = D ** (-0.5)

    qkv = x @ params["w_qkv"].T + params["b_qkv"]                    # (B,N,3C)
    qkv = qkv.reshape(B, N, 3, num_heads, D).transpose(2, 0, 3, 1, 4)
    q, k, v = qkv[0], qkv[1], qkv[2]                                 # (B,H,N,D)
    q = q * scale
    attn = jnp.einsum("bhqd,bhkd->bhqk", q, k)
    attn = attn + params["rel_bias"][None]
    attn = attn.reshape(B // nW, nW, num_heads, N, N) + mask[None, :, None]
    attn = attn.reshape(B, num_heads, N, N)
    attn = jax.nn.softmax(attn, axis=-1)
    out = jnp.einsum("bhqk,bhkd->bhqd", attn, v)
    out = out.transpose(0, 2, 1, 3).reshape(B, N, C)
    return out @ params["w_proj"].T + params["b_proj"]


# ----------------------------------------------------------------------------
if __name__ == "__main__":
    dim = 128                 # channels (head_dim=32, Swin-like; lane-dense IO)
    num_heads = 4
    window_size = (2, 2, 2)
    n = window_size[0] * window_size[1] * window_size[2]   # 8 tokens / window
    nW = 4                    # shift-mask variants per image
    n_images = 64
    B = n_images * nW         # 256 windows total
    WB = 32                   # 32 windows/step -> WB*N=256 rows, grid=(8,)

    key = jax.random.PRNGKey(0)
    kx, km, kp = jax.random.split(key, 3)

    x = jax.random.normal(kx, (B, n, dim), jnp.float32)
    # attention mask per window (e.g. from cyclic shift); 0 / -100 pattern
    mask = jnp.where(jax.random.uniform(km, (nW, n, n)) > 0.7, -100.0, 0.0)
    mask = mask.astype(jnp.float32)

    params = init_params(kp, dim, num_heads, window_size, n)

    out = window_attention_pallas(x, mask, params, num_heads,
                                  windows_per_block=WB)
    out = jax.block_until_ready(out)

    ref = window_attention_reference(x, mask, params, num_heads)
    # bf16 I/O + bf16 MXU operands (f32 accumulation / f32 softmax).
    np.testing.assert_allclose(np.asarray(out).astype(np.float32),
                               np.asarray(ref), rtol=3e-2, atol=3e-2)
    print("KERNEL_OK")
</pallas_src>

<mosaic_0001>
module attributes {stable_mosaic.version = 11 : i64} {
  func.func @kernel(%arg0: i32, %arg1: memref<32x8x128xbf16, #tpu.memory_space<vmem>>, %arg2: memref<128x384xbf16, #tpu.memory_space<vmem>>, %arg3: memref<1x384xf32, #tpu.memory_space<vmem>>, %arg4: memref<16x8x8xbf16, #tpu.memory_space<vmem>>, %arg5: memref<128x128xbf16, #tpu.memory_space<vmem>>, %arg6: memref<1x128xf32, #tpu.memory_space<vmem>>, %arg7: memref<32x8x128xbf16, #tpu.memory_space<vmem>>, %arg8: memref<256x128xbf16, #tpu.memory_space<vmem>>) attributes {dimension_semantics = [#tpu.dimension_semantics<parallel>], iteration_bounds = array<i64: 8>, scalar_prefetch = 0 : i64, scratch_operands = 1 : i64, tpu.core_type = #tpu.core_type<tc>, window_params = [{transform_indices = @transform_0, window_bounds = array<i64: 32, 8, 128>}, {pipeline_mode = #tpu.pipeline_mode<synchronous>, transform_indices = @transform_1, window_bounds = array<i64: 128, 384>}, {pipeline_mode = #tpu.pipeline_mode<synchronous>, transform_indices = @transform_2, window_bounds = array<i64: 1, 384>}, {pipeline_mode = #tpu.pipeline_mode<synchronous>, transform_indices = @transform_3, window_bounds = array<i64: 16, 8, 8>}, {pipeline_mode = #tpu.pipeline_mode<synchronous>, transform_indices = @transform_4, window_bounds = array<i64: 128, 128>}, {pipeline_mode = #tpu.pipeline_mode<synchronous>, transform_indices = @transform_5, window_bounds = array<i64: 1, 128>}, {transform_indices = @transform_6, window_bounds = array<i64: 32, 8, 128>}]} {
    %c0 = arith.constant 0 : index
    %c0_0 = arith.constant 0 : index
    %c0_1 = arith.constant 0 : index
    %0 = vector.load %arg1[%c0, %c0_0, %c0_1] : memref<32x8x128xbf16, #tpu.memory_space<vmem>>, vector<32x8x128xbf16>
    %1 = vector.shape_cast %0 : vector<32x8x128xbf16> to vector<256x128xbf16>
    %c0_2 = arith.constant 0 : index
    %c0_3 = arith.constant 0 : index
    %2 = vector.load %arg2[%c0_2, %c0_3] : memref<128x384xbf16, #tpu.memory_space<vmem>>, vector<128x384xbf16>
    %cst = arith.constant dense<0.000000e+00> : vector<256x384xf32>
    %3 = tpu.matmul %1, %2, %cst {dimension_numbers = #tpu.dot_dimension_numbers<[1], [0], [0], [1], [0, 0, 1, 1], [], []>} : vector<256x128xbf16>, vector<128x384xbf16>, vector<256x384xf32> -> vector<256x384xf32>
    %c0_4 = arith.constant 0 : index
    %c0_5 = arith.constant 0 : index
    %4 = vector.load %arg3[%c0_4, %c0_5] : memref<1x384xf32, #tpu.memory_space<vmem>>, vector<1x384xf32>
    %5 = vector.broadcast %4 : vector<1x384xf32> to vector<256x384xf32>
    %6 = arith.addf %3, %5 : vector<256x384xf32>
    %7 = arith.truncf %6 : vector<256x384xf32> to vector<256x384xbf16>
    %8 = vector.extract_strided_slice %7 {offsets = [0, 0], sizes = [256, 32], strides = [1, 1]} : vector<256x384xbf16> to vector<256x32xbf16>
    %9 = vector.shape_cast %8 : vector<256x32xbf16> to vector<32x1x8x32xbf16>
    %10 = vector.extract_strided_slice %7 {offsets = [0, 32], sizes = [256, 32], strides = [1, 1]} : vector<256x384xbf16> to vector<256x32xbf16>
    %11 = vector.shape_cast %10 : vector<256x32xbf16> to vector<32x1x8x32xbf16>
    %12 = vector.extract_strided_slice %7 {offsets = [0, 64], sizes = [256, 32], strides = [1, 1]} : vector<256x384xbf16> to vector<256x32xbf16>
    %13 = vector.shape_cast %12 : vector<256x32xbf16> to vector<32x1x8x32xbf16>
    %14 = vector.extract_strided_slice %7 {offsets = [0, 96], sizes = [256, 32], strides = [1, 1]} : vector<256x384xbf16> to vector<256x32xbf16>
    %15 = vector.shape_cast %14 : vector<256x32xbf16> to vector<32x1x8x32xbf16>
    %16 = tpu.concatenate %9, %11, %13, %15 in 1 : vector<32x1x8x32xbf16>, vector<32x1x8x32xbf16>, vector<32x1x8x32xbf16>, vector<32x1x8x32xbf16> -> vector<32x4x8x32xbf16>
    %17 = vector.shape_cast %16 : vector<32x4x8x32xbf16> to vector<128x8x32xbf16>
    %18 = vector.extract_strided_slice %7 {offsets = [0, 128], sizes = [256, 32], strides = [1, 1]} : vector<256x384xbf16> to vector<256x32xbf16>
    %19 = vector.shape_cast %18 : vector<256x32xbf16> to vector<32x1x8x32xbf16>
    %20 = vector.extract_strided_slice %7 {offsets = [0, 160], sizes = [256, 32], strides = [1, 1]} : vector<256x384xbf16> to vector<256x32xbf16>
    %21 = vector.shape_cast %20 : vector<256x32xbf16> to vector<32x1x8x32xbf16>
    %22 = vector.extract_strided_slice %7 {offsets = [0, 192], sizes = [256, 32], strides = [1, 1]} : vector<256x384xbf16> to vector<256x32xbf16>
    %23 = vector.shape_cast %22 : vector<256x32xbf16> to vector<32x1x8x32xbf16>
    %24 = vector.extract_strided_slice %7 {offsets = [0, 224], sizes = [256, 32], strides = [1, 1]} : vector<256x384xbf16> to vector<256x32xbf16>
    %25 = vector.shape_cast %24 : vector<256x32xbf16> to vector<32x1x8x32xbf16>
    %26 = tpu.concatenate %19, %21, %23, %25 in 1 : vector<32x1x8x32xbf16>, vector<32x1x8x32xbf16>, vector<32x1x8x32xbf16>, vector<32x1x8x32xbf16> -> vector<32x4x8x32xbf16>
    %27 = vector.shape_cast %26 : vector<32x4x8x32xbf16> to vector<128x8x32xbf16>
    %28 = vector.extract_strided_slice %7 {offsets = [0, 256], sizes = [256, 32], strides = [1, 1]} : vector<256x384xbf16> to vector<256x32xbf16>
    %29 = vector.shape_cast %28 : vector<256x32xbf16> to vector<32x1x8x32xbf16>
    %30 = vector.extract_strided_slice %7 {offsets = [0, 288], sizes = [256, 32], strides = [1, 1]} : vector<256x384xbf16> to vector<256x32xbf16>
    %31 = vector.shape_cast %30 : vector<256x32xbf16> to vector<32x1x8x32xbf16>
    %32 = vector.extract_strided_slice %7 {offsets = [0, 320], sizes = [256, 32], strides = [1, 1]} : vector<256x384xbf16> to vector<256x32xbf16>
    %33 = vector.shape_cast %32 : vector<256x32xbf16> to vector<32x1x8x32xbf16>
    %34 = vector.extract_strided_slice %7 {offsets = [0, 352], sizes = [256, 32], strides = [1, 1]} : vector<256x384xbf16> to vector<256x32xbf16>
    %35 = vector.shape_cast %34 : vector<256x32xbf16> to vector<32x1x8x32xbf16>
    %36 = tpu.concatenate %29, %31, %33, %35 in 1 : vector<32x1x8x32xbf16>, vector<32x1x8x32xbf16>, vector<32x1x8x32xbf16>, vector<32x1x8x32xbf16> -> vector<32x4x8x32xbf16>
    %37 = vector.shape_cast %36 : vector<32x4x8x32xbf16> to vector<128x8x32xbf16>
    "tpu.trace_start"() <{level = 10 : i32, message = "bqd,bkd->bqk"}> : () -> ()
    %cst_6 = arith.constant dense<0.000000e+00> : vector<128x8x8xf32>
    %38 = tpu.matmul %17, %27, %cst_6 {dimension_numbers = #tpu.dot_dimension_numbers<[2], [2], [1], [1], [0, 0, 0, 1, 1, 1], [0], [0]>} : vector<128x8x32xbf16>, vector<128x8x32xbf16>, vector<128x8x8xf32> -> vector<128x8x8xf32>
    "tpu.trace_stop"() : () -> ()
    %39 = vector.shape_cast %38 : vector<128x8x8xf32> to vector<8x16x8x8xf32>
    %c0_7 = arith.constant 0 : index
    %c0_8 = arith.constant 0 : index
    %c0_9 = arith.constant 0 : index
    %40 = vector.load %arg4[%c0_7, %c0_8, %c0_9] : memref<16x8x8xbf16, #tpu.memory_space<vmem>>, vector<16x8x8xbf16>
    %41 = arith.extf %40 : vector<16x8x8xbf16> to vector<16x8x8xf32>
    %42 = vector.shape_cast %41 : vector<16x8x8xf32> to vector<1x16x8x8xf32>
    %43 = vector.broadcast %42 : vector<1x16x8x8xf32> to vector<8x16x8x8xf32>
    %44 = arith.addf %39, %43 : vector<8x16x8x8xf32>
    %45 = vector.shape_cast %44 : vector<8x16x8x8xf32> to vector<128x8x8xf32>
    %cst_10 = arith.constant dense<0xFF800000> : vector<128x8xf32>
    %46 = vector.multi_reduction <maximumf>, %45, %cst_10 [2] : vector<128x8x8xf32> to vector<128x8xf32>
    %47 = vector.shape_cast %46 : vector<128x8xf32> to vector<128x8x1xf32>
    %48 = vector.broadcast %47 : vector<128x8x1xf32> to vector<128x8x8xf32>
    %49 = arith.subf %45, %48 : vector<128x8x8xf32>
    %50 = math.exp %49 : vector<128x8x8xf32>
    %cst_11 = arith.constant dense<0.000000e+00> : vector<128x8xf32>
    %51 = vector.multi_reduction <add>, %50, %cst_11 [2] : vector<128x8x8xf32> to vector<128x8xf32>
    %52 = vector.shape_cast %51 : vector<128x8xf32> to vector<128x8x1xf32>
    %53 = tpu.reciprocal %52 {approx = true} : vector<128x8x1xf32> -> vector<128x8x1xf32>
    %54 = vector.broadcast %53 : vector<128x8x1xf32> to vector<128x8x8xf32>
    %55 = arith.mulf %50, %54 : vector<128x8x8xf32>
    %56 = arith.truncf %55 : vector<128x8x8xf32> to vector<128x8x8xbf16>
    "tpu.trace_start"() <{level = 10 : i32, message = "bqk,bkd->bqd"}> : () -> ()
    %cst_12 = arith.constant dense<0.000000e+00> : vector<128x8x32xf32>
    %57 = tpu.matmul %56, %37, %cst_12 {dimension_numbers = #tpu.dot_dimension_numbers<[2], [1], [1], [2], [0, 0, 0, 1, 1, 2], [0], [0]>} : vector<128x8x8xbf16>, vector<128x8x32xbf16>, vector<128x8x32xf32> -> vector<128x8x32xf32>
    "tpu.trace_stop"() : () -> ()
    %58 = arith.truncf %57 : vector<128x8x32xf32> to vector<128x8x32xbf16>
    %59 = vector.shape_cast %58 : vector<128x8x32xbf16> to vector<32x4x8x32xbf16>
    %60 = vector.extract_strided_slice %59 {offsets = [0, 0, 0, 0], sizes = [32, 1, 8, 32], strides = [1, 1, 1, 1]} : vector<32x4x8x32xbf16> to vector<32x1x8x32xbf16>
    %61 = vector.shape_cast %60 : vector<32x1x8x32xbf16> to vector<32x8x32xbf16>
    %62 = vector.shape_cast %61 : vector<32x8x32xbf16> to vector<256x32xbf16>
    %c0_13 = arith.constant 0 : index
    %c0_14 = arith.constant 0 : index
    %63 = vector.load %arg8[%c0_13, %c0_14] : memref<256x128xbf16, #tpu.memory_space<vmem>>, vector<256x32xbf16>
    tpu.vector_store %arg8[%c0_13, %c0_14], %62 {strides = array<i32>} : memref<256x128xbf16, #tpu.memory_space<vmem>>, vector<256x32xbf16>,
    %64 = vector.extract_strided_slice %59 {offsets = [0, 1, 0, 0], sizes = [32, 1, 8, 32], strides = [1, 1, 1, 1]} : vector<32x4x8x32xbf16> to vector<32x1x8x32xbf16>
    %65 = vector.shape_cast %64 : vector<32x1x8x32xbf16> to vector<32x8x32xbf16>
    %66 = vector.shape_cast %65 : vector<32x8x32xbf16> to vector<256x32xbf16>
    %c0_15 = arith.constant 0 : index
    %c32 = arith.constant 32 : index
    %67 = vector.load %arg8[%c0_15, %c32] : memref<256x128xbf16, #tpu.memory_space<vmem>>, vector<256x32xbf16>
    tpu.vector_store %arg8[%c0_15, %c32], %66 {strides = array<i32>} : memref<256x128xbf16, #tpu.memory_space<vmem>>, vector<256x32xbf16>,
    %68 = vector.extract_strided_slice %59 {offsets = [0, 2, 0, 0], sizes = [32, 1, 8, 32], strides = [1, 1, 1, 1]} : vector<32x4x8x32xbf16> to vector<32x1x8x32xbf16>
    %69 = vector.shape_cast %68 : vector<32x1x8x32xbf16> to vector<32x8x32xbf16>
    %70 = vector.shape_cast %69 : vector<32x8x32xbf16> to vector<256x32xbf16>
    %c0_16 = arith.constant 0 : index
    %c64 = arith.constant 64 : index
    %71 = vector.load %arg8[%c0_16, %c64] : memref<256x128xbf16, #tpu.memory_space<vmem>>, vector<256x32xbf16>
    tpu.vector_store %arg8[%c0_16, %c64], %70 {strides = array<i32>} : memref<256x128xbf16, #tpu.memory_space<vmem>>, vector<256x32xbf16>,
    %72 = vector.extract_strided_slice %59 {offsets = [0, 3, 0, 0], sizes = [32, 1, 8, 32], strides = [1, 1, 1, 1]} : vector<32x4x8x32xbf16> to vector<32x1x8x32xbf16>
    %73 = vector.shape_cast %72 : vector<32x1x8x32xbf16> to vector<32x8x32xbf16>
    %74 = vector.shape_cast %73 : vector<32x8x32xbf16> to vector<256x32xbf16>
    %c0_17 = arith.constant 0 : index
    %c96 = arith.constant 96 : index
    %75 = vector.load %arg8[%c0_17, %c96] : memref<256x128xbf16, #tpu.memory_space<vmem>>, vector<256x32xbf16>
    tpu.vector_store %arg8[%c0_17, %c96], %74 {strides = array<i32>} : memref<256x128xbf16, #tpu.memory_space<vmem>>, vector<256x32xbf16>,
    %c0_18 = arith.constant 0 : index
    %c0_19 = arith.constant 0 : index
    %76 = vector.load %arg8[%c0_18, %c0_19] : memref<256x128xbf16, #tpu.memory_space<vmem>>, vector<256x128xbf16>
    %c0_20 = arith.constant 0 : index
    %c0_21 = arith.constant 0 : index
    %77 = vector.load %arg5[%c0_20, %c0_21] : memref<128x128xbf16, #tpu.memory_space<vmem>>, vector<128x128xbf16>
    %cst_22 = arith.constant dense<0.000000e+00> : vector<256x128xf32>
    %78 = tpu.matmul %76, %77, %cst_22 {dimension_numbers = #tpu.dot_dimension_numbers<[1], [0], [0], [1], [0, 0, 1, 1], [], []>} : vector<256x128xbf16>, vector<128x128xbf16>, vector<256x128xf32> -> vector<256x128xf32>
    %c0_23 = arith.constant 0 : index
    %c0_24 = arith.constant 0 : index
    %79 = vector.load %arg6[%c0_23, %c0_24] : memref<1x128xf32, #tpu.memory_space<vmem>>, vector<1x128xf32>
    %80 = vector.broadcast %79 : vector<1x128xf32> to vector<256x128xf32>
    %81 = arith.addf %78, %80 : vector<256x128xf32>
    %82 = vector.shape_cast %81 : vector<256x128xf32> to vector<32x8x128xf32>
    %83 = arith.truncf %82 : vector<32x8x128xf32> to vector<32x8x128xbf16>
    %c0_25 = arith.constant 0 : index
    %c0_26 = arith.constant 0 : index
    %c0_27 = arith.constant 0 : index
    %84 = vector.load %arg7[%c0_25, %c0_26, %c0_27] : memref<32x8x128xbf16, #tpu.memory_space<vmem>>, vector<32x8x128xbf16>
    tpu.vector_store %arg7[%c0_25, %c0_26, %c0_27], %83 {strides = array<i32>} : memref<32x8x128xbf16, #tpu.memory_space<vmem>>, vector<32x8x128xbf16>,
    return
  }
  func.func @transform_0(%arg0: i32) -> (i32, i32, i32) {
    %c0_i32 = arith.constant 0 : i32
    %c0_i32_0 = arith.constant 0 : i32
    %c0_i32_1 = arith.constant 0 : i32
    return %arg0, %c0_i32, %c0_i32_0 : i32, i32, i32
  }
  func.func @transform_1(%arg0: i32) -> (i32, i32) {
    %c0_i32 = arith.constant 0 : i32
    %c0_i32_0 = arith.constant 0 : i32
    %c0_i32_1 = arith.constant 0 : i32
    return %c0_i32, %c0_i32_0 : i32, i32
  }
  func.func @transform_2(%arg0: i32) -> (i32, i32) {
    %c0_i32 = arith.constant 0 : i32
    %c0_i32_0 = arith.constant 0 : i32
    %c0_i32_1 = arith.constant 0 : i32
    return %c0_i32, %c0_i32_0 : i32, i32
  }
  func.func @transform_3(%arg0: i32) -> (i32, i32, i32) {
    %c0_i32 = arith.constant 0 : i32
    %c0_i32_0 = arith.constant 0 : i32
    %c0_i32_1 = arith.constant 0 : i32
    %c0_i32_2 = arith.constant 0 : i32
    return %c0_i32, %c0_i32_0, %c0_i32_1 : i32, i32, i32
  }
  func.func @transform_4(%arg0: i32) -> (i32, i32) {
    %c0_i32 = arith.constant 0 : i32
    %c0_i32_0 = arith.constant 0 : i32
    %c0_i32_1 = arith.constant 0 : i32
    return %c0_i32, %c0_i32_0 : i32, i32
  }
  func.func @transform_5(%arg0: i32) -> (i32, i32) {
    %c0_i32 = arith.constant 0 : i32
    %c0_i32_0 = arith.constant 0 : i32
    %c0_i32_1 = arith.constant 0 : i32
    return %c0_i32, %c0_i32_0 : i32, i32
  }
  func.func @transform_6(%arg0: i32) -> (i32, i32, i32) {
    %c0_i32 = arith.constant 0 : i32
    %c0_i32_0 = arith.constant 0 : i32
    %c0_i32_1 = arith.constant 0 : i32
    return %arg0, %c0_i32, %c0_i32_0 : i32, i32, i32
  }
}

</mosaic_0001>

<bundles_post_ra>
// kernel: tpu_custom_call.1
= control target key start
LH: loop header
LB: loop body
LE: loop exit
PB: predicated region body
PF: predicated region fallthrough
CT: control target
= control target key end

     0   :  { %11 = vsyncpa [#allocation4], 0  ;;  %s26353_s0 = inlined_call_operand.hbm [shape: bf16[256,8,128], index: 0, kind: input, shape index: {}]   ;;  %s26354_s1 = inlined_call_operand.hbm [shape: bf16[128,384], index: 1, kind: input, shape index: {}]   ;;  %s26355_s2 = inlined_call_operand.vmem [shape: f32[1,384], index: 2, kind: input, shape index: {}]   ;;  %s26356_s3 = inlined_call_operand.vmem [shape: bf16[16,8,8], index: 3, kind: input, shape index: {}]   ;;  %s26357_s4 = inlined_call_operand.vmem [shape: bf16[128,128], index: 4, kind: input, shape index: {}]   ;;  %s26358_s5 = inlined_call_operand.vmem [shape: f32[1,128], index: 5, kind: input, shape index: {}]   ;;  %s26359_s6 = inlined_call_operand.hbm [shape: bf16[256,8,128], index: 6, kind: output, shape index: {}]  }
   0x1   :  { %13 = vsyncpa [#allocation4 + $0x1], 0 }
   0x2   :  { %14 = vsyncpa [#allocation7], 0 }
   0x3   :  { %15 = vsyncpa [#allocation5], 0 }
   0x4   :  { %17 = vsyncpa [#allocation5 + $0x1], 0  ;;  %s20170_s21 = smov 0   ;;  %s20172_s22 = smov 0  }
   0x5   :  { %s20174_s23 = smov 0   ;;  %s20176_s24 = smov 0  }
   0x6 LB: > { %s20191_s25 = sadd.s32 4294967295, %s20119_s24   ;;  %s16370_s26 = sadd.s32 4294967294, %s20119_s24   ;;  %s20119_s24 = sphi %s20176_s24, %s27271_s24   ;;  %s20115_s23 = sphi %s20174_s23, %s27270_s23   ;;  %s20111_s22 = sphi %s20172_s22, %s27269_s22   ;;  %s20107_s21 = sphi %s20170_s21, %s27268_s21  }
   0x7   : > { %p43_p0 = scmp.ne.s32.totalorder %s20111_s22, %s20107_s21  ;;  %p26360_p1 = scmp.eq.s32.totalorder %s20191_s25, 0 }
   0x8   : > { %p178_p3 = scmp.eq.s32.totalorder %s16370_s26, 7  ;;  %p16371_p5 = scmp.ge.s32.totalorder %s20119_s24, 1 }
   0x9   : > { %p20200_p4 = por %p26360_p1, %p43_p0  ;;  %p185_p7 = scmp.lt.s32.totalorder %s20119_s24, 9 }
   0xa   : > { %p20205_p6 = por %p178_p3, %p43_p0  ;;  %s20121_s30 = smov [#allocation6]  }
   0xb   : > { %s26551_s27 = scalar_select %p20200_p4, 1, 0 }
   0xc   : > { %s26552_s28 = scalar_select %p20205_p6, 1, 0 }
   0xd   : > { %p20210_p8 = pnand %p16371_p5, %p185_p7  ;;  %s197_s7 = sshll.u32 %s20121_s30, 4  ;;  %s198_s7 = int_to_ptr.vmem [resolvable:$true] %s197_s7 }
   0xe   : > { %s20223_s9 = sadd.s32 1, %s20119_s24   ;;  %s30_s10 = sadd.s32 1, %s20115_s23 }
   0xf   : > { %s26553_s29 = scalar_select %p20210_p8, 1, 0 }
  0x10   : > { %p19363_p9 = pneg %p20210_p8  ;;  %s27_s11 = ssub.s32 %s20119_s24, %s20223_s9 }
  0x11   : > { %s19991_s14 = scalar_lea.hbm %s26354_s1, 3072 }
  0x12   : > { %p20218_p10 = pnand %p19363_p9, %p26360_p1  ;;  %p19992_p11 = scmp.ne.s32.totalorder %s26354_s1, %s19991_s14 }
  0x13   : > { %p19998_p3 = scmp.lt.u32.totalorder %s19991_s14, %s26354_s1 }
  0x14   : > { %p19993_p12 = pneg %p20218_p10 }
  0x16   : > { %p19994_p13 = pnand %p19993_p12, %p19992_p11 }
  0x18   : > { %p19995_p0 = pneg %p19994_p13 }
  0x1a   : > { %p20000_p5 = pnand %p19998_p3, %p19995_p0 }
  0x1c   : > { %20003 = shalt.err (!%p20000_p5)
}
  0x1d   : > { %s20004_s19 = scalar_lea.vmem %s198_s7, 3072  ;;  %p20012_p2 = scmp.lt.s32.totalorder %s198_s7, %s198_s7 }
  0x1e   : > { %p20005_p7 = scmp.ne.s32.totalorder %s198_s7, %s20004_s19  ;;  %p20013_p6 = scmp.lt.s32.totalorder %s20004_s19, %s20004_s19 }
  0x20   : > { %p20007_p9 = pnand %p20005_p7, %p19993_p12  ;;  %p20014_p4 = por %p20013_p6, %p20012_p2 }
  0x22   : > { %p20008_p1 = pneg %p20007_p9 }
  0x24   : > { %p20015_p8 = pnand %p20014_p4, %p20008_p1 }
  0x26   : > { %20018 = shalt.err (!%p20015_p8)
}
  0x27   : > { %s20122_s20 = smov 192   ;;  %s20123_s26 = smov 12  }
  0x28   : > { %19366 = dma.hbm_to_vmem [thread:$0]  (!%p20218_p10), %s26354_s1, 3072, %s198_s7, [#allocation7], %s20122_s20, %s20122_s20, %s20123_s26  }
  0x29   : > { %p28_p11 = scmp.eq.s32.totalorder %s27_s11, 0  ;;  %p37_p2 = scmp.ne.s32.totalorder %s20115_s23, %s20111_s22 }
  0x2a   : > { %p38_p1 = scmp.eq.s32.totalorder %s20119_s24, 0  ;;  %p19376_p4 = scmp.lt.s32.totalorder %s20119_s24, 8 }
  0x2b   : > { %s20249_s13 = scalar_select %p28_p11, %s20115_s23, %s30_s10  }
  0x2c   : > { %p39_p6 = por %p38_p1, %p37_p2  ;;  %p26555_p8 = scmp.eq.s32.totalorder %s20191_s25, 7 }
  0x2d   : > { %s223_s15 = sand.u32 1, %s20115_s23   ;;  %s16851_s16 = sshll.u32 %s20119_s24, 11 }
  0x2e   : > { %p20253_p12 = por %p26555_p8, %p37_p2  ;;  %s16374_s17 = sshll.u32 %s223_s15, 7 }
  0x2f   : > { %s20262_s19 = scalar_lea.hbm %s26353_s0, %s16851_s16  ;;  %s227_s7 = scalar_lea.vmem [#allocation3], %s16374_s17 }
  0x30   : > { %s234_s10 = sshll.u32 %s227_s7, 4  ;;  %p20264_p10 = pnand %p19376_p4, %p39_p6  ;;  %s20268_s10 = int_to_ptr.vmem [resolvable:$true] %s234_s10 }
  0x31   : > { %s20270_s20 = scalar_lea.sflag [#allocation4], %s223_s15  ;;  %s20019_s26 = scalar_lea.hbm %s20262_s19, 2048 }
  0x32   : > { %p20020_p13 = scmp.ne.s32.totalorder %s20262_s19, %s20019_s26  ;;  %p20021_p0 = pneg %p20264_p10 }
  0x33   : > { %s20024_s16 = scalar_lea.hbm %s26353_s0, 16384  ;;  %p20025_p7 = scmp.lt.u32.totalorder %s20262_s19, %s26353_s0 }
  0x34   : > { %p20022_p3 = pnand %p20021_p0, %p20020_p13  ;;  %p20026_p9 = scmp.lt.u32.totalorder %s20024_s16, %s20019_s26 }
  0x35   : > { %p20028_p2 = scmp.lt.u32.totalorder %s20019_s26, %s20262_s19 }
  0x36   : > { %p20023_p5 = pneg %p20022_p3  ;;  %p20027_p11 = por %p20026_p9, %p20025_p7 }
  0x38   : > { %p20029_p1 = por %p20028_p2, %p20027_p11 }
  0x3a   : > { %p20030_p4 = pnand %p20029_p1, %p20023_p5 }
  0x3c   : > { %20033 = shalt.err (!%p20030_p4)
}
  0x3d   : > { %s20034_s15 = scalar_lea.vmem %s20268_s10, 2048  ;;  %s20124_s18 = smov [#allocation3]  }
  0x3e   : > { %p20035_p6 = scmp.ne.s32.totalorder %s20268_s10, %s20034_s15  ;;  %s20039_s7 = sshll.u32 %s20124_s18, 4  ;;  %s20040_s7 = int_to_ptr.vmem [resolvable:$false] %s20039_s7 }
  0x3f   : > { %s20041_s30 = scalar_lea.vmem %s20040_s7, 4096  ;;  %p20042_p3 = scmp.lt.s32.totalorder %s20268_s10, %s20040_s7 }
  0x40   : > { %p20037_p8 = pnand %p20035_p6, %p20021_p0  ;;  %p20043_p7 = scmp.lt.s32.totalorder %s20041_s30, %s20034_s15 }
  0x42   : > { %p20038_p13 = pneg %p20037_p8  ;;  %p20044_p9 = por %p20043_p7, %p20042_p3 }
  0x44   : > { %p20045_p11 = pnand %p20044_p9, %p20038_p13 }
  0x46   : > { %20048 = shalt.err (!%p20045_p11)
}
  0x47   : > { %s20125_s26 = smov 64   ;;  %s20126_s12 = smov 4  }
  0x48   : > { %19370 = dma.hbm_to_vmem [thread:$0]  (!%p20264_p10), %s20262_s19, 2048, %s20268_s10, %s20270_s20, %s20125_s26, %s20125_s26, %s20126_s12  }
  0x49   : > { %p26558_p0 = scmp.ne.s32.totalorder %s26553_s29, 0 }
  0x4b   : > { %246 = sbr.rel (%p26558_p0) target bundleno = 4575 (0x11df), region = 44 }
  0x52   : > { %s20301_s16 = sand.u32 1, %s20111_s22   ;;  %p26559_p5 = scmp.ne.s32.totalorder %s26551_s27, 0 }
  0x53   : > { %s16378_s17 = sshll.u32 %s20301_s16, 7  ;;  %s249_s8 = scalar_lea.sflag [#allocation4], %s20301_s16 }
  0x54   : > { %s20307_s15 = scalar_lea.vmem [#allocation3], %s16378_s17 }
  0x55   : > { %20094 = dma.done.wait (%p26559_p5), %s249_s8, 2048  }
  0x56   : > { %20096 = vsyncadd (%p26559_p5), %s249_s8, 4294965248  ;;  %p26560_p10 = scmp.eq.s32.totalorder %s20191_s25, 0 }
  0x58   : > { %20098 = dma.done.wait (%p26560_p10), [#allocation7], 3072   ;;  %p26561_p2 = pmov %p26560_p10 }
  0x59   : > { %v20127_v0 = vmov 0   ;;  %v19423_v1 = vld [vmem:[#allocation6 + $0x4] ss:$12 sps:$4 sm:$0xff]   ;;  %v19425_v2 = vld [vmem:[#allocation6] ss:$12 sps:$4 sm:$0xff]   ;;  %v20321_v19 = vld [vmem:[%s20307_s15 + $0x58] sm:$0xff]   ;;  %v354_v42 = vlaneseq }
  0x5a   : > { %20100 = vsyncadd (%p26561_p2), [#allocation7], 4294964224  ;;  %625 = vmatprep.mubr.bf16.mxu0 %v20127_v0  ;;  %735 = vmatprep.mubr.bf16.mxu1 %v20127_v0  ;;  %v19426_v3 = vld [vmem:[#allocation6 + $0x1c] ss:$12 sps:$4 sm:$0xff]   ;;  %v19428_v4 = vld [vmem:[#allocation6 + $0x18] ss:$12 sps:$4 sm:$0xff]  }
  0x5b   : > { %593 = vmatprep.subr.bf16.mxu0 %v19423_v1  ;;  %19339 = vmatprep.subr.bf16.mxu1 %v19423_v1  ;;  %v19429_v5 = vld [vmem:[#allocation6 + $0x34] ss:$12 sps:$4 sm:$0xff]   ;;  %v19431_v6 = vld [vmem:[#allocation6 + $0x30] ss:$12 sps:$4 sm:$0xff]   ;;  %v19432_v7 = vld [vmem:[#allocation6 + $0x4c] ss:$12 sps:$4 sm:$0xff]  }
  0x5c   : > { %594 = vmatpush1.bf16.msra.mxu0 %v19425_v2  ;;  %19347 = vmatpush1.bf16.msra.mxu1 %v19425_v2  ;;  %v19434_v8 = vld [vmem:[#allocation6 + $0x48] ss:$12 sps:$4 sm:$0xff]   ;;  %v19435_v9 = vld [vmem:[#allocation6 + $0x64] ss:$12 sps:$4 sm:$0xff]   ;;  %v19437_v10 = vld [vmem:[#allocation6 + $0x60] ss:$12 sps:$4 sm:$0xff]  }
  0x5d   : > { %595 = vmatprep.subr.bf16.mxu0 %v19426_v3  ;;  %19340 = vmatprep.subr.bf16.mxu1 %v19426_v3  ;;  %v19438_v11 = vld [vmem:[#allocation6 + $0x7c] ss:$12 sps:$4 sm:$0xff]   ;;  %v19440_v12 = vld [vmem:[#allocation6 + $0x78] ss:$12 sps:$4 sm:$0xff]   ;;  %v19441_v13 = vld [vmem:[#allocation6 + $0x94] ss:$12 sps:$4 sm:$0xff]  }
  0x5e   : > { %v19443_v14 = vld [vmem:[#allocation6 + $0x90] ss:$12 sps:$4 sm:$0xff]   ;;  %v19444_v15 = vld [vmem:[#allocation6 + $0xac] ss:$12 sps:$4 sm:$0xff]   ;;  %v19446_v16 = vld [vmem:[#allocation6 + $0xa8] ss:$12 sps:$4 sm:$0xff]  }
  0x5f   : > { %v19453_v17 = vld [vmem:[#allocation6 + $0x8] ss:$12 sps:$4 sm:$0xff]   ;;  %v19447_v18 = vld [vmem:[%s20307_s15] sm:$0xff]   ;;  %v19458_v24 = vld [vmem:[#allocation6 + $0x50] ss:$12 sps:$4 sm:$0xff]   ;;  %v26363_v41 = vmov 0.0  }
  0x60   : > { %596 = vmatpush1.bf16.msra.mxu0 %v19428_v4  ;;  %19348 = vmatpush1.bf16.msra.mxu1 %v19428_v4  ;;  %v19454_v20 = vld [vmem:[#allocation6 + $0x20] ss:$12 sps:$4 sm:$0xff]   ;;  %v19456_v21 = vld [vmem:[#allocation6 + $0x38] ss:$12 sps:$4 sm:$0xff]   ;;  %v19460_v25 = vld [vmem:[#allocation6 + $0x68] ss:$12 sps:$4 sm:$0xff]  }
  0x61   : > { %597 = vmatprep.subr.bf16.mxu0 %v19429_v5  ;;  %19341 = vmatprep.subr.bf16.mxu1 %v19429_v5  ;;  %v19449_v22 = vld [vmem:[%s20307_s15 + $0x8] sm:$0xff]   ;;  %v20328_v23 = vld [vmem:[%s20307_s15 + $0x60] sm:$0xff]   ;;  %v19451_v26 = vld [vmem:[%s20307_s15 + $0x10] sm:$0xff]   ;;  %vm20129_vm0 = vmmov 0   ;;  %v20363_v43 = vshrl.u32 %v354_v42, 7  ;;  %vm1811_vm1 = vcmask 261120  }
  0x62   : > { %v19455_v27 = vld [vmem:[%s20307_s15 + $0x68] sm:$0xff]   ;;  %v19463_v29 = vld [vmem:[#allocation6 + $0x98] ss:$12 sps:$4 sm:$0xff]   ;;  %v19459_v31 = vld [vmem:[%s20307_s15 + $0x70] sm:$0xff]   ;;  %s20130_s19 = smov 64   ;;  %s20131_s10 = smov 96  }
  0x63   : > { %v19461_v28 = vld [vmem:[#allocation6 + $0x80] ss:$12 sps:$4 sm:$0xff]   ;;  %v19452_v30 = vld [vmem:[%s20307_s15 + $0x18] sm:$0xff]   ;;  %v19466_v36 = vld [vmem:[%s20307_s15 + $0x30] sm:$0xff]   ;;  %v356_v44 = vsub.s32 0, %v20363_v43  ;;  %v360_v46 = vsub.s32 1, %v20363_v43 }
  0x64   : > { %598 = vmatpush1.bf16.msra.mxu0 %v19431_v6  ;;  %19349 = vmatpush1.bf16.msra.mxu1 %v19431_v6  ;;  %v19464_v32 = vld [vmem:[#allocation6 + $0xb0] ss:$12 sps:$4 sm:$0xff]   ;;  %v19457_v33 = vld [vmem:[%s20307_s15 + $0x20] sm:$0xff]   ;;  %v19465_v35 = vld [vmem:[%s20307_s15 + $0x28] sm:$0xff]   ;;  %s20132_s11 = smov 32   ;;  %vm7860_vm2 = vcmask 64512  }
  0x65   : > { %599 = vmatprep.subr.bf16.mxu0 %v19432_v7  ;;  %19342 = vmatprep.subr.bf16.mxu1 %v19432_v7  ;;  %v19462_v34 = vld [vmem:[%s20307_s15 + $0x78] sm:$0xff]   ;;  %v19468_v38 = vld [vmem:[%s20307_s15 + $0x40] sm:$0xff]   ;;  %v19469_v39 = vld [vmem:[%s20307_s15 + $0x48] sm:$0xff]   ;;  %vm9400_vm3 = vcmask 1043456   ;;  %vm15654_vm4 = vcmask 523520   ;;  %vm15799_vm5 = vcmask 785920  }
  0x66   : > { %v19467_v37 = vld [vmem:[%s20307_s15 + $0x38] sm:$0xff]   ;;  %v19470_v40 = vld [vmem:[%s20307_s15 + $0x50] sm:$0xff]   ;;  %v20369_v45 = vld [vmem:[%s26355_s2] sm:$0x7]  ;;  %vm15944_vm6 = vcmask 1048320   ;;  %s20133_s27 = smov [#allocation8]  }
  0x67   : > { %v20373_v47 = vrot.slane %v20369_v45, %v356_v44  ;;  %v20376_v48 = vrot.slane %v20369_v45, %v360_v46  ;;  %s20053_s29 = sshll.u32 %s20133_s27, 4  ;;  %s20054_s29 = int_to_ptr.vmem [resolvable:$false] %s20053_s29 }
  0x68   : > { %600 = vmatpush1.bf16.msra.mxu0 %v19434_v8  ;;  %19350 = vmatpush1.bf16.msra.mxu1 %v19434_v8  ;;  %s20055_s20 = scalar_lea.vmem %s20054_s29, 4096 }
  0x69   : > { %601 = vmatprep.subr.bf16.mxu0 %v19435_v9  ;;  %19343 = vmatprep.subr.bf16.mxu1 %v19435_v9 }
  0x6c   : > { %602 = vmatpush1.bf16.msra.mxu0 %v19437_v10  ;;  %19351 = vmatpush1.bf16.msra.mxu1 %v19437_v10 }
  0x6d   : > { %603 = vmatprep.subr.bf16.mxu0 %v19438_v11  ;;  %19344 = vmatprep.subr.bf16.mxu1 %v19438_v11 }
  0x70   : > { %604 = vmatpush1.bf16.msra.mxu0 %v19440_v12  ;;  %19352 = vmatpush1.bf16.msra.mxu1 %v19440_v12 }
  0x71   : > { %605 = vmatprep.subr.bf16.mxu0 %v19441_v13  ;;  %19345 = vmatprep.subr.bf16.mxu1 %v19441_v13 }
  0x74   : > { %606 = vmatpush1.bf16.msra.mxu0 %v19443_v14  ;;  %19353 = vmatpush1.bf16.msra.mxu1 %v19443_v14 }
  0x75   : > { %607 = vmatprep.subr.bf16.mxu0 %v19444_v15  ;;  %19346 = vmatprep.subr.bf16.mxu1 %v19444_v15 }
  0x78   : > { %608 = vmatpush1.bf16.msra.mxu0 %v19446_v16  ;;  %19354 = vmatpush1.bf16.msra.mxu1 %v19446_v16 }
  0x79   : > { %17707 = vmatprep.subr.bf16.mxu1 %v19453_v17  ;;  %17803 = vmatprep.subr.bf16.mxu0 %v26363_v41 }
  0x7b   : > { %626 = vmatmul.mubr.bf16.vlgmr.msra.gmra.mrb[0].mxu0 %v19447_v18  ;;  %736 = vmatmul.mubr.bf16.vlgmr.msra.gmra.mrb[0].mxu1 %v20321_v19 }
  0x7c   : > { %635 = vmatprep.mubr.bf16.mxu0 %v20127_v0  ;;  %745 = vmatprep.mubr.bf16.mxu1 %v20127_v0 }
  0x7d   : > { %17708 = vmatpush3.bf16.msra.mxu1 %v19453_v17 }
  0x7e   : > { %17709 = vmatprep.subr.bf16.mxu1 %v19454_v20 }
  0x81   : > { %17710 = vmatpush3.bf16.msra.mxu1 %v19454_v20 }
  0x82   : > { %17711 = vmatprep.subr.bf16.mxu1 %v19456_v21 }
  0x83   : > { %636 = vmatmul.mubr.bf16.gmra.mrb[4].mxu0 %v19449_v22  ;;  %746 = vmatmul.mubr.bf16.gmra.mrb[4].mxu1 %v20328_v23 }
  0x84   : > { %645 = vmatprep.mubr.bf16.mxu0 %v20127_v0  ;;  %755 = vmatprep.mubr.bf16.mxu1 %v20127_v0 }
  0x85   : > { %17712 = vmatpush3.bf16.msra.mxu1 %v19456_v21 }
  0x86   : > { %17713 = vmatprep.subr.bf16.mxu1 %v19458_v24 }
  0x89   : > { %17714 = vmatpush3.bf16.msra.mxu1 %v19458_v24 }
  0x8a   : > { %17715 = vmatprep.subr.bf16.mxu1 %v19460_v25 }
  0x8b   : > { %646 = vmatmul.mubr.bf16.gmra.mrb[8].mxu0 %v19451_v26  ;;  %756 = vmatmul.mubr.bf16.gmra.mrb[8].mxu1 %v19455_v27 }
  0x8c   : > { %655 = vmatprep.mubr.bf16.mxu0 %v20127_v0  ;;  %765 = vmatprep.mubr.bf16.mxu1 %v20127_v0 }
  0x8d   : > { %17716 = vmatpush3.bf16.msra.mxu1 %v19460_v25 }
  0x8e   : > { %17717 = vmatprep.subr.bf16.mxu1 %v19461_v28 }
  0x91   : > { %17718 = vmatpush3.bf16.msra.mxu1 %v19461_v28 }
  0x92   : > { %17719 = vmatprep.subr.bf16.mxu1 %v19463_v29 }
  0x93   : > { %656 = vmatmul.mubr.bf16.gmra.mrb[12].mxu0 %v19452_v30  ;;  %766 = vmatmul.mubr.bf16.gmra.mrb[12].mxu1 %v19459_v31 }
  0x94   : > { %665 = vmatprep.mubr.bf16.mxu0 %v20127_v0  ;;  %775 = vmatprep.mubr.bf16.mxu1 %v20127_v0 }
  0x95   : > { %17720 = vmatpush3.bf16.msra.mxu1 %v19463_v29 }
  0x96   : > { %17721 = vmatprep.subr.bf16.mxu1 %v19464_v32 }
  0x99   : > { %17722 = vmatpush3.bf16.msra.mxu1 %v19464_v32 }
  0x9a   : > { %17755 = vmatprep.subr.bf16.mxu1 %v26363_v41 }
  0x9b   : > { %666 = vmatmul.mubr.bf16.gmra.mrb[16].mxu0 %v19457_v33  ;;  %776 = vmatmul.mubr.bf16.gmra.mrb[16].mxu1 %v19462_v34 }
  0x9c   : > { %17723 = vmatprep.mubr.bf16.mxu1 %v19447_v18  ;;  %675 = vmatprep.mubr.bf16.mxu0 %v20127_v0 }
  0xa3   : > { %17724 = vmatmul.mubr.bf16.vlgmr.msra.gmra.mrb[20].mxu1 %v19449_v22  ;;  %676 = vmatmul.mubr.bf16.gmra.mrb[20].mxu0 %v19465_v35 }
  0xa4   : > { %17727 = vmatprep.mubr.bf16.mxu1 %v19451_v26  ;;  %685 = vmatprep.mubr.bf16.mxu0 %v20127_v0 }
  0xab   : > { %17728 = vmatmul.mubr.bf16.gmra.mrb[24].mxu1 %v19452_v30  ;;  %686 = vmatmul.mubr.bf16.gmra.mrb[24].mxu0 %v19466_v36 }
  0xac   : > { %17731 = vmatprep.mubr.bf16.mxu1 %v19457_v33  ;;  %695 = vmatprep.mubr.bf16.mxu0 %v20127_v0 }
  0xb3   : > { %17732 = vmatmul.mubr.bf16.gmra.mrb[28].mxu1 %v19465_v35  ;;  %696 = vmatmul.mubr.bf16.gmra.mrb[28].mxu0 %v19467_v37 }
  0xb4   : > { %17735 = vmatprep.mubr.bf16.mxu1 %v19466_v36  ;;  %705 = vmatprep.mubr.bf16.mxu0 %v20127_v0 }
  0xbb   : > { %17736 = vmatmul.mubr.bf16.gmra.mrb[32].mxu1 %v19467_v37  ;;  %706 = vmatmul.mubr.bf16.gmra.mrb[32].mxu0 %v19468_v38 }
  0xbc   : > { %17739 = vmatprep.mubr.bf16.mxu1 %v19468_v38  ;;  %715 = vmatprep.mubr.bf16.mxu0 %v20127_v0 }
  0xc3   : > { %17740 = vmatmul.mubr.bf16.gmra.mrb[36].mxu1 %v19469_v39  ;;  %716 = vmatmul.mubr.bf16.gmra.mrb[36].mxu0 %v19469_v39 }
  0xc4   : > { %17743 = vmatprep.mubr.bf16.mxu1 %v19470_v40  ;;  %725 = vmatprep.mubr.bf16.mxu0 %v20127_v0 }
  0xcb   : > { %17744 = vmatmul.mubr.bf16.gmra.mrb[40].mxu1 %v20321_v19  ;;  %726 = vmatmul.mubr.bf16.gmra.mrb[40].mxu0 %v19470_v40 }
  0xcc   : > { %17747 = vmatprep.mubr.bf16.mxu1 %v20328_v23  ;;  %17805 = vmatprep.mubr.msk.bf16.mxu0 %vm20129_vm0, %v26363_v41 }
  0xd3   : > { %17748 = vmatmul.mubr.bf16.gmra.mrb[44].mxu1 %v19455_v27 }
  0xd4   : > { %17751 = vmatprep.mubr.bf16.mxu1 %v19459_v31 }
  0xdb   : > { %17752 = vmatmul.mubr.bf16.gmra.mrb[48].mxu1 %v19462_v34 }
  0xdc   : > { %17757 = vmatprep.mubr.msk.bf16.mxu1 %vm20129_vm0, %v26363_v41 }
 0x14e   : > { %v627_v49 = vpop.f32.mrb[0].mxu0  ;;  %v737_v50 = vpop.f32.mrb[0].mxu1 }
 0x14f   : > { %v628_v51 = vadd.f32 %v627_v49, %v20373_v47  ;;  %v629_v52 = vpop.f32.mrb[1].mxu0  ;;  %v738_v53 = vadd.f32 %v737_v50, %v20373_v47  ;;  %v739_v54 = vpop.f32.mrb[1].mxu1 }
 0x150   : > { %v630_v55 = vadd.f32 %v629_v52, %v20376_v48  ;;  %v631_v56 = vpop.f32.mrb[2].mxu0  ;;  %v741_v57 = vpop.f32.mrb[2].mxu1  ;;  %v740_v12 = vadd.f32 %v739_v54, %v20376_v48 }
 0x151   : > { %v16852_v58 = vpack.c.bf16 %v628_v51, %v628_v51  ;;  %v633_v59 = vpop.f32.mrb[3].mxu0  ;;  %v20381_v60 = vpop.f32.mrb[3].mxu1  ;;  %v20383_v62 = vpack.c.bf16 %v738_v53, %v738_v53  ;;  %v632_v19 = vadd.f32 %v631_v56, %v20373_v47  ;;  %v742_v20 = vadd.f32 %v741_v57, %v20373_v47 }
 0x152   : > { %v16884_v61 = vpack.c.bf16 %v630_v55, %v630_v55  ;;  %v20427_v17 = vpack.c.bf16 %v740_v12, %v740_v12  ;;  %v634_v27 = vadd.f32 %v633_v59, %v20376_v48  ;;  %v744_v33 = vadd.f32 %v20381_v60, %v20376_v48 }
 0x153   : > { %26562 = vst [vmem:[#allocation12_spill] sm:$0xff] %v20383_v62  ;;  %1139 = vrot.lane.b32.xlu1 %v16852_v58, %s20130_s19  ;;  %1075 = vrot.lane.b32.xlu0 %v16852_v58, %s20131_s10  ;;  %v20449_v24 = vpack.c.bf16 %v632_v19, %v632_v19  ;;  %v20451_v25 = vpack.c.bf16 %v742_v20, %v742_v20 }
 0x154   : > { %v1816_v63 = vsel %vm1811_vm1, %v16884_v61, 0  ;;  %v20470_v31 = vpack.c.bf16 %v634_v27, %v634_v27  ;;  %v20488_v36 = vpack.c.bf16 %v744_v33, %v744_v33 }
 0x155   : > { %17756 = vmatpush3.bf16.xpose.msra.mxu1 %v1816_v63  ;;  %26563 = vst [vmem:[#allocation13_spill] sm:$0xff] %v20451_v25 }
 0x156   : > { %v637_v0 = vpop.f32.mrb[4].mxu0  ;;  %v20388_v1 = vpop.f32.mrb[4].mxu1  ;;  %17761 = vmatprep.subr.bf16.mxu1 %v26363_v41  ;;  %26564 = vst [vmem:[#allocation14_spill] sm:$0xff] %v20488_v36 }
 0x157   : > { %1203 = vrot.lane.b32.xlu1 %v16852_v58, %s20132_s11  ;;  %1119 = vrot.lane.b32.xlu0 %v20383_v62, %s20131_s10  ;;  %v639_v2 = vpop.f32.mrb[5].mxu0  ;;  %v20394_v3 = vpop.f32.mrb[5].mxu1  ;;  %v638_v10 = vadd.f32 %v637_v0, %v20373_v47  ;;  %v748_v38 = vadd.f32 %v20388_v1, %v20373_v47 }
 0x158   : > { %v640_v4 = vadd.f32 %v639_v2, %v20376_v48  ;;  %v20397_v5 = vpop.f32.mrb[6].mxu0  ;;  %v20399_v6 = vpop.f32.mrb[6].mxu1  ;;  %v750_v57 = vadd.f32 %v20394_v3, %v20376_v48 }
 0x159   : > { %v20401_v7 = vpop.f32.mrb[7].mxu0  ;;  %v20403_v8 = vpop.f32.mrb[7].mxu1  ;;  %v16854_v15 = vpack.c.bf16 %v638_v10, %v638_v10  ;;  %v20504_v40 = vpack.c.bf16 %v748_v38, %v748_v38  ;;  %v642_v19 = vadd.f32 %v20397_v5, %v20373_v47 }
 0x15a   : > { %v20405_v9 = vpack.c.bf16 %v640_v4, %v640_v4  ;;  %v20555_v2 = vpack.c.bf16 %v750_v57, %v750_v57 }
 0x15b   : > { %1247 = vrot.lane.b32.xlu1 %v20383_v62, %s20132_s11  ;;  %1183 = vrot.lane.b32.xlu0 %v20383_v62, %s20130_s19  ;;  %26565 = vst [vmem:[#allocation15_spill] sm:$0xff] %v20504_v40 }
 0x15c   : > { %17758 = vmatmul.mubr.msk.bf16.vlgmr.msra.gmra.mrb[52].mxu1 %vm1811_vm1, %v16852_v58  ;;  %v2184_v11 = vsel %vm1811_vm1, %v20405_v9, 0  ;;  %26573 = vst [vmem:[#allocation23_spill] sm:$0xff] %v20555_v2 }
 0x15d   : > { %17804 = vmatpush3.bf16.xpose.msra.mxu0 %v2184_v11  ;;  %17763 = vmatprep.mubr.msk.bf16.mxu1 %vm20129_vm0, %v26363_v41 }
 0x15e   : > { %v20418_v13 = vpop.f32.mrb[8].mxu0  ;;  %17815 = vmatprep.subr.bf16.mxu0 %v26363_v41  ;;  %v20508_v42 = vpop.f32.mrb[8].mxu1 }
 0x15f   : > { %1411 = vrot.lane.b32.xlu1 %v16884_v61, %s20130_s19  ;;  %1347 = vrot.lane.b32.xlu0 %v16884_v61, %s20131_s10  ;;  %v20423_v14 = vpop.f32.mrb[9].mxu0  ;;  %v20510_v44 = vpop.f32.mrb[9].mxu1 }
 0x160   : > { %v20425_v16 = vpop.f32.mrb[10].mxu0  ;;  %v20512_v46 = vpop.f32.mrb[10].mxu1 }
 0x161   : > { %v20429_v18 = vpop.f32.mrb[11].mxu0  ;;  %v20514_v49 = vpop.f32.mrb[11].mxu1 }
 0x163   : > { %1455 = vrot.lane.b32.xlu1 %v20427_v17, %s20130_s19  ;;  %1475 = vrot.lane.b32.xlu0 %v16884_v61, %s20132_s11  ;;  %v364_v61 = vsub.s32 2, %v20363_v43 }
 0x164   : > { %17806 = vmatmul.mubr.msk.bf16.vlgmr.msra.gmra.mrb[44].mxu0 %vm1811_vm1, %v16854_v15 }
 0x165   : > { %17817 = vmatprep.mubr.msk.bf16.mxu0 %vm20129_vm0, %v26363_v41  ;;  %v20551_v0 = vrot.slane %v20369_v45, %v364_v61 }
 0x166   : > { %v20439_v21 = vpop.f32.mrb[12].mxu0  ;;  %v20519_v50 = vpop.f32.mrb[12].mxu1 }
 0x167   : > { %1519 = vrot.lane.b32.xlu1 %v20427_v17, %s20132_s11  ;;  %1391 = vrot.lane.b32.xlu0 %v20427_v17, %s20131_s10  ;;  %v20445_v22 = vpop.f32.mrb[13].mxu0  ;;  %v20521_v51 = vpop.f32.mrb[13].mxu1  ;;  %26571 = vst [vmem:[#allocation21_spill] sm:$0xff] %v20551_v0 }
 0x168   : > { %v20447_v23 = vpop.f32.mrb[14].mxu0  ;;  %v20523_v52 = vpop.f32.mrb[14].mxu1 }
 0x169   : > { %v20453_v26 = vpop.f32.mrb[15].mxu0  ;;  %26566 = vst [vmem:[#allocation16_spill] sm:$0xff] %v20523_v52  ;;  %v20527_v54 = vpop.f32.mrb[15].mxu1 }
 0x16b   : > { %1077 = vrot.lane.b32.xlu1 %v20449_v24, %s20131_s10  ;;  %1121 = vrot.lane.b32.xlu0 %v20451_v25, %s20131_s10 }
 0x16e   : > { %v20460_v28 = vpop.f32.mrb[16].mxu0  ;;  %v20533_v55 = vpop.f32.mrb[16].mxu1 }
 0x16f   : > { %1141 = vrot.lane.b32.xlu1 %v20449_v24, %s20130_s19  ;;  %1185 = vrot.lane.b32.xlu0 %v20451_v25, %s20130_s19  ;;  %v20466_v29 = vpop.f32.mrb[17].mxu0  ;;  %26567 = vst [vmem:[#allocation17_spill] sm:$0xff] %v20533_v55  ;;  %v20535_v56 = vpop.f32.mrb[17].mxu1 }
 0x170   : > { %v20468_v30 = vpop.f32.mrb[18].mxu0  ;;  %26568 = vst [vmem:[#allocation18_spill] sm:$0xff] %v20535_v56  ;;  %v20539_v58 = vpop.f32.mrb[18].mxu1 }
 0x171   : > { %v20472_v32 = vpop.f32.mrb[19].mxu0  ;;  %26569 = vst [vmem:[#allocation19_spill] sm:$0xff] %v20539_v58  ;;  %v20543_v60 = vpop.f32.mrb[19].mxu1 }
 0x172   : > { %26570 = vst [vmem:[#allocation20_spill] sm:$0xff] %v20543_v60 }
 0x173   : > { %1205 = vrot.lane.b32.xlu1 %v20449_v24, %s20132_s11  ;;  %1349 = vrot.lane.b32.xlu0 %v20470_v31, %s20131_s10 }
 0x176   : > { %v20480_v34 = vpop.f32.mrb[20].mxu0  ;;  %v17725_v63 = vpop.f32.mrb[20].mxu1 }
 0x177   : > { %1249 = vrot.lane.b32.xlu1 %v20451_v25, %s20132_s11  ;;  %1413 = vrot.lane.b32.xlu0 %v20470_v31, %s20130_s19  ;;  %v20486_v35 = vpop.f32.mrb[21].mxu0  ;;  %v20553_v1 = vpop.f32.mrb[21].mxu1  ;;  %v20558_v4 = vadd.f32 %v17725_v63, %v20551_v0 }
 0x178   : > { %v20494_v37 = vpop.f32.mrb[22].mxu0  ;;  %26572 = vst [vmem:[#allocation22_spill] sm:$0xff] %v20553_v1  ;;  %v17726_v3 = vpop.f32.mrb[22].mxu1  ;;  %v664_v1 = vadd.f32 %v20453_v26, %v20376_v48 }
 0x179   : > { %v20502_v39 = vpop.f32.mrb[23].mxu0  ;;  %26574 = vst [vmem:[#allocation24_spill] sm:$0xff] %v20558_v4  ;;  %v20561_v43 = vadd.f32 %v17726_v3, %v20551_v0  ;;  %v823_v10 = vpop.f32.mrb[23].mxu1  ;;  %v20593_v3 = vpack.c.bf16 %v642_v19, %v642_v19 }
 0x17a   : > { %v20568_v45 = vadd.f32 %v823_v10, %v20551_v0  ;;  %v752_v10 = vadd.f32 %v20399_v6, %v20373_v47 }
 0x17b   : > { %1457 = vrot.lane.b32.xlu1 %v20488_v36, %s20130_s19  ;;  %1477 = vrot.lane.b32.xlu0 %v20470_v31, %s20132_s11  ;;  %26575 = vst [vmem:[#allocation25_spill] sm:$0xff] %v20561_v43 }
 0x17c   : > { %26576 = vst [vmem:[#allocation26_spill] sm:$0xff] %v20568_v45 }
 0x17e   : > { %v20525_v53 = vpop.f32.mrb[24].mxu0  ;;  %v17729_v11 = vpop.f32.mrb[24].mxu1 }
 0x17f   : > { %1521 = vrot.lane.b32.xlu1 %v20488_v36, %s20132_s11  ;;  %1393 = vrot.lane.b32.xlu0 %v20488_v36, %s20131_s10  ;;  %v20541_v59 = vpop.f32.mrb[25].mxu0  ;;  %v20571_v12 = vadd.f32 %v17729_v11, %v20551_v0 }
 0x180   : > { %v20581_v38 = vpop.f32.mrb[26].mxu0 }
 0x181   : > { %26577 = vst [vmem:[#allocation27_spill] sm:$0xff] %v20571_v12  ;;  %v20603_v41 = vpop.f32.mrb[27].mxu0 }
 0x183   : > { %1207 = vrot.lane.b32.xlu1 %v16854_v15, %s20132_s11  ;;  %1079 = vrot.lane.b32.xlu0 %v16854_v15, %s20131_s10 }
 0x187   : > { %1251 = vrot.lane.b32.xlu1 %v20504_v40, %s20132_s11  ;;  %1143 = vrot.lane.b32.xlu0 %v16854_v15, %s20130_s19  ;;  %v836_v15 = vpop.f32.mrb[25].mxu1 }
 0x188   : > { %v20576_v20 = vadd.f32 %v836_v15, %v20551_v0  ;;  %v17730_v27 = vpop.f32.mrb[26].mxu1 }
 0x189   : > { %v20579_v33 = vadd.f32 %v17730_v27, %v20551_v0 }
 0x18a   : > { %26578 = vst [vmem:[#allocation28_spill] sm:$0xff] %v20576_v20 }
 0x18b   : > { %1415 = vrot.lane.b32.xlu1 %v20405_v9, %s20130_s19  ;;  %1123 = vrot.lane.b32.xlu0 %v20504_v40, %s20131_s10  ;;  %26579 = vst [vmem:[#allocation29_spill] sm:$0xff] %v20579_v33 }
 0x18f   : > { %1479 = vrot.lane.b32.xlu1 %v20405_v9, %s20132_s11  ;;  %1187 = vrot.lane.b32.xlu0 %v20504_v40, %s20130_s19 }
 0x193   : > { %1459 = vrot.lane.b32.xlu1 %v20555_v2, %s20130_s19  ;;  %1351 = vrot.lane.b32.xlu0 %v20405_v9, %s20131_s10  ;;  %v839_v9 = vpop.f32.mrb[27].mxu1 }
 0x194   : > { %v20588_v57 = vadd.f32 %v839_v9, %v20551_v0  ;;  %v17733_v5 = vpop.f32.mrb[28].mxu1 }
 0x195   : > { %v20591_v61 = vadd.f32 %v17733_v5, %v20551_v0  ;;  %v852_v63 = vpop.f32.mrb[29].mxu1 }
 0x196   : > { %26580 = vst [vmem:[#allocation30_spill] sm:$0xff] %v20588_v57  ;;  %v20598_v11 = vadd.f32 %v852_v63, %v20551_v0  ;;  %v17734_v15 = vpop.f32.mrb[30].mxu1 }
 0x197   : > { %1523 = vrot.lane.b32.xlu1 %v20555_v2, %s20132_s11  ;;  %1395 = vrot.lane.b32.xlu0 %v20555_v2, %s20131_s10  ;;  %26581 = vst [vmem:[#allocation31_spill] sm:$0xff] %v20591_v61  ;;  %v20601_v27 = vadd.f32 %v17734_v15, %v20551_v0  ;;  %v855_v9 = vpop.f32.mrb[31].mxu1  ;;  %v644_v15 = vadd.f32 %v20401_v7, %v20376_v48  ;;  %v26609_v2 = vmov 0.0  }
 0x198   : > { %26582 = vst [vmem:[#allocation32_spill] sm:$0xff] %v20598_v11  ;;  %v20610_v19 = vadd.f32 %v855_v9, %v20551_v0  ;;  %v17737_v6 = vpop.f32.mrb[32].mxu1 }
 0x199   : > { %26583 = vst [vmem:[#allocation33_spill] sm:$0xff] %v20601_v27  ;;  %v20613_v5 = vadd.f32 %v17737_v6, %v20551_v0  ;;  %v868_v63 = vpop.f32.mrb[33].mxu1  ;;  %v20617_v27 = vpack.c.bf16 %v752_v10, %v752_v10 }
 0x19a   : > { %26584 = vst [vmem:[#allocation34_spill] sm:$0xff] %v20610_v19  ;;  %v20620_v61 = vadd.f32 %v868_v63, %v20551_v0  ;;  %v17738_v11 = vpop.f32.mrb[34].mxu1  ;;  %v20635_v63 = vpack.c.bf16 %v644_v15, %v644_v15 }
 0x19b   : > { %1209 = vrot.lane.b32.xlu1 %v20593_v3, %s20132_s11  ;;  %1081 = vrot.lane.b32.xlu0 %v20593_v3, %s20131_s10  ;;  %26585 = vst [vmem:[#allocation35_spill] sm:$0xff] %v20613_v5  ;;  %v20623_v33 = vadd.f32 %v17738_v11, %v20551_v0  ;;  %v871_v12 = vpop.f32.mrb[35].mxu1  ;;  %v754_v11 = vadd.f32 %v20403_v8, %v20376_v48 }
 0x19c   : > { %26586 = vst [vmem:[#allocation36_spill] sm:$0xff] %v20620_v61  ;;  %v20630_v9 = vadd.f32 %v871_v12, %v20551_v0  ;;  %v17741_v7 = vpop.f32.mrb[36].mxu1  ;;  %v20642_v61 = vpop.f32.mrb[28].mxu0 }
 0x19d   : > { %26587 = vst [vmem:[#allocation37_spill] sm:$0xff] %v20623_v33  ;;  %v20633_v10 = vadd.f32 %v17741_v7, %v20551_v0  ;;  %v884_v6 = vpop.f32.mrb[37].mxu1 }
 0x19e   : > { %26588 = vst [vmem:[#allocation38_spill] sm:$0xff] %v20630_v9  ;;  %v20640_v33 = vadd.f32 %v884_v6, %v20551_v0  ;;  %v17742_v5 = vpop.f32.mrb[38].mxu1  ;;  %v20665_v9 = vpop.f32.mrb[29].mxu0 }
 0x19f   : > { %1125 = vrot.lane.b32.xlu1 %v20617_v27, %s20131_s10  ;;  %1145 = vrot.lane.b32.xlu0 %v20593_v3, %s20130_s19  ;;  %26589 = vst [vmem:[#allocation39_spill] sm:$0xff] %v20633_v10  ;;  %v20645_v19 = vadd.f32 %v17742_v5, %v20551_v0  ;;  %v887_v12 = vpop.f32.mrb[39].mxu1  ;;  %v20657_v10 = vpack.c.bf16 %v754_v11, %v754_v11 }
 0x1a0   : > { %26590 = vst [vmem:[#allocation40_spill] sm:$0xff] %v20640_v33  ;;  %v20652_v15 = vadd.f32 %v887_v12, %v20551_v0  ;;  %v17745_v8 = vpop.f32.mrb[40].mxu1  ;;  %v648_v11 = vadd.f32 %v20418_v13, %v20373_v47  ;;  %v650_v13 = vadd.f32 %v20423_v14, %v20376_v48 }
 0x1a1   : > { %26591 = vst [vmem:[#allocation41_spill] sm:$0xff] %v20645_v19  ;;  %v20655_v7 = vadd.f32 %v17745_v8, %v20551_v0  ;;  %v900_v6 = vpop.f32.mrb[41].mxu1  ;;  %26594 = vst [vmem:[#allocation44_spill] sm:$0xff] %v20657_v10 }
 0x1a2   : > { %26592 = vst [vmem:[#allocation42_spill] sm:$0xff] %v20652_v15  ;;  %v20660_v5 = vadd.f32 %v900_v6, %v20551_v0  ;;  %v17746_v19 = vpop.f32.mrb[42].mxu1  ;;  %v20685_v20 = vpack.c.bf16 %v648_v11, %v648_v11 }
 0x1a3   : > { %1417 = vrot.lane.b32.xlu1 %v20635_v63, %s20130_s19  ;;  %1353 = vrot.lane.b32.xlu0 %v20635_v63, %s20131_s10  ;;  %26593 = vst [vmem:[#allocation43_spill] sm:$0xff] %v20655_v7  ;;  %v20663_v33 = vadd.f32 %v17746_v19, %v20551_v0  ;;  %v903_v57 = vpop.f32.mrb[43].mxu1 }
 0x1a4   : > { %26595 = vst [vmem:[#allocation45_spill] sm:$0xff] %v20660_v5  ;;  %v20674_v12 = vadd.f32 %v903_v57, %v20551_v0 }
 0x1a5   : > { %26596 = vst [vmem:[#allocation46_spill] sm:$0xff] %v20663_v33 }
 0x1a6   : > { %26597 = vst [vmem:[#allocation47_spill] sm:$0xff] %v20674_v12  ;;  %v17749_v8 = vpop.f32.mrb[44].mxu1 }
 0x1a7   : > { %1481 = vrot.lane.b32.xlu1 %v20635_v63, %s20132_s11  ;;  %1397 = vrot.lane.b32.xlu0 %v20657_v10, %s20131_s10  ;;  %v20677_v6 = vadd.f32 %v17749_v8, %v20551_v0  ;;  %v916_v19 = vpop.f32.mrb[45].mxu1  ;;  %v20696_v8 = vpop.f32.mrb[30].mxu0 }
 0x1a8   : > { %v20680_v33 = vadd.f32 %v916_v19, %v20551_v0  ;;  %v17750_v7 = vpop.f32.mrb[46].mxu1 }
 0x1a9   : > { %26598 = vst [vmem:[#allocation48_spill] sm:$0xff] %v20677_v6  ;;  %v20683_v5 = vadd.f32 %v17750_v7, %v20551_v0  ;;  %v919_v15 = vpop.f32.mrb[47].mxu1  ;;  %v20698_v7 = vpack.c.bf16 %v650_v13, %v650_v13 }
 0x1aa   : > { %26599 = vst [vmem:[#allocation49_spill] sm:$0xff] %v20680_v33  ;;  %v20694_v57 = vadd.f32 %v919_v15, %v20551_v0  ;;  %v20716_v33 = vpop.f32.mrb[31].mxu0 }
 0x1ab   : > { %26600 = vst [vmem:[#allocation50_spill] sm:$0xff] %v20683_v5  ;;  %1525 = vrot.lane.b32.xlu1 %v20657_v10, %s20132_s11  ;;  %1461 = vrot.lane.b32.xlu0 %v20657_v10, %s20130_s19 }
 0x1ac   : > { %26601 = vst [vmem:[#allocation51_spill] sm:$0xff] %v20694_v57 }
 0x1ae   : > { %v17753_v19 = vpop.f32.mrb[48].mxu1 }
 0x1af   : > { %1211 = vrot.lane.b32.xlu1 %v20685_v20, %s20132_s11  ;;  %1083 = vrot.lane.b32.xlu0 %v20685_v20, %s20131_s10  ;;  %v20705_v11 = vadd.f32 %v17753_v19, %v20551_v0  ;;  %v932_v5 = vpop.f32.mrb[49].mxu1 }
 0x1b0   : > { %v20708_v14 = vadd.f32 %v932_v5, %v20551_v0  ;;  %v17754_v15 = vpop.f32.mrb[50].mxu1  ;;  %v652_v5 = vadd.f32 %v20425_v16, %v20373_v47 }
 0x1b1   : > { %26602 = vst [vmem:[#allocation52_spill] sm:$0xff] %v20705_v11  ;;  %v20711_v6 = vadd.f32 %v17754_v15, %v20551_v0  ;;  %v935_v57 = vpop.f32.mrb[51].mxu1  ;;  %v20732_v15 = vpop.f32.mrb[32].mxu0 }
 0x1b2   : > { %26603 = vst [vmem:[#allocation53_spill] sm:$0xff] %v20708_v14  ;;  %v20714_v13 = vadd.f32 %v935_v57, %v20551_v0  ;;  %v20724_v19 = vpack.c.bf16 %v652_v5, %v652_v5  ;;  %v654_v57 = vadd.f32 %v20429_v18, %v20376_v48  ;;  %v20740_v16 = vpop.f32.mrb[33].mxu0  ;;  %v658_v18 = vadd.f32 %v20439_v21, %v20373_v47 }
 0x1b3   : > { %26604 = vst [vmem:[#allocation54_spill] sm:$0xff] %v20711_v6  ;;  %1419 = vrot.lane.b32.xlu1 %v20698_v7, %s20130_s19  ;;  %1147 = vrot.lane.b32.xlu0 %v20685_v20, %s20130_s19  ;;  %v20756_v14 = vpop.f32.mrb[34].mxu0 }
 0x1b4   : > { %26605 = vst [vmem:[#allocation55_spill] sm:$0xff] %v20714_v13  ;;  %v20734_v6 = vpack.c.bf16 %v654_v57, %v654_v57  ;;  %v20748_v5 = vpack.c.bf16 %v658_v18, %v658_v18  ;;  %v660_v57 = vadd.f32 %v20445_v22, %v20376_v48  ;;  %v20768_v43 = vpop.f32.mrb[35].mxu0  ;;  %v662_v22 = vadd.f32 %v20447_v23, %v20373_v47 }
 0x1b5   : > { %v20788_v0 = vpop.f32.mrb[36].mxu0 }
 0x1b6   : > { %v20758_v12 = vpack.c.bf16 %v660_v57, %v660_v57  ;;  %v20780_v45 = vpack.c.bf16 %v662_v22, %v662_v22  ;;  %v20790_v58 = vpop.f32.mrb[37].mxu0  ;;  %v20795_v22 = vpack.c.bf16 %v664_v1, %v664_v1  ;;  %v668_v1 = vadd.f32 %v20460_v28, %v20373_v47 }
 0x1b7   : > { %1483 = vrot.lane.b32.xlu1 %v20698_v7, %s20132_s11  ;;  %1355 = vrot.lane.b32.xlu0 %v20698_v7, %s20131_s10  ;;  %v20793_v56 = vpop.f32.mrb[38].mxu0  ;;  %v670_v28 = vadd.f32 %v20466_v29, %v20376_v48 }
 0x1b8   : > { %v20801_v10 = vpop.f32.mrb[39].mxu0 }
 0x1b9   : > { %v20803_v26 = vpop.f32.mrb[40].mxu0 }
 0x1bb   : > { %1213 = vrot.lane.b32.xlu1 %v20724_v19, %s20132_s11  ;;  %1085 = vrot.lane.b32.xlu0 %v20724_v19, %s20131_s10 }
 0x1bf   : > { %1421 = vrot.lane.b32.xlu1 %v20734_v6, %s20130_s19  ;;  %1149 = vrot.lane.b32.xlu0 %v20724_v19, %s20130_s19 }
 0x1c3   : > { %1485 = vrot.lane.b32.xlu1 %v20734_v6, %s20132_s11  ;;  %1357 = vrot.lane.b32.xlu0 %v20734_v6, %s20131_s10 }
 0x1c5   : > { %v1140_v11 = vpop.permute.xlu1 %1139  ;;  %v1076_v13 = vpop.permute.xlu0 %1075 }
 0x1c7   : > { %1215 = vrot.lane.b32.xlu1 %v20748_v5, %s20132_s11  ;;  %1087 = vrot.lane.b32.xlu0 %v20748_v5, %s20131_s10 }
 0x1c9   : > { %v20764_v21 = vpop.permute.xlu1 %1203  ;;  %v20766_v18 = vpop.permute.xlu0 %1119 }
 0x1ca   : > { %26606 = vst [vmem:[#allocation56_spill] sm:$0xff] %v20766_v18 }
 0x1cb   : > { %1423 = vrot.lane.b32.xlu1 %v20758_v12, %s20130_s19  ;;  %1151 = vrot.lane.b32.xlu0 %v20748_v5, %s20130_s19 }
 0x1cd   : > { %v20776_v57 = vpop.permute.xlu1 %1247  ;;  %v20778_v4 = vpop.permute.xlu0 %1183 }
 0x1ce   : > { %26607 = vst [vmem:[#allocation57_spill] sm:$0xff] %v20776_v57  ;;  %26608 = vst [vmem:[#allocation58_spill] sm:$0xff] %v20778_v4  ;;  %v20825_v4 = vpack.c.bf16 %v668_v1, %v668_v1  ;;  %v672_v1 = vadd.f32 %v20468_v30, %v20373_v47  ;;  %v674_v30 = vadd.f32 %v20472_v32, %v20376_v48 }
 0x1cf   : > { %1487 = vrot.lane.b32.xlu1 %v20758_v12, %s20132_s11  ;;  %1359 = vrot.lane.b32.xlu0 %v20758_v12, %s20131_s10 }
 0x1d1   : > { %v1412_v23 = vpop.permute.xlu1 %1411  ;;  %v1348_v60 = vpop.permute.xlu0 %1347 }
 0x1d2   : > { %v1862_v55 = vsel %vm1811_vm1, %v1348_v60, 0  ;;  %v20808_v60 = vpop.f32.mrb[41].mxu0  ;;  %v1908_v36 = vsel %vm1811_vm1, %v1412_v23, 0  ;;  %v20839_v23 = vpack.c.bf16 %v670_v28, %v670_v28 }
 0x1d3   : > { %1217 = vrot.lane.b32.xlu1 %v20780_v45, %s20132_s11  ;;  %1089 = vrot.lane.b32.xlu0 %v20780_v45, %s20131_s10  ;;  %v20816_v57 = vpop.f32.mrb[42].mxu0 }
 0x1d4   : > { %17762 = vmatpush3.bf16.xpose.msra.mxu1 %v1862_v55  ;;  %v20818_v55 = vpop.f32.mrb[43].mxu0 }
 0x1d5   : > { %v20805_v52 = vpop.permute.xlu1 %1455  ;;  %v1476_v40 = vpop.permute.xlu0 %1475  ;;  %17767 = vmatprep.subr.bf16.mxu1 %v26609_v2 }
 0x1d7   : > { %1425 = vrot.lane.b32.xlu1 %v20795_v22, %s20130_s19  ;;  %1153 = vrot.lane.b32.xlu0 %v20780_v45, %s20130_s19 }
 0x1d9   : > { %v20820_v25 = vpop.permute.xlu1 %1519  ;;  %v20822_v18 = vpop.permute.xlu0 %1391 }
 0x1da   : > { %26610 = vst [vmem:[#allocation59_spill] sm:$0xff] %v20820_v25  ;;  %26611 = vst [vmem:[#allocation60_spill] sm:$0xff] %v20822_v18 }
 0x1db   : > { %17764 = vmatmul.mubr.msk.bf16.vlgmr.msra.gmra.mrb[56].mxu1 %vm1811_vm1, %v1076_v13  ;;  %1489 = vrot.lane.b32.xlu1 %v20795_v22, %s20132_s11 }
 0x1dc   : > { %1361 = vrot.lane.b32.xlu0 %v20795_v22, %s20131_s10  ;;  %17768 = vmatpush3.bf16.xpose.msra.mxu1 %v1908_v36  ;;  %v1954_v36 = vsel %vm1811_vm1, %v1476_v40, 0  ;;  %v20862_v40 = vpack.c.bf16 %v672_v1, %v672_v1  ;;  %v2000_v1 = vsel %vm1811_vm1, %v20470_v31, 0 }
 0x1dd   : > { %v1078_v62 = vpop.permute.xlu1 %1077  ;;  %v20834_v25 = vpop.permute.xlu0 %1121  ;;  %17769 = vmatprep.mubr.msk.bf16.mxu1 %vm20129_vm0, %v26609_v2  ;;  %17773 = vmatprep.subr.bf16.mxu1 %v26609_v2 }
 0x1de   : > { %26612 = vst [vmem:[#allocation61_spill] sm:$0xff] %v20834_v25 }
 0x1df   : > { %1219 = vrot.lane.b32.xlu1 %v20825_v4, %s20132_s11 }
 0x1e0   : > { %1091 = vrot.lane.b32.xlu0 %v20825_v4, %s20131_s10 }
 0x1e1   : > { %v20845_v29 = vpop.permute.xlu1 %1141  ;;  %v20847_v13 = vpop.permute.xlu0 %1185 }
 0x1e2   : > { %26613 = vst [vmem:[#allocation62_spill] sm:$0xff] %v20847_v13  ;;  %v20872_v13 = vpack.c.bf16 %v674_v30, %v674_v30 }
 0x1e3   : > { %17770 = vmatmul.mubr.msk.bf16.vlgmr.msra.gmra.mrb[60].mxu1 %vm1811_vm1, %v1140_v11  ;;  %1427 = vrot.lane.b32.xlu1 %v20839_v23, %s20130_s19 }
 0x1e4   : > { %1155 = vrot.lane.b32.xlu0 %v20825_v4, %s20130_s19  ;;  %17774 = vmatpush3.bf16.xpose.msra.mxu1 %v1954_v36 }
 0x1e5   : > { %v20857_v28 = vpop.permute.xlu1 %1205  ;;  %v1350_v25 = vpop.permute.xlu0 %1349  ;;  %17775 = vmatprep.mubr.msk.bf16.mxu1 %vm20129_vm0, %v26609_v2  ;;  %17779 = vmatprep.subr.bf16.mxu1 %v26609_v2 }
 0x1e7   : > { %1491 = vrot.lane.b32.xlu1 %v20839_v23, %s20132_s11 }
 0x1e8   : > { %1363 = vrot.lane.b32.xlu0 %v20839_v23, %s20131_s10 }
 0x1e9   : > { %v20870_v11 = vpop.permute.xlu1 %1249  ;;  %v1414_v36 = vpop.permute.xlu0 %1413 }
 0x1ea   : > { %26614 = vst [vmem:[#allocation63_spill] sm:$0xff] %v20870_v11 }
 0x1eb   : > { %17776 = vmatmul.mubr.msk.bf16.vlgmr.msra.gmra.mrb[64].mxu1 %vm1811_vm1, %v20764_v21  ;;  %1221 = vrot.lane.b32.xlu1 %v20862_v40, %s20132_s11  ;;  %v678_v21 = vadd.f32 %v20480_v34, %v20373_v47  ;;  %v680_v34 = vadd.f32 %v20486_v35, %v20376_v48 }
 0x1ec   : > { %1093 = vrot.lane.b32.xlu0 %v20862_v40, %s20131_s10  ;;  %17780 = vmatpush3.bf16.xpose.msra.mxu1 %v2000_v1  ;;  %v2046_v1 = vsel %vm1811_vm1, %v1350_v25, 0 }
 0x1ed   : > { %v20882_v32 = vpop.permute.xlu1 %1457  ;;  %v1478_v18 = vpop.permute.xlu0 %1477  ;;  %17781 = vmatprep.mubr.msk.bf16.mxu1 %vm20129_vm0, %v26609_v2  ;;  %17785 = vmatprep.subr.bf16.mxu1 %v26609_v2  ;;  %v20898_v11 = vpack.c.bf16 %v678_v21, %v678_v21  ;;  %v2092_v21 = vsel %vm1811_vm1, %v1414_v36, 0 }
 0x1ee   : > { %26615 = vst [vmem:[#allocation64_spill] sm:$0xff] %v20882_v32 }
 0x1ef   : > { %1429 = vrot.lane.b32.xlu1 %v20872_v13, %s20130_s19 }
 0x1f0   : > { %1157 = vrot.lane.b32.xlu0 %v20862_v40, %s20130_s19 }
 0x1f1   : > { %v20893_v31 = vpop.permute.xlu1 %1521  ;;  %v20895_v30 = vpop.permute.xlu0 %1393 }
 0x1f2   : > { %26616 = vst [vmem:[#allocation65_spill] sm:$0xff] %v20893_v31  ;;  %26617 = vst [vmem:[#allocation66_spill] sm:$0xff] %v20895_v30 }
 0x1f3   : > { %17782 = vmatmul.mubr.msk.bf16.vlgmr.msra.gmra.mrb[68].mxu1 %vm1811_vm1, %v20449_v24  ;;  %1493 = vrot.lane.b32.xlu1 %v20872_v13, %s20132_s11  ;;  %v20915_v24 = vpack.c.bf16 %v680_v34, %v680_v34 }
 0x1f4   : > { %1365 = vrot.lane.b32.xlu0 %v20872_v13, %s20131_s10  ;;  %17786 = vmatpush3.bf16.xpose.msra.mxu1 %v2046_v1  ;;  %v682_v1 = vadd.f32 %v20494_v37, %v20373_v47  ;;  %v684_v37 = vadd.f32 %v20502_v39, %v20376_v48 }
 0x1f5   : > { %v20908_v31 = vpop.permute.xlu1 %1207  ;;  %v20910_v30 = vpop.permute.xlu0 %1079  ;;  %17787 = vmatprep.mubr.msk.bf16.mxu1 %vm20129_vm0, %v26609_v2  ;;  %17791 = vmatprep.subr.bf16.mxu1 %v26609_v2 }
 0x1f6   : > { %v20937_v36 = vpack.c.bf16 %v682_v1, %v682_v1 }
 0x1f7   : > { %1223 = vrot.lane.b32.xlu1 %v20898_v11, %s20132_s11 }
 0x1f8   : > { %1095 = vrot.lane.b32.xlu0 %v20898_v11, %s20131_s10 }
 0x1f9   : > { %v20921_v25 = vpop.permute.xlu1 %1251  ;;  %v1144_v35 = vpop.permute.xlu0 %1143 }
 0x1fa   : > { %26618 = vst [vmem:[#allocation67_spill] sm:$0xff] %v20921_v25 }
 0x1fb   : > { %17788 = vmatmul.mubr.msk.bf16.vlgmr.msra.gmra.mrb[72].mxu1 %vm1811_vm1, %v1078_v62  ;;  %1431 = vrot.lane.b32.xlu1 %v20915_v24, %s20130_s19 }
 0x1fc   : > { %1159 = vrot.lane.b32.xlu0 %v20898_v11, %s20130_s19  ;;  %17792 = vmatpush3.bf16.xpose.msra.mxu1 %v2092_v21 }
 0x1fd   : > { %v1416_v34 = vpop.permute.xlu1 %1415  ;;  %v20931_v32 = vpop.permute.xlu0 %1123  ;;  %17793 = vmatprep.mubr.msk.bf16.mxu1 %vm20129_vm0, %v26609_v2  ;;  %17797 = vmatprep.subr.bf16.mxu1 %v26609_v2 }
 0x1fe   : > { %26619 = vst [vmem:[#allocation68_spill] sm:$0xff] %v20931_v32  ;;  %v2276_v62 = vsel %vm1811_vm1, %v1416_v34, 0  ;;  %v2138_v32 = vsel %vm1811_vm1, %v1478_v18, 0  ;;  %v20949_v34 = vpack.c.bf16 %v684_v37, %v684_v37  ;;  %v2368_v18 = vsel %vm1811_vm1, %v20635_v63, 0 }
 0x1ff   : > { %1495 = vrot.lane.b32.xlu1 %v20915_v24, %s20132_s11  ;;  %17816 = vmatpush3.bf16.xpose.msra.mxu0 %v2276_v62 }
 0x200   : > { %1367 = vrot.lane.b32.xlu0 %v20915_v24, %s20131_s10  ;;  %17827 = vmatprep.subr.bf16.mxu0 %v26609_v2 }
 0x201   : > { %v1480_v21 = vpop.permute.xlu1 %1479  ;;  %v20946_v25 = vpop.permute.xlu0 %1187 }
 0x203   : > { %17794 = vmatmul.mubr.msk.bf16.vlgmr.msra.gmra.mrb[76].mxu1 %vm1811_vm1, %v20845_v29  ;;  %1225 = vrot.lane.b32.xlu1 %v20937_v36, %s20132_s11  ;;  %v688_v29 = vadd.f32 %v20525_v53, %v20373_v47  ;;  %v690_v53 = vadd.f32 %v20541_v59, %v20376_v48 }
 0x204   : > { %1097 = vrot.lane.b32.xlu0 %v20937_v36, %s20131_s10  ;;  %17798 = vmatpush3.bf16.xpose.msra.mxu1 %v2138_v32 }
 0x205   : > { %v20957_v39 = vpop.permute.xlu1 %1459  ;;  %v1352_v1 = vpop.permute.xlu0 %1351  ;;  %17799 = vmatprep.mubr.msk.bf16.mxu1 %vm20129_vm0, %v26609_v2  ;;  %17809 = vmatprep.subr.bf16.mxu1 %v26609_v2 }
 0x206   : > { %17818 = vmatmul.mubr.msk.bf16.vlgmr.msra.gmra.mrb[48].mxu0 %vm1811_vm1, %v1144_v35  ;;  %v2230_v63 = vsel %vm1811_vm1, %v1352_v1, 0  ;;  %v20979_v35 = vpack.c.bf16 %v688_v29, %v688_v29  ;;  %v2322_v29 = vsel %vm1811_vm1, %v1480_v21, 0 }
 0x207   : > { %1433 = vrot.lane.b32.xlu1 %v20949_v34, %s20130_s19  ;;  %17828 = vmatpush3.bf16.xpose.msra.mxu0 %v2368_v18 }
 0x208   : > { %1161 = vrot.lane.b32.xlu0 %v20937_v36, %s20130_s19  ;;  %17829 = vmatprep.mubr.msk.bf16.mxu0 %vm20129_vm0, %v26609_v2 }
 0x209   : > { %v20973_v32 = vpop.permute.xlu1 %1523  ;;  %v20975_v62 = vpop.permute.xlu0 %1395  ;;  %17839 = vmatprep.subr.bf16.mxu0 %v26609_v2 }
 0x20a   : > { %26620 = vst [vmem:[#allocation69_spill] sm:$0xff] %v20973_v32 }
 0x20b   : > { %17800 = vmatmul.mubr.msk.bf16.vlgmr.msra.gmra.mrb[80].mxu1 %vm1811_vm1, %v20857_v28  ;;  %1497 = vrot.lane.b32.xlu1 %v20949_v34, %s20132_s11  ;;  %v20996_v28 = vpack.c.bf16 %v690_v53, %v690_v53 }
 0x20c   : > { %1369 = vrot.lane.b32.xlu0 %v20949_v34, %s20131_s10  ;;  %17810 = vmatpush3.bf16.xpose.msra.mxu1 %v2230_v63 }
 0x20d   : > { %v20989_v37 = vpop.permute.xlu1 %1209  ;;  %v1082_v18 = vpop.permute.xlu0 %1081  ;;  %17811 = vmatprep.mubr.msk.bf16.mxu1 %vm20129_vm0, %v26609_v2  ;;  %17821 = vmatprep.subr.bf16.mxu1 %v26609_v2 }
 0x20e   : > { %17830 = vmatmul.mubr.msk.bf16.vlgmr.msra.gmra.mrb[52].mxu0 %vm1811_vm1, %v20593_v3  ;;  %v692_v3 = vadd.f32 %v20581_v38, %v20373_v47  ;;  %v694_v38 = vadd.f32 %v20603_v41, %v20376_v48 }
 0x20f   : > { %1227 = vrot.lane.b32.xlu1 %v20979_v35, %s20132_s11  ;;  %17841 = vmatprep.mubr.msk.bf16.mxu0 %vm20129_vm0, %v26609_v2 }
 0x210   : > { %1099 = vrot.lane.b32.xlu0 %v20979_v35, %s20131_s10 }
 0x211   : > { %v21004_v59 = vpop.permute.xlu1 %1125  ;;  %v1146_v1 = vpop.permute.xlu0 %1145 }
 0x212   : > { %26621 = vst [vmem:[#allocation70_spill] sm:$0xff] %v21004_v59 }
 0x213   : > { %17812 = vmatmul.mubr.msk.bf16.vlgmr.msra.gmra.mrb[84].mxu1 %vm1811_vm1, %v20910_v30  ;;  %1435 = vrot.lane.b32.xlu1 %v20996_v28, %s20130_s19  ;;  %v21019_v30 = vpack.c.bf16 %v692_v3, %v692_v3 }
 0x214   : > { %1163 = vrot.lane.b32.xlu0 %v20979_v35, %s20130_s19  ;;  %17822 = vmatpush3.bf16.xpose.msra.mxu1 %v2322_v29 }
 0x215   : > { %v1418_v63 = vpop.permute.xlu1 %1417  ;;  %v1354_v53 = vpop.permute.xlu0 %1353  ;;  %17823 = vmatprep.mubr.msk.bf16.mxu1 %vm20129_vm0, %v26609_v2  ;;  %17833 = vmatprep.subr.bf16.mxu1 %v26609_v2 }
 0x216   : > { %v2460_v21 = vsel %vm1811_vm1, %v1418_v63, 0  ;;  %v2414_v32 = vsel %vm1811_vm1, %v1354_v53, 0  ;;  %v21031_v63 = vpack.c.bf16 %v694_v38, %v694_v38 }
 0x217   : > { %1499 = vrot.lane.b32.xlu1 %v20996_v28, %s20132_s11  ;;  %17840 = vmatpush3.bf16.xpose.msra.mxu0 %v2460_v21 }
 0x218   : > { %1371 = vrot.lane.b32.xlu0 %v20996_v28, %s20131_s10  ;;  %17851 = vmatprep.subr.bf16.mxu0 %v26609_v2 }
 0x219   : > { %v1482_v29 = vpop.permute.xlu1 %1481  ;;  %v21028_v59 = vpop.permute.xlu0 %1397 }
 0x21a   : > { %26622 = vst [vmem:[#allocation71_spill] sm:$0xff] %v21028_v59 }
 0x21b   : > { %17824 = vmatmul.mubr.msk.bf16.vlgmr.msra.gmra.mrb[88].mxu1 %vm1811_vm1, %v20908_v31  ;;  %1229 = vrot.lane.b32.xlu1 %v21019_v30, %s20132_s11  ;;  %v2552_v31 = vsel %vm1811_vm1, %v20698_v7, 0  ;;  %v2506_v7 = vsel %vm1811_vm1, %v1482_v29, 0 }
 0x21c   : > { %1101 = vrot.lane.b32.xlu0 %v21019_v30, %s20131_s10  ;;  %17834 = vmatpush3.bf16.xpose.msra.mxu1 %v2414_v32  ;;  %v698_v32 = vadd.f32 %v20642_v61, %v20373_v47  ;;  %v700_v61 = vadd.f32 %v20665_v9, %v20376_v48 }
 0x21d   : > { %v21039_v41 = vpop.permute.xlu1 %1525  ;;  %v21041_v3 = vpop.permute.xlu0 %1461  ;;  %17835 = vmatprep.mubr.msk.bf16.mxu1 %vm20129_vm0, %v26609_v2  ;;  %17845 = vmatprep.subr.bf16.mxu1 %v26609_v2 }
 0x21e   : > { %26623 = vst [vmem:[#allocation72_spill] sm:$0xff] %v21039_v41  ;;  %26624 = vst [vmem:[#allocation73_spill] sm:$0xff] %v21041_v3  ;;  %17842 = vmatmul.mubr.msk.bf16.vlgmr.msra.gmra.mrb[56].mxu0 %vm1811_vm1, %v1146_v1  ;;  %v21061_v1 = vpack.c.bf16 %v698_v32, %v698_v32 }
 0x21f   : > { %1437 = vrot.lane.b32.xlu1 %v21031_v63, %s20130_s19  ;;  %17852 = vmatpush3.bf16.xpose.msra.mxu0 %v2552_v31 }
 0x220   : > { %1165 = vrot.lane.b32.xlu0 %v21019_v30, %s20130_s19  ;;  %17853 = vmatprep.mubr.msk.bf16.mxu0 %vm20129_vm0, %v26609_v2 }
 0x221   : > { %v21057_v53 = vpop.permute.xlu1 %1211  ;;  %v1084_v21 = vpop.permute.xlu0 %1083  ;;  %17863 = vmatprep.subr.bf16.mxu0 %v26609_v2 }
 0x223   : > { %17836 = vmatmul.mubr.msk.bf16.vlgmr.msra.gmra.mrb[92].mxu1 %vm1811_vm1, %v1082_v18  ;;  %1501 = vrot.lane.b32.xlu1 %v21031_v63, %s20132_s11  ;;  %v21076_v18 = vpack.c.bf16 %v700_v61, %v700_v61 }
 0x224   : > { %1373 = vrot.lane.b32.xlu0 %v21031_v63, %s20131_s10  ;;  %17846 = vmatpush3.bf16.xpose.msra.mxu1 %v2506_v7 }
 0x225   : > { %v1420_v38 = vpop.permute.xlu1 %1419  ;;  %v1148_v31 = vpop.permute.xlu0 %1147  ;;  %17847 = vmatprep.mubr.msk.bf16.mxu1 %vm20129_vm0, %v26609_v2  ;;  %17857 = vmatprep.subr.bf16.mxu1 %v26609_v2 }
 0x226   : > { %v2644_v29 = vsel %vm1811_vm1, %v1420_v38, 0  ;;  %17854 = vmatmul.mubr.msk.bf16.vlgmr.msra.gmra.mrb[60].mxu0 %vm1811_vm1, %v20685_v20  ;;  %v702_v20 = vadd.f32 %v20696_v8, %v20373_v47 }
 0x227   : > { %1231 = vrot.lane.b32.xlu1 %v21061_v1, %s20132_s11  ;;  %17864 = vmatpush3.bf16.xpose.msra.mxu0 %v2644_v29 }
 0x228   : > { %1103 = vrot.lane.b32.xlu0 %v21061_v1, %s20131_s10  ;;  %17865 = vmatprep.mubr.msk.bf16.mxu0 %vm20129_vm0, %v26609_v2  ;;  %v21104_v29 = vpack.c.bf16 %v702_v20, %v702_v20 }
 0x229   : > { %v1484_v9 = vpop.permute.xlu1 %1483  ;;  %v1356_v32 = vpop.permute.xlu0 %1355  ;;  %17875 = vmatprep.subr.bf16.mxu0 %v26609_v2 }
 0x22a   : > { %v2598_v7 = vsel %vm1811_vm1, %v1356_v32, 0  ;;  %v704_v32 = vadd.f32 %v20716_v33, %v20376_v48 }
 0x22b   : > { %17848 = vmatmul.mubr.msk.bf16.vlgmr.msra.gmra.mrb[96].mxu1 %vm1811_vm1, %v20989_v37  ;;  %1439 = vrot.lane.b32.xlu1 %v21076_v18, %s20130_s19  ;;  %v2736_v37 = vsel %vm1811_vm1, %v20734_v6, 0  ;;  %v2690_v6 = vsel %vm1811_vm1, %v1484_v9, 0 }
 0x22c   : > { %1167 = vrot.lane.b32.xlu0 %v21061_v1, %s20130_s19  ;;  %17858 = vmatpush3.bf16.xpose.msra.mxu1 %v2598_v7  ;;  %v21118_v59 = vpack.c.bf16 %v704_v32, %v704_v32 }
 0x22d   : > { %v21094_v61 = vpop.permute.xlu1 %1213  ;;  %v21096_v38 = vpop.permute.xlu0 %1085  ;;  %17859 = vmatprep.mubr.msk.bf16.mxu1 %vm20129_vm0, %v26609_v2  ;;  %17869 = vmatprep.subr.bf16.mxu1 %v26609_v2 }
 0x22e   : > { %17866 = vmatmul.mubr.msk.bf16.vlgmr.msra.gmra.mrb[64].mxu0 %vm1811_vm1, %v1148_v31 }
 0x22f   : > { %1503 = vrot.lane.b32.xlu1 %v21076_v18, %s20132_s11  ;;  %v21108_v8 = vpop.f32.mrb[52].mxu1  ;;  %17876 = vmatpush3.bf16.xpose.msra.mxu0 %v2736_v37 }
 0x230   : > { %1375 = vrot.lane.b32.xlu0 %v21076_v18, %s20131_s10  ;;  %v17759_v7 = vpop.f32.mrb[53].mxu1  ;;  %17877 = vmatprep.mubr.msk.bf16.mxu0 %vm20129_vm0, %v26609_v2 }
 0x231   : > { %v1422_v31 = vpop.permute.xlu1 %1421  ;;  %v1150_v20 = vpop.permute.xlu0 %1149  ;;  %17887 = vmatprep.subr.bf16.mxu0 %v26609_v2 }
 0x232   : > { %v1855_v41 = vpop.f32.mrb[54].mxu1  ;;  %v2828_v33 = vsel %vm1811_vm1, %v1422_v31, 0 }
 0x233   : > { %v17760_v37 = vpop.f32.mrb[55].mxu1  ;;  %17860 = vmatmul.mubr.msk.bf16.vlgmr.msra.gmra.mrb[100].mxu1 %vm1811_vm1, %v1084_v21  ;;  %1233 = vrot.lane.b32.xlu1 %v21104_v29, %s20132_s11  ;;  %v708_v41 = vadd.f32 %v20732_v15, %v20373_v47  ;;  %v710_v15 = vadd.f32 %v20740_v16, %v20376_v48 }
 0x234   : > { %1105 = vrot.lane.b32.xlu0 %v21104_v29, %s20131_s10  ;;  %17870 = vmatpush3.bf16.xpose.msra.mxu1 %v2690_v6 }
 0x235   : > { %v1486_v9 = vpop.permute.xlu1 %1485  ;;  %v1358_v7 = vpop.permute.xlu0 %1357  ;;  %17871 = vmatprep.mubr.msk.bf16.mxu1 %vm20129_vm0, %v26609_v2  ;;  %17881 = vmatprep.subr.bf16.mxu1 %v26609_v2 }
 0x236   : > { %17878 = vmatmul.mubr.msk.bf16.vlgmr.msra.gmra.mrb[68].mxu0 %vm1811_vm1, %v20724_v19  ;;  %v2782_v6 = vsel %vm1811_vm1, %v1358_v7, 0 }
 0x237   : > { %1441 = vrot.lane.b32.xlu1 %v21118_v59, %s20130_s19  ;;  %17888 = vmatpush3.bf16.xpose.msra.mxu0 %v2828_v33  ;;  %v21135_v21 = vpop.f32.mrb[44].mxu0  ;;  %v21147_v33 = vpack.c.bf16 %v708_v41, %v708_v41  ;;  %v21163_v41 = vpack.c.bf16 %v710_v15, %v710_v15 }
 0x238   : > { %1169 = vrot.lane.b32.xlu0 %v21104_v29, %s20130_s19  ;;  %17889 = vmatprep.mubr.msk.bf16.mxu0 %vm20129_vm0, %v26609_v2  ;;  %v17807_v32 = vpop.f32.mrb[45].mxu0 }
 0x239   : > { %v21142_v31 = vpop.permute.xlu1 %1215  ;;  %v21144_v19 = vpop.permute.xlu0 %1087  ;;  %17899 = vmatprep.subr.bf16.mxu0 %v26609_v2 }
 0x23a   : > { %v2223_v37 = vpop.f32.mrb[46].mxu0 }
 0x23b   : > { %17872 = vmatmul.mubr.msk.bf16.vlgmr.msra.gmra.mrb[104].mxu1 %vm1811_vm1, %v21057_v53  ;;  %1505 = vrot.lane.b32.xlu1 %v21118_v59, %s20132_s11  ;;  %v17808_v32 = vpop.f32.mrb[47].mxu0  ;;  %v2920_v53 = vsel %vm1811_vm1, %v20758_v12, 0  ;;  %v712_v12 = vadd.f32 %v20756_v14, %v20373_v47  ;;  %v714_v14 = vadd.f32 %v20768_v43, %v20376_v48 }
 0x23c   : > { %1377 = vrot.lane.b32.xlu0 %v21118_v59, %s20131_s10  ;;  %17882 = vmatpush3.bf16.xpose.msra.mxu1 %v2782_v6 }
 0x23d   : > { %v1424_v7 = vpop.permute.xlu1 %1423  ;;  %v1152_v3 = vpop.permute.xlu0 %1151  ;;  %17883 = vmatprep.mubr.msk.bf16.mxu1 %vm20129_vm0, %v26609_v2  ;;  %17893 = vmatprep.subr.bf16.mxu1 %v26609_v2 }
 0x23e   : > { %17890 = vmatmul.mubr.msk.bf16.vlgmr.msra.gmra.mrb[72].mxu0 %vm1811_vm1, %v1150_v20  ;;  %v2874_v20 = vsel %vm1811_vm1, %v1486_v9, 0  ;;  %v3012_v37 = vsel %vm1811_vm1, %v1424_v7, 0 }
 0x23f   : > { %1235 = vrot.lane.b32.xlu1 %v21147_v33, %s20132_s11  ;;  %17900 = vmatpush3.bf16.xpose.msra.mxu0 %v2920_v53 }
 0x240   : > { %1107 = vrot.lane.b32.xlu0 %v21147_v33, %s20131_s10  ;;  %17901 = vmatprep.mubr.msk.bf16.mxu0 %vm20129_vm0, %v26609_v2 }
 0x241   : > { %v1488_v16 = vpop.permute.xlu1 %1487  ;;  %v1360_v6 = vpop.permute.xlu0 %1359  ;;  %17911 = vmatprep.subr.bf16.mxu0 %v26609_v2 }
 0x242   : > { %v2966_v9 = vsel %vm1811_vm1, %v1360_v6, 0 }
 0x243   : > { %17884 = vmatmul.mubr.msk.bf16.vlgmr.msra.gmra.mrb[108].mxu1 %vm1811_vm1, %v21096_v38  ;;  %1443 = vrot.lane.b32.xlu1 %v21163_v41, %s20130_s19  ;;  %v21191_v38 = vpack.c.bf16 %v712_v12, %v712_v12  ;;  %v3058_v12 = vsel %vm1811_vm1, %v1488_v16, 0 }
 0x244   : > { %1171 = vrot.lane.b32.xlu0 %v21147_v33, %s20130_s19  ;;  %17894 = vmatpush3.bf16.xpose.msra.mxu1 %v2874_v20  ;;  %v3104_v20 = vsel %vm1811_vm1, %v20795_v22, 0 }
 0x245   : > { %v21182_v15 = vpop.permute.xlu1 %1217  ;;  %v21184_v32 = vpop.permute.xlu0 %1089  ;;  %17895 = vmatprep.mubr.msk.bf16.mxu1 %vm20129_vm0, %v26609_v2  ;;  %17905 = vmatprep.subr.bf16.mxu1 %v26609_v2 }
 0x246   : > { %17902 = vmatmul.mubr.msk.bf16.vlgmr.msra.gmra.mrb[76].mxu0 %vm1811_vm1, %v20748_v5  ;;  %v21203_v5 = vpack.c.bf16 %v714_v14, %v714_v14 }
 0x247   : > { %1507 = vrot.lane.b32.xlu1 %v21163_v41, %s20132_s11  ;;  %17912 = vmatpush3.bf16.xpose.msra.mxu0 %v3012_v37 }
 0x248   : > { %1379 = vrot.lane.b32.xlu0 %v21163_v41, %s20131_s10  ;;  %17913 = vmatprep.mubr.msk.bf16.mxu0 %vm20129_vm0, %v26609_v2 }
 0x249   : > { %v1426_v7 = vpop.permute.xlu1 %1425  ;;  %v1154_v53 = vpop.permute.xlu0 %1153  ;;  %17923 = vmatprep.subr.bf16.mxu0 %v26609_v2 }
 0x24a   : > { %v3196_v14 = vsel %vm1811_vm1, %v1426_v7, 0 }
 0x24b   : > { %17896 = vmatmul.mubr.msk.bf16.vlgmr.msra.gmra.mrb[112].mxu1 %vm1811_vm1, %v21094_v61  ;;  %1237 = vrot.lane.b32.xlu1 %v21191_v38, %s20132_s11  ;;  %v718_v61 = vadd.f32 %v20788_v0, %v20373_v47  ;;  %v720_v0 = vadd.f32 %v20790_v58, %v20376_v48 }
 0x24c   : > { %1109 = vrot.lane.b32.xlu0 %v21191_v38, %s20131_s10  ;;  %17906 = vmatpush3.bf16.xpose.msra.mxu1 %v2966_v9 }
 0x24d   : > { %v1490_v43 = vpop.permute.xlu1 %1489  ;;  %17907 = vmatprep.mubr.msk.bf16.mxu1 %vm20129_vm0, %v26609_v2  ;;  %17917 = vmatprep.subr.bf16.mxu1 %v26609_v2  ;;  %v21247_v58 = vpack.c.bf16 %v720_v0, %v720_v0 }
 0x24e   : > { %v1362_v6 = vpop.permute.xlu0 %1361  ;;  %17914 = vmatmul.mubr.msk.bf16.vlgmr.msra.gmra.mrb[80].mxu0 %vm1811_vm1, %v1152_v3  ;;  %v21231_v3 = vpack.c.bf16 %v718_v61, %v718_v61 }
 0x24f   : > { %1445 = vrot.lane.b32.xlu1 %v21203_v5, %s20130_s19  ;;  %17924 = vmatpush3.bf16.xpose.msra.mxu0 %v3104_v20  ;;  %v3150_v20 = vsel %vm1811_vm1, %v1362_v6, 0 }
 0x250   : > { %1173 = vrot.lane.b32.xlu0 %v21191_v38, %s20130_s19  ;;  %17925 = vmatprep.mubr.msk.bf16.mxu0 %vm20129_vm0, %v26609_v2 }
 0x251   : > { %v21226_v37 = vpop.permute.xlu1 %1219  ;;  %17935 = vmatprep.subr.bf16.mxu0 %v26609_v2 }
 0x252   : > { %v21229_v22 = vpop.permute.xlu0 %1091 }
 0x253   : > { %17908 = vmatmul.mubr.msk.bf16.vlgmr.msra.gmra.mrb[116].mxu1 %vm1811_vm1, %v21144_v19  ;;  %1509 = vrot.lane.b32.xlu1 %v21203_v5, %s20132_s11 }
 0x254   : > { %1381 = vrot.lane.b32.xlu0 %v21203_v5, %s20131_s10  ;;  %17918 = vmatpush3.bf16.xpose.msra.mxu1 %v3058_v12  ;;  %v724_v12 = vadd.f32 %v20801_v10, %v20376_v48 }
 0x255   : > { %v1428_v16 = vpop.permute.xlu1 %1427  ;;  %17919 = vmatprep.mubr.msk.bf16.mxu1 %vm20129_vm0, %v26609_v2  ;;  %17929 = vmatprep.subr.bf16.mxu1 %v26609_v2 }
 0x256   : > { %v1156_v9 = vpop.permute.xlu0 %1155  ;;  %17926 = vmatmul.mubr.msk.bf16.vlgmr.msra.gmra.mrb[84].mxu0 %vm1811_vm1, %v20780_v45  ;;  %v722_v45 = vadd.f32 %v20793_v56, %v20373_v47  ;;  %v3288_v56 = vsel %vm1811_vm1, %v20839_v23, 0  ;;  %v3242_v23 = vsel %vm1811_vm1, %v1490_v43, 0  ;;  %v3380_v10 = vsel %vm1811_vm1, %v1428_v16, 0 }
 0x257   : > { %1239 = vrot.lane.b32.xlu1 %v21231_v3, %s20132_s11  ;;  %17936 = vmatpush3.bf16.xpose.msra.mxu0 %v3196_v14  ;;  %v21291_v14 = vpack.c.bf16 %v724_v12, %v724_v12 }
 0x258   : > { %1111 = vrot.lane.b32.xlu0 %v21231_v3, %s20131_s10  ;;  %17937 = vmatprep.mubr.msk.bf16.mxu0 %vm20129_vm0, %v26609_v2 }
 0x259   : > { %v21255_v19 = vpop.permute.xlu1 %1491  ;;  %17947 = vmatprep.subr.bf16.mxu0 %v26609_v2 }
 0x25a   : > { %v1364_v7 = vpop.permute.xlu0 %1363 }
 0x25b   : > { %17920 = vmatmul.mubr.msk.bf16.vlgmr.msra.gmra.mrb[120].mxu1 %vm1811_vm1, %v21142_v31  ;;  %1447 = vrot.lane.b32.xlu1 %v21247_v58, %s20130_s19  ;;  %v21277_v31 = vpack.c.bf16 %v722_v45, %v722_v45  ;;  %v3334_v16 = vsel %vm1811_vm1, %v1364_v7, 0 }
 0x25c   : > { %1175 = vrot.lane.b32.xlu0 %v21231_v3, %s20130_s19  ;;  %17930 = vmatpush3.bf16.xpose.msra.mxu1 %v3150_v20 }
 0x25d   : > { %v21267_v61 = vpop.permute.xlu1 %1221  ;;  %17931 = vmatprep.mubr.msk.bf16.mxu1 %vm20129_vm0, %v26609_v2  ;;  %17941 = vmatprep.subr.bf16.mxu1 %v26609_v2 }
 0x25e   : > { %v21272_v6 = vpop.permute.xlu0 %1093  ;;  %17938 = vmatmul.mubr.msk.bf16.vlgmr.msra.gmra.mrb[88].mxu0 %vm1811_vm1, %v1154_v53 }
 0x25f   : > { %1511 = vrot.lane.b32.xlu1 %v21247_v58, %s20132_s11  ;;  %17948 = vmatpush3.bf16.xpose.msra.mxu0 %v3288_v56 }
 0x260   : > { %1383 = vrot.lane.b32.xlu0 %v21247_v58, %s20131_s10  ;;  %17949 = vmatprep.mubr.msk.bf16.mxu0 %vm20129_vm0, %v26609_v2 }
 0x261   : > { %v1430_v0 = vpop.permute.xlu1 %1429  ;;  %17959 = vmatprep.subr.bf16.mxu0 %v26609_v2 }
 0x262   : > { %v21288_v53 = vpop.permute.xlu0 %1157 }
 0x263   : > { %17932 = vmatmul.mubr.msk.bf16.vlgmr.msra.gmra.mrb[124].mxu1 %vm1811_vm1, %v21184_v32  ;;  %1241 = vrot.lane.b32.xlu1 %v21277_v31, %s20132_s11  ;;  %v728_v32 = vadd.f32 %v20803_v26, %v20373_v47  ;;  %v730_v26 = vadd.f32 %v20808_v60, %v20376_v48  ;;  %v3472_v60 = vsel %vm1811_vm1, %v20872_v13, 0  ;;  %v3426_v13 = vsel %vm1811_vm1, %v21255_v19, 0 }
 0x264   : > { %1113 = vrot.lane.b32.xlu0 %v21277_v31, %s20131_s10  ;;  %17942 = vmatpush3.bf16.xpose.msra.mxu1 %v3242_v23 }
 0x265   : > { %v21300_v20 = vpop.permute.xlu1 %1493  ;;  %17943 = vmatprep.mubr.msk.bf16.mxu1 %vm20129_vm0, %v26609_v2  ;;  %17953 = vmatprep.subr.bf16.mxu1 %v26609_v2  ;;  %v21321_v56 = vpack.c.bf16 %v728_v32, %v728_v32 }
 0x266   : > { %v1366_v43 = vpop.permute.xlu0 %1365  ;;  %17950 = vmatmul.mubr.msk.bf16.vlgmr.msra.gmra.mrb[92].mxu0 %vm1811_vm1, %v20825_v4 }
 0x267   : > { %1449 = vrot.lane.b32.xlu1 %v21291_v14, %s20130_s19  ;;  %17960 = vmatpush3.bf16.xpose.msra.mxu0 %v3380_v10 }
 0x268   : > { %1177 = vrot.lane.b32.xlu0 %v21277_v31, %s20130_s19  ;;  %17961 = vmatprep.mubr.msk.bf16.mxu0 %vm20129_vm0, %v26609_v2 }
 0x269   : > { %v21316_v45 = vpop.permute.xlu1 %1223  ;;  %17971 = vmatprep.subr.bf16.mxu0 %v26609_v2 }
 0x26a   : > { %v21319_v4 = vpop.permute.xlu0 %1095 }
 0x26b   : > { %17944 = vmatmul.mubr.msk.bf16.vlgmr.msra.gmra.mrb[128].mxu1 %vm1811_vm1, %v21182_v15  ;;  %1513 = vrot.lane.b32.xlu1 %v21291_v14, %s20132_s11  ;;  %v21339_v15 = vpack.c.bf16 %v730_v26, %v730_v26  ;;  %v758_v26 = vadd.f32 %v20508_v42, %v20373_v47 }
 0x26c   : > { %1385 = vrot.lane.b32.xlu0 %v21291_v14, %s20131_s10  ;;  %17954 = vmatpush3.bf16.xpose.msra.mxu1 %v3334_v16 }
 0x26d   : > { %v1432_v7 = vpop.permute.xlu1 %1431  ;;  %17955 = vmatprep.mubr.msk.bf16.mxu1 %vm20129_vm0, %v26609_v2  ;;  %17965 = vmatprep.subr.bf16.mxu1 %v26609_v2  ;;  %v21436_v42 = vpack.c.bf16 %v758_v26, %v758_v26 }
 0x26e   : > { %v21334_v12 = vpop.permute.xlu0 %1159  ;;  %17962 = vmatmul.mubr.msk.bf16.vlgmr.msra.gmra.mrb[96].mxu0 %vm1811_vm1, %v1156_v9  ;;  %v732_v9 = vadd.f32 %v20816_v57, %v20373_v47  ;;  %v3564_v57 = vsel %vm1811_vm1, %v1430_v0, 0  ;;  %v734_v0 = vadd.f32 %v20818_v55, %v20376_v48  ;;  %v3656_v55 = vsel %vm1811_vm1, %v20915_v24, 0 }
 0x26f   : > { %1243 = vrot.lane.b32.xlu1 %v21321_v56, %s20132_s11  ;;  %17972 = vmatpush3.bf16.xpose.msra.mxu0 %v3472_v60  ;;  %v3610_v24 = vsel %vm1811_vm1, %v21300_v20, 0  ;;  %v760_v20 = vadd.f32 %v20510_v44, %v20376_v48 }
 0x270   : > { %1115 = vrot.lane.b32.xlu0 %v21321_v56, %s20131_s10  ;;  %17973 = vmatprep.mubr.msk.bf16.mxu0 %vm20129_vm0, %v26609_v2 }
 0x271   : > { %v21347_v23 = vpop.permute.xlu1 %1495  ;;  %17983 = vmatprep.subr.bf16.mxu0 %v26609_v2  ;;  %v21439_v44 = vpack.c.bf16 %v760_v20, %v760_v20 }
 0x272   : > { %v1368_v10 = vpop.permute.xlu0 %1367 }
 0x273   : > { %17956 = vmatmul.mubr.msk.bf16.vlgmr.msra.gmra.mrb[132].mxu1 %vm1811_vm1, %v21229_v22  ;;  %1451 = vrot.lane.b32.xlu1 %v21339_v15, %s20130_s19  ;;  %v21368_v22 = vpack.c.bf16 %v732_v9, %v732_v9 }
 0x274   : > { %1179 = vrot.lane.b32.xlu0 %v21321_v56, %s20130_s19  ;;  %17966 = vmatpush3.bf16.xpose.msra.mxu1 %v3426_v13 }
 0x275   : > { %17967 = vmatprep.mubr.msk.bf16.mxu1 %vm20129_vm0, %v26609_v2  ;;  %17977 = vmatprep.subr.bf16.mxu1 %v26609_v2  ;;  %v21364_v32 = vpop.permute.xlu1 %1225 }
 0x276   : > { %17974 = vmatmul.mubr.msk.bf16.vlgmr.msra.gmra.mrb[100].mxu0 %vm1811_vm1, %v20862_v40  ;;  %v21377_v19 = vpop.permute.xlu0 %1097  ;;  %v3518_v40 = vsel %vm1811_vm1, %v1366_v43, 0 }
 0x277   : > { %1515 = vrot.lane.b32.xlu1 %v21339_v15, %s20132_s11  ;;  %17984 = vmatpush3.bf16.xpose.msra.mxu0 %v3564_v57 }
 0x278   : > { %1387 = vrot.lane.b32.xlu0 %v21339_v15, %s20131_s10  ;;  %17985 = vmatprep.mubr.msk.bf16.mxu0 %vm20129_vm0, %v26609_v2 }
 0x279   : > { %17995 = vmatprep.subr.bf16.mxu0 %v26609_v2  ;;  %v21386_v16 = vpop.permute.xlu1 %1433 }
 0x27a   : > { %v21401_v43 = vpop.permute.xlu0 %1161 }
 0x27b   : > { %17968 = vmatmul.mubr.msk.bf16.vlgmr.msra.gmra.mrb[136].mxu1 %vm1811_vm1, %v21226_v37  ;;  %1245 = vrot.lane.b32.xlu1 %v21368_v22, %s20132_s11  ;;  %v21397_v37 = vpack.c.bf16 %v734_v0, %v734_v0 }
 0x27c   : > { %1117 = vrot.lane.b32.xlu0 %v21368_v22, %s20131_s10  ;;  %17978 = vmatpush3.bf16.xpose.msra.mxu1 %v3518_v40 }
 0x27d   : > { %17979 = vmatprep.mubr.msk.bf16.mxu1 %vm20129_vm0, %v26609_v2  ;;  %17989 = vmatprep.subr.bf16.mxu1 %v26609_v2 }
 0x27e   : > { %17986 = vmatmul.mubr.msk.bf16.vlgmr.msra.gmra.mrb[104].mxu0 %vm1811_vm1, %v21288_v53  ;;  %v21408_v53 = vpop.permute.xlu1 %1497  ;;  %v1370_v60 = vpop.permute.xlu0 %1369 }
 0x27f   : > { %1253 = vrot.lane.b32.xlu1 %v20617_v27, %s20132_s11  ;;  %17996 = vmatpush3.bf16.xpose.msra.mxu0 %v3656_v55 }
 0x280   : > { %1181 = vrot.lane.b32.xlu0 %v21368_v22, %s20130_s19  ;;  %17997 = vmatprep.mubr.msk.bf16.mxu0 %vm20129_vm0, %v26609_v2 }
 0x281   : > { %18007 = vmatprep.subr.bf16.mxu0 %v26609_v2 }
 0x282   : > { %v21430_v9 = vpop.permute.xlu1 %1227 }
 0x283   : > { %17980 = vmatmul.mubr.msk.bf16.vlgmr.msra.gmra.mrb[140].mxu1 %vm1811_vm1, %v21272_v6  ;;  %1453 = vrot.lane.b32.xlu1 %v21397_v37, %s20130_s19  ;;  %v3748_v6 = vsel %vm1811_vm1, %v1432_v7, 0  ;;  %v21446_v7 = vpop.permute.xlu0 %1099 }
 0x284   : > { %1389 = vrot.lane.b32.xlu0 %v21397_v37, %s20131_s10  ;;  %17990 = vmatpush3.bf16.xpose.msra.mxu1 %v3610_v24 }
 0x285   : > { %17991 = vmatprep.mubr.msk.bf16.mxu1 %vm20129_vm0, %v26609_v2  ;;  %18001 = vmatprep.subr.bf16.mxu1 %v26609_v2 }
 0x286   : > { %17998 = vmatmul.mubr.msk.bf16.vlgmr.msra.gmra.mrb[108].mxu0 %vm1811_vm1, %v20898_v11  ;;  %v3702_v11 = vsel %vm1811_vm1, %v1368_v10, 0  ;;  %v1436_v13 = vpop.permute.xlu1 %1435  ;;  %v762_v10 = vadd.f32 %v20512_v46, %v20373_v47 }
 0x287   : > { %1517 = vrot.lane.b32.xlu1 %v21397_v37, %s20132_s11  ;;  %18008 = vmatpush3.bf16.xpose.msra.mxu0 %v3748_v6  ;;  %v1164_v57 = vpop.permute.xlu0 %1163  ;;  %v4116_v26 = vsel %vm1811_vm1, %v1436_v13, 0 }
 0x288   : > { %1189 = vrot.lane.b32.xlu0 %v20617_v27, %s20130_s19  ;;  %18009 = vmatprep.mubr.msk.bf16.mxu0 %vm20129_vm0, %v26609_v2  ;;  %v21478_v46 = vpack.c.bf16 %v762_v10, %v762_v10 }
 0x289   : > { %18019 = vmatprep.subr.bf16.mxu0 %v26609_v2 }
 0x28a   : > { %v21474_v0 = vpop.permute.xlu1 %1499 }
 0x28b   : > { %17992 = vmatmul.mubr.msk.bf16.vlgmr.msra.gmra.mrb[144].mxu1 %vm1811_vm1, %v21267_v61  ;;  %1127 = vrot.lane.b32.xlu1 %v21436_v42, %s20131_s10  ;;  %v3840_v61 = vsel %vm1811_vm1, %v20949_v34, 0  ;;  %v3794_v34 = vsel %vm1811_vm1, %v21347_v23, 0  ;;  %v1372_v23 = vpop.permute.xlu0 %1371 }
 0x28c   : > { %1399 = vrot.lane.b32.xlu0 %v21439_v44, %s20131_s10  ;;  %18002 = vmatpush3.bf16.xpose.msra.mxu1 %v3702_v11 }
 0x28d   : > { %18003 = vmatprep.mubr.msk.bf16.mxu1 %vm20129_vm0, %v26609_v2  ;;  %18013 = vmatprep.subr.bf16.mxu1 %v26609_v2 }
 0x28e   : > { %18010 = vmatmul.mubr.msk.bf16.vlgmr.msra.gmra.mrb[112].mxu0 %vm1811_vm1, %v21334_v12  ;;  %v764_v12 = vadd.f32 %v20514_v49, %v20376_v48  ;;  %v21496_v40 = vpop.permute.xlu1 %1229 }
 0x28f   : > { %1527 = vrot.lane.b32.xlu1 %v21439_v44, %s20132_s11  ;;  %18020 = vmatpush3.bf16.xpose.msra.mxu0 %v3840_v61  ;;  %v21510_v55 = vpop.permute.xlu0 %1101 }
 0x290   : > { %1463 = vrot.lane.b32.xlu0 %v21439_v44, %s20130_s19  ;;  %18021 = vmatprep.mubr.msk.bf16.mxu0 %vm20129_vm0, %v26609_v2  ;;  %v21483_v49 = vpack.c.bf16 %v764_v12, %v764_v12  ;;  %v4162_v12 = vsel %vm1811_vm1, %v21474_v0, 0 }
 0x291   : > { %18031 = vmatprep.subr.bf16.mxu0 %v26609_v2 }
 0x292   : > { %v1438_v24 = vpop.permute.xlu1 %1437 }
 0x293   : > { %18004 = vmatmul.mubr.msk.bf16.vlgmr.msra.gmra.mrb[148].mxu1 %vm1811_vm1, %v21319_v4  ;;  %1255 = vrot.lane.b32.xlu1 %v21436_v42, %s20132_s11  ;;  %v3932_v4 = vsel %vm1811_vm1, %v21386_v16, 0  ;;  %v3886_v16 = vsel %vm1811_vm1, %v1370_v60, 0  ;;  %v4208_v60 = vsel %vm1811_vm1, %v21031_v63, 0  ;;  %v4300_v63 = vsel %vm1811_vm1, %v1438_v24, 0  ;;  %v17125_v24 = vld [vmem:[%s26356_s3 + $0x8] sm:$0xff]  }
 0x294   : > { %1191 = vrot.lane.b32.xlu0 %v21436_v42, %s20130_s19  ;;  %18014 = vmatpush3.bf16.xpose.msra.mxu1 %v3794_v34 }
 0x295   : > { %18015 = vmatprep.mubr.msk.bf16.mxu1 %vm20129_vm0, %v26609_v2  ;;  %18025 = vmatprep.subr.bf16.mxu1 %v26609_v2 }
 0x296   : > { %18022 = vmatmul.mubr.msk.bf16.vlgmr.msra.gmra.mrb[116].mxu0 %vm1811_vm1, %v20937_v36  ;;  %v770_v36 = vadd.f32 %v20521_v51, %v20376_v48  ;;  %v21535_v20 = vpop.permute.xlu1 %1501 }
 0x297   : > { %1129 = vrot.lane.b32.xlu1 %v21478_v46, %s20131_s10  ;;  %18032 = vmatpush3.bf16.xpose.msra.mxu0 %v3932_v4 }
 0x298   : > { %1401 = vrot.lane.b32.xlu0 %v21483_v49, %s20131_s10  ;;  %18033 = vmatprep.mubr.msk.bf16.mxu0 %vm20129_vm0, %v26609_v2  ;;  %v21523_v51 = vpack.c.bf16 %v770_v36, %v770_v36 }
 0x299   : > { %18043 = vmatprep.subr.bf16.mxu0 %v26609_v2 }
 0x29a   : > { %v21545_v6 = vpop.permute.xlu1 %1231 }
 0x29b   : > { %18016 = vmatmul.mubr.msk.bf16.vlgmr.msra.gmra.mrb[152].mxu1 %vm1811_vm1, %v21316_v45  ;;  %1529 = vrot.lane.b32.xlu1 %v21483_v49, %s20132_s11  ;;  %v4024_v45 = vsel %vm1811_vm1, %v20996_v28, 0  ;;  %v1166_v28 = vpop.permute.xlu0 %1165 }
 0x29c   : > { %1465 = vrot.lane.b32.xlu0 %v21483_v49, %s20130_s19  ;;  %18026 = vmatpush3.bf16.xpose.msra.mxu1 %v3886_v16 }
 0x29d   : > { %18027 = vmatprep.mubr.msk.bf16.mxu1 %vm20129_vm0, %v26609_v2  ;;  %18037 = vmatprep.subr.bf16.mxu1 %v26609_v2 }
 0x29e   : > { %18034 = vmatmul.mubr.msk.bf16.vlgmr.msra.gmra.mrb[120].mxu0 %vm1811_vm1, %v21401_v43  ;;  %v3978_v43 = vsel %vm1811_vm1, %v21408_v53, 0  ;;  %v4070_v53 = vsel %vm1811_vm1, %v1372_v23, 0  ;;  %v1440_v10 = vpop.permute.xlu1 %1439 }
 0x29f   : > { %1257 = vrot.lane.b32.xlu1 %v21478_v46, %s20132_s11  ;;  %18044 = vmatpush3.bf16.xpose.msra.mxu0 %v4024_v45 }
 0x2a0   : > { %1193 = vrot.lane.b32.xlu0 %v21478_v46, %s20130_s19  ;;  %18045 = vmatprep.mubr.msk.bf16.mxu0 %vm20129_vm0, %v26609_v2 }
 0x2a1   : > { %18055 = vmatprep.subr.bf16.mxu0 %v26609_v2 }
 0x2a2   : > { %v21575_v0 = vpop.permute.xlu1 %1503 }
 0x2a3   : > { %18028 = vmatmul.mubr.msk.bf16.vlgmr.msra.gmra.mrb[156].mxu1 %vm1811_vm1, %v21377_v19  ;;  %v1374_v19 = vpop.permute.xlu0 %1373 }
 0x2a4   : > { %1403 = vrot.lane.b32.xlu0 %v21523_v51, %s20131_s10  ;;  %18038 = vmatpush3.bf16.xpose.msra.mxu1 %v3978_v43  ;;  %v21591_v43 = vld [vmem:[%s26356_s3 + $0x20] sm:$0xff]  }
 0x2a5   : > { %18039 = vmatprep.mubr.msk.bf16.mxu1 %vm20129_vm0, %v26609_v2  ;;  %18049 = vmatprep.subr.bf16.mxu1 %v26609_v2 }
 0x2a6   : > { %18046 = vmatmul.mubr.msk.bf16.vlgmr.msra.gmra.mrb[124].mxu0 %vm1811_vm1, %v20979_v35 }
 0x2a7   : > { %18056 = vmatpush3.bf16.xpose.msra.mxu0 %v4116_v26  ;;  %18057 = vmatprep.mubr.msk.bf16.mxu0 %vm20129_vm0, %v26609_v2 }
 0x2a8   : > { %18067 = vmatprep.subr.bf16.mxu0 %v26609_v2 }
 0x2ab   : > { %18040 = vmatmul.mubr.msk.bf16.vlgmr.msra.gmra.mrb[160].mxu1 %vm1811_vm1, %v21364_v32  ;;  %v21555_v32 = vpop.permute.xlu0 %1103 }
 0x2ac   : > { %18050 = vmatpush3.bf16.xpose.msra.mxu1 %v4070_v53  ;;  %18051 = vmatprep.mubr.msk.bf16.mxu1 %vm20129_vm0, %v26609_v2 }
 0x2ad   : > { %18061 = vmatprep.subr.bf16.mxu1 %v26609_v2 }
 0x2ae   : > { %v1898_v35 = vpop.f32.mrb[56].mxu1  ;;  %18058 = vmatmul.mubr.msk.bf16.vlgmr.msra.gmra.mrb[128].mxu0 %vm1811_vm1, %v1164_v57 }
 0x2af   : > { %v17765_v11 = vpop.f32.mrb[57].mxu1  ;;  %18068 = vmatpush3.bf16.xpose.msra.mxu0 %v4208_v60  ;;  %18069 = vmatprep.mubr.msk.bf16.mxu0 %vm20129_vm0, %v26609_v2  ;;  %v21566_v57 = vpop.permute.xlu0 %1167  ;;  %v21601_v60 = vunpack.c.l.bf16 %v17125_v24 }
 0x2b0   : > { %v1901_v13 = vpop.f32.mrb[58].mxu1  ;;  %18079 = vmatprep.subr.bf16.mxu0 %v26609_v2  ;;  %v4392_v11 = vsel %vm1811_vm1, %v21076_v18, 0 }
 0x2b1   : > { %v17766_v61 = vpop.f32.mrb[59].mxu1  ;;  %26627 = vst [vmem:[#allocation76_spill] sm:$0xff] %v21601_v60 }
 0x2b2   : > { %v21611_v61 = vunpack.c.l.bf16 %v21591_v43 }
 0x2b3   : > { %18052 = vmatmul.mubr.msk.bf16.vlgmr.msra.gmra.mrb[164].mxu1 %vm1811_vm1, %v21446_v7  ;;  %v17014_v7 = vld [vmem:[%s26356_s3] sm:$0xff]   ;;  %v1376_v26 = vpop.permute.xlu0 %1375 }
 0x2b4   : > { %18062 = vmatpush3.bf16.xpose.msra.mxu1 %v4162_v12  ;;  %18063 = vmatprep.mubr.msk.bf16.mxu1 %vm20129_vm0, %v26609_v2  ;;  %v21578_v36 = vunpack.c.h.bf16 %v17014_v7  ;;  %v21580_v45 = vunpack.c.l.bf16 %v17014_v7  ;;  %v4346_v7 = vsel %vm1811_vm1, %v21535_v20, 0  ;;  %v4484_v20 = vsel %vm1811_vm1, %v1440_v10, 0 }
 0x2b5   : > { %18073 = vmatprep.subr.bf16.mxu1 %v26609_v2 }
 0x2b6   : > { %v1944_v34 = vpop.f32.mrb[60].mxu1  ;;  %18070 = vmatmul.mubr.msk.bf16.vlgmr.msra.gmra.mrb[132].mxu0 %vm1811_vm1, %v21019_v30  ;;  %26625 = vst [vmem:[#allocation74_spill] sm:$0xff] %v21578_v36  ;;  %26626 = vst [vmem:[#allocation75_spill] sm:$0xff] %v21580_v45  ;;  %v4254_v30 = vsel %vm1811_vm1, %v1374_v19, 0  ;;  %v21596_v19 = vpop.permute.xlu1 %1233  ;;  %v21599_v53 = vadd.f32 %v21578_v36, %v1898_v35  ;;  %v21608_v13 = vadd.f32 %v21580_v45, %v21108_v8 }
 0x2b7   : > { %v17771_v4 = vpop.f32.mrb[61].mxu1  ;;  %18080 = vmatpush3.bf16.xpose.msra.mxu0 %v4300_v63  ;;  %18081 = vmatprep.mubr.msk.bf16.mxu0 %vm20129_vm0, %v26609_v2  ;;  %v21616_v63 = vpop.permute.xlu0 %1105  ;;  %v21619_v18 = vadd.f32 %v21601_v60, %v1944_v34 }
 0x2b8   : > { %v1947_v23 = vpop.f32.mrb[62].mxu1  ;;  %18091 = vmatprep.subr.bf16.mxu0 %v26609_v2  ;;  %v7864_v8 = vsel %vm7860_vm2, %v21599_v53, -inf  ;;  %v21625_v4 = vadd.f32 %v21611_v61, %v21135_v21  ;;  %v7861_v34 = vsel %vm7860_vm2, %v21608_v13, -inf  ;;  %v17126_v21 = vld [vmem:[%s26356_s3 + $0x10] sm:$0xff]  }
 0x2b9   : > { %v17772_v16 = vpop.f32.mrb[63].mxu1  ;;  %v21629_v23 = vunpack.c.h.bf16 %v17125_v24 }
 0x2ba   : > { %26628 = vst [vmem:[#allocation77_spill] sm:$0xff] %v21625_v4  ;;  %v1442_v16 = vpop.permute.xlu1 %1441 }
 0x2bb   : > { %18064 = vmatmul.mubr.msk.bf16.vlgmr.msra.gmra.mrb[168].mxu1 %vm1811_vm1, %v21430_v9 }
 0x2bc   : > { %18074 = vmatpush3.bf16.xpose.msra.mxu1 %v4254_v30  ;;  %18075 = vmatprep.mubr.msk.bf16.mxu1 %vm20129_vm0, %v26609_v2 }
 0x2bd   : > { %18085 = vmatprep.subr.bf16.mxu1 %v26609_v2 }
 0x2be   : > { %v1990_v9 = vpop.f32.mrb[64].mxu1  ;;  %18082 = vmatmul.mubr.msk.bf16.vlgmr.msra.gmra.mrb[136].mxu0 %vm1811_vm1, %v1166_v28 }
 0x2bf   : > { %v17777_v12 = vpop.f32.mrb[65].mxu1  ;;  %18092 = vmatpush3.bf16.xpose.msra.mxu0 %v4392_v11  ;;  %18093 = vmatprep.mubr.msk.bf16.mxu0 %vm20129_vm0, %v26609_v2  ;;  %v21647_v24 = vadd.f32 %v21629_v23, %v1990_v9  ;;  %v21649_v11 = vunpack.c.l.bf16 %v17126_v21  ;;  %v21658_v9 = vpop.permute.xlu1 %1505 }
 0x2c0   : > { %v1993_v35 = vpop.f32.mrb[66].mxu1  ;;  %18103 = vmatprep.subr.bf16.mxu0 %v26609_v2 }
 0x2c1   : > { %v17778_v28 = vpop.f32.mrb[67].mxu1  ;;  %v7885_v35 = vsel %vm7860_vm2, %v21625_v4, -inf }
 0x2c2   : > { %v21653_v28 = vpop.permute.xlu0 %1169 }
 0x2c3   : > { %18076 = vmatmul.mubr.msk.bf16.vlgmr.msra.gmra.mrb[172].mxu1 %vm1811_vm1, %v21510_v55  ;;  %7865 = vmax.xlane.f32.xlu0 %v7864_v8  ;;  %v7867_v55 = vsel %vm7860_vm2, %v21619_v18, -inf  ;;  %v4438_v8 = vsel %vm1811_vm1, %v1376_v26, 0  ;;  %v4576_v26 = vsel %vm1811_vm1, %v21118_v59, 0 }
 0x2c4   : > { %18086 = vmatpush3.bf16.xpose.msra.mxu1 %v4346_v7  ;;  %7862 = vmax.xlane.f32.xlu1 %v7861_v34  ;;  %v7870_v34 = vsel %vm7860_vm2, %v21647_v24, -inf }
 0x2c5   : > { %18087 = vmatprep.mubr.msk.bf16.mxu1 %vm20129_vm0, %v26609_v2  ;;  %18097 = vmatprep.subr.bf16.mxu1 %v26609_v2 }
 0x2c6   : > { %v2036_v30 = vpop.f32.mrb[68].mxu1  ;;  %18094 = vmatmul.mubr.msk.bf16.vlgmr.msra.gmra.mrb[140].mxu0 %vm1811_vm1, %v21061_v1 }
 0x2c7   : > { %7868 = vmax.xlane.f32.xlu0 %v7867_v55  ;;  %v17783_v12 = vpop.f32.mrb[69].mxu1  ;;  %18104 = vmatpush3.bf16.xpose.msra.mxu0 %v4484_v20  ;;  %v21662_v7 = vadd.f32 %v21649_v11, %v2036_v30  ;;  %v1378_v20 = vpop.permute.xlu0 %1377 }
 0x2c8   : > { %7886 = vmax.xlane.f32.xlu1 %v7885_v35  ;;  %v2039_v10 = vpop.f32.mrb[70].mxu1  ;;  %18105 = vmatprep.mubr.msk.bf16.mxu0 %vm20129_vm0, %v26609_v2  ;;  %v21679_v12 = vpop.permute.xlu1 %1235 }
 0x2c9   : > { %v17784_v1 = vpop.f32.mrb[71].mxu1  ;;  %18115 = vmatprep.subr.bf16.mxu0 %v26609_v2 }
 0x2ca   : > { %v21691_v1 = vld [vmem:[%s26356_s3 + $0x28] sm:$0xff]  }
 0x2cb   : > { %18088 = vmatmul.mubr.msk.bf16.vlgmr.msra.gmra.mrb[176].mxu1 %vm1811_vm1, %v21496_v40  ;;  %v7873_v40 = vsel %vm7860_vm2, %v21662_v7, -inf  ;;  %v21686_v59 = vpop.permute.xlu0 %1107 }
 0x2cc   : > { %18098 = vmatpush3.bf16.xpose.msra.mxu1 %v4438_v8  ;;  %7871 = vmax.xlane.f32.xlu1 %v7870_v34  ;;  %v4668_v8 = vsel %vm1811_vm1, %v1442_v16, 0  ;;  %v1444_v34 = vpop.permute.xlu1 %1443 }
 0x2cd   : > { %18099 = vmatprep.mubr.msk.bf16.mxu1 %vm20129_vm0, %v26609_v2  ;;  %18109 = vmatprep.subr.bf16.mxu1 %v26609_v2 }
 0x2ce   : > { %v2082_v55 = vpop.f32.mrb[72].mxu1  ;;  %18106 = vmatmul.mubr.msk.bf16.vlgmr.msra.gmra.mrb[144].mxu0 %vm1811_vm1, %v21566_v57  ;;  %v4530_v57 = vsel %vm1811_vm1, %v21575_v0, 0 }
 0x2cf   : > { %v17789_v30 = vpop.f32.mrb[73].mxu1  ;;  %18116 = vmatpush3.bf16.xpose.msra.mxu0 %v4576_v26  ;;  %18117 = vmatprep.mubr.msk.bf16.mxu0 %vm20129_vm0, %v26609_v2  ;;  %v21700_v26 = vunpack.c.l.bf16 %v21691_v1  ;;  %v21707_v16 = vpop.permute.xlu0 %1171 }
 0x2d0   : > { %7874 = vmax.xlane.f32.xlu1 %v7873_v40  ;;  %v2085_v35 = vpop.f32.mrb[74].mxu1  ;;  %18127 = vmatprep.subr.bf16.mxu0 %v26609_v2  ;;  %v21705_v40 = vunpack.c.h.bf16 %v17126_v21  ;;  %v21720_v21 = vpop.permute.xlu1 %1507 }
 0x2d1   : > { %v17790_v10 = vpop.f32.mrb[75].mxu1 }
 0x2d2   : > { %v21725_v4 = vadd.f32 %v21705_v40, %v2082_v55 }
 0x2d3   : > { %18100 = vmatmul.mubr.msk.bf16.vlgmr.msra.gmra.mrb[180].mxu1 %vm1811_vm1, %v21555_v32 }
 0x2d4   : > { %18110 = vmatpush3.bf16.xpose.msra.mxu1 %v4530_v57  ;;  %18111 = vmatprep.mubr.msk.bf16.mxu1 %vm20129_vm0, %v26609_v2  ;;  %v4622_v57 = vsel %vm1811_vm1, %v1378_v20, 0 }
 0x2d5   : > { %18121 = vmatprep.subr.bf16.mxu1 %v26609_v2 }
 0x2d6   : > { %v2128_v0 = vpop.f32.mrb[76].mxu1  ;;  %18118 = vmatmul.mubr.msk.bf16.vlgmr.msra.gmra.mrb[148].mxu0 %vm1811_vm1, %v21104_v29  ;;  %v17127_v29 = vld [vmem:[%s26356_s3 + $0x18] sm:$0xff]  }
 0x2d7   : > { %v17795_v32 = vpop.f32.mrb[77].mxu1  ;;  %18128 = vmatpush3.bf16.xpose.msra.mxu0 %v4668_v8  ;;  %18129 = vmatprep.mubr.msk.bf16.mxu0 %vm20129_vm0, %v26609_v2  ;;  %v21727_v20 = vunpack.c.l.bf16 %v17127_v29 }
 0x2d8   : > { %v2131_v30 = vpop.f32.mrb[78].mxu1  ;;  %18139 = vmatprep.subr.bf16.mxu0 %v26609_v2 }
 0x2d9   : > { %v17796_v35 = vpop.f32.mrb[79].mxu1  ;;  %v2312_v10 = vpop.f32.mrb[48].mxu0  ;;  %v21718_v30 = vunpack.c.h.bf16 %v17127_v29  ;;  %26630 = vst [vmem:[#allocation79_spill] sm:$0xff] %v21727_v20 }
 0x2da   : > { %v21714_v8 = vadd.f32 %v21700_v26, %v2312_v10  ;;  %v17819_v32 = vpop.f32.mrb[49].mxu0  ;;  %v1380_v29 = vpop.permute.xlu0 %1379 }
 0x2db   : > { %18112 = vmatmul.mubr.msk.bf16.vlgmr.msra.gmra.mrb[184].mxu1 %vm1811_vm1, %v21545_v6  ;;  %v2315_v35 = vpop.f32.mrb[50].mxu0 }
 0x2dc   : > { %26629 = vst [vmem:[#allocation78_spill] sm:$0xff] %v21714_v8  ;;  %18122 = vmatpush3.bf16.xpose.msra.mxu1 %v4622_v57  ;;  %18123 = vmatprep.mubr.msk.bf16.mxu1 %vm20129_vm0, %v26609_v2  ;;  %v17820_v10 = vpop.f32.mrb[51].mxu0  ;;  %v7891_v32 = vsel %vm7860_vm2, %v21714_v8, -inf  ;;  %v4760_v57 = vsel %vm1811_vm1, %v21163_v41, 0 }
 0x2dd   : > { %18133 = vmatprep.subr.bf16.mxu1 %v26609_v2  ;;  %7892 = vmax.xlane.f32.xlu0 %v7891_v32  ;;  %v21743_v32 = vadd.f32 %v21727_v20, %v2128_v0  ;;  %v21756_v0 = vunpack.c.h.bf16 %v21591_v43 }
 0x2de   : > { %v2174_v6 = vpop.f32.mrb[80].mxu1  ;;  %18130 = vmatmul.mubr.msk.bf16.vlgmr.msra.gmra.mrb[152].mxu0 %vm1811_vm1, %v21653_v28  ;;  %v7876_v28 = vsel %vm7860_vm2, %v21725_v4, -inf }
 0x2df   : > { %v21737_v35 = vadd.f32 %v21718_v30, %v2174_v6  ;;  %v17801_v55 = vpop.f32.mrb[81].mxu1  ;;  %18140 = vmatpush3.bf16.xpose.msra.mxu0 %v4760_v57  ;;  %18141 = vmatprep.mubr.msk.bf16.mxu0 %vm20129_vm0, %v26609_v2  ;;  %26632 = vst [vmem:[#allocation81_spill] sm:$0xff] %v21743_v32  ;;  %v21749_v6 = vpop.permute.xlu1 %1237 }
 0x2e0   : > { %v2177_v10 = vpop.f32.mrb[82].mxu1  ;;  %18151 = vmatprep.subr.bf16.mxu0 %v26609_v2  ;;  %v4714_v55 = vsel %vm1811_vm1, %v21658_v9, 0  ;;  %v4852_v9 = vsel %vm1811_vm1, %v1444_v34, 0 }
 0x2e1   : > { %26631 = vst [vmem:[#allocation80_spill] sm:$0xff] %v21737_v35  ;;  %v17802_v8 = vpop.f32.mrb[83].mxu1  ;;  %v7882_v41 = vsel %vm7860_vm2, %v21737_v35, -inf  ;;  %v2404_v57 = vpop.f32.mrb[52].mxu0  ;;  %7877 = vmax.xlane.f32.xlu0 %v7876_v28  ;;  %v7879_v28 = vsel %vm7860_vm2, %v21743_v32, -inf }
 0x2e2   : > { %7883 = vmax.xlane.f32.xlu1 %v7882_v41  ;;  %v17831_v10 = vpop.f32.mrb[53].mxu0  ;;  %v21764_v41 = vpop.permute.xlu0 %1109 }
 0x2e3   : > { %18124 = vmatmul.mubr.msk.bf16.vlgmr.msra.gmra.mrb[188].mxu1 %vm1811_vm1, %v21616_v63  ;;  %v2407_v8 = vpop.f32.mrb[54].mxu0 }
 0x2e4   : > { %18134 = vmatpush3.bf16.xpose.msra.mxu1 %v4714_v55  ;;  %18135 = vmatprep.mubr.msk.bf16.mxu1 %vm20129_vm0, %v26609_v2  ;;  %v17832_v35 = vpop.f32.mrb[55].mxu0 }
 0x2e5   : > { %18145 = vmatprep.subr.bf16.mxu1 %v26609_v2  ;;  %7880 = vmax.xlane.f32.xlu0 %v7879_v28  ;;  %v1446_v35 = vpop.permute.xlu1 %1445  ;;  %v4806_v28 = vsel %vm1811_vm1, %v1380_v29, 0 }
 0x2e6   : > { %v2266_v63 = vpop.f32.mrb[84].mxu1  ;;  %18142 = vmatmul.mubr.msk.bf16.vlgmr.msra.gmra.mrb[156].mxu0 %vm1811_vm1, %v21147_v33  ;;  %v17130_v33 = vld [vmem:[%s26356_s3 + $0x30] sm:$0xff]  }
 0x2e7   : > { %v21769_v43 = vadd.f32 %v21756_v0, %v2266_v63  ;;  %v17813_v55 = vpop.f32.mrb[85].mxu1  ;;  %18152 = vmatpush3.bf16.xpose.msra.mxu0 %v4852_v9  ;;  %18153 = vmatprep.mubr.msk.bf16.mxu0 %vm20129_vm0, %v26609_v2  ;;  %v21783_v9 = vunpack.c.h.bf16 %v21691_v1  ;;  %v1174_v63 = vpop.permute.xlu0 %1173 }
 0x2e8   : > { %v2269_v10 = vpop.f32.mrb[86].mxu1  ;;  %18163 = vmatprep.subr.bf16.mxu0 %v26609_v2  ;;  %v21787_v55 = vunpack.c.l.bf16 %v17130_v33 }
 0x2e9   : > { %26633 = vst [vmem:[#allocation82_spill] sm:$0xff] %v21769_v43  ;;  %v17814_v34 = vpop.f32.mrb[87].mxu1  ;;  %v7888_v8 = vsel %vm7860_vm2, %v21769_v43, -inf  ;;  %26634 = vst [vmem:[#allocation83_spill] sm:$0xff] %v21783_v9  ;;  %v21790_v10 = vpop.permute.xlu1 %1509 }
 0x2ea   : > { %7889 = vmax.xlane.f32.xlu0 %v7888_v8  ;;  %26635 = vst [vmem:[#allocation84_spill] sm:$0xff] %v21787_v55 }
 0x2eb   : > { %18136 = vmatmul.mubr.msk.bf16.vlgmr.msra.gmra.mrb[192].mxu1 %vm1811_vm1, %v21596_v19  ;;  %v4944_v19 = vsel %vm1811_vm1, %v21203_v5, 0  ;;  %v1382_v32 = vpop.permute.xlu0 %1381 }
 0x2ec   : > { %18146 = vmatpush3.bf16.xpose.msra.mxu1 %v4806_v28  ;;  %18147 = vmatprep.mubr.msk.bf16.mxu1 %vm20129_vm0, %v26609_v2  ;;  %v21803_v28 = vadd.f32 %v21787_v55, %v2404_v57 }
 0x2ed   : > { %18157 = vmatprep.subr.bf16.mxu1 %v26609_v2 }
 0x2ee   : > { %v2358_v34 = vpop.f32.mrb[88].mxu1  ;;  %18154 = vmatmul.mubr.msk.bf16.vlgmr.msra.gmra.mrb[160].mxu0 %vm1811_vm1, %v21707_v16  ;;  %26637 = vst [vmem:[#allocation86_spill] sm:$0xff] %v21803_v28 }
 0x2ef   : > { %v21797_v1 = vadd.f32 %v21783_v9, %v2358_v34  ;;  %v17825_v29 = vpop.f32.mrb[89].mxu1  ;;  %18164 = vmatpush3.bf16.xpose.msra.mxu0 %v4944_v19  ;;  %18165 = vmatprep.mubr.msk.bf16.mxu0 %vm20129_vm0, %v26609_v2  ;;  %v4898_v34 = vsel %vm1811_vm1, %v21720_v21, 0  ;;  %v5036_v21 = vsel %vm1811_vm1, %v1446_v35, 0 }
 0x2f0   : > { %v2361_v8 = vpop.f32.mrb[90].mxu1  ;;  %18175 = vmatprep.subr.bf16.mxu0 %v26609_v2  ;;  %v21813_v29 = vunpack.c.h.bf16 %v17130_v33 }
 0x2f1   : > { %26636 = vst [vmem:[#allocation85_spill] sm:$0xff] %v21797_v1  ;;  %v17826_v43 = vpop.f32.mrb[91].mxu1  ;;  %v7894_v16 = vsel %vm7860_vm2, %v21797_v1, -inf  ;;  %v21807_v5 = vpop.f32.mrb[56].mxu0 }
 0x2f2   : > { %7895 = vmax.xlane.f32.xlu1 %v7894_v16  ;;  %v17843_v19 = vpop.f32.mrb[57].mxu0  ;;  %26638 = vst [vmem:[#allocation87_spill] sm:$0xff] %v21813_v29  ;;  %v21815_v8 = vpop.permute.xlu1 %1239  ;;  %v7897_v16 = vsel %vm7860_vm2, %v21803_v28, -inf }
 0x2f3   : > { %18148 = vmatmul.mubr.msk.bf16.vlgmr.msra.gmra.mrb[196].mxu1 %vm1811_vm1, %v21686_v59  ;;  %v2499_v57 = vpop.f32.mrb[58].mxu0 }
 0x2f4   : > { %18158 = vmatpush3.bf16.xpose.msra.mxu1 %v4898_v34  ;;  %18159 = vmatprep.mubr.msk.bf16.mxu1 %vm20129_vm0, %v26609_v2  ;;  %v17844_v43 = vpop.f32.mrb[59].mxu0  ;;  %v21830_v34 = vpop.permute.xlu0 %1111 }
 0x2f5   : > { %18169 = vmatprep.subr.bf16.mxu1 %v26609_v2 }
 0x2f6   : > { %7898 = vmax.xlane.f32.xlu1 %v7897_v16  ;;  %v2450_v19 = vpop.f32.mrb[92].mxu1  ;;  %18166 = vmatmul.mubr.msk.bf16.vlgmr.msra.gmra.mrb[164].mxu0 %vm1811_vm1, %v21191_v38  ;;  %v1448_v16 = vpop.permute.xlu1 %1447  ;;  %v4990_v38 = vsel %vm1811_vm1, %v1382_v32, 0  ;;  %v5128_v32 = vsel %vm1811_vm1, %v21247_v58, 0 }
 0x2f7   : > { %v21826_v59 = vadd.f32 %v21813_v29, %v2450_v19  ;;  %v17837_v33 = vpop.f32.mrb[93].mxu1  ;;  %18176 = vmatpush3.bf16.xpose.msra.mxu0 %v5036_v21  ;;  %18177 = vmatprep.mubr.msk.bf16.mxu0 %vm20129_vm0, %v26609_v2 }
 0x2f8   : > { %v2453_v57 = vpop.f32.mrb[94].mxu1  ;;  %18187 = vmatprep.subr.bf16.mxu0 %v26609_v2 }
 0x2f9   : > { %26639 = vst [vmem:[#allocation88_spill] sm:$0xff] %v21826_v59  ;;  %v17838_v43 = vpop.f32.mrb[95].mxu1  ;;  %v7900_v35 = vsel %vm7860_vm2, %v21826_v59, -inf  ;;  %v21835_v28 = vpop.f32.mrb[60].mxu0 }
 0x2fa   : > { %7901 = vmax.xlane.f32.xlu0 %v7900_v35  ;;  %v17855_v19 = vpop.f32.mrb[61].mxu0  ;;  %v1176_v57 = vpop.permute.xlu0 %1175 }
 0x2fb   : > { %18160 = vmatmul.mubr.msk.bf16.vlgmr.msra.gmra.mrb[200].mxu1 %vm1811_vm1, %v21679_v12  ;;  %v2591_v21 = vpop.f32.mrb[62].mxu0  ;;  %v1512_v12 = vpop.permute.xlu1 %1511  ;;  %v768_v19 = vadd.f32 %v20519_v50, %v20373_v47  ;;  %v5220_v50 = vsel %vm1811_vm1, %v1448_v16, 0 }
 0x2fc   : > { %18170 = vmatpush3.bf16.xpose.msra.mxu1 %v4990_v38  ;;  %18171 = vmatprep.mubr.msk.bf16.mxu1 %vm20129_vm0, %v26609_v2  ;;  %v17856_v33 = vpop.f32.mrb[63].mxu0 }
 0x2fd   : > { %18181 = vmatprep.subr.bf16.mxu1 %v26609_v2 }
 0x2fe   : > { %v21843_v43 = vpop.f32.mrb[96].mxu1  ;;  %18178 = vmatmul.mubr.msk.bf16.vlgmr.msra.gmra.mrb[168].mxu0 %vm1811_vm1, %v1174_v63  ;;  %v5082_v63 = vsel %vm1811_vm1, %v21790_v10, 0 }
 0x2ff   : > { %v17849_v35 = vpop.f32.mrb[97].mxu1  ;;  %18188 = vmatpush3.bf16.xpose.msra.mxu0 %v5128_v32  ;;  %18189 = vmatprep.mubr.msk.bf16.mxu0 %vm20129_vm0, %v26609_v2  ;;  %v1384_v32 = vpop.permute.xlu0 %1383 }
 0x300   : > { %v2545_v38 = vpop.f32.mrb[98].mxu1  ;;  %18199 = vmatprep.subr.bf16.mxu0 %v26609_v2 }
 0x301   : > { %v17850_v21 = vpop.f32.mrb[99].mxu1  ;;  %v21853_v33 = vpop.f32.mrb[64].mxu0  ;;  %v21861_v38 = vpack.c.bf16 %v768_v19, %v768_v19 }
 0x302   : > { %v17867_v58 = vpop.f32.mrb[65].mxu0  ;;  %v21865_v21 = vpop.permute.xlu1 %1241 }
 0x303   : > { %18172 = vmatmul.mubr.msk.bf16.vlgmr.msra.gmra.mrb[204].mxu1 %vm1811_vm1, %v21764_v41  ;;  %v2683_v35 = vpop.f32.mrb[66].mxu0  ;;  %v21878_v16 = vpop.permute.xlu0 %1113 }
 0x304   : > { %18182 = vmatpush3.bf16.xpose.msra.mxu1 %v5082_v63  ;;  %18183 = vmatprep.mubr.msk.bf16.mxu1 %vm20129_vm0, %v26609_v2  ;;  %v17868_v59 = vpop.f32.mrb[67].mxu0 }
 0x305   : > { %18193 = vmatprep.subr.bf16.mxu1 %v26609_v2 }
 0x306   : > { %18190 = vmatmul.mubr.msk.bf16.vlgmr.msra.gmra.mrb[172].mxu0 %vm1811_vm1, %v21231_v3  ;;  %v21869_v41 = vpop.f32.mrb[100].mxu1  ;;  %v5174_v3 = vsel %vm1811_vm1, %v1384_v32, 0 }
 0x307   : > { %1131 = vrot.lane.b32.xlu1 %v21861_v38, %s20131_s10  ;;  %18200 = vmatpush3.bf16.xpose.msra.mxu0 %v5220_v50  ;;  %v17861_v10 = vpop.f32.mrb[101].mxu1  ;;  %v1450_v50 = vpop.permute.xlu1 %1449 }
 0x308   : > { %v2637_v63 = vpop.f32.mrb[102].mxu1  ;;  %18201 = vmatprep.mubr.msk.bf16.mxu0 %vm20129_vm0, %v26609_v2  ;;  %18211 = vmatprep.subr.bf16.mxu0 %v26609_v2 }
 0x309   : > { %v21876_v59 = vpop.f32.mrb[68].mxu0  ;;  %v17862_v35 = vpop.f32.mrb[103].mxu1 }
 0x30a   : > { %v17879_v19 = vpop.f32.mrb[69].mxu0 }
 0x30b   : > { %18184 = vmatmul.mubr.msk.bf16.vlgmr.msra.gmra.mrb[208].mxu1 %vm1811_vm1, %v21749_v6  ;;  %1531 = vrot.lane.b32.xlu1 %v21523_v51, %s20132_s11  ;;  %v2775_v58 = vpop.f32.mrb[70].mxu0  ;;  %v5312_v6 = vsel %vm1811_vm1, %v21291_v14, 0  ;;  %v1178_v19 = vpop.permute.xlu0 %1177 }
 0x30c   : > { %18194 = vmatpush3.bf16.xpose.msra.mxu1 %v5174_v3  ;;  %v17880_v10 = vpop.f32.mrb[71].mxu0  ;;  %18195 = vmatprep.mubr.msk.bf16.mxu1 %vm20129_vm0, %v26609_v2  ;;  %v1514_v35 = vpop.permute.xlu1 %1513 }
 0x30d   : > { %18205 = vmatprep.subr.bf16.mxu1 %v26609_v2  ;;  %v5450_v55 = vsel %vm1811_vm1, %v1514_v35, 0 }
 0x30e   : > { %v21888_v63 = vpop.f32.mrb[104].mxu1  ;;  %18202 = vmatmul.mubr.msk.bf16.vlgmr.msra.gmra.mrb[176].mxu0 %vm1811_vm1, %v1176_v57  ;;  %v5266_v57 = vsel %vm1811_vm1, %v1512_v12, 0 }
 0x30f   : > { %v17873_v32 = vpop.f32.mrb[105].mxu1  ;;  %18212 = vmatpush3.bf16.xpose.msra.mxu0 %v5312_v6  ;;  %18213 = vmatprep.mubr.msk.bf16.mxu0 %vm20129_vm0, %v26609_v2 }
 0x310   : > { %1467 = vrot.lane.b32.xlu0 %v21523_v51, %s20130_s19  ;;  %v2729_v3 = vpop.f32.mrb[106].mxu1  ;;  %18223 = vmatprep.subr.bf16.mxu0 %v26609_v2  ;;  %v5404_v32 = vsel %vm1811_vm1, %v1450_v50, 0 }
 0x311   : > { %v17874_v58 = vpop.f32.mrb[107].mxu1  ;;  %v21898_v10 = vpop.f32.mrb[72].mxu0 }
 0x312   : > { %v17891_v1 = vpop.f32.mrb[73].mxu0  ;;  %v1386_v3 = vpop.permute.xlu0 %1385 }
 0x313   : > { %18196 = vmatmul.mubr.msk.bf16.vlgmr.msra.gmra.mrb[212].mxu1 %vm1811_vm1, %v21830_v34  ;;  %v2867_v14 = vpop.f32.mrb[74].mxu0  ;;  %v21913_v34 = vpop.permute.xlu1 %1243 }
 0x314   : > { %18206 = vmatpush3.bf16.xpose.msra.mxu1 %v5266_v57  ;;  %18207 = vmatprep.mubr.msk.bf16.mxu1 %vm20129_vm0, %v26609_v2  ;;  %v17892_v6 = vpop.f32.mrb[75].mxu0 }
 0x315   : > { %18217 = vmatprep.subr.bf16.mxu1 %v26609_v2  ;;  %v5358_v6 = vsel %vm1811_vm1, %v1386_v3, 0  ;;  %v5496_v3 = vsel %vm1811_vm1, %v21339_v15, 0 }
 0x316   : > { %v21907_v58 = vpop.f32.mrb[108].mxu1  ;;  %18214 = vmatmul.mubr.msk.bf16.vlgmr.msra.gmra.mrb[180].mxu0 %vm1811_vm1, %v21277_v31 }
 0x317   : > { %v17885_v1 = vpop.f32.mrb[109].mxu1  ;;  %18224 = vmatpush3.bf16.xpose.msra.mxu0 %v5404_v32  ;;  %18225 = vmatprep.mubr.msk.bf16.mxu0 %vm20129_vm0, %v26609_v2 }
 0x318   : > { %v2821_v12 = vpop.f32.mrb[110].mxu1  ;;  %18235 = vmatprep.subr.bf16.mxu0 %v26609_v2  ;;  %v21921_v1 = vpop.permute.xlu0 %1115 }
 0x319   : > { %v17886_v57 = vpop.f32.mrb[111].mxu1  ;;  %v21916_v14 = vpop.f32.mrb[76].mxu0 }
 0x31a   : > { %v17903_v50 = vpop.f32.mrb[77].mxu0  ;;  %v1452_v12 = vpop.permute.xlu1 %1451 }
 0x31b   : > { %18208 = vmatmul.mubr.msk.bf16.vlgmr.msra.gmra.mrb[216].mxu1 %vm1811_vm1, %v21815_v8  ;;  %v2959_v31 = vpop.f32.mrb[78].mxu0 }
 0x31c   : > { %18218 = vmatpush3.bf16.xpose.msra.mxu1 %v5358_v6  ;;  %v17904_v32 = vpop.f32.mrb[79].mxu0  ;;  %18219 = vmatprep.mubr.msk.bf16.mxu1 %vm20129_vm0, %v26609_v2 }
 0x31d   : > { %18229 = vmatprep.subr.bf16.mxu1 %v26609_v2  ;;  %v1180_v32 = vpop.permute.xlu0 %1179 }
 0x31e   : > { %v21926_v57 = vpop.f32.mrb[112].mxu1  ;;  %18226 = vmatmul.mubr.msk.bf16.vlgmr.msra.gmra.mrb[184].mxu0 %vm1811_vm1, %v1178_v19  ;;  %v17131_v19 = vld [vmem:[%s26356_s3 + $0x38] sm:$0xff]  }
 0x31f   : > { %v17897_v50 = vpop.f32.mrb[113].mxu1  ;;  %18236 = vmatpush3.bf16.xpose.msra.mxu0 %v5496_v3  ;;  %18237 = vmatprep.mubr.msk.bf16.mxu0 %vm20129_vm0, %v26609_v2  ;;  %v1516_v3 = vpop.permute.xlu1 %1515  ;;  %v21948_v35 = vunpack.c.h.bf16 %v17131_v19 }
 0x320   : > { %v2913_v8 = vpop.f32.mrb[114].mxu1  ;;  %18247 = vmatprep.subr.bf16.mxu0 %v26609_v2 }
 0x321   : > { %v17898_v6 = vpop.f32.mrb[115].mxu1  ;;  %v21934_v31 = vpop.f32.mrb[80].mxu0  ;;  %v21946_v8 = vunpack.c.l.bf16 %v17131_v19  ;;  %26641 = vst [vmem:[#allocation90_spill] sm:$0xff] %v21948_v35 }
 0x322   : > { %v17915_v29 = vpop.f32.mrb[81].mxu0 }
 0x323   : > { %18220 = vmatmul.mubr.msk.bf16.vlgmr.msra.gmra.mrb[220].mxu1 %vm1811_vm1, %v21878_v16  ;;  %v3051_v15 = vpop.f32.mrb[82].mxu0  ;;  %v5588_v29 = vsel %vm1811_vm1, %v1452_v12, 0  ;;  %26640 = vst [vmem:[#allocation89_spill] sm:$0xff] %v21946_v8  ;;  %v21959_v9 = vpop.permute.xlu1 %1245  ;;  %v21963_v19 = vadd.f32 %v21946_v8, %v21807_v5 }
 0x324   : > { %18230 = vmatpush3.bf16.xpose.msra.mxu1 %v5450_v55  ;;  %v17916_v50 = vpop.f32.mrb[83].mxu0  ;;  %18231 = vmatprep.mubr.msk.bf16.mxu1 %vm20129_vm0, %v26609_v2  ;;  %v1388_v55 = vpop.permute.xlu0 %1387 }
 0x325   : > { %18241 = vmatprep.subr.bf16.mxu1 %v26609_v2  ;;  %26642 = vst [vmem:[#allocation91_spill] sm:$0xff] %v21963_v19 }
 0x326   : > { %v21950_v6 = vpop.f32.mrb[116].mxu1  ;;  %18238 = vmatmul.mubr.msk.bf16.vlgmr.msra.gmra.mrb[188].mxu0 %vm1811_vm1, %v21321_v56  ;;  %v21967_v56 = vadd.f32 %v21948_v35, %v21843_v43  ;;  %v7903_v43 = vsel %vm7860_vm2, %v21963_v19, -inf  ;;  %v26688_v35 = vld [vmem:[#allocation72_spill] sm:$0xff] }
 0x327   : > { %v17909_v16 = vpop.f32.mrb[117].mxu1  ;;  %18248 = vmatpush3.bf16.xpose.msra.mxu0 %v5588_v29  ;;  %18249 = vmatprep.mubr.msk.bf16.mxu0 %vm20129_vm0, %v26609_v2 }
 0x328   : > { %v3005_v15 = vpop.f32.mrb[118].mxu1  ;;  %18259 = vmatprep.subr.bf16.mxu0 %v26609_v2  ;;  %26643 = vst [vmem:[#allocation92_spill] sm:$0xff] %v21967_v56  ;;  %v5542_v16 = vsel %vm1811_vm1, %v1388_v55, 0  ;;  %v1118_v5 = vpop.permute.xlu0 %1117  ;;  %v7906_v55 = vsel %vm7860_vm2, %v21967_v56, -inf }
 0x329   : > { %v17910_v50 = vpop.f32.mrb[119].mxu1  ;;  %v21957_v12 = vpop.f32.mrb[84].mxu0 }
 0x32a   : > { %v17927_v29 = vpop.f32.mrb[85].mxu0 }
 0x32b   : > { %18232 = vmatmul.mubr.msk.bf16.vlgmr.msra.gmra.mrb[224].mxu1 %vm1811_vm1, %v21865_v21  ;;  %v3143_v15 = vpop.f32.mrb[86].mxu0  ;;  %v5680_v29 = vsel %vm1811_vm1, %v21397_v37, 0 }
 0x32c   : > { %18242 = vmatpush3.bf16.xpose.msra.mxu1 %v5542_v16  ;;  %v17928_v50 = vpop.f32.mrb[87].mxu0  ;;  %18243 = vmatprep.mubr.msk.bf16.mxu1 %vm20129_vm0, %v26609_v2  ;;  %v21984_v16 = vpop.permute.xlu1 %1253 }
 0x32d   : > { %18253 = vmatprep.subr.bf16.mxu1 %v26609_v2  ;;  %v1182_v37 = vpop.permute.xlu0 %1181 }
 0x32e   : > { %v21975_v8 = vpop.f32.mrb[120].mxu1  ;;  %18250 = vmatmul.mubr.msk.bf16.vlgmr.msra.gmra.mrb[192].mxu0 %vm1811_vm1, %v1180_v32 }
 0x32f   : > { %7904 = vmax.xlane.f32.xlu0 %v7903_v43  ;;  %7907 = vmax.xlane.f32.xlu1 %v7906_v55  ;;  %v17921_v21 = vpop.f32.mrb[121].mxu1  ;;  %v5634_v43 = vsel %vm1811_vm1, %v1516_v3, 0 }
 0x330   : > { %v3097_v15 = vpop.f32.mrb[122].mxu1  ;;  %18260 = vmatpush3.bf16.xpose.msra.mxu0 %v5680_v29  ;;  %18261 = vmatprep.mubr.msk.bf16.mxu0 %vm20129_vm0, %v26609_v2  ;;  %v1454_v29 = vpop.permute.xlu1 %1453 }
 0x331   : > { %v17922_v32 = vpop.f32.mrb[123].mxu1  ;;  %v21988_v50 = vpop.f32.mrb[88].mxu0  ;;  %18271 = vmatprep.subr.bf16.mxu0 %v26609_v2 }
 0x332   : > { %v17939_v19 = vpop.f32.mrb[89].mxu0  ;;  %v5772_v32 = vsel %vm1811_vm1, %v1454_v29, 0 }
 0x333   : > { %18244 = vmatmul.mubr.msk.bf16.vlgmr.msra.gmra.mrb[228].mxu1 %vm1811_vm1, %v21921_v1  ;;  %v3235_v55 = vpop.f32.mrb[90].mxu0 }
 0x334   : > { %18254 = vmatpush3.bf16.xpose.msra.mxu1 %v5634_v43  ;;  %v17940_v21 = vpop.f32.mrb[91].mxu0  ;;  %18255 = vmatprep.mubr.msk.bf16.mxu1 %vm20129_vm0, %v26609_v2  ;;  %v1390_v55 = vpop.permute.xlu0 %1389 }
 0x335   : > { %18265 = vmatprep.subr.bf16.mxu1 %v26609_v2  ;;  %v5726_v56 = vsel %vm1811_vm1, %v1390_v55, 0  ;;  %v1518_v55 = vpop.permute.xlu1 %1517 }
 0x336   : > { %v21997_v15 = vpop.f32.mrb[124].mxu1 }
 0x337   : > { %v17933_v19 = vpop.f32.mrb[125].mxu1  ;;  %18262 = vmatmul.mubr.msk.bf16.vlgmr.msra.gmra.mrb[196].mxu0 %vm1811_vm1, %v21368_v22 }
 0x338   : > { %v3189_v3 = vpop.f32.mrb[126].mxu1  ;;  %18272 = vmatpush3.bf16.xpose.msra.mxu0 %v5772_v32  ;;  %18273 = vmatprep.mubr.msk.bf16.mxu0 %vm20129_vm0, %v26609_v2 }
 0x339   : > { %v17934_v1 = vpop.f32.mrb[127].mxu1  ;;  %v22004_v43 = vpop.f32.mrb[92].mxu0  ;;  %18283 = vmatprep.subr.bf16.mxu0 %v26609_v2  ;;  %v5864_v3 = vsel %vm1811_vm1, %v20427_v17, 0  ;;  %v5818_v17 = vsel %vm1811_vm1, %v1518_v55, 0 }
 0x33a   : > { %26644 = vst [vmem:[#allocation93_spill] sm:$0xff] %v22004_v43  ;;  %v17951_v21 = vpop.f32.mrb[93].mxu0 }
 0x33b   : > { %18256 = vmatmul.mubr.msk.bf16.vlgmr.msra.gmra.mrb[232].mxu1 %vm1811_vm1, %v21913_v34  ;;  %v3327_v29 = vpop.f32.mrb[94].mxu0 }
 0x33c   : > { %18266 = vmatpush3.bf16.xpose.msra.mxu1 %v5726_v56  ;;  %v17952_v22 = vpop.f32.mrb[95].mxu0  ;;  %18267 = vmatprep.mubr.msk.bf16.mxu1 %vm20129_vm0, %v26609_v2 }
 0x33d   : > { %18277 = vmatprep.subr.bf16.mxu1 %v26609_v2 }
 0x33e   : > { %v22013_v32 = vpop.f32.mrb[128].mxu1 }
 0x33f   : > { %26645 = vst [vmem:[#allocation94_spill] sm:$0xff] %v22013_v32  ;;  %v17945_v19 = vpop.f32.mrb[129].mxu1  ;;  %18274 = vmatmul.mubr.msk.bf16.vlgmr.msra.gmra.mrb[200].mxu0 %vm1811_vm1, %v1182_v37  ;;  %v774_v37 = vadd.f32 %v20527_v54, %v20376_v48  ;;  %v5956_v54 = vsel %vm1811_vm1, %v20805_v52, 0 }
 0x340   : > { %18284 = vmatpush3.bf16.xpose.msra.mxu0 %v5864_v3  ;;  %1259 = vrot.lane.b32.xlu1 %v21861_v38, %s20132_s11  ;;  %v3281_v34 = vpop.f32.mrb[130].mxu1 }
 0x341   : > { %v17946_v56 = vpop.f32.mrb[131].mxu1  ;;  %v22020_v1 = vpop.f32.mrb[96].mxu0  ;;  %18285 = vmatprep.mubr.msk.bf16.mxu0 %vm20129_vm0, %v26609_v2  ;;  %18295 = vmatprep.subr.bf16.mxu0 %v26609_v2  ;;  %v22038_v3 = vpack.c.bf16 %v774_v37, %v774_v37  ;;  %v26650_v37 = vld [vmem:[#allocation60_spill] sm:$0xff] }
 0x342   : > { %26646 = vst [vmem:[#allocation95_spill] sm:$0xff] %v22020_v1  ;;  %v17963_v21 = vpop.f32.mrb[97].mxu0  ;;  %v26662_v1 = vld [vmem:[#allocation57_spill] sm:$0xff] }
 0x343   : > { %18268 = vmatmul.mubr.msk.bf16.vlgmr.msra.gmra.mrb[236].mxu1 %vm1811_vm1, %v1118_v5  ;;  %v3419_v29 = vpop.f32.mrb[98].mxu0  ;;  %v26648_v5 = vld [vmem:[#allocation12_spill] sm:$0xff] }
 0x344   : > { %18278 = vmatpush3.bf16.xpose.msra.mxu1 %v5818_v17  ;;  %v17964_v22 = vpop.f32.mrb[99].mxu0  ;;  %18279 = vmatprep.mubr.msk.bf16.mxu1 %vm20129_vm0, %v26609_v2  ;;  %v5910_v17 = vsel %vm1811_vm1, %v26650_v37, 0 }
 0x345   : > { %1195 = vrot.lane.b32.xlu0 %v21861_v38, %s20130_s19  ;;  %18289 = vmatprep.subr.bf16.mxu1 %v26609_v2 }
 0x346   : > { %v22034_v19 = vpop.f32.mrb[132].mxu1 }
 0x347   : > { %26647 = vst [vmem:[#allocation96_spill] sm:$0xff] %v22034_v19  ;;  %v17957_v34 = vpop.f32.mrb[133].mxu1  ;;  %18286 = vmatmul.mubr.msk.bf16.vlgmr.msra.gmra.mrb[204].mxu0 %vm1811_vm1, %v26648_v5  ;;  %v26652_v5 = vld [vmem:[#allocation58_spill] sm:$0xff] }
 0x348   : > { %v3373_v56 = vpop.f32.mrb[134].mxu1  ;;  %18296 = vmatpush3.bf16.xpose.msra.mxu0 %v5956_v54  ;;  %18297 = vmatprep.mubr.msk.bf16.mxu0 %vm20129_vm0, %v26609_v2 }
 0x349   : > { %1405 = vrot.lane.b32.xlu0 %v22038_v3, %s20131_s10  ;;  %v17958_v55 = vpop.f32.mrb[135].mxu1  ;;  %v22046_v21 = vpop.f32.mrb[100].mxu0  ;;  %18307 = vmatprep.subr.bf16.mxu0 %v26609_v2  ;;  %v26653_v56 = vld [vmem:[#allocation14_spill] sm:$0xff] }
 0x34a   : > { %26649 = vst [vmem:[#allocation12_spill] sm:$0xff] %v22046_v21  ;;  %v17975_v52 = vpop.f32.mrb[101].mxu0  ;;  %v6048_v55 = vsel %vm1811_vm1, %v26653_v56, 0 }
 0x34b   : > { %18280 = vmatmul.mubr.msk.bf16.vlgmr.msra.gmra.mrb[240].mxu1 %vm1811_vm1, %v21959_v9  ;;  %v3511_v29 = vpop.f32.mrb[102].mxu0  ;;  %v22062_v52 = vpop.permute.xlu0 %1189 }
 0x34c   : > { %18290 = vmatpush3.bf16.xpose.msra.mxu1 %v5910_v17  ;;  %v17976_v22 = vpop.f32.mrb[103].mxu0  ;;  %18291 = vmatprep.mubr.msk.bf16.mxu1 %vm20129_vm0, %v26609_v2  ;;  %v26655_v29 = vld [vmem:[#allocation59_spill] sm:$0xff] }
 0x34d   : > { %18301 = vmatprep.subr.bf16.mxu1 %v26609_v2  ;;  %v6002_v22 = vsel %vm1811_vm1, %v26655_v29, 0 }
 0x34e   : > { %v22056_v54 = vpop.f32.mrb[136].mxu1 }
 0x34f   : > { %26651 = vst [vmem:[#allocation60_spill] sm:$0xff] %v22056_v54  ;;  %v17969_v34 = vpop.f32.mrb[137].mxu1  ;;  %18298 = vmatmul.mubr.msk.bf16.vlgmr.msra.gmra.mrb[208].mxu0 %vm1811_vm1, %v26652_v5  ;;  %v26656_v5 = vld [vmem:[#allocation56_spill] sm:$0xff] }
 0x350   : > { %18308 = vmatpush3.bf16.xpose.msra.mxu0 %v6048_v55  ;;  %v3465_v9 = vpop.f32.mrb[138].mxu1  ;;  %18309 = vmatprep.mubr.msk.bf16.mxu0 %vm20129_vm0, %v26609_v2 }
 0x351   : > { %v17970_v37 = vpop.f32.mrb[139].mxu1  ;;  %18319 = vmatprep.subr.bf16.mxu0 %v26609_v2  ;;  %v22067_v17 = vpop.f32.mrb[104].mxu0 }
 0x352   : > { %26654 = vst [vmem:[#allocation58_spill] sm:$0xff] %v22067_v17  ;;  %v17987_v34 = vpop.f32.mrb[105].mxu0  ;;  %v22076_v9 = vpop.permute.xlu0 %1399  ;;  %v26658_v17 = vld [vmem:[#allocation64_spill] sm:$0xff] }
 0x353   : > { %18292 = vmatmul.mubr.msk.bf16.vlgmr.msra.gmra.mrb[244].mxu1 %vm1811_vm1, %v26656_v5  ;;  %v3603_v56 = vpop.f32.mrb[106].mxu0  ;;  %v6140_v21 = vsel %vm1811_vm1, %v26658_v17, 0  ;;  %v26659_v34 = vld [vmem:[#allocation13_spill] sm:$0xff] }
 0x354   : > { %18302 = vmatpush3.bf16.xpose.msra.mxu1 %v6002_v22  ;;  %18303 = vmatprep.mubr.msk.bf16.mxu1 %vm20129_vm0, %v26609_v2  ;;  %v17988_v55 = vpop.f32.mrb[107].mxu0 }
 0x355   : > { %18313 = vmatprep.subr.bf16.mxu1 %v26609_v2  ;;  %v26661_v55 = vld [vmem:[#allocation66_spill] sm:$0xff] }
 0x356   : > { %v22078_v37 = vpop.f32.mrb[140].mxu1  ;;  %v22093_v17 = vpop.permute.xlu0 %1463 }
 0x357   : > { %26657 = vst [vmem:[#allocation14_spill] sm:$0xff] %v22078_v37  ;;  %v17981_v29 = vpop.f32.mrb[141].mxu1  ;;  %18310 = vmatmul.mubr.msk.bf16.vlgmr.msra.gmra.mrb[212].mxu0 %vm1811_vm1, %v26659_v34  ;;  %v6094_v37 = vsel %vm1811_vm1, %v26661_v55, 0  ;;  %v22098_v34 = vpop.permute.xlu1 %1127  ;;  %v26666_v55 = vld [vmem:[#allocation23_spill] sm:$0xff] }
 0x358   : > { %v3557_v5 = vpop.f32.mrb[142].mxu1  ;;  %18320 = vmatpush3.bf16.xpose.msra.mxu0 %v6140_v21  ;;  %18321 = vmatprep.mubr.msk.bf16.mxu0 %vm20129_vm0, %v26609_v2 }
 0x359   : > { %v17982_v22 = vpop.f32.mrb[143].mxu1  ;;  %18331 = vmatprep.subr.bf16.mxu0 %v26609_v2  ;;  %v22087_v56 = vpop.f32.mrb[108].mxu0 }
 0x35a   : > { %26660 = vst [vmem:[#allocation59_spill] sm:$0xff] %v22087_v56  ;;  %v17999_v54 = vpop.f32.mrb[109].mxu0 }
 0x35b   : > { %18304 = vmatmul.mubr.msk.bf16.vlgmr.msra.gmra.mrb[248].mxu1 %vm1811_vm1, %v26662_v1  ;;  %v3695_v29 = vpop.f32.mrb[110].mxu0  ;;  %v22104_v54 = vadd.f32 %v21580_v45, %v21835_v28  ;;  %v26665_v1 = vld [vmem:[#allocation62_spill] sm:$0xff] }
 0x35c   : > { %18314 = vmatpush3.bf16.xpose.msra.mxu1 %v6094_v37  ;;  %18315 = vmatprep.mubr.msk.bf16.mxu1 %vm20129_vm0, %v26609_v2  ;;  %v18000_v21 = vpop.f32.mrb[111].mxu0  ;;  %v6232_v37 = vsel %vm1811_vm1, %v26666_v55, 0  ;;  %v26670_v55 = vld [vmem:[#allocation61_spill] sm:$0xff] }
 0x35d   : > { %18325 = vmatprep.subr.bf16.mxu1 %v26609_v2  ;;  %26664 = vst [vmem:[#allocation64_spill] sm:$0xff] %v22104_v54 }
 0x35e   : > { %v22100_v5 = vpop.f32.mrb[144].mxu1 }
 0x35f   : > { %26663 = vst [vmem:[#allocation56_spill] sm:$0xff] %v22100_v5  ;;  %v17993_v22 = vpop.f32.mrb[145].mxu1  ;;  %18322 = vmatmul.mubr.msk.bf16.vlgmr.msra.gmra.mrb[216].mxu0 %vm1811_vm1, %v26665_v1  ;;  %v22115_v5 = vpop.permute.xlu0 %1191  ;;  %v22121_v1 = vadd.f32 %v21578_v36, %v21869_v41  ;;  %v6324_v41 = vsel %vm1811_vm1, %v20957_v39, 0 }
 0x360   : > { %v3649_v29 = vpop.f32.mrb[146].mxu1  ;;  %18332 = vmatpush3.bf16.xpose.msra.mxu0 %v6232_v37  ;;  %18333 = vmatprep.mubr.msk.bf16.mxu0 %vm20129_vm0, %v26609_v2  ;;  %v26668_v22 = vld [vmem:[#allocation65_spill] sm:$0xff] }
 0x361   : > { %v17994_v21 = vpop.f32.mrb[147].mxu1  ;;  %v22112_v56 = vpop.f32.mrb[112].mxu0  ;;  %18343 = vmatprep.subr.bf16.mxu0 %v26609_v2  ;;  %v6186_v19 = vsel %vm1811_vm1, %v26668_v22, 0  ;;  %26669 = vst [vmem:[#allocation66_spill] sm:$0xff] %v22121_v1  ;;  %v7909_v29 = vsel %vm7860_vm2, %v22104_v54, -inf }
 0x362   : > { %26667 = vst [vmem:[#allocation13_spill] sm:$0xff] %v22112_v56  ;;  %v18011_v28 = vpop.f32.mrb[113].mxu0  ;;  %v22127_v21 = vpop.permute.xlu1 %1527 }
 0x363   : > { %18316 = vmatmul.mubr.msk.bf16.vlgmr.msra.gmra.mrb[252].mxu1 %vm1811_vm1, %v26670_v55  ;;  %v3787_v37 = vpop.f32.mrb[114].mxu0  ;;  %v26672_v55 = vld [vmem:[#allocation15_spill] sm:$0xff] }
 0x364   : > { %18326 = vmatpush3.bf16.xpose.msra.mxu1 %v6186_v19  ;;  %7910 = vmax.xlane.f32.xlu1 %v7909_v29  ;;  %v18012_v56 = vpop.f32.mrb[115].mxu0  ;;  %v7912_v37 = vsel %vm7860_vm2, %v22121_v1, -inf  ;;  %v22140_v19 = vpop.permute.xlu0 %1401 }
 0x365   : > { %18327 = vmatprep.mubr.msk.bf16.mxu1 %vm20129_vm0, %v26609_v2  ;;  %18337 = vmatprep.subr.bf16.mxu1 %v26609_v2 }
 0x366   : > { %v22132_v28 = vpop.f32.mrb[148].mxu1  ;;  %v22147_v39 = vpop.permute.xlu1 %1255 }
 0x367   : > { %26671 = vst [vmem:[#allocation57_spill] sm:$0xff] %v22132_v28  ;;  %v18005_v22 = vpop.f32.mrb[149].mxu1  ;;  %18334 = vmatmul.mubr.msk.bf16.vlgmr.msra.gmra.mrb[220].mxu0 %vm1811_vm1, %v26672_v55  ;;  %v6278_v55 = vsel %vm1811_vm1, %v20975_v62, 0  ;;  %v26674_v28 = vld [vmem:[#allocation63_spill] sm:$0xff]  ;;  %v26677_v62 = vld [vmem:[#allocation44_spill] sm:$0xff] }
 0x368   : > { %18344 = vmatpush3.bf16.xpose.msra.mxu0 %v6324_v41  ;;  %7913 = vmax.xlane.f32.xlu0 %v7912_v37  ;;  %v3741_v56 = vpop.f32.mrb[150].mxu1 }
 0x369   : > { %v18006_v29 = vpop.f32.mrb[151].mxu1  ;;  %v22142_v54 = vpop.f32.mrb[116].mxu0  ;;  %18345 = vmatprep.mubr.msk.bf16.mxu0 %vm20129_vm0, %v26609_v2  ;;  %18355 = vmatprep.subr.bf16.mxu0 %v26609_v2 }
 0x36a   : > { %26673 = vst [vmem:[#allocation62_spill] sm:$0xff] %v22142_v54  ;;  %v18023_v22 = vpop.f32.mrb[117].mxu0  ;;  %v22156_v56 = vpop.permute.xlu0 %1465 }
 0x36b   : > { %18328 = vmatmul.mubr.msk.bf16.vlgmr.msra.gmra.mrb[0].mxu1 %vm1811_vm1, %v26674_v28  ;;  %v3879_v41 = vpop.f32.mrb[118].mxu0  ;;  %v26676_v22 = vld [vmem:[#allocation16_spill] sm:$0xff]  ;;  %v6416_v28 = vsel %vm1811_vm1, %v26677_v62, 0 }
 0x36c   : > { %18338 = vmatpush3.bf16.xpose.msra.mxu1 %v6278_v55  ;;  %v18024_v37 = vpop.f32.mrb[119].mxu0  ;;  %18339 = vmatprep.mubr.msk.bf16.mxu1 %vm20129_vm0, %v26609_v2  ;;  %v772_v54 = vadd.f32 %v26676_v22, %v20373_v47  ;;  %v22166_v55 = vpop.permute.xlu1 %1129  ;;  %v26680_v62 = vld [vmem:[#allocation68_spill] sm:$0xff] }
 0x36d   : > { %18349 = vmatprep.subr.bf16.mxu1 %v26609_v2 }
 0x36e   : > { %v22158_v29 = vpop.f32.mrb[152].mxu1  ;;  %v22173_v36 = vpack.c.bf16 %v772_v54, %v772_v54 }
 0x36f   : > { %26675 = vst [vmem:[#allocation23_spill] sm:$0xff] %v22158_v29  ;;  %18346 = vmatmul.mubr.msk.bf16.vlgmr.msra.gmra.mrb[224].mxu0 %vm1811_vm1, %v20946_v25  ;;  %v18017_v41 = vpop.f32.mrb[153].mxu1  ;;  %v26679_v25 = vld [vmem:[#allocation69_spill] sm:$0xff] }
 0x370   : > { %18356 = vmatpush3.bf16.xpose.msra.mxu0 %v6416_v28  ;;  %18357 = vmatprep.mubr.msk.bf16.mxu0 %vm20129_vm0, %v26609_v2  ;;  %v3833_v37 = vpop.f32.mrb[154].mxu1  ;;  %v6370_v45 = vsel %vm1811_vm1, %v26679_v25, 0  ;;  %v22179_v28 = vpop.permute.xlu0 %1193 }
 0x371   : > { %v22170_v1 = vpop.f32.mrb[120].mxu0  ;;  %18367 = vmatprep.subr.bf16.mxu0 %v26609_v2  ;;  %v18018_v29 = vpop.f32.mrb[155].mxu1  ;;  %v26682_v37 = vld [vmem:[#allocation73_spill] sm:$0xff] }
 0x372   : > { %26678 = vst [vmem:[#allocation65_spill] sm:$0xff] %v22170_v1  ;;  %v18035_v22 = vpop.f32.mrb[121].mxu0  ;;  %v22186_v54 = vpop.permute.xlu1 %1529  ;;  %v26684_v1 = vld [vmem:[#allocation71_spill] sm:$0xff] }
 0x373   : > { %18340 = vmatmul.mubr.msk.bf16.vlgmr.msra.gmra.mrb[4].mxu1 %vm1811_vm1, %v26680_v62  ;;  %v3971_v41 = vpop.f32.mrb[122].mxu0  ;;  %v6508_v22 = vsel %vm1811_vm1, %v26682_v37, 0 }
 0x374   : > { %18350 = vmatpush3.bf16.xpose.msra.mxu1 %v6370_v45  ;;  %v18036_v43 = vpop.f32.mrb[123].mxu0  ;;  %18351 = vmatprep.mubr.msk.bf16.mxu1 %vm20129_vm0, %v26609_v2  ;;  %v22201_v41 = vpop.permute.xlu0 %1403 }
 0x375   : > { %1133 = vrot.lane.b32.xlu1 %v22173_v36, %s20131_s10  ;;  %18361 = vmatprep.subr.bf16.mxu1 %v26609_v2 }
 0x376   : > { %v22188_v29 = vpop.f32.mrb[156].mxu1 }
 0x377   : > { %26681 = vst [vmem:[#allocation61_spill] sm:$0xff] %v22188_v29  ;;  %18358 = vmatmul.mubr.msk.bf16.vlgmr.msra.gmra.mrb[228].mxu0 %vm1811_vm1, %v20617_v27  ;;  %v18029_v45 = vpop.f32.mrb[157].mxu1  ;;  %v6462_v27 = vsel %vm1811_vm1, %v26684_v1, 0 }
 0x378   : > { %v3925_v43 = vpop.f32.mrb[158].mxu1  ;;  %18368 = vmatpush3.bf16.xpose.msra.mxu0 %v6508_v22  ;;  %18369 = vmatprep.mubr.msk.bf16.mxu0 %vm20129_vm0, %v26609_v2  ;;  %v26685_v45 = vld [vmem:[#allocation67_spill] sm:$0xff] }
 0x379   : > { %1533 = vrot.lane.b32.xlu1 %v22038_v3, %s20132_s11  ;;  %v18030_v25 = vpop.f32.mrb[159].mxu1  ;;  %v22198_v62 = vpop.f32.mrb[124].mxu0  ;;  %18379 = vmatprep.subr.bf16.mxu0 %v26609_v2 }
 0x37a   : > { %26683 = vst [vmem:[#allocation15_spill] sm:$0xff] %v22198_v62  ;;  %v18047_v37 = vpop.f32.mrb[125].mxu0  ;;  %v22207_v43 = vpop.permute.xlu1 %1257 }
 0x37b   : > { %18352 = vmatmul.mubr.msk.bf16.vlgmr.msra.gmra.mrb[8].mxu1 %vm1811_vm1, %v26685_v45  ;;  %v4063_v22 = vpop.f32.mrb[126].mxu0  ;;  %v22212_v25 = vpop.xlane.xlu0 %7865 }
 0x37c   : > { %18362 = vmatpush3.bf16.xpose.msra.mxu1 %v6462_v27  ;;  %v18048_v29 = vpop.f32.mrb[127].mxu0  ;;  %18363 = vmatprep.mubr.msk.bf16.mxu1 %vm20129_vm0, %v26609_v2  ;;  %v6600_v27 = vsel %vm1811_vm1, %v21439_v44, 0 }
 0x37d   : > { %18373 = vmatprep.subr.bf16.mxu1 %v26609_v2 }
 0x37e   : > { %1469 = vrot.lane.b32.xlu0 %v22038_v3, %s20130_s19  ;;  %v22216_v37 = vpop.f32.mrb[160].mxu1  ;;  %v22222_v29 = vpop.xlane.xlu1 %7862 }
 0x37f   : > { %26686 = vst [vmem:[#allocation63_spill] sm:$0xff] %v22216_v37  ;;  %18370 = vmatmul.mubr.msk.bf16.vlgmr.msra.gmra.mrb[232].mxu0 %vm1811_vm1, %v22062_v52  ;;  %v18041_v1 = vpop.f32.mrb[161].mxu1  ;;  %v6554_v52 = vsel %vm1811_vm1, %v26688_v35, 0  ;;  %v22233_v32 = vpop.xlane.xlu0 %7868 }
 0x380   : > { %v4017_v45 = vpop.f32.mrb[162].mxu1  ;;  %18380 = vmatpush3.bf16.xpose.msra.mxu0 %v6600_v27  ;;  %18381 = vmatprep.mubr.msk.bf16.mxu0 %vm20129_vm0, %v26609_v2  ;;  %v26689_v1 = vld [vmem:[#allocation70_spill] sm:$0xff] }
 0x381   : > { %v18042_v22 = vpop.f32.mrb[163].mxu1  ;;  %v22226_v62 = vpop.f32.mrb[128].mxu0  ;;  %18391 = vmatprep.subr.bf16.mxu0 %v26609_v2 }
 0x382   : > { %26687 = vst [vmem:[#allocation16_spill] sm:$0xff] %v22226_v62  ;;  %v18059_v37 = vpop.f32.mrb[129].mxu0  ;;  %v22242_v22 = vpop.xlane.xlu1 %7886 }
 0x383   : > { %18364 = vmatmul.mubr.msk.bf16.vlgmr.msra.gmra.mrb[12].mxu1 %vm1811_vm1, %v26689_v1  ;;  %v4155_v44 = vpop.f32.mrb[130].mxu0  ;;  %v6692_v37 = vsel %vm1811_vm1, %v22093_v17, 0  ;;  %v22246_v35 = vpop.xlane.xlu0 %7892  ;;  %v6646_v17 = vsel %vm1811_vm1, %v22076_v9, 0 }
 0x384   : > { %18374 = vmatpush3.bf16.xpose.msra.mxu1 %v6554_v52  ;;  %v18060_v27 = vpop.f32.mrb[131].mxu0  ;;  %18375 = vmatprep.mubr.msk.bf16.mxu1 %vm20129_vm0, %v26609_v2 }
 0x385   : > { %18385 = vmatprep.subr.bf16.mxu1 %v26609_v2 }
 0x386   : > { %v22238_v45 = vpop.f32.mrb[164].mxu1 }
 0x387   : > { %26690 = vst [vmem:[#allocation44_spill] sm:$0xff] %v22238_v45  ;;  %18382 = vmatmul.mubr.msk.bf16.vlgmr.msra.gmra.mrb[236].mxu0 %vm1811_vm1, %v21436_v42  ;;  %v18053_v1 = vpop.f32.mrb[165].mxu1 }
 0x388   : > { %18392 = vmatpush3.bf16.xpose.msra.mxu0 %v6692_v37  ;;  %18393 = vmatprep.mubr.msk.bf16.mxu0 %vm20129_vm0, %v26609_v2  ;;  %v4109_v52 = vpop.f32.mrb[166].mxu1  ;;  %v22259_v37 = vpop.xlane.xlu1 %7871 }
 0x389   : > { %v22250_v44 = vpop.f32.mrb[132].mxu0  ;;  %18403 = vmatprep.subr.bf16.mxu0 %v26609_v2  ;;  %v18054_v27 = vpop.f32.mrb[167].mxu1 }
 0x38a   : > { %26691 = vst [vmem:[#allocation69_spill] sm:$0xff] %v22250_v44  ;;  %v18071_v62 = vpop.f32.mrb[133].mxu0  ;;  %v22262_v52 = vpop.xlane.xlu0 %7877 }
 0x38b   : > { %18376 = vmatmul.mubr.msk.bf16.vlgmr.msra.gmra.mrb[16].mxu1 %vm1811_vm1, %v21984_v16  ;;  %v4247_v42 = vpop.f32.mrb[134].mxu0  ;;  %v6784_v16 = vsel %vm1811_vm1, %v21483_v49, 0 }
 0x38c   : > { %18386 = vmatpush3.bf16.xpose.msra.mxu1 %v6646_v17  ;;  %18387 = vmatprep.mubr.msk.bf16.mxu1 %vm20129_vm0, %v26609_v2  ;;  %v18072_v1 = vpop.f32.mrb[135].mxu0  ;;  %v22277_v44 = vpop.xlane.xlu1 %7874 }
 0x38d   : > { %18397 = vmatprep.subr.bf16.mxu1 %v26609_v2 }
 0x38e   : > { %v22264_v27 = vpop.f32.mrb[168].mxu1 }
 0x38f   : > { %26692 = vst [vmem:[#allocation68_spill] sm:$0xff] %v22264_v27  ;;  %v18065_v62 = vpop.f32.mrb[169].mxu1  ;;  %18394 = vmatmul.mubr.msk.bf16.vlgmr.msra.gmra.mrb[240].mxu0 %vm1811_vm1, %v22115_v5  ;;  %v22281_v5 = vpop.xlane.xlu0 %7880 }
 0x390   : > { %v4201_v9 = vpop.f32.mrb[170].mxu1  ;;  %18404 = vmatpush3.bf16.xpose.msra.mxu0 %v6784_v16  ;;  %18405 = vmatprep.mubr.msk.bf16.mxu0 %vm20129_vm0, %v26609_v2  ;;  %v6738_v62 = vsel %vm1811_vm1, %v22127_v21, 0  ;;  %v6876_v21 = vsel %vm1811_vm1, %v22156_v56, 0 }
 0x391   : > { %v18066_v17 = vpop.f32.mrb[171].mxu1  ;;  %v22272_v42 = vpop.f32.mrb[136].mxu0  ;;  %18415 = vmatprep.subr.bf16.mxu0 %v26609_v2 }
 0x392   : > { %26693 = vst [vmem:[#allocation73_spill] sm:$0xff] %v22272_v42  ;;  %v18083_v1 = vpop.f32.mrb[137].mxu0 }
 0x393   : > { %18388 = vmatmul.mubr.msk.bf16.vlgmr.msra.gmra.mrb[20].mxu1 %vm1811_vm1, %v22098_v34  ;;  %v4339_v49 = vpop.f32.mrb[138].mxu0  ;;  %v22294_v34 = vadd.f32 %v21601_v60, %v21853_v33  ;;  %v22298_v1 = vadd.f32 %v21629_v23, %v21888_v63 }
 0x394   : > { %18398 = vmatpush3.bf16.xpose.msra.mxu1 %v6738_v62  ;;  %v18084_v16 = vpop.f32.mrb[139].mxu0  ;;  %18399 = vmatprep.mubr.msk.bf16.mxu1 %vm20129_vm0, %v26609_v2  ;;  %v22300_v62 = vpop.xlane.xlu1 %7883 }
 0x395   : > { %18409 = vmatprep.subr.bf16.mxu1 %v26609_v2 }
 0x396   : > { %v22286_v9 = vpop.f32.mrb[172].mxu1 }
 0x397   : > { %26694 = vst [vmem:[#allocation71_spill] sm:$0xff] %v22286_v9  ;;  %v18077_v17 = vpop.f32.mrb[173].mxu1  ;;  %18406 = vmatmul.mubr.msk.bf16.vlgmr.msra.gmra.mrb[244].mxu0 %vm1811_vm1, %v21478_v46  ;;  %v22307_v46 = vpop.xlane.xlu0 %7889 }
 0x398   : > { %v4293_v49 = vpop.f32.mrb[174].mxu1  ;;  %18416 = vmatpush3.bf16.xpose.msra.mxu0 %v6876_v21  ;;  %18417 = vmatprep.mubr.msk.bf16.mxu0 %vm20129_vm0, %v26609_v2  ;;  %v6830_v17 = vsel %vm1811_vm1, %v22140_v19, 0 }
 0x399   : > { %v18078_v56 = vpop.f32.mrb[175].mxu1  ;;  %v22304_v16 = vpop.f32.mrb[140].mxu0  ;;  %18427 = vmatprep.subr.bf16.mxu0 %v26609_v2  ;;  %v7915_v49 = vsel %vm7860_vm2, %v22294_v34, -inf }
 0x39a   : > { %26695 = vst [vmem:[#allocation67_spill] sm:$0xff] %v22304_v16  ;;  %v18095_v33 = vpop.f32.mrb[141].mxu0  ;;  %v7918_v56 = vsel %vm7860_vm2, %v22298_v1, -inf  ;;  %v22319_v16 = vpop.xlane.xlu1 %7895 }
 0x39b   : > { %18400 = vmatmul.mubr.msk.bf16.vlgmr.msra.gmra.mrb[24].mxu1 %vm1811_vm1, %v22147_v39  ;;  %v4431_v63 = vpop.f32.mrb[142].mxu0  ;;  %v22321_v19 = vpop.xlane.xlu0 %7901 }
 0x39c   : > { %18410 = vmatpush3.bf16.xpose.msra.mxu1 %v6830_v17  ;;  %v18096_v21 = vpop.f32.mrb[143].mxu0  ;;  %18411 = vmatprep.mubr.msk.bf16.mxu1 %vm20129_vm0, %v26609_v2  ;;  %v6968_v17 = vsel %vm1811_vm1, %v21523_v51, 0 }
 0x39d   : > { %7916 = vmax.xlane.f32.xlu0 %v7915_v49  ;;  %7919 = vmax.xlane.f32.xlu1 %v7918_v56 }
 0x39e   : > { %v22323_v33 = vpop.f32.mrb[176].mxu1  ;;  %18421 = vmatprep.subr.bf16.mxu1 %v26609_v2 }
 0x39f   : > { %26696 = vst [vmem:[#allocation72_spill] sm:$0xff] %v22323_v33  ;;  %v18089_v39 = vpop.f32.mrb[177].mxu1  ;;  %18418 = vmatmul.mubr.msk.bf16.vlgmr.msra.gmra.mrb[248].mxu0 %vm1811_vm1, %v22179_v28  ;;  %v22337_v33 = vpop.xlane.xlu1 %7898 }
 0x3a0   : > { %v4385_v63 = vpop.f32.mrb[178].mxu1  ;;  %18428 = vmatpush3.bf16.xpose.msra.mxu0 %v6968_v17  ;;  %18429 = vmatprep.mubr.msk.bf16.mxu0 %vm20129_vm0, %v26609_v2  ;;  %v6922_v39 = vsel %vm1811_vm1, %v22186_v54, 0  ;;  %v1468_v28 = vpop.permute.xlu0 %1467 }
 0x3a1   : > { %v18090_v21 = vpop.f32.mrb[179].mxu1  ;;  %v22332_v49 = vpop.f32.mrb[144].mxu0  ;;  %18439 = vmatprep.subr.bf16.mxu0 %v26609_v2 }
 0x3a2   : > { %26697 = vst [vmem:[#allocation70_spill] sm:$0xff] %v22332_v49  ;;  %v18107_v56 = vpop.f32.mrb[145].mxu0  ;;  %v7060_v21 = vsel %vm1811_vm1, %v1468_v28, 0  ;;  %v7014_v49 = vsel %vm1811_vm1, %v22201_v41, 0  ;;  %v26701_v41 = vld [vmem:[#allocation18_spill] sm:$0xff] }
 0x3a3   : > { %18412 = vmatmul.mubr.msk.bf16.vlgmr.msra.gmra.mrb[28].mxu1 %vm1811_vm1, %v22166_v55  ;;  %v4523_v51 = vpop.f32.mrb[146].mxu0 }
 0x3a4   : > { %18422 = vmatpush3.bf16.xpose.msra.mxu1 %v6922_v39  ;;  %v18108_v17 = vpop.f32.mrb[147].mxu0  ;;  %18423 = vmatprep.mubr.msk.bf16.mxu1 %vm20129_vm0, %v26609_v2  ;;  %v1132_v51 = vpop.permute.xlu1 %1131 }
 0x3a5   : > { %18433 = vmatprep.subr.bf16.mxu1 %v26609_v2 }
 0x3a6   : > { %v22344_v63 = vpop.f32.mrb[180].mxu1 }
 0x3a7   : > { %26698 = vst [vmem:[#allocation97_spill] sm:$0xff] %v22344_v63  ;;  %v18101_v56 = vpop.f32.mrb[181].mxu1  ;;  %18430 = vmatmul.mubr.msk.bf16.vlgmr.msra.gmra.mrb[252].mxu0 %vm1811_vm1, %v21861_v38 }
 0x3a8   : > { %v4477_v54 = vpop.f32.mrb[182].mxu1  ;;  %18440 = vmatpush3.bf16.xpose.msra.mxu0 %v7060_v21  ;;  %18441 = vmatprep.mubr.msk.bf16.mxu0 %vm20129_vm0, %v26609_v2 }
 0x3a9   : > { %v18102_v55 = vpop.f32.mrb[183].mxu1  ;;  %v22351_v39 = vpop.f32.mrb[148].mxu0  ;;  %18451 = vmatprep.subr.bf16.mxu0 %v26609_v2 }
 0x3aa   : > { %26699 = vst [vmem:[#allocation98_spill] sm:$0xff] %v22351_v39  ;;  %v18119_v17 = vpop.f32.mrb[149].mxu0  ;;  %v1532_v54 = vpop.permute.xlu1 %1531 }
 0x3ab   : > { %18424 = vmatmul.mubr.msk.bf16.vlgmr.msra.gmra.mrb[32].mxu1 %vm1811_vm1, %v22207_v43  ;;  %v4615_v28 = vpop.f32.mrb[150].mxu0  ;;  %v780_v17 = vadd.f32 %v26701_v41, %v20376_v48 }
 0x3ac   : > { %18434 = vmatpush3.bf16.xpose.msra.mxu1 %v7014_v49  ;;  %v18120_v38 = vpop.f32.mrb[151].mxu0  ;;  %18435 = vmatprep.mubr.msk.bf16.mxu1 %vm20129_vm0, %v26609_v2 }
 0x3ad   : > { %18445 = vmatprep.subr.bf16.mxu1 %v26609_v2  ;;  %v7106_v38 = vsel %vm1811_vm1, %v1532_v54, 0 }
 0x3ae   : > { %1261 = vrot.lane.b32.xlu1 %v22173_v36, %s20132_s11  ;;  %v22363_v21 = vpop.f32.mrb[184].mxu1 }
 0x3af   : > { %26700 = vst [vmem:[#allocation99_spill] sm:$0xff] %v22363_v21  ;;  %v18113_v56 = vpop.f32.mrb[185].mxu1 }
 0x3b0   : > { %v4569_v55 = vpop.f32.mrb[186].mxu1  ;;  %v22375_v56 = vpack.c.bf16 %v780_v17, %v780_v17 }
 0x3b1   : > { %v18114_v43 = vpop.f32.mrb[187].mxu1  ;;  %v22367_v28 = vpop.f32.mrb[152].mxu0 }
 0x3b2   : > { %26702 = vst [vmem:[#allocation18_spill] sm:$0xff] %v22367_v28  ;;  %v18131_v49 = vpop.f32.mrb[153].mxu0 }
 0x3b3   : > { %18436 = vmatmul.mubr.msk.bf16.vlgmr.msra.gmra.mrb[36].mxu1 %vm1811_vm1, %v1132_v51  ;;  %1197 = vrot.lane.b32.xlu0 %v22173_v36, %s20130_s19  ;;  %v4707_v39 = vpop.f32.mrb[154].mxu0 }
 0x3b4   : > { %18446 = vmatpush3.bf16.xpose.msra.mxu1 %v7106_v38  ;;  %v18132_v21 = vpop.f32.mrb[155].mxu0  ;;  %18447 = vmatprep.mubr.msk.bf16.mxu1 %vm20129_vm0, %v26609_v2 }
 0x3b5   : > { %18457 = vmatprep.subr.bf16.mxu1 %v26609_v2 }
 0x3b6   : > { %v22378_v55 = vpop.f32.mrb[188].mxu1 }
 0x3b7   : > { %26703 = vst [vmem:[#allocation100_spill] sm:$0xff] %v22378_v55  ;;  %1407 = vrot.lane.b32.xlu0 %v22375_v56, %s20131_s10  ;;  %v18125_v54 = vpop.f32.mrb[189].mxu1 }
 0x3b8   : > { %v4661_v51 = vpop.f32.mrb[190].mxu1  ;;  %v7152_v54 = vsel %vm1811_vm1, %v22038_v3, 0 }
 0x3b9   : > { %v18126_v41 = vpop.f32.mrb[191].mxu1  ;;  %v22382_v43 = vpop.f32.mrb[156].mxu0 }
 0x3ba   : > { %26704 = vst [vmem:[#allocation101_spill] sm:$0xff] %v22382_v43  ;;  %v18143_v39 = vpop.f32.mrb[157].mxu0 }
 0x3bb   : > { %v4799_v49 = vpop.f32.mrb[158].mxu0 }
 0x3bc   : > { %v22384_v21 = vpop.xlane.xlu0 %7904  ;;  %v22386_v38 = vpop.xlane.xlu1 %7907 }
 0x3bd   : > { %v18144_v17 = vpop.f32.mrb[159].mxu0 }
 0x3be   : > { %v22388_v28 = vpop.f32.mrb[192].mxu1 }
 0x3bf   : > { %26705 = vst [vmem:[#allocation102_spill] sm:$0xff] %v22388_v28  ;;  %v18137_v63 = vpop.f32.mrb[193].mxu1  ;;  %v26713_v28 = vld [vmem:[#allocation17_spill] sm:$0xff] }
 0x3c0   : > { %v1196_v42 = vpop.permute.xlu0 %1195  ;;  %v1260_v55 = vpop.permute.xlu1 %1259 }
 0x3c1   : > { %v4753_v9 = vpop.f32.mrb[194].mxu1  ;;  %18442 = vmatmul.mubr.msk.bf16.vlgmr.msra.gmra.mrb[0].mxu0 %vm1811_vm1, %v1196_v42  ;;  %18448 = vmatmul.mubr.msk.bf16.vlgmr.msra.gmra.mrb[40].mxu1 %vm1811_vm1, %v1260_v55  ;;  %v22394_v51 = vpop.f32.mrb[160].mxu0 }
 0x3c2   : > { %26706 = vst [vmem:[#allocation103_spill] sm:$0xff] %v22394_v51  ;;  %v18138_v41 = vpop.f32.mrb[195].mxu1  ;;  %18452 = vmatpush3.bf16.xpose.msra.mxu0 %v7152_v54  ;;  %v18155_v39 = vpop.f32.mrb[161].mxu0  ;;  %18453 = vmatprep.mubr.msk.bf16.mxu0 %vm20129_vm0, %v26609_v2 }
 0x3c3   : > { %v4891_v49 = vpop.f32.mrb[162].mxu0  ;;  %18459 = vmatprep.mubr.msk.bf16.mxu1 %vm20129_vm0, %v26609_v2  ;;  %18463 = vmatprep.subr.bf16.mxu0 %v26609_v2 }
 0x3c4   : > { %v1406_v42 = vpop.permute.xlu0 %1405  ;;  %v18156_v9 = vpop.f32.mrb[163].mxu0 }
 0x3c5   : > { %v7198_v63 = vsel %vm1811_vm1, %v1406_v42, 0  ;;  %v22413_v42 = vadd.f32 %v21649_v11, %v21876_v59 }
 0x3c6   : > { %v22402_v55 = vpop.f32.mrb[196].mxu1  ;;  %18458 = vmatpush3.bf16.xpose.msra.mxu1 %v7198_v63 }
 0x3c7   : > { %26707 = vst [vmem:[#allocation104_spill] sm:$0xff] %v22402_v55  ;;  %v18149_v3 = vpop.f32.mrb[197].mxu1  ;;  %18469 = vmatprep.subr.bf16.mxu1 %v26609_v2 }
 0x3c8   : > { %v4845_v17 = vpop.f32.mrb[198].mxu1 }
 0x3c9   : > { %v18150_v54 = vpop.f32.mrb[199].mxu1  ;;  %18454 = vmatmul.mubr.msk.bf16.vlgmr.msra.gmra.mrb[4].mxu0 %vm1811_vm1, %v22173_v36  ;;  %v22407_v41 = vpop.f32.mrb[164].mxu0 }
 0x3ca   : > { %26708 = vst [vmem:[#allocation105_spill] sm:$0xff] %v22407_v41  ;;  %v18167_v39 = vpop.f32.mrb[165].mxu0  ;;  %18465 = vmatprep.mubr.msk.bf16.mxu0 %vm20129_vm0, %v26609_v2  ;;  %v22419_v54 = vadd.f32 %v21705_v40, %v21907_v58 }
 0x3cb   : > { %v4983_v49 = vpop.f32.mrb[166].mxu0  ;;  %v7921_v39 = vsel %vm7860_vm2, %v22413_v42, -inf }
 0x3cc   : > { %v18168_v9 = vpop.f32.mrb[167].mxu0  ;;  %v7924_v59 = vsel %vm7860_vm2, %v22419_v54, -inf }
 0x3ce   : > { %v22415_v63 = vpop.f32.mrb[200].mxu1 }
 0x3cf   : > { %26709 = vst [vmem:[#allocation106_spill] sm:$0xff] %v22415_v63  ;;  %v18161_v3 = vpop.f32.mrb[201].mxu1 }
 0x3d0   : > { %v4937_v17 = vpop.f32.mrb[202].mxu1 }
 0x3d1   : > { %v18162_v36 = vpop.f32.mrb[203].mxu1  ;;  %v22421_v41 = vpop.f32.mrb[168].mxu0 }
 0x3d2   : > { %26710 = vst [vmem:[#allocation107_spill] sm:$0xff] %v22421_v41  ;;  %7922 = vmax.xlane.f32.xlu1 %v7921_v39  ;;  %v18179_v49 = vpop.f32.mrb[169].mxu0  ;;  %v778_v39 = vadd.f32 %v26713_v28, %v20373_v47 }
 0x3d3   : > { %v5075_v9 = vpop.f32.mrb[170].mxu0 }
 0x3d4   : > { %v18180_v51 = vpop.f32.mrb[171].mxu0  ;;  %v22435_v27 = vpack.c.bf16 %v778_v39, %v778_v39 }
 0x3d6   : > { %7925 = vmax.xlane.f32.xlu0 %v7924_v59  ;;  %v22427_v3 = vpop.f32.mrb[204].mxu1 }
 0x3d7   : > { %26711 = vst [vmem:[#allocation108_spill] sm:$0xff] %v22427_v3  ;;  %v18173_v17 = vpop.f32.mrb[205].mxu1 }
 0x3d8   : > { %v5029_v63 = vpop.f32.mrb[206].mxu1 }
 0x3d9   : > { %v18174_v58 = vpop.f32.mrb[207].mxu1  ;;  %v22429_v43 = vpop.f32.mrb[172].mxu0 }
 0x3da   : > { %26712 = vst [vmem:[#allocation109_spill] sm:$0xff] %v22429_v43  ;;  %v18191_v36 = vpop.f32.mrb[173].mxu0 }
 0x3db   : > { %v5167_v41 = vpop.f32.mrb[174].mxu0 }
 0x3dc   : > { %v18192_v55 = vpop.f32.mrb[175].mxu0 }
 0x3de   : > { %v22433_v49 = vpop.f32.mrb[208].mxu1 }
 0x3df   : > { %26714 = vst [vmem:[#allocation17_spill] sm:$0xff] %v22433_v49  ;;  %v18185_v51 = vpop.f32.mrb[209].mxu1 }
 0x3e0   : > { %v5121_v9 = vpop.f32.mrb[210].mxu1 }
 0x3e1   : > { %v18186_v59 = vpop.f32.mrb[211].mxu1  ;;  %v22437_v45 = vpop.f32.mrb[176].mxu0 }
 0x3e2   : > { %26715 = vst [vmem:[#allocation110_spill] sm:$0xff] %v22437_v45  ;;  %v18203_v17 = vpop.f32.mrb[177].mxu0 }
 0x3e3   : > { %1135 = vrot.lane.b32.xlu1 %v22435_v27, %s20131_s10  ;;  %v5259_v63 = vpop.f32.mrb[178].mxu0 }
 0x3e4   : > { %v18204_v58 = vpop.f32.mrb[179].mxu0 }
 0x3e6   : > { %v22441_v41 = vpop.f32.mrb[212].mxu1 }
 0x3e7   : > { %26716 = vst [vmem:[#allocation111_spill] sm:$0xff] %v22441_v41  ;;  %1535 = vrot.lane.b32.xlu1 %v22375_v56, %s20132_s11  ;;  %v18197_v28 = vpop.f32.mrb[213].mxu1 }
 0x3e8   : > { %v5213_v55 = vpop.f32.mrb[214].mxu1 }
 0x3e9   : > { %v18198_v36 = vpop.f32.mrb[215].mxu1  ;;  %v22445_v51 = vpop.f32.mrb[180].mxu0 }
 0x3ea   : > { %26717 = vst [vmem:[#allocation112_spill] sm:$0xff] %v22445_v51  ;;  %v18215_v39 = vpop.f32.mrb[181].mxu0  ;;  %v8245_v36 = vsub.f32 %v21608_v13, %v22222_v29 }
 0x3eb   : > { %v5351_v9 = vpop.f32.mrb[182].mxu0 }
 0x3ec   : > { %1471 = vrot.lane.b32.xlu0 %v22375_v56, %s20130_s19  ;;  %v18216_v59 = vpop.f32.mrb[183].mxu0 }
 0x3ee   : > { %v22449_v17 = vpop.f32.mrb[216].mxu1 }
 0x3ef   : > { %26718 = vst [vmem:[#allocation113_spill] sm:$0xff] %v22449_v17  ;;  %v18209_v63 = vpop.f32.mrb[217].mxu1  ;;  %v26729_v17 = vld [vmem:[#allocation20_spill] sm:$0xff] }
 0x3f0   : > { %v5305_v58 = vpop.f32.mrb[218].mxu1  ;;  %v8373_v63 = vmul.f32 1.442695, %v8245_v36 }
 0x3f1   : > { %v22451_v45 = vpop.xlane.xlu1 %7910  ;;  %v18210_v43 = vpop.f32.mrb[219].mxu1 }
 0x3f2   : > { %v22453_v41 = vpop.f32.mrb[184].mxu0  ;;  %19479 = vpow2.f32 %v8373_v63 }
 0x3f3   : > { %26719 = vst [vmem:[#allocation114_spill] sm:$0xff] %v22453_v41  ;;  %v18227_v28 = vpop.f32.mrb[185].mxu0 }
 0x3f4   : > { %v5443_v55 = vpop.f32.mrb[186].mxu0 }
 0x3f5   : > { %v18228_v39 = vpop.f32.mrb[187].mxu0  ;;  %v1134_v9 = vpop.permute.xlu1 %1133 }
 0x3f6   : > { %v22457_v51 = vpop.xlane.xlu0 %7913  ;;  %v22459_v49 = vpop.f32.mrb[220].mxu1  ;;  %18460 = vmatmul.mubr.msk.bf16.vlgmr.msra.gmra.mrb[44].mxu1 %vm1811_vm1, %v1134_v9  ;;  %v8246_v9 = vsub.f32 %v21599_v53, %v22212_v25 }
 0x3f7   : > { %26720 = vst [vmem:[#allocation115_spill] sm:$0xff] %v22459_v49  ;;  %v18221_v59 = vpop.f32.mrb[221].mxu1  ;;  %18471 = vmatprep.mubr.msk.bf16.mxu1 %vm20129_vm0, %v26609_v2 }
 0x3f8   : > { %v5397_v43 = vpop.f32.mrb[222].mxu1 }
 0x3f9   : > { %v1534_v58 = vpop.permute.xlu1 %1533  ;;  %v18222_v28 = vpop.f32.mrb[223].mxu1 }
 0x3fa   : > { %v7290_v55 = vsel %vm1811_vm1, %v1534_v58, 0  ;;  %v1470_v41 = vpop.permute.xlu0 %1469  ;;  %v22465_v13 = vpop.f32.mrb[188].mxu0  ;;  %v8375_v28 = vmul.f32 1.442695, %v8246_v9 }
 0x3fb   : > { %26721 = vst [vmem:[#allocation116_spill] sm:$0xff] %v22465_v13  ;;  %v7244_v29 = vsel %vm1811_vm1, %v1470_v41, 0  ;;  %v18239_v39 = vpop.f32.mrb[189].mxu0  ;;  %18470 = vmatpush3.bf16.xpose.msra.mxu1 %v7290_v55 }
 0x3fc   : > { %18464 = vmatpush3.bf16.xpose.msra.mxu0 %v7244_v29  ;;  %v5535_v49 = vpop.f32.mrb[190].mxu0  ;;  %18481 = vmatprep.subr.bf16.mxu1 %v26609_v2  ;;  %19481 = vpow2.f32 %v8375_v28  ;;  %v22478_v39 = vadd.f32 %v21727_v20, %v21898_v10  ;;  %v22482_v25 = vpop.eup %19479 }
 0x3fd   : > { %v18240_v36 = vpop.f32.mrb[191].mxu0  ;;  %18475 = vmatprep.subr.bf16.mxu0 %v26609_v2 }
 0x3fe   : > { %v22472_v59 = vpop.f32.mrb[224].mxu1  ;;  %v7927_v10 = vsel %vm7860_vm2, %v22478_v39, -inf }
 0x3ff   : > { %26722 = vst [vmem:[#allocation117_spill] sm:$0xff] %v22472_v59  ;;  %v18233_v43 = vpop.f32.mrb[225].mxu1 }
 0x400   : > { %v5489_v58 = vpop.f32.mrb[226].mxu1 }
 0x401   : > { %v18234_v13 = vpop.f32.mrb[227].mxu1  ;;  %v22474_v41 = vpop.f32.mrb[192].mxu0  ;;  %v8629_v58 = vsel %vm7860_vm2, %v22482_v25, 0.0 }
 0x402   : > { %26723 = vst [vmem:[#allocation118_spill] sm:$0xff] %v22474_v41  ;;  %v18251_v55 = vpop.f32.mrb[193].mxu0  ;;  %v22486_v13 = vadd.f32 %v21718_v30, %v21926_v57 }
 0x403   : > { %v5627_v29 = vpop.f32.mrb[194].mxu0 }
 0x404   : > { %v18252_v49 = vpop.f32.mrb[195].mxu0 }
 0x406   : > { %v22480_v53 = vpop.f32.mrb[228].mxu1  ;;  %v22498_v57 = vpop.eup %19481 }
 0x407   : > { %26724 = vst [vmem:[#allocation119_spill] sm:$0xff] %v22480_v53  ;;  %v18245_v63 = vpop.f32.mrb[229].mxu1 }
 0x408   : > { %v5581_v36 = vpop.f32.mrb[230].mxu1  ;;  %v7930_v63 = vsel %vm7860_vm2, %v22486_v13, -inf }
 0x409   : > { %v18246_v43 = vpop.f32.mrb[231].mxu1 }
 0x40a   : > { %v22488_v9 = vpop.f32.mrb[196].mxu0 }
 0x40b   : > { %26725 = vst [vmem:[#allocation120_spill] sm:$0xff] %v22488_v9  ;;  %v18263_v28 = vpop.f32.mrb[197].mxu0  ;;  %8630 = vadd.xlane.f32.xlu1 %v8629_v58  ;;  %7928 = vmax.xlane.f32.xlu0 %v7927_v10 }
 0x40c   : > { %v5719_v55 = vpop.f32.mrb[198].mxu0  ;;  %v8632_v28 = vsel %vm7860_vm2, %v22498_v57, 0.0 }
 0x40d   : > { %v18264_v29 = vpop.f32.mrb[199].mxu0 }
 0x40e   : > { %v22494_v49 = vpop.f32.mrb[232].mxu1 }
 0x40f   : > { %26726 = vst [vmem:[#allocation121_spill] sm:$0xff] %v22494_v49  ;;  %7931 = vmax.xlane.f32.xlu0 %v7930_v63  ;;  %v18257_v36 = vpop.f32.mrb[233].mxu1  ;;  %v784_v63 = vadd.f32 %v26729_v17, %v20376_v48 }
 0x410   : > { %v5673_v43 = vpop.f32.mrb[234].mxu1 }
 0x411   : > { %v18258_v9 = vpop.f32.mrb[235].mxu1 }
 0x412   : > { %v22500_v41 = vpop.f32.mrb[200].mxu0 }
 0x413   : > { %26727 = vst [vmem:[#allocation122_spill] sm:$0xff] %v22500_v41  ;;  %v18275_v58 = vpop.f32.mrb[201].mxu0  ;;  %8633 = vadd.xlane.f32.xlu0 %v8632_v28 }
 0x414   : > { %v5811_v10 = vpop.f32.mrb[202].mxu0  ;;  %v22512_v58 = vpack.c.bf16 %v784_v63, %v784_v63 }
 0x415   : > { %v18276_v55 = vpop.f32.mrb[203].mxu0 }
 0x416   : > { %v22504_v29 = vpop.f32.mrb[236].mxu1 }
 0x417   : > { %26728 = vst [vmem:[#allocation123_spill] sm:$0xff] %v22504_v29  ;;  %v18269_v49 = vpop.f32.mrb[237].mxu1 }
 0x418   : > { %v5765_v53 = vpop.f32.mrb[238].mxu1 }
 0x419   : > { %v18270_v59 = vpop.f32.mrb[239].mxu1 }
 0x41a   : > { %v22508_v36 = vpop.f32.mrb[204].mxu0 }
 0x41b   : > { %26730 = vst [vmem:[#allocation20_spill] sm:$0xff] %v22508_v36  ;;  %v18287_v9 = vpop.f32.mrb[205].mxu0 }
 0x41c   : > { %v5903_v43 = vpop.f32.mrb[206].mxu0  ;;  %1199 = vrot.lane.b32.xlu1 %v22435_v27, %s20130_s19 }
 0x41d   : > { %v18288_v41 = vpop.f32.mrb[207].mxu0 }
 0x41e   : > { %v22514_v28 = vpop.f32.mrb[240].mxu1 }
 0x41f   : > { %26731 = vst [vmem:[#allocation124_spill] sm:$0xff] %v22514_v28  ;;  %v18281_v10 = vpop.f32.mrb[241].mxu1 }
 0x420   : > { %1409 = vrot.lane.b32.xlu1 %v22512_v58, %s20131_s10  ;;  %v5857_v59 = vpop.f32.mrb[242].mxu1 }
 0x421   : > { %v18282_v53 = vpop.f32.mrb[243].mxu1 }
 0x422   : > { %v22518_v49 = vpop.f32.mrb[208].mxu0 }
 0x423   : > { %26732 = vst [vmem:[#allocation125_spill] sm:$0xff] %v22518_v49  ;;  %v18299_v48 = vpop.f32.mrb[209].mxu0 }
 0x424   : > { %v5995_v17 = vpop.f32.mrb[210].mxu0 }
 0x425   : > { %v18300_v55 = vpop.f32.mrb[211].mxu0 }
 0x426   : > { %v22520_v9 = vpop.f32.mrb[244].mxu1 }
 0x427   : > { %26733 = vst [vmem:[#allocation126_spill] sm:$0xff] %v22520_v9  ;;  %v18293_v43 = vpop.f32.mrb[245].mxu1 }
 0x428   : > { %v5949_v36 = vpop.f32.mrb[246].mxu1 }
 0x429   : > { %1263 = vrot.lane.b32.xlu0 %v22435_v27, %s20132_s11  ;;  %v18294_v41 = vpop.f32.mrb[247].mxu1  ;;  %v7336_v36 = vsel %vm1811_vm1, %v22375_v56, 0 }
 0x42a   : > { %v22524_v63 = vpop.f32.mrb[212].mxu0  ;;  %v22526_v10 = vpop.xlane.xlu0 %7916  ;;  %v8247_v41 = vsub.f32 %v21619_v18, %v22233_v32 }
 0x42b   : > { %26734 = vst [vmem:[#allocation127_spill] sm:$0xff] %v22524_v63  ;;  %v22528_v28 = vpop.xlane.xlu1 %7919  ;;  %v18311_v59 = vpop.f32.mrb[213].mxu0 }
 0x42c   : > { %v6087_v53 = vpop.f32.mrb[214].mxu0  ;;  %v8377_v18 = vmul.f32 1.442695, %v8247_v41 }
 0x42d   : > { %v18312_v49 = vpop.f32.mrb[215].mxu0 }
 0x42e   : > { %v1198_v48 = vpop.permute.xlu0 %1197  ;;  %v22530_v17 = vpop.f32.mrb[248].mxu1  ;;  %v8248_v49 = vsub.f32 %v21647_v24, %v22259_v37  ;;  %19483 = vpow2.f32 %v8377_v18 }
 0x42f   : > { %26735 = vst [vmem:[#allocation128_spill] sm:$0xff] %v22530_v17  ;;  %v1262_v55 = vpop.permute.xlu1 %1261  ;;  %v18305_v9 = vpop.f32.mrb[249].mxu1  ;;  %18466 = vmatmul.mubr.msk.bf16.vlgmr.msra.gmra.mrb[8].mxu0 %vm1811_vm1, %v1198_v48 }
 0x430   : > { %18472 = vmatmul.mubr.msk.bf16.vlgmr.msra.gmra.mrb[48].mxu1 %vm1811_vm1, %v1262_v55  ;;  %18476 = vmatpush3.bf16.xpose.msra.mxu0 %v7336_v36  ;;  %v6041_v43 = vpop.f32.mrb[250].mxu1  ;;  %v8379_v36 = vmul.f32 1.442695, %v8248_v49  ;;  %v22561_v49 = vadd.f32 %v21611_v61, %v21916_v14  ;;  %v22575_v14 = vadd.f32 %v21756_v0, %v21950_v6 }
 0x431   : > { %v18306_v59 = vpop.f32.mrb[251].mxu1  ;;  %18477 = vmatprep.mubr.msk.bf16.mxu0 %vm20129_vm0, %v26609_v2  ;;  %18483 = vmatprep.mubr.msk.bf16.mxu1 %vm20129_vm0, %v26609_v2 }
 0x432   : > { %v22544_v9 = vpop.f32.mrb[216].mxu0  ;;  %v1408_v56 = vpop.permute.xlu0 %1407  ;;  %18487 = vmatprep.subr.bf16.mxu0 %v26609_v2  ;;  %19485 = vpow2.f32 %v8379_v36  ;;  %v7933_v36 = vsel %vm7860_vm2, %v22561_v49, -inf  ;;  %26742 = vst [vmem:[#allocation135_spill] sm:$0xff] %v22575_v14 }
 0x433   : > { %26736 = vst [vmem:[#allocation129_spill] sm:$0xff] %v22544_v9  ;;  %v7382_v53 = vsel %vm1811_vm1, %v1408_v56, 0  ;;  %v18323_v48 = vpop.f32.mrb[217].mxu0 }
 0x434   : > { %v6179_v55 = vpop.f32.mrb[218].mxu0  ;;  %18482 = vmatpush3.bf16.xpose.msra.mxu1 %v7382_v53 }
 0x435   : > { %v18324_v32 = vpop.f32.mrb[219].mxu0  ;;  %18493 = vmatprep.subr.bf16.mxu1 %v26609_v2 }
 0x436   : > { %v22549_v43 = vpop.f32.mrb[252].mxu1 }
 0x437   : > { %26737 = vst [vmem:[#allocation130_spill] sm:$0xff] %v22549_v43  ;;  %v18317_v59 = vpop.f32.mrb[253].mxu1  ;;  %18478 = vmatmul.mubr.msk.bf16.vlgmr.msra.gmra.mrb[12].mxu0 %vm1811_vm1, %v22435_v27 }
 0x438   : > { %v6133_v24 = vpop.f32.mrb[254].mxu1  ;;  %18489 = vmatprep.mubr.msk.bf16.mxu0 %vm20129_vm0, %v26609_v2  ;;  %v22565_v9 = vpop.eup %19483 }
 0x439   : > { %v18318_v37 = vpop.f32.mrb[255].mxu1 }
 0x43a   : > { %v22555_v56 = vpop.f32.mrb[220].mxu0 }
 0x43b   : > { %26738 = vst [vmem:[#allocation131_spill] sm:$0xff] %v22555_v56  ;;  %v18335_v41 = vpop.f32.mrb[221].mxu0 }
 0x43c   : > { %v6271_v53 = vpop.f32.mrb[222].mxu0  ;;  %v22569_v37 = vpop.eup %19485 }
 0x43d   : > { %v18336_v48 = vpop.f32.mrb[223].mxu0 }
 0x43e   : > { %v22557_v55 = vpop.f32.mrb[0].mxu1 }
 0x43f   : > { %26739 = vst [vmem:[#allocation132_spill] sm:$0xff] %v22557_v55  ;;  %v18329_v32 = vpop.f32.mrb[1].mxu1 }
 0x440   : > { %v6225_v27 = vpop.f32.mrb[2].mxu1 }
 0x441   : > { %v18330_v59 = vpop.f32.mrb[3].mxu1  ;;  %v8638_v27 = vsel %vm7860_vm2, %v22569_v37, 0.0 }
 0x442   : > { %v22563_v24 = vpop.f32.mrb[224].mxu0  ;;  %v8635_v59 = vsel %vm7860_vm2, %v22565_v9, 0.0 }
 0x443   : > { %26740 = vst [vmem:[#allocation133_spill] sm:$0xff] %v22563_v24  ;;  %v18347_v18 = vpop.f32.mrb[225].mxu0 }
 0x444   : > { %v6363_v41 = vpop.f32.mrb[226].mxu0  ;;  %7934 = vmax.xlane.f32.xlu1 %v7933_v36 }
 0x445   : > { %v18348_v53 = vpop.f32.mrb[227].mxu0 }
 0x446   : > { %v22571_v48 = vpop.f32.mrb[4].mxu1  ;;  %v7936_v53 = vsel %vm7860_vm2, %v22575_v14, -inf }
 0x447   : > { %26741 = vst [vmem:[#allocation134_spill] sm:$0xff] %v22571_v48  ;;  %v18341_v32 = vpop.f32.mrb[5].mxu1 }
 0x448   : > { %8639 = vadd.xlane.f32.xlu1 %v8638_v27  ;;  %8636 = vadd.xlane.f32.xlu0 %v8635_v59  ;;  %v6317_v18 = vpop.f32.mrb[6].mxu1  ;;  %v26746_v27 = vld [vmem:[#allocation19_spill] sm:$0xff] }
 0x449   : > { %v18342_v24 = vpop.f32.mrb[7].mxu1  ;;  %v782_v59 = vadd.f32 %v26746_v27, %v20373_v47 }
 0x44a   : > { %v22581_v41 = vpop.f32.mrb[228].mxu0 }
 0x44b   : > { %26743 = vst [vmem:[#allocation136_spill] sm:$0xff] %v22581_v41  ;;  %v18359_v36 = vpop.f32.mrb[229].mxu0  ;;  %v22593_v17 = vpack.c.bf16 %v782_v59, %v782_v59 }
 0x44c   : > { %v6455_v56 = vpop.f32.mrb[230].mxu0  ;;  %7937 = vmax.xlane.f32.xlu0 %v7936_v53 }
 0x44d   : > { %v18360_v6 = vpop.f32.mrb[231].mxu0 }
 0x44e   : > { %v22585_v32 = vpop.f32.mrb[8].mxu1 }
 0x44f   : > { %26744 = vst [vmem:[#allocation137_spill] sm:$0xff] %v22585_v32  ;;  %v18353_v48 = vpop.f32.mrb[9].mxu1 }
 0x450   : > { %v6409_v55 = vpop.f32.mrb[10].mxu1 }
 0x451   : > { %v18354_v43 = vpop.f32.mrb[11].mxu1 }
 0x452   : > { %v22587_v63 = vpop.f32.mrb[232].mxu0 }
 0x453   : > { %26745 = vst [vmem:[#allocation138_spill] sm:$0xff] %v22587_v63  ;;  %v18371_v24 = vpop.f32.mrb[233].mxu0 }
 0x454   : > { %v6547_v18 = vpop.f32.mrb[234].mxu0 }
 0x455   : > { %v18372_v41 = vpop.f32.mrb[235].mxu0 }
 0x456   : > { %v22591_v36 = vpop.f32.mrb[12].mxu1 }
 0x457   : > { %26747 = vst [vmem:[#allocation19_spill] sm:$0xff] %v22591_v36  ;;  %v18365_v56 = vpop.f32.mrb[13].mxu1 }
 0x458   : > { %v6501_v53 = vpop.f32.mrb[14].mxu1 }
 0x459   : > { %1137 = vrot.lane.b32.xlu1 %v22593_v17, %s20131_s10  ;;  %v18366_v48 = vpop.f32.mrb[15].mxu1 }
 0x45a   : > { %v22597_v55 = vpop.f32.mrb[236].mxu0 }
 0x45b   : > { %26748 = vst [vmem:[#allocation139_spill] sm:$0xff] %v22597_v55  ;;  %v18383_v43 = vpop.f32.mrb[237].mxu0 }
 0x45c   : > { %v6639_v6 = vpop.f32.mrb[238].mxu0 }
 0x45d   : > { %v18384_v63 = vpop.f32.mrb[239].mxu0  ;;  %1537 = vrot.lane.b32.xlu1 %v22512_v58, %s20132_s11 }
 0x45e   : > { %v22601_v47 = vpop.f32.mrb[16].mxu1 }
 0x45f   : > { %26749 = vst [vmem:[#allocation140_spill] sm:$0xff] %v22601_v47  ;;  %v22603_v41 = vpop.xlane.xlu1 %7922  ;;  %v18377_v27 = vpop.f32.mrb[17].mxu1 }
 0x460   : > { %v6593_v59 = vpop.f32.mrb[18].mxu1 }
 0x461   : > { %v18378_v24 = vpop.f32.mrb[19].mxu1 }
 0x462   : > { %v22605_v18 = vpop.f32.mrb[240].mxu0  ;;  %1473 = vrot.lane.b32.xlu0 %v22512_v58, %s20130_s19 }
 0x463   : > { %26750 = vst [vmem:[#allocation141_spill] sm:$0xff] %v22605_v18  ;;  %v18395_v56 = vpop.f32.mrb[241].mxu0  ;;  %v1136_v53 = vpop.permute.xlu1 %1135 }
 0x464   : > { %v22609_v48 = vpop.xlane.xlu0 %7925  ;;  %v6731_v63 = vpop.f32.mrb[242].mxu0  ;;  %18484 = vmatmul.mubr.msk.bf16.vlgmr.msra.gmra.mrb[52].mxu1 %vm1811_vm1, %v1136_v53  ;;  %v8249_v53 = vsub.f32 %v21662_v7, %v22277_v44 }
 0x465   : > { %v18396_v43 = vpop.f32.mrb[243].mxu0  ;;  %18495 = vmatprep.mubr.msk.bf16.mxu1 %vm20129_vm0, %v26609_v2 }
 0x466   : > { %v22614_v6 = vpop.f32.mrb[20].mxu1 }
 0x467   : > { %26751 = vst [vmem:[#allocation142_spill] sm:$0xff] %v22614_v6  ;;  %v1536_v27 = vpop.permute.xlu1 %1535  ;;  %v18389_v59 = vpop.f32.mrb[21].mxu1 }
 0x468   : > { %v7474_v24 = vsel %vm1811_vm1, %v1536_v27, 0  ;;  %v1472_v18 = vpop.permute.xlu0 %1471  ;;  %v6685_v55 = vpop.f32.mrb[22].mxu1 }
 0x469   : > { %v7428_v56 = vsel %vm1811_vm1, %v1472_v18, 0  ;;  %v18390_v47 = vpop.f32.mrb[23].mxu1  ;;  %18494 = vmatpush3.bf16.xpose.msra.mxu1 %v7474_v24  ;;  %v8381_v55 = vmul.f32 1.442695, %v8249_v53  ;;  %v22636_v53 = vadd.f32 %v21700_v26, %v21934_v31 }
 0x46a   : > { %18488 = vmatpush3.bf16.xpose.msra.mxu0 %v7428_v56  ;;  %v22618_v63 = vpop.f32.mrb[244].mxu0  ;;  %18505 = vmatprep.subr.bf16.mxu1 %v26609_v2  ;;  %v8250_v56 = vsub.f32 %v21725_v4, %v22262_v52 }
 0x46b   : > { %26752 = vst [vmem:[#allocation143_spill] sm:$0xff] %v22618_v63  ;;  %v18407_v43 = vpop.f32.mrb[245].mxu0  ;;  %18499 = vmatprep.subr.bf16.mxu0 %v26609_v2  ;;  %19487 = vpow2.f32 %v8381_v55  ;;  %26757 = vst [vmem:[#allocation148_spill] sm:$0xff] %v22636_v53 }
 0x46c   : > { %v6823_v59 = vpop.f32.mrb[246].mxu0  ;;  %v8383_v43 = vmul.f32 1.442695, %v8250_v56 }
 0x46d   : > { %v18408_v6 = vpop.f32.mrb[247].mxu0 }
 0x46e   : > { %v22624_v27 = vpop.f32.mrb[24].mxu1  ;;  %19489 = vpow2.f32 %v8383_v43 }
 0x46f   : > { %26753 = vst [vmem:[#allocation144_spill] sm:$0xff] %v22624_v27  ;;  %v18401_v36 = vpop.f32.mrb[25].mxu1 }
 0x470   : > { %v6777_v18 = vpop.f32.mrb[26].mxu1 }
 0x471   : > { %v18402_v47 = vpop.f32.mrb[27].mxu1 }
 0x472   : > { %v22626_v24 = vpop.f32.mrb[248].mxu0 }
 0x473   : > { %26754 = vst [vmem:[#allocation145_spill] sm:$0xff] %v22626_v24  ;;  %v18419_v63 = vpop.f32.mrb[249].mxu0 }
 0x474   : > { %v6915_v32 = vpop.f32.mrb[250].mxu0  ;;  %v26759_v63 = vld [vmem:[#allocation83_spill] sm:$0xff] }
 0x475   : > { %v18420_v7 = vpop.f32.mrb[251].mxu0  ;;  %v22638_v18 = vpop.eup %19487  ;;  %v22644_v47 = vadd.f32 %v26759_v63, %v21975_v8 }
 0x476   : > { %v22630_v44 = vpop.f32.mrb[28].mxu1  ;;  %v8641_v56 = vsel %vm7860_vm2, %v22638_v18, 0.0  ;;  %v7939_v7 = vsel %vm7860_vm2, %v22636_v53, -inf  ;;  %v26782_v53 = vld [vmem:[#allocation85_spill] sm:$0xff] }
 0x477   : > { %26755 = vst [vmem:[#allocation146_spill] sm:$0xff] %v22630_v44  ;;  %v18413_v59 = vpop.f32.mrb[29].mxu1  ;;  %26760 = vst [vmem:[#allocation83_spill] sm:$0xff] %v22644_v47  ;;  %v7942_v43 = vsel %vm7860_vm2, %v22644_v47, -inf }
 0x478   : > { %v6869_v6 = vpop.f32.mrb[30].mxu1  ;;  %v22652_v59 = vpop.eup %19489 }
 0x479   : > { %v18414_v29 = vpop.f32.mrb[31].mxu1 }
 0x47a   : > { %v22632_v27 = vpop.f32.mrb[252].mxu0 }
 0x47b   : > { %26756 = vst [vmem:[#allocation147_spill] sm:$0xff] %v22632_v27  ;;  %v18431_v36 = vpop.f32.mrb[253].mxu0 }
 0x47c   : > { %v7007_v55 = vpop.f32.mrb[254].mxu0 }
 0x47d   : > { %v18432_v4 = vpop.f32.mrb[255].mxu0  ;;  %v8644_v55 = vsel %vm7860_vm2, %v22652_v59, 0.0 }
 0x47e   : > { %v22640_v52 = vpop.f32.mrb[32].mxu1 }
 0x47f   : > { %26758 = vst [vmem:[#allocation149_spill] sm:$0xff] %v22640_v52  ;;  %v18425_v32 = vpop.f32.mrb[33].mxu1 }
 0x480   : > { %v6961_v29 = vpop.f32.mrb[34].mxu1 }
 0x481   : > { %8642 = vadd.xlane.f32.xlu1 %v8641_v56  ;;  %7940 = vmax.xlane.f32.xlu0 %v7939_v7  ;;  %v18426_v31 = vpop.f32.mrb[35].mxu1 }
 0x485   : > { %7943 = vmax.xlane.f32.xlu0 %v7942_v43 }
 0x486   : > { %v22654_v6 = vpop.f32.mrb[36].mxu1 }
 0x487   : > { %26761 = vst [vmem:[#allocation150_spill] sm:$0xff] %v22654_v6  ;;  %v18437_v8 = vpop.f32.mrb[37].mxu1 }
 0x488   : > { %v7053_v36 = vpop.f32.mrb[38].mxu1 }
 0x489   : > { %8645 = vadd.xlane.f32.xlu0 %v8644_v55  ;;  %v18438_v4 = vpop.f32.mrb[39].mxu1 }
 0x492   : > { %1201 = vrot.lane.b32.xlu1 %v22593_v17, %s20130_s19 }
 0x494   : > { %v22660_v32 = vpop.f32.mrb[0].mxu0  ;;  %v22662_v29 = vpop.f32.mrb[40].mxu1 }
 0x495   : > { %26762 = vst [vmem:[#allocation151_spill] sm:$0xff] %v22660_v32  ;;  %26763 = vst [vmem:[#allocation152_spill] sm:$0xff] %v22662_v29  ;;  %v18443_v56 = vpop.f32.mrb[1].mxu0  ;;  %v18449_v7 = vpop.f32.mrb[41].mxu1  ;;  %v26770_v29 = vld [vmem:[#allocation87_spill] sm:$0xff] }
 0x496   : > { %v7099_v31 = vpop.f32.mrb[2].mxu0  ;;  %v7145_v43 = vpop.f32.mrb[42].mxu1  ;;  %v7520_v56 = vsel %vm1811_vm1, %v22512_v58, 0  ;;  %v22703_v32 = vadd.f32 %v26770_v29, %v21997_v15  ;;  %v26772_v15 = vld [vmem:[#allocation89_spill] sm:$0xff] }
 0x497   : > { %v18444_v27 = vpop.f32.mrb[3].mxu0  ;;  %v18450_v6 = vpop.f32.mrb[43].mxu1  ;;  %v26765_v43 = vld [vmem:[#allocation81_spill] sm:$0xff] }
 0x498   : > { %v22664_v8 = vpop.xlane.xlu1 %8630  ;;  %v22666_v36 = vpop.xlane.xlu0 %7928 }
 0x49c   : > { %v22668_v52 = vpop.f32.mrb[4].mxu0  ;;  %v1200_v55 = vpop.permute.xlu1 %1199 }
 0x49d   : > { %26764 = vst [vmem:[#allocation153_spill] sm:$0xff] %v22668_v52  ;;  %v22670_v4 = vpop.xlane.xlu0 %7931  ;;  %v18455_v24 = vpop.f32.mrb[5].mxu0  ;;  %18490 = vmatmul.mubr.msk.bf16.vlgmr.msra.gmra.mrb[16].mxu0 %vm1811_vm1, %v1200_v55  ;;  %v8251_v55 = vsub.f32 %v26765_v43, %v22281_v5  ;;  %v7948_v43 = vsel %vm7860_vm2, %v22703_v32, -inf }
 0x49e   : > { %18500 = vmatpush3.bf16.xpose.msra.mxu0 %v7520_v56  ;;  %v7191_v7 = vpop.f32.mrb[6].mxu0  ;;  %18501 = vmatprep.mubr.msk.bf16.mxu0 %vm20129_vm0, %v26609_v2  ;;  %v26766_v56 = vld [vmem:[#allocation80_spill] sm:$0xff] }
 0x49f   : > { %v18456_v27 = vpop.f32.mrb[7].mxu0  ;;  %1265 = vrot.lane.b32.xlu0 %v22593_v17, %s20132_s11  ;;  %18511 = vmatprep.subr.bf16.mxu0 %v26609_v2  ;;  %v8252_v7 = vsub.f32 %v26766_v56, %v22300_v62  ;;  %26771 = vst [vmem:[#allocation80_spill] sm:$0xff] %v22703_v32  ;;  %v22717_v56 = vadd.f32 %v26772_v15, %v21988_v50  ;;  %v26779_v32 = vld [vmem:[#allocation90_spill] sm:$0xff] }
 0x4a0   : > { %v1410_v31 = vpop.permute.xlu1 %1409  ;;  %v8256_v15 = vsub.f32 %v26782_v53, %v22319_v16 }
 0x4a1   : > { %v22680_v6 = vpop.xlane.xlu0 %8633  ;;  %v7566_v58 = vsel %vm1811_vm1, %v1410_v31, 0  ;;  %v8387_v27 = vmul.f32 1.442695, %v8252_v7  ;;  %v26767_v31 = vld [vmem:[#allocation84_spill] sm:$0xff]  ;;  %v26774_v7 = vld [vmem:[#allocation21_spill] sm:$0xff] }
 0x4a2   : > { %26773 = vst [vmem:[#allocation84_spill] sm:$0xff] %v22717_v56  ;;  %v8395_v14 = vmul.f32 1.442695, %v8256_v15 }
 0x4a5   : > { %v1264_v24 = vpop.permute.xlu0 %1263  ;;  %18502 = vmatmul.mubr.msk.bf16.vlgmr.msra.gmra.mrb[20].mxu0 %vm1811_vm1, %v22593_v17  ;;  %v8385_v17 = vmul.f32 1.442695, %v8251_v55 }
 0x4a6   : > { %18496 = vmatmul.mubr.msk.bf16.vlgmr.msra.gmra.mrb[56].mxu1 %vm1811_vm1, %v1264_v24  ;;  %18513 = vmatprep.mubr.msk.bf16.mxu0 %vm20129_vm0, %v26609_v2  ;;  %v22697_v24 = vadd.f32 %v26767_v31, %v21957_v12 }
 0x4a7   : > { %18506 = vmatpush3.bf16.xpose.msra.mxu1 %v7566_v58  ;;  %18507 = vmatprep.mubr.msk.bf16.mxu1 %vm20129_vm0, %v26609_v2  ;;  %19491 = vpow2.f32 %v8385_v17  ;;  %v26769_v58 = vld [vmem:[#allocation77_spill] sm:$0xff]  ;;  %v26775_v17 = vld [vmem:[#allocation22_spill] sm:$0xff] }
 0x4a8   : > { %18517 = vmatprep.subr.bf16.mxu1 %v26609_v2  ;;  %26768 = vst [vmem:[#allocation81_spill] sm:$0xff] %v22697_v24  ;;  %v8253_v52 = vsub.f32 %v26769_v58, %v22242_v22  ;;  %19493 = vpow2.f32 %v8387_v27  ;;  %v7945_v5 = vsel %vm7860_vm2, %v22697_v24, -inf  ;;  %v821_v27 = vadd.f32 %v26775_v17, %v26774_v7 }
 0x4a9   : > { %v7951_v58 = vsel %vm7860_vm2, %v22717_v56, -inf  ;;  %v26778_v56 = vld [vmem:[#allocation94_spill] sm:$0xff] }
 0x4aa   : > { %v8389_v62 = vmul.f32 1.442695, %v8253_v52  ;;  %v22756_v24 = vadd.f32 %v26779_v32, %v26778_v56  ;;  %v26783_v56 = vld [vmem:[#allocation93_spill] sm:$0xff] }
 0x4ac   : > { %19495 = vpow2.f32 %v8389_v62  ;;  %v22727_v62 = vpack.c.bf16 %v821_v27, %v821_v27  ;;  %26780 = vst [vmem:[#allocation87_spill] sm:$0xff] %v22756_v24 }
 0x4b1   : > { %v22709_v55 = vpop.eup %19491 }
 0x4b2   : > { %v8647_v12 = vsel %vm7860_vm2, %v22709_v55, 0.0  ;;  %v22713_v22 = vpop.eup %19493 }
 0x4b3   : > { %v8650_v52 = vsel %vm7860_vm2, %v22713_v22, 0.0 }
 0x4b6   : > { %7946 = vmax.xlane.f32.xlu1 %v7945_v5  ;;  %v22725_v5 = vpop.eup %19495 }
 0x4b7   : > { %v8653_v50 = vsel %vm7860_vm2, %v22725_v5, 0.0 }
 0x4ba   : > { %7949 = vmax.xlane.f32.xlu1 %v7948_v43 }
 0x4be   : > { %8648 = vadd.xlane.f32.xlu0 %v8647_v12 }
 0x4c2   : > { %8651 = vadd.xlane.f32.xlu0 %v8650_v52 }
 0x4c6   : > { %7952 = vmax.xlane.f32.xlu0 %v7951_v58 }
 0x4c9   : > { %v22729_v43 = vpop.f32.mrb[44].mxu1 }
 0x4ca   : > { %26776 = vst [vmem:[#allocation77_spill] sm:$0xff] %v22729_v43  ;;  %8654 = vadd.xlane.f32.xlu0 %v8653_v50  ;;  %v18461_v12 = vpop.f32.mrb[45].mxu1 }
 0x4cb   : > { %1619 = vrot.lane.b32.xlu1 %v22727_v62, %s20131_s10  ;;  %v7237_v52 = vpop.f32.mrb[46].mxu1 }
 0x4cc   : > { %v18462_v7 = vpop.f32.mrb[47].mxu1 }
 0x4cd   : > { %v26777_v7 = vld [vmem:[#allocation82_spill] sm:$0xff] }
 0x4d1   : > { %v22735_v17 = vpop.xlane.xlu1 %7934 }
 0x4d5   : > { %v22737_v44 = vpop.xlane.xlu1 %8639  ;;  %v22739_v3 = vpop.xlane.xlu0 %8636 }
 0x4d9   : > { %v1138_v27 = vpop.permute.xlu1 %1137  ;;  %v22741_v58 = vpop.xlane.xlu0 %7937 }
 0x4da   : > { %18508 = vmatmul.mubr.msk.bf16.vlgmr.msra.gmra.mrb[60].mxu1 %vm1811_vm1, %v1138_v27  ;;  %v8254_v27 = vsub.f32 %v26777_v7, %v22307_v46  ;;  %v26784_v7 = vld [vmem:[#allocation75_spill] sm:$0xff] }
 0x4db   : > { %18519 = vmatprep.mubr.msk.bf16.mxu1 %vm20129_vm0, %v26609_v2 }
 0x4dc   : > { %v8391_v47 = vmul.f32 1.442695, %v8254_v27  ;;  %v22768_v27 = vadd.f32 %v26784_v7, %v26783_v56 }
 0x4dd   : > { %v1538_v50 = vpop.permute.xlu1 %1537  ;;  %v1474_v12 = vpop.permute.xlu0 %1473 }
 0x4de   : > { %v7658_v43 = vsel %vm1811_vm1, %v1538_v50, 0  ;;  %v7612_v52 = vsel %vm1811_vm1, %v1474_v12, 0  ;;  %v7954_v50 = vsel %vm7860_vm2, %v22756_v24, -inf  ;;  %19497 = vpow2.f32 %v8391_v47  ;;  %26785 = vst [vmem:[#allocation21_spill] sm:$0xff] %v22768_v27 }
 0x4df   : > { %18512 = vmatpush3.bf16.xpose.msra.mxu0 %v7612_v52  ;;  %18518 = vmatpush3.bf16.xpose.msra.mxu1 %v7658_v43  ;;  %v26781_v43 = vld [vmem:[#allocation78_spill] sm:$0xff]  ;;  %v7957_v16 = vsel %vm7860_vm2, %v22768_v27, -inf }
 0x4e0   : > { %1683 = vrot.lane.b32.xlu0 %v22727_v62, %s20130_s19  ;;  %18523 = vmatprep.subr.bf16.mxu0 %v26609_v2  ;;  %v8255_v12 = vsub.f32 %v26781_v43, %v22246_v35 }
 0x4e1   : > { %18529 = vmatprep.subr.bf16.mxu1 %v26609_v2 }
 0x4e2   : > { %v8393_v52 = vmul.f32 1.442695, %v8255_v12 }
 0x4e4   : > { %19499 = vpow2.f32 %v8393_v52 }
 0x4e5   : > { %19501 = vpow2.f32 %v8395_v14 }
 0x4e6   : > { %19503 = vrcp.f32 %v22664_v8 }
 0x4e8   : > { %v22764_v46 = vpop.eup %19497 }
 0x4ee   : > { %v22778_v53 = vpop.eup %19499 }
 0x4ef   : > { %7955 = vmax.xlane.f32.xlu1 %v7954_v50  ;;  %v8656_v50 = vsel %vm7860_vm2, %v22764_v46, 0.0  ;;  %v22784_v24 = vpop.eup %19501 }
 0x4ff   : > { %8657 = vadd.xlane.f32.xlu0 %v8656_v50  ;;  %v8659_v50 = vsel %vm7860_vm2, %v22778_v53, 0.0 }
 0x500   : > { %1747 = vrot.lane.b32.xlu1 %v22727_v62, %s20132_s11 }
 0x502   : > { %v22774_v35 = vpop.f32.mrb[8].mxu0 }
 0x503   : > { %26786 = vst [vmem:[#allocation22_spill] sm:$0xff] %v22774_v35  ;;  %v22780_v47 = vpop.f32.mrb[48].mxu1  ;;  %v18467_v14 = vpop.f32.mrb[9].mxu0  ;;  %7958 = vmax.xlane.f32.xlu0 %v7957_v16 }
 0x504   : > { %26787 = vst [vmem:[#allocation82_spill] sm:$0xff] %v22780_v47  ;;  %v18473_v15 = vpop.f32.mrb[49].mxu1  ;;  %v7283_v43 = vpop.f32.mrb[10].mxu0  ;;  %v8662_v47 = vsel %vm7860_vm2, %v22784_v24, 0.0 }
 0x505   : > { %v7329_v12 = vpop.f32.mrb[50].mxu1  ;;  %v18468_v52 = vpop.f32.mrb[11].mxu0 }
 0x506   : > { %v18474_v56 = vpop.f32.mrb[51].mxu1  ;;  %v19504_v52 = vpop.eup %19503 }
 0x507   : > { %8660 = vadd.xlane.f32.xlu0 %v8659_v50  ;;  %v26789_v56 = vld [vmem:[#allocation86_spill] sm:$0xff] }
 0x508   : > { %v8257_v50 = vsub.f32 %v26789_v56, %v22337_v33 }
 0x50a   : > { %v22787_v35 = vpop.f32.mrb[12].mxu0 }
 0x50b   : > { %26788 = vst [vmem:[#allocation94_spill] sm:$0xff] %v22787_v35  ;;  %v18479_v14 = vpop.f32.mrb[13].mxu0  ;;  %8663 = vadd.xlane.f32.xlu0 %v8662_v47  ;;  %v9141_v47 = vmul.f32 %v19504_v52, %v22482_v25  ;;  %v26792_v52 = vld [vmem:[#allocation74_spill] sm:$0xff] }
 0x50c   : > { %v7375_v16 = vpop.f32.mrb[14].mxu0  ;;  %v9402_v14 = vsel %vm9400_vm3, %v22727_v62, 0  ;;  %v26790_v62 = vld [vmem:[#allocation26_spill] sm:$0xff] }
 0x50d   : > { %v18480_v15 = vpop.f32.mrb[15].mxu0  ;;  %v8397_v16 = vmul.f32 1.442695, %v8257_v50  ;;  %v9269_v33 = vpack.c.bf16 %v9141_v47, %v9141_v47  ;;  %v16917_v25 = vpack.c.bf16 %v26790_v62, %v26790_v62 }
 0x50e   : > { %v22791_v43 = vpop.xlane.xlu1 %8642  ;;  %v22793_v12 = vpop.xlane.xlu0 %7940 }
 0x50f   : > { %19505 = vpow2.f32 %v8397_v16 }
 0x512   : > { %v1202_v27 = vpop.permute.xlu1 %1201  ;;  %v22797_v8 = vpop.xlane.xlu0 %7943 }
 0x513   : > { %18514 = vmatmul.mubr.msk.bf16.vlgmr.msra.gmra.mrb[24].mxu0 %vm1811_vm1, %v1202_v27  ;;  %v26791_v27 = vld [vmem:[#allocation96_spill] sm:$0xff] }
 0x514   : > { %18524 = vmatpush3.bf16.msra.mxu0 %v9402_v14  ;;  %18525 = vmatprep.mubr.msk.bf16.mxu0 %vm20129_vm0, %v26609_v2  ;;  %v22818_v50 = vadd.f32 %v26792_v52, %v26791_v27 }
 0x515   : > { %18535 = vmatprep.subr.bf16.mxu0 %v26609_v2 }
 0x516   : > { %v22806_v15 = vpop.xlane.xlu0 %8645  ;;  %26793 = vst [vmem:[#allocation78_spill] sm:$0xff] %v22818_v50  ;;  %v7960_v14 = vsel %vm7860_vm2, %v22818_v50, -inf  ;;  %v26796_v50 = vld [vmem:[#allocation95_spill] sm:$0xff] }
 0x517   : > { %v22834_v32 = vadd.f32 %v21601_v60, %v26796_v50 }
 0x519   : > { %v22823_v47 = vpop.eup %19505  ;;  %26797 = vst [vmem:[#allocation93_spill] sm:$0xff] %v22834_v32 }
 0x51a   : > { %v1266_v56 = vpop.permute.xlu0 %1265  ;;  %v8665_v16 = vsel %vm7860_vm2, %v22823_v47, 0.0 }
 0x51b   : > { %18520 = vmatmul.mubr.msk.bf16.vlgmr.msra.gmra.mrb[64].mxu1 %vm1811_vm1, %v1266_v56  ;;  %18526 = vmatmul.mubr.msk.bf16.vlgmr.msra.gmra.mrb[28].mxu0 %vm7860_vm2, %v9269_v33  ;;  %v26794_v33 = vld [vmem:[#allocation88_spill] sm:$0xff] }
 0x51c   : > { %18531 = vmatprep.mubr.msk.bf16.mxu1 %vm20129_vm0, %v26609_v2  ;;  %18537 = vmatprep.mubr.msk.bf16.mxu0 %vm20129_vm0, %v26609_v2  ;;  %v8258_v56 = vsub.f32 %v26794_v33, %v22321_v19 }
 0x51e   : > { %v8399_v62 = vmul.f32 1.442695, %v8258_v56  ;;  %v26798_v56 = vld [vmem:[#allocation91_spill] sm:$0xff] }
 0x520   : > { %19507 = vpow2.f32 %v8399_v62 }
 0x521   : > { %1621 = vrot.lane.b32.xlu0 %v16917_v25, %s20131_s10  ;;  %19509 = vrcp.f32 %v22680_v6  ;;  %v8259_v6 = vsub.f32 %v26798_v56, %v22384_v21  ;;  %v26799_v21 = vld [vmem:[#allocation92_spill] sm:$0xff] }
 0x522   : > { %19511 = vrcp.f32 %v22739_v3  ;;  %v26800_v56 = vld [vmem:[#allocation60_spill] sm:$0xff] }
 0x524   : > { %7961 = vmax.xlane.f32.xlu1 %v7960_v14  ;;  %v7963_v14 = vsel %vm7860_vm2, %v22834_v32, -inf }
 0x528   : > { %8666 = vadd.xlane.f32.xlu1 %v8665_v16 }
 0x52a   : > { %v22839_v16 = vpop.eup %19507 }
 0x52b   : > { %v8668_v33 = vsel %vm7860_vm2, %v22839_v16, 0.0 }
 0x537   : > { %v22829_v35 = vpop.f32.mrb[52].mxu1 }
 0x538   : > { %26795 = vst [vmem:[#allocation85_spill] sm:$0xff] %v22829_v35  ;;  %v18485_v27 = vpop.f32.mrb[53].mxu1 }
 0x539   : > { %1685 = vrot.lane.b32.xlu1 %v16917_v25, %s20130_s19  ;;  %v7421_v7 = vpop.f32.mrb[54].mxu1 }
 0x53a   : > { %v18486_v52 = vpop.f32.mrb[55].mxu1  ;;  %v19510_v7 = vpop.eup %19509 }
 0x53b   : > { %v9142_v50 = vmul.f32 %v19510_v7, %v22498_v57  ;;  %v8260_v57 = vsub.f32 %v26799_v21, %v22386_v38  ;;  %v19512_v3 = vpop.eup %19511 }
 0x540   : > { %7964 = vmax.xlane.f32.xlu0 %v7963_v14  ;;  %v9270_v14 = vpack.c.bf16 %v9142_v50, %v9142_v50 }
 0x543   : > { %v22841_v19 = vpop.xlane.xlu1 %7946 }
 0x544   : > { %8669 = vadd.xlane.f32.xlu0 %v8668_v33  ;;  %v8401_v33 = vmul.f32 1.442695, %v8259_v6  ;;  %v22869_v6 = vadd.f32 %v21629_v23, %v26800_v56  ;;  %v26802_v56 = vld [vmem:[#allocation14_spill] sm:$0xff] }
 0x546   : > { %19513 = vpow2.f32 %v8401_v33  ;;  %26801 = vst [vmem:[#allocation86_spill] sm:$0xff] %v22869_v6  ;;  %v7966_v33 = vsel %vm7860_vm2, %v22869_v6, -inf  ;;  %v26808_v6 = vld [vmem:[#allocation58_spill] sm:$0xff] }
 0x547   : > { %v22845_v52 = vpop.xlane.xlu1 %7949  ;;  %19515 = vrcp.f32 %v22791_v43 }
 0x54b   : > { %v22850_v62 = vpop.xlane.xlu0 %8648  ;;  %v1620_v27 = vpop.permute.xlu1 %1619 }
 0x54c   : > { %v9448_v35 = vsel %vm9400_vm3, %v1620_v27, 0  ;;  %v9143_v27 = vmul.f32 %v19512_v3, %v22565_v9  ;;  %v22881_v9 = vadd.f32 %v21705_v40, %v26802_v56  ;;  %v9586_v3 = vsel %vm9400_vm3, %v16917_v25, 0 }
 0x54d   : > { %18530 = vmatpush3.bf16.msra.mxu1 %v9448_v35  ;;  %v8403_v35 = vmul.f32 1.442695, %v8260_v57 }
 0x54e   : > { %18541 = vmatprep.subr.bf16.mxu1 %v26609_v2  ;;  %v9271_v21 = vpack.c.bf16 %v9143_v27, %v9143_v27  ;;  %26803 = vst [vmem:[#allocation26_spill] sm:$0xff] %v22881_v9  ;;  %v7972_v27 = vsel %vm7860_vm2, %v22881_v9, -inf }
 0x54f   : > { %v22855_v32 = vpop.xlane.xlu0 %8651  ;;  %19517 = vpow2.f32 %v8403_v35 }
 0x550   : > { %18532 = vmatmul.mubr.msk.bf16.vlgmr.msra.gmra.mrb[68].mxu1 %vm7860_vm2, %v9270_v14  ;;  %v22876_v43 = vpop.eup %19513  ;;  %19519 = vrcp.f32 %v22737_v44 }
 0x551   : > { %18543 = vmatprep.mubr.msk.bf16.mxu1 %vm20129_vm0, %v26609_v2  ;;  %v19516_v57 = vpop.eup %19515  ;;  %v8671_v35 = vsel %vm7860_vm2, %v22876_v43, 0.0 }
 0x553   : > { %v22862_v7 = vpop.xlane.xlu0 %7952 }
 0x557   : > { %v22865_v50 = vpop.xlane.xlu0 %8654 }
 0x55a   : > { %1749 = vrot.lane.b32.xlu0 %v16917_v25, %s20132_s11 }
 0x55b   : > { %v1684_v14 = vpop.permute.xlu0 %1683 }
 0x55c   : > { %v9494_v38 = vsel %vm9400_vm3, %v1684_v14, 0  ;;  %v9145_v14 = vmul.f32 %v19516_v57, %v22638_v18  ;;  %v26804_v18 = vld [vmem:[#allocation64_spill] sm:$0xff] }
 0x55d   : > { %18536 = vmatpush3.bf16.msra.mxu0 %v9494_v38  ;;  %7967 = vmax.xlane.f32.xlu1 %v7966_v33  ;;  %v22893_v38 = vpop.eup %19517 }
 0x55e   : > { %18547 = vmatprep.subr.bf16.mxu0 %v26609_v2  ;;  %v9273_v33 = vpack.c.bf16 %v9145_v14, %v9145_v14  ;;  %v8674_v25 = vsel %vm7860_vm2, %v22893_v38, 0.0 }
 0x560   : > { %18538 = vmatmul.mubr.msk.bf16.vlgmr.msra.gmra.mrb[32].mxu0 %vm7860_vm2, %v9271_v21  ;;  %v8261_v21 = vsub.f32 %v26804_v18, %v22451_v45  ;;  %v22915_v45 = vadd.f32 %v21727_v20, %v26808_v6 }
 0x561   : > { %18548 = vmatpush3.bf16.msra.mxu0 %v9586_v3  ;;  %8672 = vadd.xlane.f32.xlu1 %v8671_v35 }
 0x562   : > { %18549 = vmatprep.mubr.msk.bf16.mxu0 %vm20129_vm0, %v26609_v2  ;;  %18559 = vmatprep.subr.bf16.mxu0 %v26609_v2  ;;  %v8405_v57 = vmul.f32 1.442695, %v8261_v21  ;;  %26809 = vst [vmem:[#allocation88_spill] sm:$0xff] %v22915_v45 }
 0x564   : > { %19521 = vpow2.f32 %v8405_v57 }
 0x565   : > { %7973 = vmax.xlane.f32.xlu1 %v7972_v27  ;;  %v26806_v27 = vld [vmem:[#allocation12_spill] sm:$0xff]  ;;  %19523 = vrcp.f32 %v22806_v15 }
 0x568   : > { %18550 = vmatmul.mubr.msk.bf16.vlgmr.msra.gmra.mrb[36].mxu0 %vm7860_vm2, %v9273_v33  ;;  %v22907_v33 = vadd.f32 %v21649_v11, %v26806_v27 }
 0x569   : > { %8675 = vadd.xlane.f32.xlu1 %v8674_v25  ;;  %18561 = vmatprep.mubr.msk.bf16.mxu0 %vm20129_vm0, %v26609_v2  ;;  %v26807_v25 = vld [vmem:[#allocation24_spill] sm:$0xff] }
 0x56a   : > { %v22911_v9 = vpack.c.bf16 %v26807_v25, %v26807_v25  ;;  %v7969_v44 = vsel %vm7860_vm2, %v22907_v33, -inf  ;;  %v19520_v25 = vpop.eup %19519 }
 0x56e   : > { %v22929_v20 = vpop.eup %19521 }
 0x570   : > { %v22902_v56 = vpop.f32.mrb[16].mxu0 }
 0x571   : > { %26805 = vst [vmem:[#allocation96_spill] sm:$0xff] %v22902_v56  ;;  %v18491_v3 = vpop.f32.mrb[17].mxu0 }
 0x572   : > { %v7467_v35 = vpop.f32.mrb[18].mxu0 }
 0x573   : > { %v18492_v14 = vpop.f32.mrb[19].mxu0 }
 0x578   : > { %v22917_v18 = vpop.f32.mrb[20].mxu0 }
 0x579   : > { %26810 = vst [vmem:[#allocation95_spill] sm:$0xff] %v22917_v18  ;;  %v22921_v21 = vpop.f32.mrb[56].mxu1  ;;  %v18503_v57 = vpop.f32.mrb[21].mxu0  ;;  %7970 = vmax.xlane.f32.xlu0 %v7969_v44  ;;  %v7975_v18 = vsel %vm7860_vm2, %v22915_v45, -inf  ;;  %v9144_v44 = vmul.f32 %v19520_v25, %v22569_v37  ;;  %v26813_v37 = vld [vmem:[#allocation66_spill] sm:$0xff] }
 0x57a   : > { %26811 = vst [vmem:[#allocation91_spill] sm:$0xff] %v22921_v21  ;;  %v18497_v3 = vpop.f32.mrb[57].mxu1  ;;  %v7559_v35 = vpop.f32.mrb[22].mxu0  ;;  %1623 = vrot.lane.b32.xlu1 %v22911_v9, %s20131_s10  ;;  %v26812_v57 = vld [vmem:[#allocation56_spill] sm:$0xff]  ;;  %v8262_v25 = vsub.f32 %v26813_v37, %v22457_v51  ;;  %v8264_v21 = vsub.f32 %v22298_v1, %v22528_v28 }
 0x57b   : > { %v7513_v14 = vpop.f32.mrb[58].mxu1  ;;  %v18504_v27 = vpop.f32.mrb[23].mxu0  ;;  %v22936_v3 = vadd.f32 %v21718_v30, %v26812_v57 }
 0x57c   : > { %v18498_v56 = vpop.f32.mrb[59].mxu1  ;;  %v22925_v6 = vpop.xlane.xlu1 %7955  ;;  %v9272_v27 = vpack.c.bf16 %v9144_v44, %v9144_v44  ;;  %v8263_v44 = vsub.f32 %v22294_v34, %v22526_v10  ;;  %v8411_v15 = vmul.f32 1.442695, %v8264_v21 }
 0x57d   : > { %7976 = vmax.xlane.f32.xlu0 %v7975_v18  ;;  %v8677_v56 = vsel %vm7860_vm2, %v22929_v20, 0.0  ;;  %v7978_v18 = vsel %vm7860_vm2, %v22936_v3, -inf }
 0x57e   : > { %1687 = vrot.lane.b32.xlu1 %v22911_v9, %s20130_s19 }
 0x580   : > { %v1748_v35 = vpop.permute.xlu1 %1747 }
 0x581   : > { %v9540_v14 = vsel %vm9400_vm3, %v1748_v35, 0  ;;  %8678 = vadd.xlane.f32.xlu0 %v8677_v56  ;;  %v8407_v35 = vmul.f32 1.442695, %v8262_v25 }
 0x582   : > { %18542 = vmatpush3.bf16.msra.mxu1 %v9540_v14  ;;  %v8409_v14 = vmul.f32 1.442695, %v8263_v44 }
 0x583   : > { %18553 = vmatprep.subr.bf16.mxu1 %v26609_v2  ;;  %19525 = vpow2.f32 %v8407_v35 }
 0x584   : > { %19527 = vpow2.f32 %v8409_v14 }
 0x585   : > { %18544 = vmatmul.mubr.msk.bf16.vlgmr.msra.gmra.mrb[72].mxu1 %vm7860_vm2, %v9272_v27  ;;  %7979 = vmax.xlane.f32.xlu0 %v7978_v18  ;;  %v19524_v18 = vpop.eup %19523  ;;  %19529 = vpow2.f32 %v8411_v15 }
 0x586   : > { %18555 = vmatprep.mubr.msk.bf16.mxu1 %vm20129_vm0, %v26609_v2  ;;  %v9146_v37 = vmul.f32 %v19524_v18, %v22652_v59  ;;  %v26814_v59 = vld [vmem:[#allocation57_spill] sm:$0xff]  ;;  %19531 = vrcp.f32 %v22850_v62  ;;  %v26817_v62 = vld [vmem:[#allocation59_spill] sm:$0xff] }
 0x587   : > { %v22978_v21 = vadd.f32 %v21756_v0, %v26814_v59  ;;  %19533 = vrcp.f32 %v22865_v50 }
 0x588   : > { %v9274_v35 = vpack.c.bf16 %v9146_v37, %v9146_v37  ;;  %v8265_v37 = vsub.f32 %v22413_v42, %v22603_v41 }
 0x589   : > { %26815 = vst [vmem:[#allocation92_spill] sm:$0xff] %v22978_v21  ;;  %v7984_v14 = vsel %vm7860_vm2, %v22978_v21, -inf  ;;  %v22998_v21 = vadd.f32 %v21611_v61, %v26817_v62 }
 0x58b   : > { %26818 = vst [vmem:[#allocation14_spill] sm:$0xff] %v22998_v21 }
 0x58c   : > { %v22949_v57 = vpop.xlane.xlu0 %8657 }
 0x58d   : > { %v22966_v25 = vpop.eup %19525 }
 0x58e   : > { %v8680_v1 = vsel %vm7860_vm2, %v22966_v25, 0.0  ;;  %v22972_v28 = vpop.eup %19527 }
 0x58f   : > { %v8683_v44 = vsel %vm7860_vm2, %v22972_v28, 0.0  ;;  %v22984_v18 = vpop.eup %19529 }
 0x590   : > { %v22954_v56 = vpop.xlane.xlu0 %7958 }
 0x594   : > { %v22956_v27 = vpop.xlane.xlu0 %8660 }
 0x598   : > { %v22960_v51 = vpop.xlane.xlu0 %8663 }
 0x59b   : > { %1751 = vrot.lane.b32.xlu0 %v22911_v9, %s20132_s11 }
 0x59c   : > { %v1622_v34 = vpop.permute.xlu0 %1621 }
 0x59d   : > { %v9632_v10 = vsel %vm9400_vm3, %v1622_v34, 0  ;;  %v8686_v34 = vsel %vm7860_vm2, %v22984_v18, 0.0 }
 0x59e   : > { %18554 = vmatpush3.bf16.msra.mxu1 %v9632_v10 }
 0x59f   : > { %18565 = vmatprep.subr.bf16.mxu1 %v26609_v2 }
 0x5a1   : > { %18556 = vmatmul.mubr.msk.bf16.vlgmr.msra.gmra.mrb[76].mxu1 %vm7860_vm2, %v9274_v35 }
 0x5a2   : > { %8681 = vadd.xlane.f32.xlu1 %v8680_v1  ;;  %18567 = vmatprep.mubr.msk.bf16.mxu1 %vm20129_vm0, %v26609_v2  ;;  %v8413_v1 = vmul.f32 1.442695, %v8265_v37 }
 0x5a4   : > { %19535 = vpow2.f32 %v8413_v1 }
 0x5a5   : > { %19537 = vrcp.f32 %v22855_v32  ;;  %v26822_v32 = vld [vmem:[#allocation23_spill] sm:$0xff] }
 0x5a6   : > { %8684 = vadd.xlane.f32.xlu1 %v8683_v44 }
 0x5aa   : > { %7985 = vmax.xlane.f32.xlu1 %v7984_v14  ;;  %v19532_v14 = vpop.eup %19531 }
 0x5ab   : > { %v9147_v41 = vmul.f32 %v19532_v14, %v22709_v55  ;;  %v19534_v1 = vpop.eup %19533  ;;  %v9770_v14 = vsel %vm9400_vm3, %v22911_v9, 0 }
 0x5ad   : > { %v22989_v15 = vpop.f32.mrb[60].mxu1 }
 0x5ae   : > { %26816 = vst [vmem:[#allocation60_spill] sm:$0xff] %v22989_v15  ;;  %8687 = vadd.xlane.f32.xlu1 %v8686_v34  ;;  %v18509_v10 = vpop.f32.mrb[61].mxu1  ;;  %v26819_v15 = vld [vmem:[#allocation13_spill] sm:$0xff] }
 0x5af   : > { %v7605_v35 = vpop.f32.mrb[62].mxu1  ;;  %v23005_v34 = vadd.f32 %v21700_v26, %v26819_v15  ;;  %v7981_v10 = vsel %vm7860_vm2, %v22998_v21, -inf  ;;  %v23017_v15 = vpop.eup %19535 }
 0x5b0   : > { %v18510_v59 = vpop.f32.mrb[63].mxu1  ;;  %v9275_v35 = vpack.c.bf16 %v9147_v41, %v9147_v41  ;;  %v9149_v41 = vmul.f32 %v19534_v1, %v22725_v5  ;;  %v19538_v5 = vpop.eup %19537 }
 0x5b1   : > { %v22993_v44 = vpop.xlane.xlu1 %7961  ;;  %26820 = vst [vmem:[#allocation64_spill] sm:$0xff] %v23005_v34  ;;  %v26821_v59 = vld [vmem:[#allocation25_spill] sm:$0xff]  ;;  %v7987_v55 = vsel %vm7860_vm2, %v23005_v34, -inf }
 0x5b2   : > { %v23013_v62 = vpack.c.bf16 %v26821_v59, %v26821_v59 }
 0x5b5   : > { %v23000_v42 = vpop.xlane.xlu1 %8666 }
 0x5b9   : > { %v1686_v37 = vpop.permute.xlu1 %1685 }
 0x5ba   : > { %v9678_v50 = vsel %vm9400_vm3, %v1686_v37, 0  ;;  %7982 = vmax.xlane.f32.xlu0 %v7981_v10  ;;  %v8689_v37 = vsel %vm7860_vm2, %v23017_v15, 0.0  ;;  %v9277_v10 = vpack.c.bf16 %v9149_v41, %v9149_v41 }
 0x5bb   : > { %18560 = vmatpush3.bf16.msra.mxu0 %v9678_v50 }
 0x5bc   : > { %18571 = vmatprep.subr.bf16.mxu0 %v26609_v2 }
 0x5be   : > { %18562 = vmatmul.mubr.msk.bf16.vlgmr.msra.gmra.mrb[40].mxu0 %vm7860_vm2, %v9275_v35  ;;  %7988 = vmax.xlane.f32.xlu0 %v7987_v55  ;;  %v9148_v35 = vmul.f32 %v19538_v5, %v22713_v22  ;;  %v8266_v22 = vsub.f32 %v22419_v54, %v22609_v48 }
 0x5bf   : > { %18572 = vmatpush3.bf16.msra.mxu0 %v9770_v14  ;;  %1625 = vrot.lane.b32.xlu1 %v23013_v62, %s20131_s10  ;;  %v23048_v14 = vadd.f32 %v26759_v63, %v26822_v32 }
 0x5c0   : > { %18573 = vmatprep.mubr.msk.bf16.mxu0 %vm20129_vm0, %v26609_v2  ;;  %18583 = vmatprep.subr.bf16.mxu0 %v26609_v2  ;;  %v9276_v55 = vpack.c.bf16 %v9148_v35, %v9148_v35 }
 0x5c1   : > { %26823 = vst [vmem:[#allocation12_spill] sm:$0xff] %v23048_v14  ;;  %v7990_v41 = vsel %vm7860_vm2, %v23048_v14, -inf }
 0x5c2   : > { %8690 = vadd.xlane.f32.xlu0 %v8689_v37  ;;  %v8415_v37 = vmul.f32 1.442695, %v8266_v22 }
 0x5c4   : > { %19539 = vpow2.f32 %v8415_v37 }
 0x5c5   : > { %19541 = vrcp.f32 %v22949_v57 }
 0x5c6   : > { %18574 = vmatmul.mubr.msk.bf16.vlgmr.msra.gmra.mrb[44].mxu0 %vm7860_vm2, %v9277_v10  ;;  %19543 = vrcp.f32 %v22956_v27 }
 0x5c7   : > { %18585 = vmatprep.mubr.msk.bf16.mxu0 %vm20129_vm0, %v26609_v2 }
 0x5cd   : > { %v23034_v9 = vpop.xlane.xlu0 %7964 }
 0x5ce   : > { %v23070_v57 = vpop.eup %19539 }
 0x5d1   : > { %v23036_v50 = vpop.xlane.xlu0 %8669 }
 0x5d5   : > { %v1750_v1 = vpop.permute.xlu0 %1749 }
 0x5d6   : > { %v9724_v59 = vsel %vm9400_vm3, %v1750_v1, 0 }
 0x5d7   : > { %18566 = vmatpush3.bf16.msra.mxu1 %v9724_v59 }
 0x5d8   : > { %1689 = vrot.lane.b32.xlu0 %v23013_v62, %s20130_s19  ;;  %18577 = vmatprep.subr.bf16.mxu1 %v26609_v2 }
 0x5da   : > { %18568 = vmatmul.mubr.msk.bf16.vlgmr.msra.gmra.mrb[80].mxu1 %vm7860_vm2, %v9276_v55  ;;  %v8268_v55 = vsub.f32 %v22486_v13, %v22670_v4  ;;  %v19542_v13 = vpop.eup %19541  ;;  %v26826_v4 = vld [vmem:[#allocation62_spill] sm:$0xff] }
 0x5db   : > { %18579 = vmatprep.mubr.msk.bf16.mxu1 %vm20129_vm0, %v26609_v2 }
 0x5dc   : > { %v8419_v37 = vmul.f32 1.442695, %v8268_v55  ;;  %v8692_v55 = vsel %vm7860_vm2, %v23070_v57, 0.0 }
 0x5de   : > { %19545 = vpow2.f32 %v8419_v37 }
 0x5df   : > { %19547 = vrcp.f32 %v23000_v42 }
 0x5e0   : > { %19549 = vrcp.f32 %v22960_v51 }
 0x5e3   : > { %7991 = vmax.xlane.f32.xlu1 %v7990_v41 }
 0x5e6   : > { %v23054_v10 = vpop.f32.mrb[24].mxu0 }
 0x5e7   : > { %26824 = vst [vmem:[#allocation24_spill] sm:$0xff] %v23054_v10  ;;  %v18515_v5 = vpop.f32.mrb[25].mxu0 }
 0x5e8   : > { %v7651_v35 = vpop.f32.mrb[26].mxu0 }
 0x5e9   : > { %v18516_v1 = vpop.f32.mrb[27].mxu0 }
 0x5ea   : > { %v23056_v59 = vpop.xlane.xlu1 %7967 }
 0x5ee   : > { %v23061_v32 = vpop.f32.mrb[28].mxu0  ;;  %v23063_v54 = vpop.xlane.xlu1 %8672 }
 0x5ef   : > { %v23065_v48 = vpop.f32.mrb[64].mxu1  ;;  %v18527_v22 = vpop.f32.mrb[29].mxu0 }
 0x5f0   : > { %26825 = vst [vmem:[#allocation58_spill] sm:$0xff] %v23065_v48  ;;  %v18521_v41 = vpop.f32.mrb[65].mxu1  ;;  %v9441_v5 = vpop.f32.mrb[30].mxu0  ;;  %v23076_v22 = vadd.f32 %v26767_v31, %v26826_v4 }
 0x5f1   : > { %v7697_v35 = vpop.f32.mrb[66].mxu1  ;;  %v18528_v1 = vpop.f32.mrb[31].mxu0  ;;  %v26828_v5 = vld [vmem:[#allocation61_spill] sm:$0xff] }
 0x5f2   : > { %v18522_v10 = vpop.f32.mrb[67].mxu1  ;;  %v23068_v14 = vpop.xlane.xlu1 %7973  ;;  %26827 = vst [vmem:[#allocation56_spill] sm:$0xff] %v23076_v22  ;;  %v23086_v35 = vadd.f32 %v26770_v29, %v26828_v5  ;;  %v7993_v1 = vsel %vm7860_vm2, %v23076_v22, -inf }
 0x5f3   : > { %v9150_v10 = vmul.f32 %v19542_v13, %v22764_v46  ;;  %v19544_v41 = vpop.eup %19543 }
 0x5f4   : > { %1753 = vrot.lane.b32.xlu1 %v23013_v62, %s20132_s11  ;;  %26829 = vst [vmem:[#allocation66_spill] sm:$0xff] %v23086_v35  ;;  %v7996_v46 = vsel %vm7860_vm2, %v23086_v35, -inf  ;;  %v23095_v13 = vpop.eup %19545 }
 0x5f5   : > { %v9278_v48 = vpack.c.bf16 %v9150_v10, %v9150_v10 }
 0x5f6   : > { %v23078_v27 = vpop.xlane.xlu1 %8675 }
 0x5f7   : > { %8693 = vadd.xlane.f32.xlu0 %v8692_v55  ;;  %v9151_v55 = vmul.f32 %v19544_v41, %v22778_v53  ;;  %v19548_v53 = vpop.eup %19547  ;;  %v8267_v41 = vsub.f32 %v22478_v39, %v22666_v36  ;;  %v8269_v39 = vsub.f32 %v22561_v49, %v22735_v17 }
 0x5f9   : > { %v9279_v10 = vpack.c.bf16 %v9151_v55, %v9151_v55 }
 0x5fa   : > { %v1624_v37 = vpop.permute.xlu1 %1623 }
 0x5fb   : > { %v9816_v4 = vsel %vm9400_vm3, %v1624_v37, 0  ;;  %7994 = vmax.xlane.f32.xlu0 %v7993_v1  ;;  %v8698_v37 = vsel %vm7860_vm2, %v23095_v13, 0.0  ;;  %v9153_v1 = vmul.f32 %v19548_v53, %v22823_v47 }
 0x5fc   : > { %18578 = vmatpush3.bf16.msra.mxu1 %v9816_v4  ;;  %v8417_v4 = vmul.f32 1.442695, %v8267_v41 }
 0x5fd   : > { %18589 = vmatprep.subr.bf16.mxu1 %v26609_v2  ;;  %v9281_v55 = vpack.c.bf16 %v9153_v1, %v9153_v1 }
 0x5fe   : > { %v1688_v42 = vpop.permute.xlu1 %1687  ;;  %19551 = vpow2.f32 %v8417_v4 }
 0x5ff   : > { %v9862_v5 = vsel %vm9400_vm3, %v1688_v42, 0  ;;  %18580 = vmatmul.mubr.msk.bf16.vlgmr.msra.gmra.mrb[84].mxu1 %vm7860_vm2, %v9278_v48  ;;  %7997 = vmax.xlane.f32.xlu0 %v7996_v46  ;;  %v9954_v48 = vsel %vm9400_vm3, %v23013_v62, 0  ;;  %v8421_v42 = vmul.f32 1.442695, %v8269_v39  ;;  %v19550_v46 = vpop.eup %19549 }
 0x600   : > { %18584 = vmatpush3.bf16.msra.mxu0 %v9862_v5  ;;  %18591 = vmatprep.mubr.msk.bf16.mxu1 %vm20129_vm0, %v26609_v2  ;;  %v9152_v17 = vmul.f32 %v19550_v46, %v22784_v24 }
 0x601   : > { %18595 = vmatprep.subr.bf16.mxu0 %v26609_v2  ;;  %19553 = vpow2.f32 %v8421_v42  ;;  %v26833_v42 = vld [vmem:[#allocation135_spill] sm:$0xff] }
 0x602   : > { %v9280_v1 = vpack.c.bf16 %v9152_v17, %v9152_v17  ;;  %v8270_v46 = vsub.f32 %v26833_v42, %v22741_v58 }
 0x603   : > { %18586 = vmatmul.mubr.msk.bf16.vlgmr.msra.gmra.mrb[48].mxu0 %vm7860_vm2, %v9279_v10  ;;  %8699 = vadd.xlane.f32.xlu0 %v8698_v37  ;;  %v26831_v10 = vld [vmem:[#allocation28_spill] sm:$0xff] }
 0x604   : > { %18596 = vmatpush3.bf16.msra.mxu0 %v9954_v48  ;;  %18597 = vmatprep.mubr.msk.bf16.mxu0 %vm20129_vm0, %v26609_v2  ;;  %v23132_v53 = vpack.c.bf16 %v26831_v10, %v26831_v10 }
 0x605   : > { %18607 = vmatprep.subr.bf16.mxu0 %v26609_v2 }
 0x606   : > { %v23115_v36 = vpop.xlane.xlu0 %7970 }
 0x608   : > { %v23127_v49 = vpop.eup %19551 }
 0x609   : > { %v8695_v37 = vsel %vm7860_vm2, %v23127_v49, 0.0 }
 0x60a   : > { %v23118_v62 = vpop.xlane.xlu0 %7976 }
 0x60b   : > { %26830 = vst [vmem:[#allocation57_spill] sm:$0xff] %v23118_v62  ;;  %18598 = vmatmul.mubr.msk.bf16.vlgmr.msra.gmra.mrb[52].mxu0 %vm7860_vm2, %v9281_v55  ;;  %v23137_v48 = vpop.eup %19553 }
 0x60c   : > { %18609 = vmatprep.mubr.msk.bf16.mxu0 %vm20129_vm0, %v26609_v2  ;;  %v8701_v24 = vsel %vm7860_vm2, %v23137_v48, 0.0 }
 0x60e   : > { %v23123_v47 = vpop.xlane.xlu0 %8678 }
 0x612   : > { %v23125_v5 = vpop.xlane.xlu0 %7979 }
 0x616   : > { %v1752_v51 = vpop.permute.xlu0 %1751 }
 0x617   : > { %v9908_v41 = vsel %vm9400_vm3, %v1752_v51, 0  ;;  %v8423_v51 = vmul.f32 1.442695, %v8270_v46 }
 0x618   : > { %18590 = vmatpush3.bf16.msra.mxu1 %v9908_v41  ;;  %8696 = vadd.xlane.f32.xlu1 %v8695_v37  ;;  %v26834_v41 = vld [vmem:[#allocation65_spill] sm:$0xff] }
 0x619   : > { %1627 = vrot.lane.b32.xlu0 %v23132_v53, %s20131_s10  ;;  %18601 = vmatprep.subr.bf16.mxu1 %v26609_v2  ;;  %19555 = vpow2.f32 %v8423_v51  ;;  %v26835_v37 = vld [vmem:[#allocation89_spill] sm:$0xff] }
 0x61a   : > { %19557 = vrcp.f32 %v23036_v50 }
 0x61b   : > { %18592 = vmatmul.mubr.msk.bf16.vlgmr.msra.gmra.mrb[88].mxu1 %vm7860_vm2, %v9280_v1  ;;  %v23158_v1 = vadd.f32 %v26835_v37, %v26834_v41  ;;  %v26839_v37 = vld [vmem:[#allocation148_spill] sm:$0xff]  ;;  %19559 = vrcp.f32 %v23063_v54 }
 0x61c   : > { %8702 = vadd.xlane.f32.xlu1 %v8701_v24  ;;  %18603 = vmatprep.mubr.msk.bf16.mxu1 %vm20129_vm0, %v26609_v2 }
 0x61d   : > { %26836 = vst [vmem:[#allocation13_spill] sm:$0xff] %v23158_v1 }
 0x623   : > { %v23147_v4 = vpop.f32.mrb[68].mxu1  ;;  %v23168_v51 = vpop.eup %19555 }
 0x624   : > { %26832 = vst [vmem:[#allocation59_spill] sm:$0xff] %v23147_v4  ;;  %v18533_v39 = vpop.f32.mrb[69].mxu1  ;;  %v19558_v50 = vpop.eup %19557  ;;  %v8704_v41 = vsel %vm7860_vm2, %v23168_v51, 0.0 }
 0x625   : > { %v9487_v55 = vpop.f32.mrb[70].mxu1 }
 0x626   : > { %v18534_v17 = vpop.f32.mrb[71].mxu1 }
 0x627   : > { %v7999_v17 = vsel %vm7860_vm2, %v23158_v1, -inf }
 0x62d   : > { %1691 = vrot.lane.b32.xlu1 %v23132_v53, %s20130_s19 }
 0x62f   : > { %v23153_v10 = vpop.xlane.xlu1 %8681 }
 0x633   : > { %v23160_v24 = vpop.f32.mrb[32].mxu0  ;;  %v23162_v39 = vpop.xlane.xlu1 %8684 }
 0x634   : > { %26837 = vst [vmem:[#allocation25_spill] sm:$0xff] %v23160_v24  ;;  %v18539_v55 = vpop.f32.mrb[33].mxu0 }
 0x635   : > { %v9533_v58 = vpop.f32.mrb[34].mxu0 }
 0x636   : > { %v18540_v42 = vpop.f32.mrb[35].mxu0 }
 0x637   : > { %v23164_v46 = vpop.xlane.xlu1 %7985  ;;  %v9154_v42 = vmul.f32 %v19558_v50, %v22839_v16  ;;  %v26840_v16 = vld [vmem:[#allocation83_spill] sm:$0xff] }
 0x638   : > { %26838 = vst [vmem:[#allocation23_spill] sm:$0xff] %v23164_v46  ;;  %8000 = vmax.xlane.f32.xlu0 %v7999_v17  ;;  %v8271_v17 = vsub.f32 %v26839_v37, %v22793_v12  ;;  %v26842_v37 = vld [vmem:[#allocation90_spill] sm:$0xff] }
 0x639   : > { %v9282_v45 = vpack.c.bf16 %v9154_v42, %v9154_v42 }
 0x63a   : > { %v8425_v62 = vmul.f32 1.442695, %v8271_v17 }
 0x63b   : > { %v9622_v35 = vpop.f32.mrb[36].mxu0  ;;  %v23170_v22 = vpop.xlane.xlu1 %8687 }
 0x63c   : > { %v16948_v34 = vpack.c.bf16 %v9622_v35, %v23061_v32  ;;  %v18551_v55 = vpop.f32.mrb[37].mxu0  ;;  %8705 = vadd.xlane.f32.xlu0 %v8704_v41  ;;  %19561 = vpow2.f32 %v8425_v62  ;;  %v26844_v41 = vld [vmem:[#allocation44_spill] sm:$0xff] }
 0x63d   : > { %v9625_v58 = vpop.f32.mrb[38].mxu0  ;;  %19563 = vrcp.f32 %v23123_v47  ;;  %v26845_v55 = vld [vmem:[#allocation74_spill] sm:$0xff] }
 0x63e   : > { %15510 = vst.msk [vmem:[#allocation2] sm:$0xff] %vm1811_vm1, %v16948_v34  ;;  %v18552_v1 = vpop.f32.mrb[39].mxu0  ;;  %v8272_v34 = vsub.f32 %v26840_v16, %v22797_v8  ;;  %v23207_v58 = vadd.f32 %v26845_v55, %v26844_v41 }
 0x63f   : > { %v1626_v46 = vpop.permute.xlu1 %1625 }
 0x640   : > { %v10000_v21 = vsel %vm9400_vm3, %v1626_v46, 0  ;;  %v8427_v32 = vmul.f32 1.442695, %v8272_v34  ;;  %26846 = vst [vmem:[#allocation61_spill] sm:$0xff] %v23207_v58  ;;  %v10138_v34 = vsel %vm9400_vm3, %v23132_v53, 0 }
 0x641   : > { %18602 = vmatpush3.bf16.msra.mxu1 %v10000_v21  ;;  %v26841_v21 = vld [vmem:[#allocation63_spill] sm:$0xff] }
 0x642   : > { %18613 = vmatprep.subr.bf16.mxu1 %v26609_v2  ;;  %v23193_v1 = vadd.f32 %v26842_v37, %v26841_v21  ;;  %19565 = vpow2.f32 %v8427_v32  ;;  %v8008_v32 = vsel %vm7860_vm2, %v23207_v58, -inf }
 0x643   : > { %19567 = vrcp.f32 %v23078_v27 }
 0x644   : > { %18604 = vmatmul.mubr.msk.bf16.vlgmr.msra.gmra.mrb[92].mxu1 %vm7860_vm2, %v9282_v45  ;;  %26843 = vst [vmem:[#allocation62_spill] sm:$0xff] %v23193_v1  ;;  %v19560_v45 = vpop.eup %19559  ;;  %v8002_v62 = vsel %vm7860_vm2, %v23193_v1, -inf }
 0x645   : > { %18615 = vmatprep.mubr.msk.bf16.mxu1 %vm20129_vm0, %v26609_v2  ;;  %v9155_v8 = vmul.f32 %v19560_v45, %v22876_v43 }
 0x646   : > { %v23200_v46 = vpop.eup %19561 }
 0x647   : > { %v23187_v12 = vpop.xlane.xlu0 %7982  ;;  %v8707_v42 = vsel %vm7860_vm2, %v23200_v46, 0.0  ;;  %v9283_v17 = vpack.c.bf16 %v9155_v8, %v9155_v8  ;;  %v19564_v16 = vpop.eup %19563 }
 0x64b   : > { %v23189_v35 = vpop.xlane.xlu0 %7988 }
 0x64c   : > { %v23220_v21 = vpop.eup %19565 }
 0x64f   : > { %v23196_v54 = vpop.xlane.xlu0 %8690 }
 0x651   : > { %8003 = vmax.xlane.f32.xlu1 %v8002_v62  ;;  %v9157_v62 = vmul.f32 %v19564_v16, %v22929_v20  ;;  %v26848_v20 = vld [vmem:[#allocation30_spill] sm:$0xff] }
 0x652   : > { %1755 = vrot.lane.b32.xlu0 %v23132_v53, %s20132_s11  ;;  %v8710_v53 = vsel %vm7860_vm2, %v23220_v21, 0.0 }
 0x653   : > { %v1690_v50 = vpop.permute.xlu0 %1689  ;;  %v9285_v41 = vpack.c.bf16 %v9157_v62, %v9157_v62 }
 0x654   : > { %v10046_v47 = vsel %vm9400_vm3, %v1690_v50, 0 }
 0x655   : > { %18608 = vmatpush3.bf16.msra.mxu0 %v10046_v47  ;;  %8708 = vadd.xlane.f32.xlu1 %v8707_v42  ;;  %v23234_v47 = vpack.c.bf16 %v26848_v20, %v26848_v20  ;;  %v26849_v42 = vld [vmem:[#allocation15_spill] sm:$0xff] }
 0x656   : > { %18619 = vmatprep.subr.bf16.mxu0 %v26609_v2 }
 0x658   : > { %v23213_v43 = vpop.f32.mrb[72].mxu1  ;;  %18610 = vmatmul.mubr.msk.bf16.vlgmr.msra.gmra.mrb[56].mxu0 %vm7860_vm2, %v9283_v17  ;;  %v26850_v17 = vld [vmem:[#allocation75_spill] sm:$0xff] }
 0x659   : > { %26847 = vst [vmem:[#allocation28_spill] sm:$0xff] %v23213_v43  ;;  %18620 = vmatpush3.bf16.msra.mxu0 %v10138_v34  ;;  %8009 = vmax.xlane.f32.xlu1 %v8008_v32  ;;  %v18545_v45 = vpop.f32.mrb[73].mxu1  ;;  %v23238_v16 = vadd.f32 %v26850_v17, %v26849_v42  ;;  %v19568_v34 = vpop.eup %19567  ;;  %v26852_v32 = vld [vmem:[#allocation16_spill] sm:$0xff] }
 0x65a   : > { %v9579_v8 = vpop.f32.mrb[74].mxu1  ;;  %18621 = vmatprep.mubr.msk.bf16.mxu0 %vm20129_vm0, %v26609_v2  ;;  %18631 = vmatprep.subr.bf16.mxu0 %v26609_v2  ;;  %v23244_v45 = vadd.f32 %v21601_v60, %v26852_v32 }
 0x65b   : > { %v18546_v50 = vpop.f32.mrb[75].mxu1  ;;  %26851 = vst [vmem:[#allocation135_spill] sm:$0xff] %v23238_v16  ;;  %v8005_v27 = vsel %vm7860_vm2, %v23238_v16, -inf  ;;  %v9156_v8 = vmul.f32 %v19568_v34, %v22893_v38  ;;  %v26855_v38 = vld [vmem:[#allocation81_spill] sm:$0xff] }
 0x65c   : > { %26853 = vst [vmem:[#allocation65_spill] sm:$0xff] %v23244_v45  ;;  %v8273_v34 = vsub.f32 %v26855_v38, %v22841_v19 }
 0x65d   : > { %8711 = vadd.xlane.f32.xlu1 %v8710_v53  ;;  %v9284_v1 = vpack.c.bf16 %v9156_v8, %v9156_v8 }
 0x660   : > { %18622 = vmatmul.mubr.msk.bf16.vlgmr.msra.gmra.mrb[60].mxu0 %vm7860_vm2, %v9285_v41  ;;  %v8011_v41 = vsel %vm7860_vm2, %v23244_v45, -inf }
 0x661   : > { %18633 = vmatprep.mubr.msk.bf16.mxu0 %vm20129_vm0, %v26609_v2 }
 0x66e   : > { %1629 = vrot.lane.b32.xlu1 %v23234_v47, %s20131_s10 }
 0x670   : > { %v23246_v62 = vpop.xlane.xlu1 %7991 }
 0x671   : > { %8006 = vmax.xlane.f32.xlu0 %v8005_v27  ;;  %v8429_v27 = vmul.f32 1.442695, %v8273_v34 }
 0x673   : > { %19569 = vpow2.f32 %v8429_v27 }
 0x674   : > { %v1754_v50 = vpop.permute.xlu1 %1753  ;;  %v23251_v53 = vpop.f32.mrb[76].mxu1  ;;  %19571 = vrcp.f32 %v23153_v10 }
 0x675   : > { %26854 = vst [vmem:[#allocation148_spill] sm:$0xff] %v23251_v53  ;;  %v10092_v20 = vsel %vm9400_vm3, %v1754_v50, 0  ;;  %8012 = vmax.xlane.f32.xlu0 %v8011_v41  ;;  %v18557_v32 = vpop.f32.mrb[77].mxu1  ;;  %v26856_v50 = vld [vmem:[#allocation80_spill] sm:$0xff] }
 0x676   : > { %v9671_v58 = vpop.f32.mrb[78].mxu1  ;;  %18614 = vmatpush3.bf16.msra.mxu1 %v10092_v20  ;;  %v8274_v42 = vsub.f32 %v26856_v50, %v22845_v52 }
 0x677   : > { %v18558_v16 = vpop.f32.mrb[79].mxu1  ;;  %18625 = vmatprep.subr.bf16.mxu1 %v26609_v2 }
 0x678   : > { %v8431_v41 = vmul.f32 1.442695, %v8274_v42 }
 0x679   : > { %18616 = vmatmul.mubr.msk.bf16.vlgmr.msra.gmra.mrb[96].mxu1 %vm7860_vm2, %v9284_v1 }
 0x67a   : > { %18627 = vmatprep.mubr.msk.bf16.mxu1 %vm20129_vm0, %v26609_v2  ;;  %19573 = vpow2.f32 %v8431_v41 }
 0x67b   : > { %19575 = vrcp.f32 %v23162_v39 }
 0x67c   : > { %19577 = vrcp.f32 %v23196_v54 }
 0x67d   : > { %v23275_v8 = vpop.eup %19569 }
 0x67e   : > { %v19572_v19 = vpop.eup %19571  ;;  %v8713_v42 = vsel %vm7860_vm2, %v23275_v8, 0.0 }
 0x67f   : > { %v9158_v34 = vmul.f32 %v19572_v19, %v22966_v25 }
 0x681   : > { %v9286_v45 = vpack.c.bf16 %v9158_v34, %v9158_v34 }
 0x684   : > { %v23266_v58 = vpop.xlane.xlu0 %8693  ;;  %v23283_v32 = vpop.eup %19573 }
 0x685   : > { %v8716_v53 = vsel %vm7860_vm2, %v23283_v32, 0.0 }
 0x688   : > { %v23269_v16 = vpop.xlane.xlu0 %7994 }
 0x68b   : > { %1693 = vrot.lane.b32.xlu0 %v23234_v47, %s20130_s19 }
 0x68c   : > { %v23273_v1 = vpop.xlane.xlu0 %7997 }
 0x68d   : > { %26857 = vst [vmem:[#allocation83_spill] sm:$0xff] %v23273_v1 }
 0x690   : > { %v23277_v20 = vpop.xlane.xlu0 %8699 }
 0x691   : > { %v23279_v52 = vpop.f32.mrb[40].mxu0 }
 0x692   : > { %26858 = vst [vmem:[#allocation63_spill] sm:$0xff] %v23279_v52  ;;  %v18563_v38 = vpop.f32.mrb[41].mxu0  ;;  %8714 = vadd.xlane.f32.xlu1 %v8713_v42 }
 0x693   : > { %v9717_v27 = vpop.f32.mrb[42].mxu0  ;;  %v26859_v38 = vld [vmem:[#allocation87_spill] sm:$0xff] }
 0x694   : > { %v18564_v50 = vpop.f32.mrb[43].mxu0  ;;  %v1628_v41 = vpop.permute.xlu0 %1627  ;;  %v8276_v27 = vsub.f32 %v26859_v38, %v22925_v6 }
 0x695   : > { %v10184_v4 = vsel %vm9400_vm3, %v1628_v41, 0  ;;  %v26862_v41 = vld [vmem:[#allocation69_spill] sm:$0xff] }
 0x696   : > { %18626 = vmatpush3.bf16.msra.mxu1 %v10184_v4  ;;  %8717 = vadd.xlane.f32.xlu1 %v8716_v53  ;;  %v8435_v4 = vmul.f32 1.442695, %v8276_v27  ;;  %v26860_v53 = vld [vmem:[#allocation68_spill] sm:$0xff]  ;;  %v23311_v39 = vadd.f32 %v21649_v11, %v26862_v41 }
 0x697   : > { %18637 = vmatprep.subr.bf16.mxu1 %v26609_v2  ;;  %v23302_v34 = vadd.f32 %v21629_v23, %v26860_v53 }
 0x698   : > { %19579 = vpow2.f32 %v8435_v4  ;;  %26863 = vst [vmem:[#allocation44_spill] sm:$0xff] %v23311_v39  ;;  %v8017_v4 = vsel %vm7860_vm2, %v23311_v39, -inf }
 0x699   : > { %v23292_v1 = vpop.f32.mrb[44].mxu0  ;;  %18628 = vmatmul.mubr.msk.bf16.vlgmr.msra.gmra.mrb[100].mxu1 %vm7860_vm2, %v9286_v45  ;;  %26861 = vst [vmem:[#allocation90_spill] sm:$0xff] %v23302_v34  ;;  %v19576_v45 = vpop.eup %19575  ;;  %v8014_v6 = vsel %vm7860_vm2, %v23302_v34, -inf }
 0x69a   : > { %v18575_v42 = vpop.f32.mrb[45].mxu0  ;;  %18639 = vmatprep.mubr.msk.bf16.mxu1 %vm20129_vm0, %v26609_v2 }
 0x69b   : > { %v9809_v25 = vpop.f32.mrb[46].mxu0 }
 0x69c   : > { %v18576_v19 = vpop.f32.mrb[47].mxu0  ;;  %v9159_v25 = vmul.f32 %v19576_v45, %v22972_v28 }
 0x69d   : > { %v26864_v19 = vld [vmem:[#allocation71_spill] sm:$0xff] }
 0x69e   : > { %v23320_v54 = vadd.f32 %v21705_v40, %v26864_v19  ;;  %v9287_v28 = vpack.c.bf16 %v9159_v25, %v9159_v25  ;;  %v19578_v19 = vpop.eup %19577  ;;  %v26867_v25 = vld [vmem:[#allocation84_spill] sm:$0xff] }
 0x6a0   : > { %26865 = vst [vmem:[#allocation74_spill] sm:$0xff] %v23320_v54  ;;  %v8020_v24 = vsel %vm7860_vm2, %v23320_v54, -inf }
 0x6a2   : > { %v23332_v52 = vpop.eup %19579 }
 0x6a5   : > { %v23304_v50 = vpop.xlane.xlu1 %8696 }
 0x6a7   : > { %1757 = vrot.lane.b32.xlu1 %v23234_v47, %s20132_s11 }
 0x6a9   : > { %v23313_v42 = vpop.xlane.xlu1 %8702 }
 0x6aa   : > { %8015 = vmax.xlane.f32.xlu0 %v8014_v6 }
 0x6ad   : > { %v1692_v38 = vpop.permute.xlu1 %1691  ;;  %v23322_v27 = vpop.f32.mrb[80].mxu1 }
 0x6ae   : > { %26866 = vst [vmem:[#allocation30_spill] sm:$0xff] %v23322_v27  ;;  %v10230_v53 = vsel %vm9400_vm3, %v1692_v38, 0  ;;  %8018 = vmax.xlane.f32.xlu0 %v8017_v4  ;;  %v18569_v10 = vpop.f32.mrb[81].mxu1  ;;  %v10322_v38 = vsel %vm9400_vm3, %v23234_v47, 0  ;;  %v8275_v4 = vsub.f32 %v26867_v25, %v22862_v7 }
 0x6af   : > { %v9763_v6 = vpop.f32.mrb[82].mxu1  ;;  %18632 = vmatpush3.bf16.msra.mxu0 %v10230_v53  ;;  %v9161_v10 = vmul.f32 %v19578_v19, %v23017_v15  ;;  %v8722_v53 = vsel %vm7860_vm2, %v23332_v52, 0.0 }
 0x6b0   : > { %v18570_v45 = vpop.f32.mrb[83].mxu1  ;;  %18643 = vmatprep.subr.bf16.mxu0 %v26609_v2 }
 0x6b1   : > { %v9289_v6 = vpack.c.bf16 %v9161_v10, %v9161_v10  ;;  %v26869_v10 = vld [vmem:[#allocation27_spill] sm:$0xff] }
 0x6b2   : > { %18634 = vmatmul.mubr.msk.bf16.vlgmr.msra.gmra.mrb[64].mxu0 %vm7860_vm2, %v9287_v28  ;;  %8021 = vmax.xlane.f32.xlu0 %v8020_v24  ;;  %v8433_v24 = vmul.f32 1.442695, %v8275_v4  ;;  %v26868_v28 = vld [vmem:[#allocation21_spill] sm:$0xff] }
 0x6b3   : > { %18644 = vmatpush3.bf16.msra.mxu0 %v10322_v38  ;;  %18645 = vmatprep.mubr.msk.bf16.mxu0 %vm20129_vm0, %v26609_v2  ;;  %v8277_v47 = vsub.f32 %v26868_v28, %v22954_v56  ;;  %v23359_v56 = vpack.c.bf16 %v26869_v10, %v26869_v10 }
 0x6b4   : > { %18655 = vmatprep.subr.bf16.mxu0 %v26609_v2  ;;  %19581 = vpow2.f32 %v8433_v24 }
 0x6b5   : > { %v8437_v15 = vmul.f32 1.442695, %v8277_v47  ;;  %19583 = vrcp.f32 %v23170_v22 }
 0x6b6   : > { %8723 = vadd.xlane.f32.xlu0 %v8722_v53 }
 0x6b7   : > { %19585 = vpow2.f32 %v8437_v15 }
 0x6b8   : > { %19587 = vrcp.f32 %v23266_v58 }
 0x6ba   : > { %18646 = vmatmul.mubr.msk.bf16.vlgmr.msra.gmra.mrb[68].mxu0 %vm7860_vm2, %v9289_v6 }
 0x6bb   : > { %18657 = vmatprep.mubr.msk.bf16.mxu0 %vm20129_vm0, %v26609_v2 }
 0x6be   : > { %v23353_v45 = vpop.eup %19581 }
 0x6bf   : > { %v19584_v19 = vpop.eup %19583  ;;  %v8719_v25 = vsel %vm7860_vm2, %v23353_v45, 0.0 }
 0x6c0   : > { %v9160_v22 = vmul.f32 %v19584_v19, %v22984_v18 }
 0x6c1   : > { %v23363_v4 = vpop.eup %19585 }
 0x6c2   : > { %v8725_v24 = vsel %vm7860_vm2, %v23363_v4, 0.0  ;;  %v9288_v28 = vpack.c.bf16 %v9160_v22, %v9160_v22 }
 0x6c5   : > { %v23351_v7 = vpop.xlane.xlu0 %8000 }
 0x6c9   : > { %v23355_v38 = vpop.xlane.xlu0 %8705 }
 0x6cb   : > { %8720 = vadd.xlane.f32.xlu1 %v8719_v25 }
 0x6cc   : > { %1631 = vrot.lane.b32.xlu0 %v23359_v56, %s20131_s10 }
 0x6cd   : > { %v1756_v53 = vpop.permute.xlu0 %1755 }
 0x6ce   : > { %v10276_v6 = vsel %vm9400_vm3, %v1756_v53, 0 }
 0x6cf   : > { %18638 = vmatpush3.bf16.msra.mxu1 %v10276_v6  ;;  %8726 = vadd.xlane.f32.xlu1 %v8725_v24  ;;  %v26872_v6 = vld [vmem:[#allocation78_spill] sm:$0xff] }
 0x6d0   : > { %18649 = vmatprep.subr.bf16.mxu1 %v26609_v2  ;;  %v8278_v24 = vsub.f32 %v26872_v6, %v22993_v44  ;;  %v26873_v44 = vld [vmem:[#allocation73_spill] sm:$0xff] }
 0x6d2   : > { %v23372_v47 = vpop.f32.mrb[84].mxu1  ;;  %18640 = vmatmul.mubr.msk.bf16.vlgmr.msra.gmra.mrb[104].mxu1 %vm7860_vm2, %v9288_v28  ;;  %v8439_v41 = vmul.f32 1.442695, %v8278_v24 }
 0x6d3   : > { %26870 = vst [vmem:[#allocation15_spill] sm:$0xff] %v23372_v47  ;;  %v18581_v15 = vpop.f32.mrb[85].mxu1  ;;  %18651 = vmatprep.mubr.msk.bf16.mxu1 %vm20129_vm0, %v26609_v2 }
 0x6d4   : > { %v9855_v18 = vpop.f32.mrb[86].mxu1  ;;  %19589 = vpow2.f32 %v8439_v41 }
 0x6d5   : > { %v18582_v19 = vpop.f32.mrb[87].mxu1  ;;  %19591 = vrcp.f32 %v23304_v50 }
 0x6d6   : > { %v23377_v10 = vpop.f32.mrb[48].mxu0 }
 0x6d7   : > { %26871 = vst [vmem:[#allocation75_spill] sm:$0xff] %v23377_v10  ;;  %v18587_v25 = vpop.f32.mrb[49].mxu0 }
 0x6d8   : > { %v9901_v53 = vpop.f32.mrb[50].mxu0  ;;  %v26874_v25 = vld [vmem:[#allocation79_spill] sm:$0xff] }
 0x6d9   : > { %v18588_v22 = vpop.f32.mrb[51].mxu0  ;;  %v23392_v53 = vadd.f32 %v26874_v25, %v26873_v44 }
 0x6db   : > { %26875 = vst [vmem:[#allocation16_spill] sm:$0xff] %v23392_v53  ;;  %v8023_v58 = vsel %vm7860_vm2, %v23392_v53, -inf }
 0x6de   : > { %v9990_v43 = vpop.f32.mrb[52].mxu0  ;;  %v23381_v27 = vpop.xlane.xlu1 %8003 }
 0x6df   : > { %v16949_v28 = vpack.c.bf16 %v9990_v43, %v23292_v1  ;;  %v18599_v15 = vpop.f32.mrb[53].mxu0  ;;  %v19588_v43 = vpop.eup %19587 }
 0x6e0   : > { %v9993_v54 = vpop.f32.mrb[54].mxu0  ;;  %1695 = vrot.lane.b32.xlu1 %v23359_v56, %s20130_s19  ;;  %v9162_v41 = vmul.f32 %v19588_v43, %v23070_v57  ;;  %v26878_v43 = vld [vmem:[#allocation86_spill] sm:$0xff] }
 0x6e1   : > { %15511 = vst.msk [vmem:[#allocation2 + $0x8] sm:$0xff] %vm1811_vm1, %v16949_v28  ;;  %v18600_v18 = vpop.f32.mrb[55].mxu0  ;;  %v23400_v54 = vpop.eup %19589 }
 0x6e2   : > { %v23388_v19 = vpop.xlane.xlu1 %8708  ;;  %v8728_v28 = vsel %vm7860_vm2, %v23400_v54, 0.0  ;;  %v9290_v39 = vpack.c.bf16 %v9162_v41, %v9162_v41 }
 0x6e6   : > { %v23394_v6 = vpop.xlane.xlu1 %8009 }
 0x6ea   : > { %v23396_v1 = vpop.xlane.xlu1 %8711 }
 0x6eb   : > { %8024 = vmax.xlane.f32.xlu0 %v8023_v58  ;;  %v26877_v58 = vld [vmem:[#allocation93_spill] sm:$0xff] }
 0x6ec   : > { %v8279_v53 = vsub.f32 %v26877_v58, %v23034_v9  ;;  %v19592_v9 = vpop.eup %19591 }
 0x6ee   : > { %v1630_v24 = vpop.permute.xlu1 %1629  ;;  %v23403_v22 = vpop.f32.mrb[88].mxu1  ;;  %v8441_v57 = vmul.f32 1.442695, %v8279_v53 }
 0x6ef   : > { %26876 = vst [vmem:[#allocation81_spill] sm:$0xff] %v23403_v22  ;;  %v10368_v15 = vsel %vm9400_vm3, %v1630_v24, 0  ;;  %8729 = vadd.xlane.f32.xlu0 %v8728_v28  ;;  %v18593_v18 = vpop.f32.mrb[89].mxu1  ;;  %v8280_v24 = vsub.f32 %v26878_v43, %v23056_v59  ;;  %v9163_v59 = vmul.f32 %v19592_v9, %v23127_v49  ;;  %v10506_v49 = vsel %vm9400_vm3, %v23359_v56, 0 }
 0x6f0   : > { %v9947_v44 = vpop.f32.mrb[90].mxu1  ;;  %18650 = vmatpush3.bf16.msra.mxu1 %v10368_v15  ;;  %19593 = vpow2.f32 %v8441_v57 }
 0x6f1   : > { %v18594_v34 = vpop.f32.mrb[91].mxu1  ;;  %18661 = vmatprep.subr.bf16.mxu1 %v26609_v2  ;;  %v8443_v28 = vmul.f32 1.442695, %v8280_v24  ;;  %19595 = vrcp.f32 %v23313_v42  ;;  %v26880_v44 = vld [vmem:[#allocation97_spill] sm:$0xff]  ;;  %v9291_v43 = vpack.c.bf16 %v9163_v59, %v9163_v59 }
 0x6f2   : > { %v26879_v34 = vld [vmem:[#allocation72_spill] sm:$0xff]  ;;  %v23435_v58 = vadd.f32 %v21756_v0, %v26880_v44 }
 0x6f3   : > { %18652 = vmatmul.mubr.msk.bf16.vlgmr.msra.gmra.mrb[108].mxu1 %vm7860_vm2, %v9290_v39  ;;  %v23421_v15 = vadd.f32 %v21718_v30, %v26879_v34  ;;  %19597 = vpow2.f32 %v8443_v28 }
 0x6f4   : > { %18663 = vmatprep.mubr.msk.bf16.mxu1 %vm20129_vm0, %v26609_v2  ;;  %26881 = vst [vmem:[#allocation80_spill] sm:$0xff] %v23435_v58  ;;  %v8032_v28 = vsel %vm7860_vm2, %v23435_v58, -inf  ;;  %19599 = vrcp.f32 %v23277_v20 }
 0x6f5   : > { %v8026_v50 = vsel %vm7860_vm2, %v23421_v15, -inf }
 0x6fa   : > { %v23428_v53 = vpop.eup %19593 }
 0x6fb   : > { %v8731_v57 = vsel %vm7860_vm2, %v23428_v53, 0.0  ;;  %v19596_v24 = vpop.eup %19595 }
 0x6fc   : > { %v9165_v9 = vmul.f32 %v19596_v24, %v23137_v48  ;;  %v26884_v24 = vld [vmem:[#allocation67_spill] sm:$0xff] }
 0x6fd   : > { %v23446_v34 = vpop.eup %19597 }
 0x6fe   : > { %v23417_v41 = vpop.xlane.xlu0 %8006  ;;  %v9293_v59 = vpack.c.bf16 %v9165_v9, %v9165_v9  ;;  %v19600_v9 = vpop.eup %19599 }
 0x702   : > { %v23424_v39 = vpop.xlane.xlu0 %8012 }
 0x704   : > { %8027 = vmax.xlane.f32.xlu1 %v8026_v50  ;;  %v8734_v50 = vsel %vm7860_vm2, %v23446_v34, 0.0 }
 0x705   : > { %1759 = vrot.lane.b32.xlu0 %v23359_v56, %s20132_s11 }
 0x706   : > { %v1694_v18 = vpop.permute.xlu0 %1693 }
 0x707   : > { %v10414_v42 = vsel %vm9400_vm3, %v1694_v18, 0 }
 0x708   : > { %18656 = vmatpush3.bf16.msra.mxu0 %v10414_v42  ;;  %8732 = vadd.xlane.f32.xlu1 %v8731_v57  ;;  %v26883_v57 = vld [vmem:[#allocation29_spill] sm:$0xff] }
 0x709   : > { %18667 = vmatprep.subr.bf16.mxu0 %v26609_v2 }
 0x70b   : > { %18658 = vmatmul.mubr.msk.bf16.vlgmr.msra.gmra.mrb[72].mxu0 %vm7860_vm2, %v9291_v43  ;;  %v23464_v43 = vpack.c.bf16 %v26883_v57, %v26883_v57 }
 0x70c   : > { %18668 = vmatpush3.bf16.msra.mxu0 %v10506_v49  ;;  %8033 = vmax.xlane.f32.xlu1 %v8032_v28  ;;  %v23468_v49 = vadd.f32 %v21611_v61, %v26884_v24 }
 0x70d   : > { %18669 = vmatprep.mubr.msk.bf16.mxu0 %vm20129_vm0, %v26609_v2  ;;  %18679 = vmatprep.subr.bf16.mxu0 %v26609_v2 }
 0x70e   : > { %26885 = vst [vmem:[#allocation68_spill] sm:$0xff] %v23468_v49 }
 0x710   : > { %8735 = vadd.xlane.f32.xlu1 %v8734_v50  ;;  %v26886_v50 = vld [vmem:[#allocation70_spill] sm:$0xff] }
 0x713   : > { %18670 = vmatmul.mubr.msk.bf16.vlgmr.msra.gmra.mrb[76].mxu0 %vm7860_vm2, %v9293_v59  ;;  %v23474_v59 = vadd.f32 %v21700_v26, %v26886_v50 }
 0x714   : > { %18681 = vmatprep.mubr.msk.bf16.mxu0 %vm20129_vm0, %v26609_v2 }
 0x715   : > { %26887 = vst [vmem:[#allocation69_spill] sm:$0xff] %v23474_v59  ;;  %v8035_v57 = vsel %vm7860_vm2, %v23474_v59, -inf }
 0x717   : > { %v23457_v56 = vpop.f32.mrb[92].mxu1 }
 0x718   : > { %26882 = vst [vmem:[#allocation87_spill] sm:$0xff] %v23457_v56  ;;  %v18605_v18 = vpop.f32.mrb[93].mxu1 }
 0x719   : > { %v10039_v44 = vpop.f32.mrb[94].mxu1  ;;  %v8029_v18 = vsel %vm7860_vm2, %v23468_v49, -inf }
 0x71a   : > { %v18606_v42 = vpop.f32.mrb[95].mxu1  ;;  %v9164_v44 = vmul.f32 %v19600_v9, %v23095_v13 }
 0x71c   : > { %v9292_v48 = vpack.c.bf16 %v9164_v44, %v9164_v44  ;;  %v26889_v44 = vld [vmem:[#allocation26_spill] sm:$0xff] }
 0x71f   : > { %v8715_v28 = vpop.xlane.xlu1 %8714 }
 0x721   : > { %1633 = vrot.lane.b32.xlu1 %v23464_v43, %s20131_s10 }
 0x723   : > { %v23476_v20 = vpop.xlane.xlu1 %8717 }
 0x724   : > { %8030 = vmax.xlane.f32.xlu0 %v8029_v18  ;;  %v8281_v18 = vsub.f32 %v22907_v33, %v23115_v36 }
 0x727   : > { %v1758_v42 = vpop.permute.xlu1 %1757 }
 0x728   : > { %v10460_v24 = vsel %vm9400_vm3, %v1758_v42, 0  ;;  %8036 = vmax.xlane.f32.xlu0 %v8035_v57  ;;  %v8282_v42 = vsub.f32 %v26889_v44, %v23068_v14  ;;  %v8445_v57 = vmul.f32 1.442695, %v8281_v18 }
 0x729   : > { %18662 = vmatpush3.bf16.msra.mxu1 %v10460_v24 }
 0x72a   : > { %18673 = vmatprep.subr.bf16.mxu1 %v26609_v2  ;;  %19601 = vpow2.f32 %v8445_v57 }
 0x72b   : > { %v23485_v50 = vpop.f32.mrb[56].mxu0  ;;  %19603 = vrcp.f32 %v23355_v38 }
 0x72c   : > { %26888 = vst [vmem:[#allocation71_spill] sm:$0xff] %v23485_v50  ;;  %v18611_v56 = vpop.f32.mrb[57].mxu0  ;;  %18664 = vmatmul.mubr.msk.bf16.vlgmr.msra.gmra.mrb[112].mxu1 %vm7860_vm2, %v9292_v48 }
 0x72d   : > { %v10085_v13 = vpop.f32.mrb[58].mxu0  ;;  %18675 = vmatprep.mubr.msk.bf16.mxu1 %vm20129_vm0, %v26609_v2  ;;  %v8447_v56 = vmul.f32 1.442695, %v8282_v42 }
 0x72e   : > { %v18612_v9 = vpop.f32.mrb[59].mxu0 }
 0x72f   : > { %19605 = vpow2.f32 %v8447_v56 }
 0x730   : > { %19607 = vrcp.f32 %v23388_v19 }
 0x731   : > { %19609 = vrcp.f32 %v8715_v28 }
 0x733   : > { %v23496_v24 = vpop.f32.mrb[60].mxu0 }
 0x734   : > { %v18623_v59 = vpop.f32.mrb[61].mxu0  ;;  %v23507_v14 = vpop.eup %19601 }
 0x735   : > { %v10177_v58 = vpop.f32.mrb[62].mxu0  ;;  %v19604_v36 = vpop.eup %19603 }
 0x736   : > { %v18624_v47 = vpop.f32.mrb[63].mxu0  ;;  %v9166_v38 = vmul.f32 %v19604_v36, %v23168_v51 }
 0x737   : > { %v23498_v48 = vpop.xlane.xlu0 %8015  ;;  %v8737_v47 = vsel %vm7860_vm2, %v23507_v14, 0.0 }
 0x738   : > { %v9294_v42 = vpack.c.bf16 %v9166_v38, %v9166_v38  ;;  %v8284_v38 = vsub.f32 %v22936_v3, %v23125_v5 }
 0x739   : > { %v23513_v58 = vpop.eup %19605 }
 0x73a   : > { %v8740_v44 = vsel %vm7860_vm2, %v23513_v58, 0.0 }
 0x73b   : > { %v23501_v13 = vpop.xlane.xlu0 %8018 }
 0x73e   : > { %1697 = vrot.lane.b32.xlu0 %v23464_v43, %s20130_s19 }
 0x73f   : > { %v23505_v33 = vpop.xlane.xlu0 %8021 }
 0x743   : > { %v23509_v59 = vpop.xlane.xlu0 %8723 }
 0x745   : > { %8738 = vadd.xlane.f32.xlu1 %v8737_v47 }
 0x747   : > { %v1632_v9 = vpop.permute.xlu0 %1631 }
 0x748   : > { %v10552_v18 = vsel %vm9400_vm3, %v1632_v9, 0  ;;  %v8451_v9 = vmul.f32 1.442695, %v8284_v38  ;;  %v26895_v38 = vld [vmem:[#allocation100_spill] sm:$0xff] }
 0x749   : > { %18674 = vmatpush3.bf16.msra.mxu1 %v10552_v18  ;;  %8741 = vadd.xlane.f32.xlu1 %v8740_v44  ;;  %v26891_v18 = vld [vmem:[#allocation99_spill] sm:$0xff]  ;;  %v23549_v28 = vadd.f32 %v26770_v29, %v26895_v38  ;;  %v26898_v38 = vld [vmem:[#allocation88_spill] sm:$0xff] }
 0x74a   : > { %18685 = vmatprep.subr.bf16.mxu1 %v26609_v2  ;;  %v23532_v44 = vadd.f32 %v26759_v63, %v26891_v18  ;;  %19611 = vpow2.f32 %v8451_v9 }
 0x74b   : > { %26896 = vst [vmem:[#allocation78_spill] sm:$0xff] %v23549_v28 }
 0x74c   : > { %v23520_v57 = vpop.f32.mrb[96].mxu1  ;;  %18676 = vmatmul.mubr.msk.bf16.vlgmr.msra.gmra.mrb[116].mxu1 %vm7860_vm2, %v9294_v42  ;;  %26892 = vst [vmem:[#allocation21_spill] sm:$0xff] %v23532_v44  ;;  %v8038_v3 = vsel %vm7860_vm2, %v23532_v44, -inf }
 0x74d   : > { %26890 = vst [vmem:[#allocation84_spill] sm:$0xff] %v23520_v57  ;;  %v18617_v47 = vpop.f32.mrb[97].mxu1  ;;  %18687 = vmatprep.mubr.msk.bf16.mxu1 %vm20129_vm0, %v26609_v2  ;;  %v26899_v57 = vld [vmem:[#allocation14_spill] sm:$0xff] }
 0x74e   : > { %v10131_v51 = vpop.f32.mrb[98].mxu1  ;;  %v19608_v47 = vpop.eup %19607 }
 0x74f   : > { %v18618_v36 = vpop.f32.mrb[99].mxu1  ;;  %v26893_v51 = vld [vmem:[#allocation98_spill] sm:$0xff]  ;;  %v9167_v5 = vmul.f32 %v19608_v47, %v23200_v46  ;;  %v19610_v22 = vpop.eup %19609  ;;  %v10690_v47 = vsel %vm9400_vm3, %v23464_v43, 0 }
 0x750   : > { %v23540_v36 = vadd.f32 %v26767_v31, %v26893_v51 }
 0x751   : > { %v9295_v51 = vpack.c.bf16 %v9167_v5, %v9167_v5  ;;  %v26897_v5 = vld [vmem:[#allocation57_spill] sm:$0xff] }
 0x752   : > { %26894 = vst [vmem:[#allocation27_spill] sm:$0xff] %v23540_v36  ;;  %v8041_v9 = vsel %vm7860_vm2, %v23540_v36, -inf }
 0x754   : > { %v23557_v46 = vpop.eup %19611 }
 0x758   : > { %v23534_v42 = vpop.xlane.xlu1 %8720 }
 0x75a   : > { %1761 = vrot.lane.b32.xlu1 %v23464_v43, %s20132_s11  ;;  %v8285_v43 = vsub.f32 %v26899_v57, %v23187_v12 }
 0x75c   : > { %v23542_v19 = vpop.xlane.xlu1 %8726 }
 0x75d   : > { %8039 = vmax.xlane.f32.xlu0 %v8038_v3  ;;  %v8044_v3 = vsel %vm7860_vm2, %v23549_v28, -inf }
 0x760   : > { %v1696_v18 = vpop.permute.xlu1 %1695 }
 0x761   : > { %v10598_v56 = vsel %vm9400_vm3, %v1696_v18, 0  ;;  %8042 = vmax.xlane.f32.xlu0 %v8041_v9  ;;  %v8283_v18 = vsub.f32 %v26898_v38, %v26897_v5  ;;  %v8746_v9 = vsel %vm7860_vm2, %v23557_v46, 0.0  ;;  %v8453_v5 = vmul.f32 1.442695, %v8285_v43 }
 0x762   : > { %18680 = vmatpush3.bf16.msra.mxu0 %v10598_v56  ;;  %v9169_v56 = vmul.f32 %v19610_v22, %v23275_v8 }
 0x763   : > { %18691 = vmatprep.subr.bf16.mxu0 %v26609_v2 }
 0x765   : > { %18682 = vmatmul.mubr.msk.bf16.vlgmr.msra.gmra.mrb[80].mxu0 %vm7860_vm2, %v9295_v51  ;;  %8045 = vmax.xlane.f32.xlu0 %v8044_v3  ;;  %v9297_v51 = vpack.c.bf16 %v9169_v56, %v9169_v56  ;;  %v8449_v3 = vmul.f32 1.442695, %v8283_v18 }
 0x766   : > { %18692 = vmatpush3.bf16.msra.mxu0 %v10690_v47  ;;  %18693 = vmatprep.mubr.msk.bf16.mxu0 %vm20129_vm0, %v26609_v2 }
 0x767   : > { %18703 = vmatprep.subr.bf16.mxu0 %v26609_v2  ;;  %19613 = vpow2.f32 %v8449_v3 }
 0x768   : > { %19615 = vrcp.f32 %v23396_v1 }
 0x769   : > { %8747 = vadd.xlane.f32.xlu0 %v8746_v9  ;;  %19617 = vpow2.f32 %v8453_v5 }
 0x76a   : > { %19619 = vrcp.f32 %v23476_v20 }
 0x76c   : > { %v23572_v47 = vpop.f32.mrb[100].mxu1 }
 0x76d   : > { %26900 = vst [vmem:[#allocation73_spill] sm:$0xff] %v23572_v47  ;;  %v18629_v10 = vpop.f32.mrb[101].mxu1  ;;  %18694 = vmatmul.mubr.msk.bf16.vlgmr.msra.gmra.mrb[84].mxu0 %vm7860_vm2, %v9297_v51 }
 0x76e   : > { %v10223_v8 = vpop.f32.mrb[102].mxu1  ;;  %18705 = vmatprep.mubr.msk.bf16.mxu0 %vm20129_vm0, %v26609_v2  ;;  %v26901_v10 = vld [vmem:[#allocation32_spill] sm:$0xff] }
 0x76f   : > { %v18630_v22 = vpop.f32.mrb[103].mxu1  ;;  %v23586_v18 = vpack.c.bf16 %v26901_v10, %v26901_v10 }
 0x771   : > { %v23580_v38 = vpop.eup %19613 }
 0x772   : > { %v19616_v12 = vpop.eup %19615  ;;  %v8743_v9 = vsel %vm7860_vm2, %v23580_v38, 0.0 }
 0x773   : > { %v23590_v51 = vpop.eup %19617  ;;  %v9168_v1 = vmul.f32 %v19616_v12, %v23220_v21 }
 0x774   : > { %v8749_v8 = vsel %vm7860_vm2, %v23590_v51, 0.0 }
 0x775   : > { %v9296_v22 = vpack.c.bf16 %v9168_v1, %v9168_v1 }
 0x778   : > { %v23578_v56 = vpop.xlane.xlu0 %8024 }
 0x77c   : > { %v23582_v57 = vpop.xlane.xlu0 %8729 }
 0x77e   : > { %8744 = vadd.xlane.f32.xlu1 %v8743_v9  ;;  %v26903_v9 = vld [vmem:[#allocation23_spill] sm:$0xff] }
 0x77f   : > { %1635 = vrot.lane.b32.xlu0 %v23586_v18, %s20131_s10 }
 0x780   : > { %v1760_v3 = vpop.permute.xlu0 %1759 }
 0x781   : > { %v10644_v43 = vsel %vm9400_vm3, %v1760_v3, 0  ;;  %v26904_v3 = vld [vmem:[#allocation92_spill] sm:$0xff] }
 0x782   : > { %18686 = vmatpush3.bf16.msra.mxu1 %v10644_v43  ;;  %8750 = vadd.xlane.f32.xlu1 %v8749_v8  ;;  %v8286_v50 = vsub.f32 %v26904_v3, %v26903_v9 }
 0x783   : > { %18697 = vmatprep.subr.bf16.mxu1 %v26609_v2 }
 0x784   : > { %v8455_v36 = vmul.f32 1.442695, %v8286_v50  ;;  %v19620_v50 = vpop.eup %19619 }
 0x785   : > { %v23599_v5 = vpop.f32.mrb[64].mxu0  ;;  %18688 = vmatmul.mubr.msk.bf16.vlgmr.msra.gmra.mrb[120].mxu1 %vm7860_vm2, %v9296_v22  ;;  %v9170_v20 = vmul.f32 %v19620_v50, %v23283_v32 }
 0x786   : > { %26902 = vst [vmem:[#allocation79_spill] sm:$0xff] %v23599_v5  ;;  %v18635_v10 = vpop.f32.mrb[65].mxu0  ;;  %18699 = vmatprep.mubr.msk.bf16.mxu1 %vm20129_vm0, %v26609_v2  ;;  %19621 = vpow2.f32 %v8455_v36 }
 0x787   : > { %v10269_v21 = vpop.f32.mrb[66].mxu0  ;;  %v26905_v10 = vld [vmem:[#allocation18_spill] sm:$0xff]  ;;  %19623 = vrcp.f32 %v23534_v42 }
 0x788   : > { %v18636_v12 = vpop.f32.mrb[67].mxu0  ;;  %v26906_v21 = vld [vmem:[#allocation89_spill] sm:$0xff] }
 0x789   : > { %v23617_v12 = vadd.f32 %v26906_v21, %v26905_v10 }
 0x78b   : > { %26907 = vst [vmem:[#allocation93_spill] sm:$0xff] %v23617_v12 }
 0x78d   : > { %v10358_v28 = vpop.f32.mrb[68].mxu0 }
 0x78e   : > { %v16950_v43 = vpack.c.bf16 %v10358_v28, %v23496_v24  ;;  %v18647_v8 = vpop.f32.mrb[69].mxu0 }
 0x78f   : > { %v10361_v1 = vpop.f32.mrb[70].mxu0  ;;  %v9298_v8 = vpack.c.bf16 %v9170_v20, %v9170_v20  ;;  %v26910_v20 = vld [vmem:[#allocation12_spill] sm:$0xff] }
 0x790   : > { %15512 = vst.msk [vmem:[#allocation2 + $0x10] sm:$0xff] %vm1811_vm1, %v16950_v43  ;;  %v18648_v44 = vpop.f32.mrb[71].mxu0  ;;  %v23625_v9 = vpop.eup %19621  ;;  %v26908_v1 = vld [vmem:[#allocation64_spill] sm:$0xff] }
 0x791   : > { %v23608_v49 = vpop.xlane.xlu1 %8027  ;;  %v8047_v44 = vsel %vm7860_vm2, %v23617_v12, -inf  ;;  %v8752_v3 = vsel %vm7860_vm2, %v23625_v9, 0.0  ;;  %v8287_v10 = vsub.f32 %v26908_v1, %v23189_v35  ;;  %v26911_v35 = vld [vmem:[#allocation102_spill] sm:$0xff] }
 0x793   : > { %1699 = vrot.lane.b32.xlu1 %v23586_v18, %s20130_s19 }
 0x795   : > { %v23613_v22 = vpop.xlane.xlu1 %8732 }
 0x799   : > { %v23619_v24 = vpop.xlane.xlu1 %8033 }
 0x79d   : > { %v23621_v28 = vpop.xlane.xlu1 %8735 }
 0x79e   : > { %8048 = vmax.xlane.f32.xlu0 %v8047_v44  ;;  %v8457_v44 = vmul.f32 1.442695, %v8287_v10 }
 0x7a0   : > { %19625 = vpow2.f32 %v8457_v44 }
 0x7a1   : > { %v1634_v36 = vpop.permute.xlu1 %1633  ;;  %19627 = vrcp.f32 %v23542_v19 }
 0x7a2   : > { %v10736_v43 = vsel %vm9400_vm3, %v1634_v36, 0  ;;  %8753 = vadd.xlane.f32.xlu0 %v8752_v3  ;;  %v8288_v36 = vsub.f32 %v26910_v20, %v23246_v62 }
 0x7a3   : > { %18698 = vmatpush3.bf16.msra.mxu1 %v10736_v43 }
 0x7a4   : > { %18709 = vmatprep.subr.bf16.mxu1 %v26609_v2  ;;  %v8459_v3 = vmul.f32 1.442695, %v8288_v36 }
 0x7a5   : > { %v23634_v12 = vpop.f32.mrb[104].mxu1 }
 0x7a6   : > { %26909 = vst [vmem:[#allocation86_spill] sm:$0xff] %v23634_v12  ;;  %v18641_v21 = vpop.f32.mrb[105].mxu1  ;;  %18700 = vmatmul.mubr.msk.bf16.vlgmr.msra.gmra.mrb[124].mxu1 %vm7860_vm2, %v9298_v8  ;;  %v19624_v8 = vpop.eup %19623  ;;  %19629 = vpow2.f32 %v8459_v3 }
 0x7a7   : > { %v10315_v32 = vpop.f32.mrb[106].mxu1  ;;  %18711 = vmatprep.mubr.msk.bf16.mxu1 %vm20129_vm0, %v26609_v2  ;;  %v23646_v21 = vadd.f32 %v26842_v37, %v26911_v35  ;;  %v9171_v62 = vmul.f32 %v19624_v8, %v23353_v45  ;;  %v10874_v45 = vsel %vm9400_vm3, %v23586_v18, 0  ;;  %19631 = vrcp.f32 %v23509_v59 }
 0x7a8   : > { %v18642_v50 = vpop.f32.mrb[107].mxu1 }
 0x7a9   : > { %26912 = vst [vmem:[#allocation72_spill] sm:$0xff] %v23646_v21  ;;  %v8050_v42 = vsel %vm7860_vm2, %v23646_v21, -inf  ;;  %v26913_v50 = vld [vmem:[#allocation104_spill] sm:$0xff]  ;;  %v9299_v36 = vpack.c.bf16 %v9171_v62, %v9171_v62 }
 0x7aa   : > { %v23653_v10 = vpop.eup %19625  ;;  %v23660_v44 = vadd.f32 %v26845_v55, %v26913_v50 }
 0x7ab   : > { %v8755_v20 = vsel %vm7860_vm2, %v23653_v10, 0.0  ;;  %v19628_v3 = vpop.eup %19627 }
 0x7ac   : > { %26914 = vst [vmem:[#allocation97_spill] sm:$0xff] %v23660_v44  ;;  %v8056_v35 = vsel %vm7860_vm2, %v23660_v44, -inf }
 0x7b0   : > { %v23671_v8 = vpop.eup %19629 }
 0x7b1   : > { %v23642_v43 = vpop.xlane.xlu0 %8030  ;;  %v8758_v62 = vsel %vm7860_vm2, %v23671_v8, 0.0 }
 0x7b5   : > { %v23649_v1 = vpop.xlane.xlu0 %8036 }
 0x7b7   : > { %8051 = vmax.xlane.f32.xlu1 %v8050_v42  ;;  %v9173_v42 = vmul.f32 %v19628_v3, %v23363_v4 }
 0x7b8   : > { %1763 = vrot.lane.b32.xlu0 %v23586_v18, %s20132_s11 }
 0x7b9   : > { %v1698_v32 = vpop.permute.xlu0 %1697 }
 0x7ba   : > { %v10782_v19 = vsel %vm9400_vm3, %v1698_v32, 0  ;;  %v9301_v32 = vpack.c.bf16 %v9173_v42, %v9173_v42 }
 0x7bb   : > { %18704 = vmatpush3.bf16.msra.mxu0 %v10782_v19  ;;  %8756 = vadd.xlane.f32.xlu1 %v8755_v20 }
 0x7bc   : > { %18715 = vmatprep.subr.bf16.mxu0 %v26609_v2 }
 0x7be   : > { %18706 = vmatmul.mubr.msk.bf16.vlgmr.msra.gmra.mrb[88].mxu0 %vm7860_vm2, %v9299_v36  ;;  %v26916_v36 = vld [vmem:[#allocation34_spill] sm:$0xff] }
 0x7bf   : > { %18716 = vmatpush3.bf16.msra.mxu0 %v10874_v45  ;;  %8057 = vmax.xlane.f32.xlu1 %v8056_v35  ;;  %v23689_v3 = vpack.c.bf16 %v26916_v36, %v26916_v36  ;;  %v26917_v45 = vld [vmem:[#allocation101_spill] sm:$0xff] }
 0x7c0   : > { %18717 = vmatprep.mubr.msk.bf16.mxu0 %vm20129_vm0, %v26609_v2  ;;  %18727 = vmatprep.subr.bf16.mxu0 %v26609_v2  ;;  %v23693_v35 = vadd.f32 %v26850_v17, %v26917_v45 }
 0x7c2   : > { %26918 = vst [vmem:[#allocation67_spill] sm:$0xff] %v23693_v35  ;;  %v8053_v59 = vsel %vm7860_vm2, %v23693_v35, -inf }
 0x7c3   : > { %8759 = vadd.xlane.f32.xlu1 %v8758_v62  ;;  %v19632_v62 = vpop.eup %19631 }
 0x7c6   : > { %v23679_v18 = vpop.f32.mrb[108].mxu1  ;;  %18718 = vmatmul.mubr.msk.bf16.vlgmr.msra.gmra.mrb[92].mxu0 %vm7860_vm2, %v9301_v32  ;;  %v26919_v32 = vld [vmem:[#allocation103_spill] sm:$0xff] }
 0x7c7   : > { %26915 = vst [vmem:[#allocation29_spill] sm:$0xff] %v23679_v18  ;;  %v18653_v19 = vpop.f32.mrb[109].mxu1  ;;  %18729 = vmatprep.mubr.msk.bf16.mxu0 %vm20129_vm0, %v26609_v2 }
 0x7c8   : > { %v10407_v4 = vpop.f32.mrb[110].mxu1  ;;  %v23699_v19 = vadd.f32 %v21601_v60, %v26919_v32 }
 0x7c9   : > { %v18654_v20 = vpop.f32.mrb[111].mxu1 }
 0x7ca   : > { %26920 = vst [vmem:[#allocation70_spill] sm:$0xff] %v23699_v19  ;;  %v9172_v20 = vmul.f32 %v19632_v62, %v23332_v52  ;;  %v8059_v45 = vsel %vm7860_vm2, %v23699_v19, -inf }
 0x7cc   : > { %v9300_v47 = vpack.c.bf16 %v9172_v20, %v9172_v20  ;;  %v26923_v20 = vld [vmem:[#allocation83_spill] sm:$0xff] }
 0x7d2   : > { %v8739_v42 = vpop.xlane.xlu1 %8738 }
 0x7d4   : > { %1637 = vrot.lane.b32.xlu1 %v23689_v3, %s20131_s10 }
 0x7d6   : > { %v23701_v4 = vpop.xlane.xlu1 %8741 }
 0x7d7   : > { %8054 = vmax.xlane.f32.xlu0 %v8053_v59  ;;  %v26922_v59 = vld [vmem:[#allocation56_spill] sm:$0xff] }
 0x7da   : > { %v1762_v36 = vpop.permute.xlu1 %1761 }
 0x7db   : > { %v10828_v50 = vsel %vm9400_vm3, %v1762_v36, 0  ;;  %8060 = vmax.xlane.f32.xlu0 %v8059_v45  ;;  %v8289_v36 = vsub.f32 %v26922_v59, %v23269_v16  ;;  %v26924_v45 = vld [vmem:[#allocation66_spill] sm:$0xff] }
 0x7dc   : > { %18710 = vmatpush3.bf16.msra.mxu1 %v10828_v50  ;;  %v8290_v19 = vsub.f32 %v26924_v45, %v26923_v20 }
 0x7dd   : > { %18721 = vmatprep.subr.bf16.mxu1 %v26609_v2  ;;  %v8461_v50 = vmul.f32 1.442695, %v8289_v36 }
 0x7de   : > { %v23710_v32 = vpop.f32.mrb[72].mxu0 }
 0x7df   : > { %26921 = vst [vmem:[#allocation26_spill] sm:$0xff] %v23710_v32  ;;  %v18659_v44 = vpop.f32.mrb[73].mxu0  ;;  %18712 = vmatmul.mubr.msk.bf16.vlgmr.msra.gmra.mrb[128].mxu1 %vm7860_vm2, %v9300_v47  ;;  %19633 = vpow2.f32 %v8461_v50 }
 0x7e0   : > { %v10453_v52 = vpop.f32.mrb[74].mxu0  ;;  %18723 = vmatprep.mubr.msk.bf16.mxu1 %vm20129_vm0, %v26609_v2  ;;  %v8463_v44 = vmul.f32 1.442695, %v8290_v19  ;;  %19635 = vrcp.f32 %v23582_v57 }
 0x7e1   : > { %v18660_v62 = vpop.f32.mrb[75].mxu0 }
 0x7e2   : > { %19637 = vpow2.f32 %v8463_v44 }
 0x7e3   : > { %19639 = vrcp.f32 %v23613_v22 }
 0x7e4   : > { %19641 = vrcp.f32 %v8739_v42 }
 0x7e6   : > { %v23721_v35 = vpop.f32.mrb[76].mxu0 }
 0x7e7   : > { %v18671_v21 = vpop.f32.mrb[77].mxu0 }
 0x7e8   : > { %v10545_v60 = vpop.f32.mrb[78].mxu0 }
 0x7e9   : > { %v18672_v18 = vpop.f32.mrb[79].mxu0  ;;  %v23732_v62 = vpop.eup %19633 }
 0x7ea   : > { %v23723_v47 = vpop.xlane.xlu0 %8039  ;;  %v19636_v59 = vpop.eup %19635  ;;  %v8761_v60 = vsel %vm7860_vm2, %v23732_v62, 0.0 }
 0x7eb   : > { %v9174_v57 = vmul.f32 %v19636_v59, %v23400_v54 }
 0x7ec   : > { %v23738_v18 = vpop.eup %19637 }
 0x7ed   : > { %v8764_v50 = vsel %vm7860_vm2, %v23738_v18, 0.0  ;;  %v9302_v20 = vpack.c.bf16 %v9174_v57, %v9174_v57 }
 0x7ee   : > { %v23726_v52 = vpop.xlane.xlu0 %8042 }
 0x7f1   : > { %1701 = vrot.lane.b32.xlu0 %v23689_v3, %s20130_s19 }
 0x7f2   : > { %v23730_v16 = vpop.xlane.xlu0 %8045 }
 0x7f6   : > { %v23734_v21 = vpop.xlane.xlu0 %8747 }
 0x7f8   : > { %8762 = vadd.xlane.f32.xlu1 %v8761_v60 }
 0x7fa   : > { %v1636_v19 = vpop.permute.xlu0 %1635 }
 0x7fb   : > { %v10920_v36 = vsel %vm9400_vm3, %v1636_v19, 0  ;;  %v26926_v19 = vld [vmem:[#allocation62_spill] sm:$0xff] }
 0x7fc   : > { %18722 = vmatpush3.bf16.msra.mxu1 %v10920_v36  ;;  %8765 = vadd.xlane.f32.xlu1 %v8764_v50  ;;  %v8292_v57 = vsub.f32 %v26926_v19, %v23381_v27  ;;  %v26927_v50 = vld [vmem:[#allocation106_spill] sm:$0xff] }
 0x7fd   : > { %18733 = vmatprep.subr.bf16.mxu1 %v26609_v2  ;;  %v23757_v5 = vadd.f32 %v21629_v23, %v26927_v50 }
 0x7fe   : > { %v8467_v36 = vmul.f32 1.442695, %v8292_v57  ;;  %v26931_v57 = vld [vmem:[#allocation108_spill] sm:$0xff] }
 0x7ff   : > { %v23745_v45 = vpop.f32.mrb[112].mxu1  ;;  %18724 = vmatmul.mubr.msk.bf16.vlgmr.msra.gmra.mrb[132].mxu1 %vm7860_vm2, %v9302_v20  ;;  %26928 = vst [vmem:[#allocation98_spill] sm:$0xff] %v23757_v5  ;;  %v8062_v27 = vsel %vm7860_vm2, %v23757_v5, -inf  ;;  %v23774_v42 = vadd.f32 %v21705_v40, %v26931_v57 }
 0x800   : > { %26925 = vst [vmem:[#allocation99_spill] sm:$0xff] %v23745_v45  ;;  %v18665_v60 = vpop.f32.mrb[113].mxu1  ;;  %18735 = vmatprep.mubr.msk.bf16.mxu1 %vm20129_vm0, %v26609_v2  ;;  %19643 = vpow2.f32 %v8467_v36 }
 0x801   : > { %v10499_v54 = vpop.f32.mrb[114].mxu1  ;;  %v19640_v60 = vpop.eup %19639  ;;  %26932 = vst [vmem:[#allocation57_spill] sm:$0xff] %v23774_v42 }
 0x802   : > { %v18666_v59 = vpop.f32.mrb[115].mxu1  ;;  %v26929_v54 = vld [vmem:[#allocation105_spill] sm:$0xff]  ;;  %v9175_v19 = vmul.f32 %v19640_v60, %v23428_v53  ;;  %v19642_v12 = vpop.eup %19641  ;;  %v11058_v60 = vsel %vm9400_vm3, %v23689_v3, 0 }
 0x803   : > { %v23765_v59 = vadd.f32 %v21649_v11, %v26929_v54 }
 0x804   : > { %v9303_v54 = vpack.c.bf16 %v9175_v19, %v9175_v19  ;;  %v26933_v19 = vld [vmem:[#allocation13_spill] sm:$0xff] }
 0x805   : > { %26930 = vst [vmem:[#allocation100_spill] sm:$0xff] %v23765_v59  ;;  %v8065_v36 = vsel %vm7860_vm2, %v23765_v59, -inf  ;;  %v8291_v57 = vsub.f32 %v26933_v19, %v23351_v7 }
 0x80a   : > { %v23782_v53 = vpop.eup %19643 }
 0x80b   : > { %v23759_v20 = vpop.xlane.xlu1 %8744 }
 0x80d   : > { %1765 = vrot.lane.b32.xlu1 %v23689_v3, %s20132_s11 }
 0x80f   : > { %v23767_v22 = vpop.xlane.xlu1 %8750 }
 0x810   : > { %8063 = vmax.xlane.f32.xlu0 %v8062_v27  ;;  %v8068_v27 = vsel %vm7860_vm2, %v23774_v42, -inf }
 0x813   : > { %v1700_v50 = vpop.permute.xlu1 %1699 }
 0x814   : > { %v10966_v44 = vsel %vm9400_vm3, %v1700_v50, 0  ;;  %8066 = vmax.xlane.f32.xlu0 %v8065_v36  ;;  %v8770_v50 = vsel %vm7860_vm2, %v23782_v53, 0.0 }
 0x815   : > { %18728 = vmatpush3.bf16.msra.mxu0 %v10966_v44  ;;  %v9177_v44 = vmul.f32 %v19642_v12, %v23507_v14 }
 0x816   : > { %18739 = vmatprep.subr.bf16.mxu0 %v26609_v2 }
 0x817   : > { %v9305_v36 = vpack.c.bf16 %v9177_v44, %v9177_v44 }
 0x818   : > { %18730 = vmatmul.mubr.msk.bf16.vlgmr.msra.gmra.mrb[96].mxu0 %vm7860_vm2, %v9303_v54  ;;  %8069 = vmax.xlane.f32.xlu0 %v8068_v27  ;;  %v8465_v54 = vmul.f32 1.442695, %v8291_v57  ;;  %v26934_v27 = vld [vmem:[#allocation135_spill] sm:$0xff] }
 0x819   : > { %18740 = vmatpush3.bf16.msra.mxu0 %v11058_v60  ;;  %18741 = vmatprep.mubr.msk.bf16.mxu0 %vm20129_vm0, %v26609_v2  ;;  %v8293_v3 = vsub.f32 %v26934_v27, %v23417_v41 }
 0x81a   : > { %18751 = vmatprep.subr.bf16.mxu0 %v26609_v2  ;;  %19645 = vpow2.f32 %v8465_v54 }
 0x81b   : > { %v8469_v7 = vmul.f32 1.442695, %v8293_v3  ;;  %19647 = vrcp.f32 %v23621_v28 }
 0x81c   : > { %8771 = vadd.xlane.f32.xlu0 %v8770_v50 }
 0x81d   : > { %19649 = vpow2.f32 %v8469_v7 }
 0x81e   : > { %19651 = vrcp.f32 %v23701_v4 }
 0x81f   : > { %v23797_v60 = vpop.f32.mrb[116].mxu1 }
 0x820   : > { %26935 = vst [vmem:[#allocation88_spill] sm:$0xff] %v23797_v60  ;;  %v18677_v45 = vpop.f32.mrb[117].mxu1  ;;  %18742 = vmatmul.mubr.msk.bf16.vlgmr.msra.gmra.mrb[100].mxu0 %vm7860_vm2, %v9305_v36 }
 0x821   : > { %v10591_v14 = vpop.f32.mrb[118].mxu1  ;;  %18753 = vmatprep.mubr.msk.bf16.mxu0 %vm20129_vm0, %v26609_v2  ;;  %v26936_v45 = vld [vmem:[#allocation31_spill] sm:$0xff] }
 0x822   : > { %v18678_v12 = vpop.f32.mrb[119].mxu1  ;;  %v23811_v50 = vpack.c.bf16 %v26936_v45, %v26936_v45 }
 0x824   : > { %v23805_v19 = vpop.eup %19645 }
 0x825   : > { %v19648_v41 = vpop.eup %19647  ;;  %v8767_v36 = vsel %vm7860_vm2, %v23805_v19, 0.0 }
 0x826   : > { %v9176_v28 = vmul.f32 %v19648_v41, %v23446_v34 }
 0x827   : > { %v23815_v27 = vpop.eup %19649 }
 0x828   : > { %v8773_v14 = vsel %vm7860_vm2, %v23815_v27, 0.0  ;;  %v9304_v12 = vpack.c.bf16 %v9176_v28, %v9176_v28 }
 0x82b   : > { %v23803_v44 = vpop.xlane.xlu0 %8048 }
 0x82f   : > { %v23807_v57 = vpop.xlane.xlu0 %8753 }
 0x831   : > { %8768 = vadd.xlane.f32.xlu1 %v8767_v36  ;;  %v26938_v36 = vld [vmem:[#allocation61_spill] sm:$0xff] }
 0x832   : > { %1639 = vrot.lane.b32.xlu0 %v23811_v50, %s20131_s10 }
 0x833   : > { %v1764_v54 = vpop.permute.xlu0 %1763 }
 0x834   : > { %v11012_v3 = vsel %vm9400_vm3, %v1764_v54, 0  ;;  %v8294_v54 = vsub.f32 %v26938_v36, %v23394_v6  ;;  %v26939_v6 = vld [vmem:[#allocation107_spill] sm:$0xff] }
 0x835   : > { %18734 = vmatpush3.bf16.msra.mxu1 %v11012_v3  ;;  %8774 = vadd.xlane.f32.xlu1 %v8773_v14 }
 0x836   : > { %18745 = vmatprep.subr.bf16.mxu1 %v26609_v2  ;;  %v8471_v42 = vmul.f32 1.442695, %v8294_v54 }
 0x838   : > { %v23824_v7 = vpop.f32.mrb[80].mxu0  ;;  %18736 = vmatmul.mubr.msk.bf16.vlgmr.msra.gmra.mrb[136].mxu1 %vm7860_vm2, %v9304_v12  ;;  %19653 = vpow2.f32 %v8471_v42 }
 0x839   : > { %26937 = vst [vmem:[#allocation14_spill] sm:$0xff] %v23824_v7  ;;  %v18683_v45 = vpop.f32.mrb[81].mxu0  ;;  %18747 = vmatprep.mubr.msk.bf16.mxu1 %vm20129_vm0, %v26609_v2  ;;  %19655 = vrcp.f32 %v23759_v20 }
 0x83a   : > { %v10637_v34 = vpop.f32.mrb[82].mxu0  ;;  %v23842_v45 = vadd.f32 %v26874_v25, %v26939_v6 }
 0x83b   : > { %v18684_v41 = vpop.f32.mrb[83].mxu0 }
 0x83c   : > { %26940 = vst [vmem:[#allocation32_spill] sm:$0xff] %v23842_v45 }
 0x840   : > { %v10726_v32 = vpop.f32.mrb[84].mxu0 }
 0x841   : > { %v16951_v3 = vpack.c.bf16 %v10726_v32, %v23721_v35  ;;  %v18695_v14 = vpop.f32.mrb[85].mxu0  ;;  %v19652_v32 = vpop.eup %19651 }
 0x842   : > { %v10729_v28 = vpop.f32.mrb[86].mxu0  ;;  %v23850_v41 = vpop.eup %19653  ;;  %v9178_v4 = vmul.f32 %v19652_v32, %v23513_v58  ;;  %v26941_v14 = vld [vmem:[#allocation65_spill] sm:$0xff] }
 0x843   : > { %15513 = vst.msk [vmem:[#allocation2 + $0x18] sm:$0xff] %vm1811_vm1, %v16951_v3  ;;  %v18696_v59 = vpop.f32.mrb[87].mxu0  ;;  %v8776_v36 = vsel %vm7860_vm2, %v23850_v41, 0.0  ;;  %v8295_v28 = vsub.f32 %v26941_v14, %v23424_v39  ;;  %v26944_v39 = vld [vmem:[#allocation17_spill] sm:$0xff] }
 0x844   : > { %v23833_v5 = vpop.xlane.xlu1 %8051  ;;  %v8071_v59 = vsel %vm7860_vm2, %v23842_v45, -inf  ;;  %v9306_v3 = vpack.c.bf16 %v9178_v4, %v9178_v4  ;;  %v26943_v4 = vld [vmem:[#allocation90_spill] sm:$0xff] }
 0x846   : > { %1703 = vrot.lane.b32.xlu1 %v23811_v50, %s20130_s19 }
 0x848   : > { %v23838_v12 = vpop.xlane.xlu1 %8756 }
 0x84c   : > { %v23844_v35 = vpop.xlane.xlu1 %8057 }
 0x850   : > { %v23846_v34 = vpop.xlane.xlu1 %8759 }
 0x851   : > { %8072 = vmax.xlane.f32.xlu0 %v8071_v59  ;;  %v8473_v59 = vmul.f32 1.442695, %v8295_v28 }
 0x853   : > { %19657 = vpow2.f32 %v8473_v59 }
 0x854   : > { %v1638_v42 = vpop.permute.xlu1 %1637  ;;  %19659 = vrcp.f32 %v23767_v22 }
 0x855   : > { %v11104_v54 = vsel %vm9400_vm3, %v1638_v42, 0  ;;  %8777 = vadd.xlane.f32.xlu0 %v8776_v36  ;;  %v8296_v42 = vsub.f32 %v26943_v4, %v23498_v48 }
 0x856   : > { %18746 = vmatpush3.bf16.msra.mxu1 %v11104_v54 }
 0x857   : > { %18757 = vmatprep.subr.bf16.mxu1 %v26609_v2  ;;  %v8475_v36 = vmul.f32 1.442695, %v8296_v42 }
 0x858   : > { %v23859_v6 = vpop.f32.mrb[120].mxu1 }
 0x859   : > { %26942 = vst [vmem:[#allocation23_spill] sm:$0xff] %v23859_v6  ;;  %v18689_v45 = vpop.f32.mrb[121].mxu1  ;;  %18748 = vmatmul.mubr.msk.bf16.vlgmr.msra.gmra.mrb[140].mxu1 %vm7860_vm2, %v9306_v3  ;;  %v19656_v3 = vpop.eup %19655  ;;  %19661 = vpow2.f32 %v8475_v36 }
 0x85a   : > { %v10683_v58 = vpop.f32.mrb[122].mxu1  ;;  %18759 = vmatprep.mubr.msk.bf16.mxu1 %vm20129_vm0, %v26609_v2  ;;  %v23871_v45 = vadd.f32 %v21718_v30, %v26944_v39  ;;  %v9179_v48 = vmul.f32 %v19656_v3, %v23580_v38  ;;  %v11242_v38 = vsel %vm9400_vm3, %v23811_v50, 0  ;;  %19663 = vrcp.f32 %v23734_v21 }
 0x85b   : > { %v18690_v32 = vpop.f32.mrb[123].mxu1 }
 0x85c   : > { %26945 = vst [vmem:[#allocation92_spill] sm:$0xff] %v23871_v45  ;;  %v8074_v20 = vsel %vm7860_vm2, %v23871_v45, -inf  ;;  %v26946_v32 = vld [vmem:[#allocation111_spill] sm:$0xff]  ;;  %v9307_v42 = vpack.c.bf16 %v9179_v48, %v9179_v48 }
 0x85d   : > { %v23878_v28 = vpop.eup %19657  ;;  %v23885_v59 = vadd.f32 %v21756_v0, %v26946_v32 }
 0x85e   : > { %v8779_v4 = vsel %vm7860_vm2, %v23878_v28, 0.0  ;;  %v19660_v36 = vpop.eup %19659 }
 0x85f   : > { %26947 = vst [vmem:[#allocation18_spill] sm:$0xff] %v23885_v59  ;;  %v8080_v39 = vsel %vm7860_vm2, %v23885_v59, -inf }
 0x863   : > { %v23896_v3 = vpop.eup %19661 }
 0x864   : > { %v23867_v54 = vpop.xlane.xlu0 %8054  ;;  %v8782_v48 = vsel %vm7860_vm2, %v23896_v3, 0.0 }
 0x868   : > { %v23874_v14 = vpop.xlane.xlu0 %8060 }
 0x86a   : > { %8075 = vmax.xlane.f32.xlu1 %v8074_v20  ;;  %v9181_v20 = vmul.f32 %v19660_v36, %v23590_v51 }
 0x86b   : > { %1767 = vrot.lane.b32.xlu0 %v23811_v50, %s20132_s11 }
 0x86c   : > { %v1702_v58 = vpop.permute.xlu0 %1701 }
 0x86d   : > { %v11150_v22 = vsel %vm9400_vm3, %v1702_v58, 0  ;;  %v9309_v58 = vpack.c.bf16 %v9181_v20, %v9181_v20 }
 0x86e   : > { %18752 = vmatpush3.bf16.msra.mxu0 %v11150_v22  ;;  %8780 = vadd.xlane.f32.xlu1 %v8779_v4 }
 0x86f   : > { %18763 = vmatprep.subr.bf16.mxu0 %v26609_v2 }
 0x871   : > { %18754 = vmatmul.mubr.msk.bf16.vlgmr.msra.gmra.mrb[104].mxu0 %vm7860_vm2, %v9307_v42  ;;  %v26949_v42 = vld [vmem:[#allocation33_spill] sm:$0xff] }
 0x872   : > { %18764 = vmatpush3.bf16.msra.mxu0 %v11242_v38  ;;  %8081 = vmax.xlane.f32.xlu1 %v8080_v39  ;;  %v23914_v36 = vpack.c.bf16 %v26949_v42, %v26949_v42  ;;  %v26950_v38 = vld [vmem:[#allocation109_spill] sm:$0xff] }
 0x873   : > { %18765 = vmatprep.mubr.msk.bf16.mxu0 %vm20129_vm0, %v26609_v2  ;;  %18775 = vmatprep.subr.bf16.mxu0 %v26609_v2  ;;  %v23918_v39 = vadd.f32 %v21611_v61, %v26950_v38 }
 0x875   : > { %26951 = vst [vmem:[#allocation12_spill] sm:$0xff] %v23918_v39  ;;  %v8077_v21 = vsel %vm7860_vm2, %v23918_v39, -inf }
 0x876   : > { %8783 = vadd.xlane.f32.xlu1 %v8782_v48  ;;  %v19664_v48 = vpop.eup %19663 }
 0x879   : > { %v23904_v50 = vpop.f32.mrb[124].mxu1  ;;  %18766 = vmatmul.mubr.msk.bf16.vlgmr.msra.gmra.mrb[108].mxu0 %vm7860_vm2, %v9309_v58  ;;  %v26952_v58 = vld [vmem:[#allocation110_spill] sm:$0xff] }
 0x87a   : > { %26948 = vst [vmem:[#allocation64_spill] sm:$0xff] %v23904_v50  ;;  %v18701_v22 = vpop.f32.mrb[125].mxu1  ;;  %18777 = vmatprep.mubr.msk.bf16.mxu0 %vm20129_vm0, %v26609_v2 }
 0x87b   : > { %v10775_v51 = vpop.f32.mrb[126].mxu1  ;;  %v23924_v22 = vadd.f32 %v21700_v26, %v26952_v58 }
 0x87c   : > { %v18702_v4 = vpop.f32.mrb[127].mxu1 }
 0x87d   : > { %26953 = vst [vmem:[#allocation102_spill] sm:$0xff] %v23924_v22  ;;  %v9180_v4 = vmul.f32 %v19664_v48, %v23557_v46  ;;  %v8083_v38 = vsel %vm7860_vm2, %v23924_v22, -inf }
 0x87f   : > { %v9308_v60 = vpack.c.bf16 %v9180_v4, %v9180_v4  ;;  %v26956_v4 = vld [vmem:[#allocation74_spill] sm:$0xff] }
 0x885   : > { %v8763_v20 = vpop.xlane.xlu1 %8762 }
 0x887   : > { %1641 = vrot.lane.b32.xlu1 %v23914_v36, %s20131_s10 }
 0x889   : > { %v23926_v51 = vpop.xlane.xlu1 %8765 }
 0x88a   : > { %8078 = vmax.xlane.f32.xlu0 %v8077_v21  ;;  %v26955_v21 = vld [vmem:[#allocation44_spill] sm:$0xff] }
 0x88d   : > { %v1766_v42 = vpop.permute.xlu1 %1765 }
 0x88e   : > { %v11196_v32 = vsel %vm9400_vm3, %v1766_v42, 0  ;;  %8084 = vmax.xlane.f32.xlu0 %v8083_v38  ;;  %v8297_v42 = vsub.f32 %v26955_v21, %v23501_v13  ;;  %v8298_v38 = vsub.f32 %v26956_v4, %v23505_v33 }
 0x88f   : > { %18758 = vmatpush3.bf16.msra.mxu1 %v11196_v32 }
 0x890   : > { %18769 = vmatprep.subr.bf16.mxu1 %v26609_v2  ;;  %v8477_v32 = vmul.f32 1.442695, %v8297_v42 }
 0x891   : > { %v23935_v58 = vpop.f32.mrb[88].mxu0 }
 0x892   : > { %26954 = vst [vmem:[#allocation104_spill] sm:$0xff] %v23935_v58  ;;  %v18707_v59 = vpop.f32.mrb[89].mxu0  ;;  %18760 = vmatmul.mubr.msk.bf16.vlgmr.msra.gmra.mrb[144].mxu1 %vm7860_vm2, %v9308_v60  ;;  %19665 = vpow2.f32 %v8477_v32 }
 0x893   : > { %v10821_v46 = vpop.f32.mrb[90].mxu0  ;;  %18771 = vmatprep.mubr.msk.bf16.mxu1 %vm20129_vm0, %v26609_v2  ;;  %v8479_v59 = vmul.f32 1.442695, %v8298_v38  ;;  %19667 = vrcp.f32 %v23807_v57 }
 0x894   : > { %v18708_v48 = vpop.f32.mrb[91].mxu0 }
 0x895   : > { %19669 = vpow2.f32 %v8479_v59 }
 0x896   : > { %19671 = vrcp.f32 %v23838_v12 }
 0x897   : > { %19673 = vrcp.f32 %v8763_v20 }
 0x899   : > { %v23946_v22 = vpop.f32.mrb[92].mxu0 }
 0x89a   : > { %v18719_v39 = vpop.f32.mrb[93].mxu0 }
 0x89b   : > { %v10913_v45 = vpop.f32.mrb[94].mxu0 }
 0x89c   : > { %v18720_v50 = vpop.f32.mrb[95].mxu0  ;;  %v23957_v33 = vpop.eup %19665 }
 0x89d   : > { %v23948_v60 = vpop.xlane.xlu0 %8063  ;;  %v19668_v48 = vpop.eup %19667  ;;  %v8785_v45 = vsel %vm7860_vm2, %v23957_v33, 0.0 }
 0x89e   : > { %v9182_v57 = vmul.f32 %v19668_v48, %v23625_v9 }
 0x89f   : > { %v23963_v50 = vpop.eup %19669 }
 0x8a0   : > { %v8788_v32 = vsel %vm7860_vm2, %v23963_v50, 0.0  ;;  %v9310_v4 = vpack.c.bf16 %v9182_v57, %v9182_v57  ;;  %v8300_v57 = vsub.f32 %v23421_v15, %v23608_v49 }
 0x8a1   : > { %v23951_v46 = vpop.xlane.xlu0 %8066 }
 0x8a4   : > { %1705 = vrot.lane.b32.xlu0 %v23914_v36, %s20130_s19 }
 0x8a5   : > { %v23955_v13 = vpop.xlane.xlu0 %8069 }
 0x8a9   : > { %v23959_v39 = vpop.xlane.xlu0 %8771 }
 0x8ab   : > { %8786 = vadd.xlane.f32.xlu1 %v8785_v45 }
 0x8ad   : > { %v1640_v21 = vpop.permute.xlu0 %1639 }
 0x8ae   : > { %v11288_v42 = vsel %vm9400_vm3, %v1640_v21, 0  ;;  %v8483_v21 = vmul.f32 1.442695, %v8300_v57  ;;  %v26962_v57 = vld [vmem:[#allocation115_spill] sm:$0xff] }
 0x8af   : > { %18770 = vmatpush3.bf16.msra.mxu1 %v11288_v42  ;;  %8789 = vadd.xlane.f32.xlu1 %v8788_v32  ;;  %v26958_v42 = vld [vmem:[#allocation113_spill] sm:$0xff]  ;;  %v23999_v20 = vadd.f32 %v26770_v29, %v26962_v57 }
 0x8b0   : > { %18781 = vmatprep.subr.bf16.mxu1 %v26609_v2  ;;  %v23982_v32 = vadd.f32 %v26759_v63, %v26958_v42  ;;  %19675 = vpow2.f32 %v8483_v21 }
 0x8b1   : > { %26963 = vst [vmem:[#allocation56_spill] sm:$0xff] %v23999_v20 }
 0x8b2   : > { %v23970_v38 = vpop.f32.mrb[128].mxu1  ;;  %18772 = vmatmul.mubr.msk.bf16.vlgmr.msra.gmra.mrb[148].mxu1 %vm7860_vm2, %v9310_v4  ;;  %26959 = vst [vmem:[#allocation101_spill] sm:$0xff] %v23982_v32  ;;  %v8086_v15 = vsel %vm7860_vm2, %v23982_v32, -inf }
 0x8b3   : > { %26957 = vst [vmem:[#allocation34_spill] sm:$0xff] %v23970_v38  ;;  %v18713_v45 = vpop.f32.mrb[129].mxu1  ;;  %18783 = vmatprep.mubr.msk.bf16.mxu1 %vm20129_vm0, %v26609_v2 }
 0x8b4   : > { %v10867_v9 = vpop.f32.mrb[130].mxu1  ;;  %v19672_v45 = vpop.eup %19671 }
 0x8b5   : > { %v18714_v48 = vpop.f32.mrb[131].mxu1  ;;  %v26960_v9 = vld [vmem:[#allocation112_spill] sm:$0xff]  ;;  %v9183_v49 = vmul.f32 %v19672_v45, %v23653_v10  ;;  %v19674_v6 = vpop.eup %19673  ;;  %v11426_v45 = vsel %vm9400_vm3, %v23914_v36, 0 }
 0x8b6   : > { %v23990_v48 = vadd.f32 %v26767_v31, %v26960_v9 }
 0x8b7   : > { %v9311_v9 = vpack.c.bf16 %v9183_v49, %v9183_v49  ;;  %v26964_v49 = vld [vmem:[#allocation16_spill] sm:$0xff] }
 0x8b8   : > { %26961 = vst [vmem:[#allocation103_spill] sm:$0xff] %v23990_v48  ;;  %v8089_v21 = vsel %vm7860_vm2, %v23990_v48, -inf  ;;  %v8299_v57 = vsub.f32 %v26964_v49, %v23578_v56 }
 0x8ba   : > { %v24007_v10 = vpop.eup %19675 }
 0x8be   : > { %v23984_v4 = vpop.xlane.xlu1 %8768 }
 0x8c0   : > { %1769 = vrot.lane.b32.xlu1 %v23914_v36, %s20132_s11 }
 0x8c2   : > { %v23992_v12 = vpop.xlane.xlu1 %8774 }
 0x8c3   : > { %8087 = vmax.xlane.f32.xlu0 %v8086_v15  ;;  %v8092_v15 = vsel %vm7860_vm2, %v23999_v20, -inf }
 0x8c6   : > { %v1704_v42 = vpop.permute.xlu1 %1703 }
 0x8c7   : > { %v11334_v59 = vsel %vm9400_vm3, %v1704_v42, 0  ;;  %8090 = vmax.xlane.f32.xlu0 %v8089_v21  ;;  %v8794_v42 = vsel %vm7860_vm2, %v24007_v10, 0.0 }
 0x8c8   : > { %18776 = vmatpush3.bf16.msra.mxu0 %v11334_v59  ;;  %v9185_v59 = vmul.f32 %v19674_v6, %v23732_v62 }
 0x8c9   : > { %18787 = vmatprep.subr.bf16.mxu0 %v26609_v2 }
 0x8ca   : > { %v9313_v21 = vpack.c.bf16 %v9185_v59, %v9185_v59 }
 0x8cb   : > { %18778 = vmatmul.mubr.msk.bf16.vlgmr.msra.gmra.mrb[112].mxu0 %vm7860_vm2, %v9311_v9  ;;  %8093 = vmax.xlane.f32.xlu0 %v8092_v15  ;;  %v8481_v9 = vmul.f32 1.442695, %v8299_v57  ;;  %v26965_v15 = vld [vmem:[#allocation68_spill] sm:$0xff] }
 0x8cc   : > { %18788 = vmatpush3.bf16.msra.mxu0 %v11426_v45  ;;  %18789 = vmatprep.mubr.msk.bf16.mxu0 %vm20129_vm0, %v26609_v2  ;;  %v8301_v36 = vsub.f32 %v26965_v15, %v23642_v43 }
 0x8cd   : > { %18799 = vmatprep.subr.bf16.mxu0 %v26609_v2  ;;  %19677 = vpow2.f32 %v8481_v9 }
 0x8ce   : > { %v8485_v56 = vmul.f32 1.442695, %v8301_v36  ;;  %19679 = vrcp.f32 %v23846_v34 }
 0x8cf   : > { %8795 = vadd.xlane.f32.xlu0 %v8794_v42 }
 0x8d0   : > { %19681 = vpow2.f32 %v8485_v56 }
 0x8d1   : > { %19683 = vrcp.f32 %v23926_v51 }
 0x8d2   : > { %v24022_v45 = vpop.f32.mrb[132].mxu1 }
 0x8d3   : > { %26966 = vst [vmem:[#allocation83_spill] sm:$0xff] %v24022_v45  ;;  %v18725_v38 = vpop.f32.mrb[133].mxu1  ;;  %18790 = vmatmul.mubr.msk.bf16.vlgmr.msra.gmra.mrb[116].mxu0 %vm7860_vm2, %v9313_v21 }
 0x8d4   : > { %v10959_v62 = vpop.f32.mrb[134].mxu1  ;;  %18801 = vmatprep.mubr.msk.bf16.mxu0 %vm20129_vm0, %v26609_v2  ;;  %v26967_v38 = vld [vmem:[#allocation36_spill] sm:$0xff] }
 0x8d5   : > { %v18726_v6 = vpop.f32.mrb[135].mxu1  ;;  %v24036_v42 = vpack.c.bf16 %v26967_v38, %v26967_v38 }
 0x8d7   : > { %v24030_v49 = vpop.eup %19677 }
 0x8d8   : > { %v19680_v43 = vpop.eup %19679  ;;  %v8791_v21 = vsel %vm7860_vm2, %v24030_v49, 0.0 }
 0x8d9   : > { %v9184_v34 = vmul.f32 %v19680_v43, %v23671_v8 }
 0x8da   : > { %v24040_v15 = vpop.eup %19681 }
 0x8db   : > { %v8797_v62 = vsel %vm7860_vm2, %v24040_v15, 0.0  ;;  %v9312_v6 = vpack.c.bf16 %v9184_v34, %v9184_v34 }
 0x8de   : > { %v24028_v59 = vpop.xlane.xlu0 %8072 }
 0x8e2   : > { %v24032_v57 = vpop.xlane.xlu0 %8777 }
 0x8e4   : > { %8792 = vadd.xlane.f32.xlu1 %v8791_v21  ;;  %v26969_v21 = vld [vmem:[#allocation80_spill] sm:$0xff] }
 0x8e5   : > { %1643 = vrot.lane.b32.xlu0 %v24036_v42, %s20131_s10 }
 0x8e6   : > { %v1768_v9 = vpop.permute.xlu0 %1767 }
 0x8e7   : > { %v11380_v36 = vsel %vm9400_vm3, %v1768_v9, 0  ;;  %v8302_v9 = vsub.f32 %v26969_v21, %v23619_v24  ;;  %v26970_v24 = vld [vmem:[#allocation114_spill] sm:$0xff] }
 0x8e8   : > { %18782 = vmatpush3.bf16.msra.mxu1 %v11380_v36  ;;  %8798 = vadd.xlane.f32.xlu1 %v8797_v62 }
 0x8e9   : > { %18793 = vmatprep.subr.bf16.mxu1 %v26609_v2  ;;  %v8487_v58 = vmul.f32 1.442695, %v8302_v9 }
 0x8eb   : > { %v24049_v56 = vpop.f32.mrb[96].mxu0  ;;  %18784 = vmatmul.mubr.msk.bf16.vlgmr.msra.gmra.mrb[152].mxu1 %vm7860_vm2, %v9312_v6  ;;  %19685 = vpow2.f32 %v8487_v58 }
 0x8ec   : > { %26968 = vst [vmem:[#allocation66_spill] sm:$0xff] %v24049_v56  ;;  %v18731_v38 = vpop.f32.mrb[97].mxu0  ;;  %18795 = vmatprep.mubr.msk.bf16.mxu1 %vm20129_vm0, %v26609_v2  ;;  %19687 = vrcp.f32 %v23984_v4 }
 0x8ed   : > { %v11005_v8 = vpop.f32.mrb[98].mxu0  ;;  %v26971_v38 = vld [vmem:[#allocation89_spill] sm:$0xff] }
 0x8ee   : > { %v18732_v43 = vpop.f32.mrb[99].mxu0  ;;  %v24067_v8 = vadd.f32 %v26971_v38, %v26970_v24 }
 0x8f0   : > { %26972 = vst [vmem:[#allocation62_spill] sm:$0xff] %v24067_v8 }
 0x8f3   : > { %v11094_v7 = vpop.f32.mrb[100].mxu0 }
 0x8f4   : > { %v16952_v36 = vpack.c.bf16 %v11094_v7, %v23946_v22  ;;  %v18743_v62 = vpop.f32.mrb[101].mxu0  ;;  %v19684_v22 = vpop.eup %19683 }
 0x8f5   : > { %v11097_v34 = vpop.f32.mrb[102].mxu0  ;;  %v24075_v21 = vpop.eup %19685  ;;  %v9186_v51 = vmul.f32 %v19684_v22, %v23738_v18 }
 0x8f6   : > { %15514 = vst.msk [vmem:[#allocation2 + $0x20] sm:$0xff] %vm1811_vm1, %v16952_v36  ;;  %v18744_v20 = vpop.f32.mrb[103].mxu0  ;;  %v8800_v9 = vsel %vm7860_vm2, %v24075_v21, 0.0  ;;  %v26973_v34 = vld [vmem:[#allocation69_spill] sm:$0xff] }
 0x8f7   : > { %v24058_v48 = vpop.xlane.xlu1 %8075  ;;  %v8095_v20 = vsel %vm7860_vm2, %v24067_v8, -inf  ;;  %v9314_v62 = vpack.c.bf16 %v9186_v51, %v9186_v51  ;;  %v8303_v24 = vsub.f32 %v26973_v34, %v23649_v1  ;;  %v26975_v51 = vld [vmem:[#allocation21_spill] sm:$0xff] }
 0x8f8   : > { %v26976_v1 = vld [vmem:[#allocation117_spill] sm:$0xff] }
 0x8f9   : > { %1707 = vrot.lane.b32.xlu1 %v24036_v42, %s20130_s19 }
 0x8fb   : > { %v24063_v6 = vpop.xlane.xlu1 %8780 }
 0x8ff   : > { %v24069_v7 = vpop.xlane.xlu1 %8081 }
 0x903   : > { %v24071_v43 = vpop.xlane.xlu1 %8783 }
 0x904   : > { %8096 = vmax.xlane.f32.xlu0 %v8095_v20  ;;  %v8489_v20 = vmul.f32 1.442695, %v8303_v24 }
 0x906   : > { %19689 = vpow2.f32 %v8489_v20 }
 0x907   : > { %v1642_v58 = vpop.permute.xlu1 %1641  ;;  %19691 = vrcp.f32 %v23992_v12 }
 0x908   : > { %v11472_v36 = vsel %vm9400_vm3, %v1642_v58, 0  ;;  %8801 = vadd.xlane.f32.xlu0 %v8800_v9  ;;  %v8304_v58 = vsub.f32 %v26975_v51, %v23723_v47 }
 0x909   : > { %18794 = vmatpush3.bf16.msra.mxu1 %v11472_v36 }
 0x90a   : > { %18805 = vmatprep.subr.bf16.mxu1 %v26609_v2  ;;  %v8491_v9 = vmul.f32 1.442695, %v8304_v58 }
 0x90b   : > { %v24084_v8 = vpop.f32.mrb[136].mxu1 }
 0x90c   : > { %26974 = vst [vmem:[#allocation106_spill] sm:$0xff] %v24084_v8  ;;  %v18737_v32 = vpop.f32.mrb[137].mxu1  ;;  %18796 = vmatmul.mubr.msk.bf16.vlgmr.msra.gmra.mrb[156].mxu1 %vm7860_vm2, %v9314_v62  ;;  %v19688_v62 = vpop.eup %19687  ;;  %19693 = vpow2.f32 %v8491_v9 }
 0x90d   : > { %v11051_v18 = vpop.f32.mrb[138].mxu1  ;;  %18807 = vmatprep.mubr.msk.bf16.mxu1 %vm20129_vm0, %v26609_v2  ;;  %v24096_v32 = vadd.f32 %v26842_v37, %v26976_v1  ;;  %v9187_v47 = vmul.f32 %v19688_v62, %v23805_v19  ;;  %v11610_v19 = vsel %vm9400_vm3, %v24036_v42, 0  ;;  %19695 = vrcp.f32 %v23959_v39 }
 0x90e   : > { %v18738_v22 = vpop.f32.mrb[139].mxu1 }
 0x90f   : > { %26977 = vst [vmem:[#allocation105_spill] sm:$0xff] %v24096_v32  ;;  %v8098_v4 = vsel %vm7860_vm2, %v24096_v32, -inf  ;;  %v26978_v22 = vld [vmem:[#allocation119_spill] sm:$0xff]  ;;  %v9315_v58 = vpack.c.bf16 %v9187_v47, %v9187_v47 }
 0x910   : > { %v24103_v24 = vpop.eup %19689  ;;  %v24110_v20 = vadd.f32 %v26845_v55, %v26978_v22 }
 0x911   : > { %v8803_v51 = vsel %vm7860_vm2, %v24103_v24, 0.0  ;;  %v19692_v9 = vpop.eup %19691 }
 0x912   : > { %26979 = vst [vmem:[#allocation108_spill] sm:$0xff] %v24110_v20  ;;  %v8104_v1 = vsel %vm7860_vm2, %v24110_v20, -inf }
 0x916   : > { %v24121_v62 = vpop.eup %19693 }
 0x917   : > { %v24092_v36 = vpop.xlane.xlu0 %8078  ;;  %v8806_v47 = vsel %vm7860_vm2, %v24121_v62, 0.0 }
 0x91b   : > { %v24099_v34 = vpop.xlane.xlu0 %8084 }
 0x91d   : > { %8099 = vmax.xlane.f32.xlu1 %v8098_v4  ;;  %v9189_v4 = vmul.f32 %v19692_v9, %v23815_v27 }
 0x91e   : > { %1771 = vrot.lane.b32.xlu0 %v24036_v42, %s20132_s11 }
 0x91f   : > { %v1706_v18 = vpop.permute.xlu0 %1705 }
 0x920   : > { %v11518_v12 = vsel %vm9400_vm3, %v1706_v18, 0  ;;  %v9317_v18 = vpack.c.bf16 %v9189_v4, %v9189_v4 }
 0x921   : > { %18800 = vmatpush3.bf16.msra.mxu0 %v11518_v12  ;;  %8804 = vadd.xlane.f32.xlu1 %v8803_v51 }
 0x922   : > { %18811 = vmatprep.subr.bf16.mxu0 %v26609_v2 }
 0x924   : > { %18802 = vmatmul.mubr.msk.bf16.vlgmr.msra.gmra.mrb[120].mxu0 %vm7860_vm2, %v9315_v58  ;;  %v26981_v58 = vld [vmem:[#allocation38_spill] sm:$0xff] }
 0x925   : > { %18812 = vmatpush3.bf16.msra.mxu0 %v11610_v19  ;;  %8105 = vmax.xlane.f32.xlu1 %v8104_v1  ;;  %v24139_v9 = vpack.c.bf16 %v26981_v58, %v26981_v58  ;;  %v26982_v19 = vld [vmem:[#allocation116_spill] sm:$0xff] }
 0x926   : > { %18813 = vmatprep.mubr.msk.bf16.mxu0 %vm20129_vm0, %v26609_v2  ;;  %18823 = vmatprep.subr.bf16.mxu0 %v26609_v2  ;;  %v24143_v1 = vadd.f32 %v26850_v17, %v26982_v19 }
 0x928   : > { %26983 = vst [vmem:[#allocation135_spill] sm:$0xff] %v24143_v1  ;;  %v8101_v39 = vsel %vm7860_vm2, %v24143_v1, -inf }
 0x929   : > { %8807 = vadd.xlane.f32.xlu1 %v8806_v47  ;;  %v19696_v47 = vpop.eup %19695 }
 0x92c   : > { %v24129_v42 = vpop.f32.mrb[140].mxu1  ;;  %18814 = vmatmul.mubr.msk.bf16.vlgmr.msra.gmra.mrb[124].mxu0 %vm7860_vm2, %v9317_v18  ;;  %v26984_v18 = vld [vmem:[#allocation118_spill] sm:$0xff] }
 0x92d   : > { %26980 = vst [vmem:[#allocation13_spill] sm:$0xff] %v24129_v42  ;;  %v18749_v12 = vpop.f32.mrb[141].mxu1  ;;  %18825 = vmatprep.mubr.msk.bf16.mxu0 %vm20129_vm0, %v26609_v2 }
 0x92e   : > { %v11143_v27 = vpop.f32.mrb[142].mxu1  ;;  %v26985_v12 = vld [vmem:[#allocation76_spill] sm:$0xff] }
 0x92f   : > { %v18750_v51 = vpop.f32.mrb[143].mxu1  ;;  %v24149_v22 = vadd.f32 %v26985_v12, %v26984_v18 }
 0x930   : > { %v9188_v51 = vmul.f32 %v19696_v47, %v23782_v53 }
 0x931   : > { %26986 = vst [vmem:[#allocation31_spill] sm:$0xff] %v24149_v22  ;;  %v8107_v19 = vsel %vm7860_vm2, %v24149_v22, -inf }
 0x932   : > { %v9316_v42 = vpack.c.bf16 %v9188_v51, %v9188_v51  ;;  %v26989_v51 = vld [vmem:[#allocation78_spill] sm:$0xff] }
 0x938   : > { %v8787_v4 = vpop.xlane.xlu1 %8786 }
 0x93a   : > { %1645 = vrot.lane.b32.xlu1 %v24139_v9, %s20131_s10 }
 0x93c   : > { %v24151_v27 = vpop.xlane.xlu1 %8789 }
 0x93d   : > { %8102 = vmax.xlane.f32.xlu0 %v8101_v39  ;;  %v26988_v39 = vld [vmem:[#allocation27_spill] sm:$0xff] }
 0x940   : > { %v1770_v58 = vpop.permute.xlu1 %1769 }
 0x941   : > { %v11564_v45 = vsel %vm9400_vm3, %v1770_v58, 0  ;;  %8108 = vmax.xlane.f32.xlu0 %v8107_v19  ;;  %v8305_v58 = vsub.f32 %v26988_v39, %v23726_v52  ;;  %v8306_v19 = vsub.f32 %v26989_v51, %v23730_v16 }
 0x942   : > { %18806 = vmatpush3.bf16.msra.mxu1 %v11564_v45 }
 0x943   : > { %18817 = vmatprep.subr.bf16.mxu1 %v26609_v2  ;;  %v8493_v45 = vmul.f32 1.442695, %v8305_v58 }
 0x944   : > { %v24160_v18 = vpop.f32.mrb[104].mxu0 }
 0x945   : > { %26987 = vst [vmem:[#allocation61_spill] sm:$0xff] %v24160_v18  ;;  %v18755_v1 = vpop.f32.mrb[105].mxu0  ;;  %18808 = vmatmul.mubr.msk.bf16.vlgmr.msra.gmra.mrb[160].mxu1 %vm7860_vm2, %v9316_v42  ;;  %19697 = vpow2.f32 %v8493_v45 }
 0x946   : > { %v11189_v53 = vpop.f32.mrb[106].mxu0  ;;  %18819 = vmatprep.mubr.msk.bf16.mxu1 %vm20129_vm0, %v26609_v2  ;;  %v8495_v1 = vmul.f32 1.442695, %v8306_v19  ;;  %19699 = vrcp.f32 %v24032_v57 }
 0x947   : > { %v18756_v47 = vpop.f32.mrb[107].mxu0 }
 0x948   : > { %19701 = vpow2.f32 %v8495_v1 }
 0x949   : > { %19703 = vrcp.f32 %v24063_v6 }
 0x94a   : > { %19705 = vrcp.f32 %v8787_v4 }
 0x94c   : > { %v24171_v22 = vpop.f32.mrb[108].mxu0 }
 0x94d   : > { %v18767_v32 = vpop.f32.mrb[109].mxu0 }
 0x94e   : > { %v11281_v12 = vpop.f32.mrb[110].mxu0 }
 0x94f   : > { %v18768_v20 = vpop.f32.mrb[111].mxu0  ;;  %v24182_v16 = vpop.eup %19697 }
 0x950   : > { %v24173_v42 = vpop.xlane.xlu0 %8087  ;;  %v19700_v47 = vpop.eup %19699  ;;  %v8809_v20 = vsel %vm7860_vm2, %v24182_v16, 0.0 }
 0x951   : > { %v9190_v57 = vmul.f32 %v19700_v47, %v23850_v41 }
 0x952   : > { %v24188_v12 = vpop.eup %19701 }
 0x953   : > { %v8812_v45 = vsel %vm7860_vm2, %v24188_v12, 0.0  ;;  %v9318_v51 = vpack.c.bf16 %v9190_v57, %v9190_v57 }
 0x954   : > { %v24176_v53 = vpop.xlane.xlu0 %8090 }
 0x957   : > { %1709 = vrot.lane.b32.xlu0 %v24139_v9, %s20130_s19 }
 0x958   : > { %v24180_v52 = vpop.xlane.xlu0 %8093 }
 0x95c   : > { %v24184_v32 = vpop.xlane.xlu0 %8795 }
 0x95e   : > { %8810 = vadd.xlane.f32.xlu1 %v8809_v20 }
 0x960   : > { %v1644_v39 = vpop.permute.xlu0 %1643 }
 0x961   : > { %v11656_v58 = vsel %vm9400_vm3, %v1644_v39, 0  ;;  %v26991_v39 = vld [vmem:[#allocation72_spill] sm:$0xff] }
 0x962   : > { %18818 = vmatpush3.bf16.msra.mxu1 %v11656_v58  ;;  %8813 = vadd.xlane.f32.xlu1 %v8812_v45  ;;  %v8308_v57 = vsub.f32 %v26991_v39, %v23833_v5  ;;  %v26992_v45 = vld [vmem:[#allocation121_spill] sm:$0xff] }
 0x963   : > { %18829 = vmatprep.subr.bf16.mxu1 %v26609_v2  ;;  %v24207_v56 = vadd.f32 %v21629_v23, %v26992_v45 }
 0x964   : > { %v8499_v58 = vmul.f32 1.442695, %v8308_v57  ;;  %v26996_v57 = vld [vmem:[#allocation123_spill] sm:$0xff] }
 0x965   : > { %v24195_v19 = vpop.f32.mrb[144].mxu1  ;;  %18820 = vmatmul.mubr.msk.bf16.vlgmr.msra.gmra.mrb[164].mxu1 %vm7860_vm2, %v9318_v51  ;;  %26993 = vst [vmem:[#allocation65_spill] sm:$0xff] %v24207_v56  ;;  %v8110_v5 = vsel %vm7860_vm2, %v24207_v56, -inf  ;;  %v24224_v4 = vadd.f32 %v21705_v40, %v26996_v57 }
 0x966   : > { %26990 = vst [vmem:[#allocation107_spill] sm:$0xff] %v24195_v19  ;;  %v18761_v20 = vpop.f32.mrb[145].mxu1  ;;  %18831 = vmatprep.mubr.msk.bf16.mxu1 %vm20129_vm0, %v26609_v2  ;;  %19707 = vpow2.f32 %v8499_v58 }
 0x967   : > { %v11235_v41 = vpop.f32.mrb[146].mxu1  ;;  %v19704_v20 = vpop.eup %19703  ;;  %26997 = vst [vmem:[#allocation17_spill] sm:$0xff] %v24224_v4 }
 0x968   : > { %v18762_v47 = vpop.f32.mrb[147].mxu1  ;;  %v26994_v41 = vld [vmem:[#allocation120_spill] sm:$0xff]  ;;  %v9191_v39 = vmul.f32 %v19704_v20, %v23878_v28  ;;  %v19706_v8 = vpop.eup %19705  ;;  %v11794_v20 = vsel %vm9400_vm3, %v24139_v9, 0 }
 0x969   : > { %v24215_v47 = vadd.f32 %v21649_v11, %v26994_v41 }
 0x96a   : > { %v9319_v41 = vpack.c.bf16 %v9191_v39, %v9191_v39  ;;  %v26998_v39 = vld [vmem:[#allocation93_spill] sm:$0xff] }
 0x96b   : > { %26995 = vst [vmem:[#allocation90_spill] sm:$0xff] %v24215_v47  ;;  %v8113_v58 = vsel %vm7860_vm2, %v24215_v47, -inf  ;;  %v8307_v57 = vsub.f32 %v26998_v39, %v23803_v44 }
 0x970   : > { %v24232_v28 = vpop.eup %19707 }
 0x971   : > { %v24209_v51 = vpop.xlane.xlu1 %8792 }
 0x973   : > { %1773 = vrot.lane.b32.xlu1 %v24139_v9, %s20132_s11 }
 0x975   : > { %v24217_v6 = vpop.xlane.xlu1 %8798 }
 0x976   : > { %8111 = vmax.xlane.f32.xlu0 %v8110_v5  ;;  %v8116_v5 = vsel %vm7860_vm2, %v24224_v4, -inf }
 0x979   : > { %v1708_v45 = vpop.permute.xlu1 %1707 }
 0x97a   : > { %v11702_v1 = vsel %vm9400_vm3, %v1708_v45, 0  ;;  %8114 = vmax.xlane.f32.xlu0 %v8113_v58  ;;  %v8818_v45 = vsel %vm7860_vm2, %v24232_v28, 0.0 }
 0x97b   : > { %18824 = vmatpush3.bf16.msra.mxu0 %v11702_v1  ;;  %v9193_v1 = vmul.f32 %v19706_v8, %v23957_v33 }
 0x97c   : > { %18835 = vmatprep.subr.bf16.mxu0 %v26609_v2 }
 0x97d   : > { %v9321_v58 = vpack.c.bf16 %v9193_v1, %v9193_v1 }
 0x97e   : > { %18826 = vmatmul.mubr.msk.bf16.vlgmr.msra.gmra.mrb[128].mxu0 %vm7860_vm2, %v9319_v41  ;;  %8117 = vmax.xlane.f32.xlu0 %v8116_v5  ;;  %v8497_v41 = vmul.f32 1.442695, %v8307_v57  ;;  %v26999_v5 = vld [vmem:[#allocation67_spill] sm:$0xff] }
 0x97f   : > { %18836 = vmatpush3.bf16.msra.mxu0 %v11794_v20  ;;  %18837 = vmatprep.mubr.msk.bf16.mxu0 %vm20129_vm0, %v26609_v2  ;;  %v8309_v9 = vsub.f32 %v26999_v5, %v23867_v54 }
 0x980   : > { %18847 = vmatprep.subr.bf16.mxu0 %v26609_v2  ;;  %19709 = vpow2.f32 %v8497_v41 }
 0x981   : > { %v8501_v44 = vmul.f32 1.442695, %v8309_v9  ;;  %19711 = vrcp.f32 %v24071_v43 }
 0x982   : > { %8819 = vadd.xlane.f32.xlu0 %v8818_v45 }
 0x983   : > { %19713 = vpow2.f32 %v8501_v44 }
 0x984   : > { %19715 = vrcp.f32 %v24151_v27 }
 0x985   : > { %v24247_v20 = vpop.f32.mrb[148].mxu1 }
 0x986   : > { %27000 = vst [vmem:[#allocation111_spill] sm:$0xff] %v24247_v20  ;;  %v18773_v19 = vpop.f32.mrb[149].mxu1  ;;  %18838 = vmatmul.mubr.msk.bf16.vlgmr.msra.gmra.mrb[132].mxu0 %vm7860_vm2, %v9321_v58 }
 0x987   : > { %v11327_v33 = vpop.f32.mrb[150].mxu1  ;;  %18849 = vmatprep.mubr.msk.bf16.mxu0 %vm20129_vm0, %v26609_v2  ;;  %v27001_v19 = vld [vmem:[#allocation35_spill] sm:$0xff] }
 0x988   : > { %v18774_v8 = vpop.f32.mrb[151].mxu1  ;;  %v24261_v45 = vpack.c.bf16 %v27001_v19, %v27001_v19 }
 0x98a   : > { %v24255_v39 = vpop.eup %19709 }
 0x98b   : > { %v19712_v54 = vpop.eup %19711  ;;  %v8815_v58 = vsel %vm7860_vm2, %v24255_v39, 0.0 }
 0x98c   : > { %v9192_v43 = vmul.f32 %v19712_v54, %v23896_v3 }
 0x98d   : > { %v24265_v5 = vpop.eup %19713 }
 0x98e   : > { %v8821_v33 = vsel %vm7860_vm2, %v24265_v5, 0.0  ;;  %v9320_v8 = vpack.c.bf16 %v9192_v43, %v9192_v43 }
 0x991   : > { %v24253_v1 = vpop.xlane.xlu0 %8096 }
 0x995   : > { %v24257_v57 = vpop.xlane.xlu0 %8801 }
 0x997   : > { %8816 = vadd.xlane.f32.xlu1 %v8815_v58  ;;  %v27003_v58 = vld [vmem:[#allocation97_spill] sm:$0xff] }
 0x998   : > { %1647 = vrot.lane.b32.xlu0 %v24261_v45, %s20131_s10 }
 0x999   : > { %v1772_v41 = vpop.permute.xlu0 %1771 }
 0x99a   : > { %v11748_v9 = vsel %vm9400_vm3, %v1772_v41, 0  ;;  %v8310_v41 = vsub.f32 %v27003_v58, %v23844_v35  ;;  %v27004_v35 = vld [vmem:[#allocation122_spill] sm:$0xff] }
 0x99b   : > { %18830 = vmatpush3.bf16.msra.mxu1 %v11748_v9  ;;  %8822 = vadd.xlane.f32.xlu1 %v8821_v33 }
 0x99c   : > { %18841 = vmatprep.subr.bf16.mxu1 %v26609_v2  ;;  %v8503_v4 = vmul.f32 1.442695, %v8310_v41 }
 0x99e   : > { %v24274_v44 = vpop.f32.mrb[112].mxu0  ;;  %18832 = vmatmul.mubr.msk.bf16.vlgmr.msra.gmra.mrb[168].mxu1 %vm7860_vm2, %v9320_v8  ;;  %19717 = vpow2.f32 %v8503_v4 }
 0x99f   : > { %27002 = vst [vmem:[#allocation33_spill] sm:$0xff] %v24274_v44  ;;  %v18779_v19 = vpop.f32.mrb[113].mxu0  ;;  %18843 = vmatprep.mubr.msk.bf16.mxu1 %vm20129_vm0, %v26609_v2  ;;  %19719 = vrcp.f32 %v24209_v51 }
 0x9a0   : > { %v11373_v3 = vpop.f32.mrb[114].mxu0  ;;  %v24292_v19 = vadd.f32 %v26874_v25, %v27004_v35 }
 0x9a1   : > { %v18780_v54 = vpop.f32.mrb[115].mxu0 }
 0x9a2   : > { %27005 = vst [vmem:[#allocation109_spill] sm:$0xff] %v24292_v19 }
 0x9a6   : > { %v11462_v18 = vpop.f32.mrb[116].mxu0 }
 0x9a7   : > { %v16953_v9 = vpack.c.bf16 %v11462_v18, %v24171_v22  ;;  %v18791_v33 = vpop.f32.mrb[117].mxu0  ;;  %v19716_v18 = vpop.eup %19715 }
 0x9a8   : > { %v11465_v43 = vpop.f32.mrb[118].mxu0  ;;  %v24300_v54 = vpop.eup %19717  ;;  %v9194_v27 = vmul.f32 %v19716_v18, %v23963_v50  ;;  %v27006_v33 = vld [vmem:[#allocation70_spill] sm:$0xff] }
 0x9a9   : > { %15515 = vst.msk [vmem:[#allocation2 + $0x28] sm:$0xff] %vm1811_vm1, %v16953_v9  ;;  %v18792_v47 = vpop.f32.mrb[119].mxu0  ;;  %v8824_v58 = vsel %vm7860_vm2, %v24300_v54, 0.0  ;;  %v8311_v43 = vsub.f32 %v27006_v33, %v23874_v14  ;;  %v27009_v14 = vld [vmem:[#allocation124_spill] sm:$0xff] }
 0x9aa   : > { %v24283_v56 = vpop.xlane.xlu1 %8099  ;;  %v8119_v47 = vsel %vm7860_vm2, %v24292_v19, -inf  ;;  %v9322_v9 = vpack.c.bf16 %v9194_v27, %v9194_v27  ;;  %v27008_v27 = vld [vmem:[#allocation98_spill] sm:$0xff] }
 0x9ac   : > { %1711 = vrot.lane.b32.xlu1 %v24261_v45, %s20130_s19 }
 0x9ae   : > { %v24288_v8 = vpop.xlane.xlu1 %8804 }
 0x9b2   : > { %v24294_v22 = vpop.xlane.xlu1 %8105 }
 0x9b6   : > { %v24296_v3 = vpop.xlane.xlu1 %8807 }
 0x9b7   : > { %8120 = vmax.xlane.f32.xlu0 %v8119_v47  ;;  %v8505_v47 = vmul.f32 1.442695, %v8311_v43 }
 0x9b9   : > { %19721 = vpow2.f32 %v8505_v47 }
 0x9ba   : > { %v1646_v4 = vpop.permute.xlu1 %1645  ;;  %19723 = vrcp.f32 %v24217_v6 }
 0x9bb   : > { %v11840_v41 = vsel %vm9400_vm3, %v1646_v4, 0  ;;  %8825 = vadd.xlane.f32.xlu0 %v8824_v58  ;;  %v8312_v4 = vsub.f32 %v27008_v27, %v23948_v60 }
 0x9bc   : > { %18842 = vmatpush3.bf16.msra.mxu1 %v11840_v41 }
 0x9bd   : > { %18853 = vmatprep.subr.bf16.mxu1 %v26609_v2  ;;  %v8507_v58 = vmul.f32 1.442695, %v8312_v4 }
 0x9be   : > { %v24309_v35 = vpop.f32.mrb[152].mxu1 }
 0x9bf   : > { %27007 = vst [vmem:[#allocation110_spill] sm:$0xff] %v24309_v35  ;;  %v18785_v19 = vpop.f32.mrb[153].mxu1  ;;  %18844 = vmatmul.mubr.msk.bf16.vlgmr.msra.gmra.mrb[172].mxu1 %vm7860_vm2, %v9322_v9  ;;  %v19720_v9 = vpop.eup %19719  ;;  %19725 = vpow2.f32 %v8507_v58 }
 0x9c0   : > { %v11419_v50 = vpop.f32.mrb[154].mxu1  ;;  %18855 = vmatprep.mubr.msk.bf16.mxu1 %vm20129_vm0, %v26609_v2  ;;  %v24321_v19 = vadd.f32 %v21718_v30, %v27009_v14  ;;  %v9195_v60 = vmul.f32 %v19720_v9, %v24030_v49  ;;  %v11978_v49 = vsel %vm9400_vm3, %v24261_v45, 0  ;;  %19727 = vrcp.f32 %v24184_v32 }
 0x9c1   : > { %v18786_v18 = vpop.f32.mrb[155].mxu1 }
 0x9c2   : > { %27010 = vst [vmem:[#allocation44_spill] sm:$0xff] %v24321_v19  ;;  %v8122_v51 = vsel %vm7860_vm2, %v24321_v19, -inf  ;;  %v27011_v18 = vld [vmem:[#allocation126_spill] sm:$0xff]  ;;  %v9323_v4 = vpack.c.bf16 %v9195_v60, %v9195_v60 }
 0x9c3   : > { %v24328_v43 = vpop.eup %19721  ;;  %v24335_v47 = vadd.f32 %v21756_v0, %v27011_v18 }
 0x9c4   : > { %v8827_v27 = vsel %vm7860_vm2, %v24328_v43, 0.0  ;;  %v19724_v58 = vpop.eup %19723 }
 0x9c5   : > { %27012 = vst [vmem:[#allocation74_spill] sm:$0xff] %v24335_v47  ;;  %v8128_v14 = vsel %vm7860_vm2, %v24335_v47, -inf }
 0x9c9   : > { %v24346_v9 = vpop.eup %19725 }
 0x9ca   : > { %v24317_v41 = vpop.xlane.xlu0 %8102  ;;  %v8830_v60 = vsel %vm7860_vm2, %v24346_v9, 0.0 }
 0x9ce   : > { %v24324_v33 = vpop.xlane.xlu0 %8108 }
 0x9d0   : > { %8123 = vmax.xlane.f32.xlu1 %v8122_v51  ;;  %v9197_v51 = vmul.f32 %v19724_v58, %v24040_v15 }
 0x9d1   : > { %1775 = vrot.lane.b32.xlu0 %v24261_v45, %s20132_s11 }
 0x9d2   : > { %v1710_v50 = vpop.permute.xlu0 %1709 }
 0x9d3   : > { %v11886_v6 = vsel %vm9400_vm3, %v1710_v50, 0  ;;  %v9325_v50 = vpack.c.bf16 %v9197_v51, %v9197_v51 }
 0x9d4   : > { %18848 = vmatpush3.bf16.msra.mxu0 %v11886_v6  ;;  %8828 = vadd.xlane.f32.xlu1 %v8827_v27 }
 0x9d5   : > { %18859 = vmatprep.subr.bf16.mxu0 %v26609_v2 }
 0x9d7   : > { %18850 = vmatmul.mubr.msk.bf16.vlgmr.msra.gmra.mrb[136].mxu0 %vm7860_vm2, %v9323_v4  ;;  %v27014_v4 = vld [vmem:[#allocation37_spill] sm:$0xff] }
 0x9d8   : > { %18860 = vmatpush3.bf16.msra.mxu0 %v11978_v49  ;;  %8129 = vmax.xlane.f32.xlu1 %v8128_v14  ;;  %v24364_v58 = vpack.c.bf16 %v27014_v4, %v27014_v4  ;;  %v27015_v49 = vld [vmem:[#allocation20_spill] sm:$0xff] }
 0x9d9   : > { %18861 = vmatprep.mubr.msk.bf16.mxu0 %vm20129_vm0, %v26609_v2  ;;  %18871 = vmatprep.subr.bf16.mxu0 %v26609_v2  ;;  %v24368_v14 = vadd.f32 %v21611_v61, %v27015_v49 }
 0x9db   : > { %27016 = vst [vmem:[#allocation112_spill] sm:$0xff] %v24368_v14  ;;  %v8125_v32 = vsel %vm7860_vm2, %v24368_v14, -inf }
 0x9dc   : > { %8831 = vadd.xlane.f32.xlu1 %v8830_v60  ;;  %v19728_v60 = vpop.eup %19727 }
 0x9df   : > { %v24354_v45 = vpop.f32.mrb[156].mxu1  ;;  %18862 = vmatmul.mubr.msk.bf16.vlgmr.msra.gmra.mrb[140].mxu0 %vm7860_vm2, %v9325_v50  ;;  %v27017_v50 = vld [vmem:[#allocation125_spill] sm:$0xff] }
 0x9e0   : > { %27013 = vst [vmem:[#allocation113_spill] sm:$0xff] %v24354_v45  ;;  %v18797_v6 = vpop.f32.mrb[157].mxu1  ;;  %18873 = vmatprep.mubr.msk.bf16.mxu0 %vm20129_vm0, %v26609_v2 }
 0x9e1   : > { %v11511_v15 = vpop.f32.mrb[158].mxu1  ;;  %v24374_v6 = vadd.f32 %v21700_v26, %v27017_v50 }
 0x9e2   : > { %v18798_v27 = vpop.f32.mrb[159].mxu1 }
 0x9e3   : > { %27018 = vst [vmem:[#allocation115_spill] sm:$0xff] %v24374_v6  ;;  %v9196_v27 = vmul.f32 %v19728_v60, %v24007_v10  ;;  %v8131_v49 = vsel %vm7860_vm2, %v24374_v6, -inf }
 0x9e5   : > { %v9324_v20 = vpack.c.bf16 %v9196_v27, %v9196_v27  ;;  %v27021_v27 = vld [vmem:[#allocation57_spill] sm:$0xff] }
 0x9eb   : > { %v8811_v51 = vpop.xlane.xlu1 %8810 }
 0x9ed   : > { %1649 = vrot.lane.b32.xlu1 %v24364_v58, %s20131_s10 }
 0x9ef   : > { %v24376_v15 = vpop.xlane.xlu1 %8813 }
 0x9f0   : > { %8126 = vmax.xlane.f32.xlu0 %v8125_v32  ;;  %v27020_v32 = vld [vmem:[#allocation100_spill] sm:$0xff] }
 0x9f3   : > { %v1774_v4 = vpop.permute.xlu1 %1773 }
 0x9f4   : > { %v11932_v18 = vsel %vm9400_vm3, %v1774_v4, 0  ;;  %8132 = vmax.xlane.f32.xlu0 %v8131_v49  ;;  %v8313_v4 = vsub.f32 %v27020_v32, %v23951_v46  ;;  %v8314_v49 = vsub.f32 %v27021_v27, %v23955_v13 }
 0x9f5   : > { %18854 = vmatpush3.bf16.msra.mxu1 %v11932_v18 }
 0x9f6   : > { %18865 = vmatprep.subr.bf16.mxu1 %v26609_v2  ;;  %v8509_v18 = vmul.f32 1.442695, %v8313_v4 }
 0x9f7   : > { %v24385_v50 = vpop.f32.mrb[120].mxu0 }
 0x9f8   : > { %27019 = vst [vmem:[#allocation16_spill] sm:$0xff] %v24385_v50  ;;  %v18803_v47 = vpop.f32.mrb[121].mxu0  ;;  %18856 = vmatmul.mubr.msk.bf16.vlgmr.msra.gmra.mrb[176].mxu1 %vm7860_vm2, %v9324_v20  ;;  %19729 = vpow2.f32 %v8509_v18 }
 0x9f9   : > { %v11557_v10 = vpop.f32.mrb[122].mxu0  ;;  %18867 = vmatprep.mubr.msk.bf16.mxu1 %vm20129_vm0, %v26609_v2  ;;  %v8511_v47 = vmul.f32 1.442695, %v8314_v49  ;;  %19731 = vrcp.f32 %v24257_v57 }
 0x9fa   : > { %v18804_v60 = vpop.f32.mrb[123].mxu0 }
 0x9fb   : > { %19733 = vpow2.f32 %v8511_v47 }
 0x9fc   : > { %19735 = vrcp.f32 %v24288_v8 }
 0x9fd   : > { %19737 = vrcp.f32 %v8811_v51 }
 0x9ff   : > { %v24396_v6 = vpop.f32.mrb[124].mxu0 }
 0xa00   : > { %v18815_v14 = vpop.f32.mrb[125].mxu0 }
 0xa01   : > { %v11649_v19 = vpop.f32.mrb[126].mxu0 }
 0xa02   : > { %v18816_v45 = vpop.f32.mrb[127].mxu0  ;;  %v24407_v13 = vpop.eup %19729 }
 0xa03   : > { %v24398_v20 = vpop.xlane.xlu0 %8111  ;;  %v19732_v60 = vpop.eup %19731  ;;  %v8833_v19 = vsel %vm7860_vm2, %v24407_v13, 0.0 }
 0xa04   : > { %v9198_v57 = vmul.f32 %v19732_v60, %v24075_v21 }
 0xa05   : > { %v24413_v45 = vpop.eup %19733 }
 0xa06   : > { %v8836_v18 = vsel %vm7860_vm2, %v24413_v45, 0.0  ;;  %v9326_v27 = vpack.c.bf16 %v9198_v57, %v9198_v57 }
 0xa07   : > { %v24401_v10 = vpop.xlane.xlu0 %8114 }
 0xa0a   : > { %1713 = vrot.lane.b32.xlu0 %v24364_v58, %s20130_s19 }
 0xa0b   : > { %v24405_v46 = vpop.xlane.xlu0 %8117 }
 0xa0f   : > { %v24409_v14 = vpop.xlane.xlu0 %8819 }
 0xa11   : > { %8834 = vadd.xlane.f32.xlu1 %v8833_v19 }
 0xa13   : > { %v1648_v32 = vpop.permute.xlu0 %1647 }
 0xa14   : > { %v12024_v4 = vsel %vm9400_vm3, %v1648_v32, 0  ;;  %v27023_v32 = vld [vmem:[#allocation92_spill] sm:$0xff] }
 0xa15   : > { %18866 = vmatpush3.bf16.msra.mxu1 %v12024_v4  ;;  %8837 = vadd.xlane.f32.xlu1 %v8836_v18  ;;  %v8316_v57 = vsub.f32 %v27023_v32, %v24058_v48  ;;  %v27024_v18 = vld [vmem:[#allocation128_spill] sm:$0xff] }
 0xa16   : > { %18877 = vmatprep.subr.bf16.mxu1 %v26609_v2  ;;  %v24432_v44 = vadd.f32 %v26759_v63, %v27024_v18 }
 0xa17   : > { %v8515_v4 = vmul.f32 1.442695, %v8316_v57  ;;  %v27028_v57 = vld [vmem:[#allocation130_spill] sm:$0xff] }
 0xa18   : > { %v24420_v49 = vpop.f32.mrb[160].mxu1  ;;  %18868 = vmatmul.mubr.msk.bf16.vlgmr.msra.gmra.mrb[180].mxu1 %vm7860_vm2, %v9326_v27  ;;  %27025 = vst [vmem:[#allocation36_spill] sm:$0xff] %v24432_v44  ;;  %v8134_v48 = vsel %vm7860_vm2, %v24432_v44, -inf  ;;  %v24449_v51 = vadd.f32 %v26770_v29, %v27028_v57 }
 0xa19   : > { %27022 = vst [vmem:[#allocation68_spill] sm:$0xff] %v24420_v49  ;;  %v18809_v19 = vpop.f32.mrb[161].mxu1  ;;  %18879 = vmatprep.mubr.msk.bf16.mxu1 %vm20129_vm0, %v26609_v2  ;;  %19739 = vpow2.f32 %v8515_v4 }
 0xa1a   : > { %v11603_v21 = vpop.f32.mrb[162].mxu1  ;;  %v19736_v19 = vpop.eup %19735  ;;  %27029 = vst [vmem:[#allocation114_spill] sm:$0xff] %v24449_v51 }
 0xa1b   : > { %v18810_v60 = vpop.f32.mrb[163].mxu1  ;;  %v27026_v21 = vld [vmem:[#allocation127_spill] sm:$0xff]  ;;  %v9199_v32 = vmul.f32 %v19736_v19, %v24103_v24  ;;  %v19738_v35 = vpop.eup %19737  ;;  %v12162_v19 = vsel %vm9400_vm3, %v24364_v58, 0 }
 0xa1c   : > { %v24440_v60 = vadd.f32 %v26767_v31, %v27026_v21 }
 0xa1d   : > { %v9327_v21 = vpack.c.bf16 %v9199_v32, %v9199_v32  ;;  %v27030_v32 = vld [vmem:[#allocation32_spill] sm:$0xff] }
 0xa1e   : > { %27027 = vst [vmem:[#allocation80_spill] sm:$0xff] %v24440_v60  ;;  %v8137_v4 = vsel %vm7860_vm2, %v24440_v60, -inf  ;;  %v8315_v57 = vsub.f32 %v27030_v32, %v24028_v59 }
 0xa23   : > { %v24457_v24 = vpop.eup %19739 }
 0xa24   : > { %v24434_v27 = vpop.xlane.xlu1 %8816 }
 0xa26   : > { %1777 = vrot.lane.b32.xlu1 %v24364_v58, %s20132_s11 }
 0xa28   : > { %v24442_v8 = vpop.xlane.xlu1 %8822 }
 0xa29   : > { %8135 = vmax.xlane.f32.xlu0 %v8134_v48  ;;  %v8140_v48 = vsel %vm7860_vm2, %v24449_v51, -inf }
 0xa2c   : > { %v1712_v18 = vpop.permute.xlu1 %1711 }
 0xa2d   : > { %v12070_v47 = vsel %vm9400_vm3, %v1712_v18, 0  ;;  %8138 = vmax.xlane.f32.xlu0 %v8137_v4  ;;  %v8842_v18 = vsel %vm7860_vm2, %v24457_v24, 0.0 }
 0xa2e   : > { %18872 = vmatpush3.bf16.msra.mxu0 %v12070_v47  ;;  %v9201_v47 = vmul.f32 %v19738_v35, %v24182_v16 }
 0xa2f   : > { %18883 = vmatprep.subr.bf16.mxu0 %v26609_v2 }
 0xa30   : > { %v9329_v4 = vpack.c.bf16 %v9201_v47, %v9201_v47 }
 0xa31   : > { %18874 = vmatmul.mubr.msk.bf16.vlgmr.msra.gmra.mrb[144].mxu0 %vm7860_vm2, %v9327_v21  ;;  %8141 = vmax.xlane.f32.xlu0 %v8140_v48  ;;  %v8513_v21 = vmul.f32 1.442695, %v8315_v57  ;;  %v27031_v48 = vld [vmem:[#allocation12_spill] sm:$0xff] }
 0xa32   : > { %18884 = vmatpush3.bf16.msra.mxu0 %v12162_v19  ;;  %18885 = vmatprep.mubr.msk.bf16.mxu0 %vm20129_vm0, %v26609_v2  ;;  %v8317_v58 = vsub.f32 %v27031_v48, %v24092_v36 }
 0xa33   : > { %18895 = vmatprep.subr.bf16.mxu0 %v26609_v2  ;;  %19741 = vpow2.f32 %v8513_v21 }
 0xa34   : > { %v8517_v59 = vmul.f32 1.442695, %v8317_v58  ;;  %19743 = vrcp.f32 %v24296_v3 }
 0xa35   : > { %8843 = vadd.xlane.f32.xlu0 %v8842_v18 }
 0xa36   : > { %19745 = vpow2.f32 %v8517_v59 }
 0xa37   : > { %19747 = vrcp.f32 %v24376_v15 }
 0xa38   : > { %v24472_v19 = vpop.f32.mrb[164].mxu1 }
 0xa39   : > { %27032 = vst [vmem:[#allocation89_spill] sm:$0xff] %v24472_v19  ;;  %v18821_v49 = vpop.f32.mrb[165].mxu1  ;;  %18886 = vmatmul.mubr.msk.bf16.vlgmr.msra.gmra.mrb[148].mxu0 %vm7860_vm2, %v9329_v4 }
 0xa3a   : > { %v11695_v16 = vpop.f32.mrb[166].mxu1  ;;  %18897 = vmatprep.mubr.msk.bf16.mxu0 %vm20129_vm0, %v26609_v2  ;;  %v27033_v49 = vld [vmem:[#allocation40_spill] sm:$0xff] }
 0xa3b   : > { %v18822_v35 = vpop.f32.mrb[167].mxu1  ;;  %v24486_v18 = vpack.c.bf16 %v27033_v49, %v27033_v49 }
 0xa3d   : > { %v24480_v32 = vpop.eup %19741 }
 0xa3e   : > { %v19744_v36 = vpop.eup %19743  ;;  %v8839_v4 = vsel %vm7860_vm2, %v24480_v32, 0.0 }
 0xa3f   : > { %v9200_v3 = vmul.f32 %v19744_v36, %v24121_v62 }
 0xa40   : > { %v24490_v48 = vpop.eup %19745 }
 0xa41   : > { %v8845_v16 = vsel %vm7860_vm2, %v24490_v48, 0.0  ;;  %v9328_v35 = vpack.c.bf16 %v9200_v3, %v9200_v3 }
 0xa44   : > { %v24478_v47 = vpop.xlane.xlu0 %8120 }
 0xa48   : > { %v24482_v57 = vpop.xlane.xlu0 %8825 }
 0xa4a   : > { %8840 = vadd.xlane.f32.xlu1 %v8839_v4  ;;  %v27035_v4 = vld [vmem:[#allocation18_spill] sm:$0xff] }
 0xa4b   : > { %1651 = vrot.lane.b32.xlu0 %v24486_v18, %s20131_s10 }
 0xa4c   : > { %v1776_v21 = vpop.permute.xlu0 %1775 }
 0xa4d   : > { %v12116_v58 = vsel %vm9400_vm3, %v1776_v21, 0  ;;  %v8318_v21 = vsub.f32 %v27035_v4, %v24069_v7  ;;  %v27036_v7 = vld [vmem:[#allocation129_spill] sm:$0xff] }
 0xa4e   : > { %18878 = vmatpush3.bf16.msra.mxu1 %v12116_v58  ;;  %8846 = vadd.xlane.f32.xlu1 %v8845_v16 }
 0xa4f   : > { %18889 = vmatprep.subr.bf16.mxu1 %v26609_v2  ;;  %v8519_v51 = vmul.f32 1.442695, %v8318_v21 }
 0xa51   : > { %v24499_v59 = vpop.f32.mrb[128].mxu0  ;;  %18880 = vmatmul.mubr.msk.bf16.vlgmr.msra.gmra.mrb[184].mxu1 %vm7860_vm2, %v9328_v35  ;;  %19749 = vpow2.f32 %v8519_v51 }
 0xa52   : > { %27034 = vst [vmem:[#allocation69_spill] sm:$0xff] %v24499_v59  ;;  %v18827_v49 = vpop.f32.mrb[129].mxu0  ;;  %18891 = vmatprep.mubr.msk.bf16.mxu1 %vm20129_vm0, %v26609_v2  ;;  %19751 = vrcp.f32 %v24434_v27 }
 0xa53   : > { %v11741_v62 = vpop.f32.mrb[130].mxu0  ;;  %v24517_v49 = vadd.f32 %v26971_v38, %v27036_v7 }
 0xa54   : > { %v18828_v36 = vpop.f32.mrb[131].mxu0 }
 0xa55   : > { %27037 = vst [vmem:[#allocation21_spill] sm:$0xff] %v24517_v49 }
 0xa59   : > { %v11830_v50 = vpop.f32.mrb[132].mxu0 }
 0xa5a   : > { %v16954_v58 = vpack.c.bf16 %v11830_v50, %v24396_v6  ;;  %v18839_v16 = vpop.f32.mrb[133].mxu0  ;;  %v19748_v50 = vpop.eup %19747 }
 0xa5b   : > { %v11833_v3 = vpop.f32.mrb[134].mxu0  ;;  %v24525_v36 = vpop.eup %19749  ;;  %v9202_v15 = vmul.f32 %v19748_v50, %v24188_v12  ;;  %v27038_v16 = vld [vmem:[#allocation102_spill] sm:$0xff] }
 0xa5c   : > { %15516 = vst.msk [vmem:[#allocation2 + $0x30] sm:$0xff] %vm1811_vm1, %v16954_v58  ;;  %v18840_v60 = vpop.f32.mrb[135].mxu0  ;;  %v8848_v4 = vsel %vm7860_vm2, %v24525_v36, 0.0  ;;  %v8319_v3 = vsub.f32 %v27038_v16, %v24099_v34  ;;  %v27041_v34 = vld [vmem:[#allocation132_spill] sm:$0xff] }
 0xa5d   : > { %v24508_v44 = vpop.xlane.xlu1 %8123  ;;  %v8143_v60 = vsel %vm7860_vm2, %v24517_v49, -inf  ;;  %v9330_v58 = vpack.c.bf16 %v9202_v15, %v9202_v15  ;;  %v27040_v15 = vld [vmem:[#allocation101_spill] sm:$0xff] }
 0xa5f   : > { %1715 = vrot.lane.b32.xlu1 %v24486_v18, %s20130_s19 }
 0xa61   : > { %v24513_v35 = vpop.xlane.xlu1 %8828 }
 0xa65   : > { %v24519_v6 = vpop.xlane.xlu1 %8129 }
 0xa69   : > { %v24521_v62 = vpop.xlane.xlu1 %8831 }
 0xa6a   : > { %8144 = vmax.xlane.f32.xlu0 %v8143_v60  ;;  %v8521_v60 = vmul.f32 1.442695, %v8319_v3 }
 0xa6c   : > { %19753 = vpow2.f32 %v8521_v60 }
 0xa6d   : > { %v1650_v51 = vpop.permute.xlu1 %1649  ;;  %19755 = vrcp.f32 %v24442_v8 }
 0xa6e   : > { %v12208_v21 = vsel %vm9400_vm3, %v1650_v51, 0  ;;  %8849 = vadd.xlane.f32.xlu0 %v8848_v4  ;;  %v8320_v51 = vsub.f32 %v27040_v15, %v24173_v42 }
 0xa6f   : > { %18890 = vmatpush3.bf16.msra.mxu1 %v12208_v21 }
 0xa70   : > { %18901 = vmatprep.subr.bf16.mxu1 %v26609_v2  ;;  %v8523_v4 = vmul.f32 1.442695, %v8320_v51 }
 0xa71   : > { %v24534_v7 = vpop.f32.mrb[168].mxu1 }
 0xa72   : > { %27039 = vst [vmem:[#allocation117_spill] sm:$0xff] %v24534_v7  ;;  %v18833_v49 = vpop.f32.mrb[169].mxu1  ;;  %18892 = vmatmul.mubr.msk.bf16.vlgmr.msra.gmra.mrb[188].mxu1 %vm7860_vm2, %v9330_v58  ;;  %v19752_v58 = vpop.eup %19751  ;;  %19757 = vpow2.f32 %v8523_v4 }
 0xa73   : > { %v11787_v12 = vpop.f32.mrb[170].mxu1  ;;  %18903 = vmatprep.mubr.msk.bf16.mxu1 %vm20129_vm0, %v26609_v2  ;;  %v24546_v49 = vadd.f32 %v26842_v37, %v27041_v34  ;;  %v9203_v42 = vmul.f32 %v19752_v58, %v24255_v39  ;;  %v12346_v39 = vsel %vm9400_vm3, %v24486_v18, 0  ;;  %19759 = vrcp.f32 %v24409_v14 }
 0xa74   : > { %v18834_v50 = vpop.f32.mrb[171].mxu1 }
 0xa75   : > { %27042 = vst [vmem:[#allocation119_spill] sm:$0xff] %v24546_v49  ;;  %v8146_v27 = vsel %vm7860_vm2, %v24546_v49, -inf  ;;  %v27043_v50 = vld [vmem:[#allocation134_spill] sm:$0xff]  ;;  %v9331_v51 = vpack.c.bf16 %v9203_v42, %v9203_v42 }
 0xa76   : > { %v24553_v3 = vpop.eup %19753  ;;  %v24560_v60 = vadd.f32 %v26845_v55, %v27043_v50 }
 0xa77   : > { %v8851_v15 = vsel %vm7860_vm2, %v24553_v3, 0.0  ;;  %v19756_v4 = vpop.eup %19755 }
 0xa78   : > { %27044 = vst [vmem:[#allocation38_spill] sm:$0xff] %v24560_v60  ;;  %v8152_v34 = vsel %vm7860_vm2, %v24560_v60, -inf }
 0xa7c   : > { %v24571_v58 = vpop.eup %19757 }
 0xa7d   : > { %v24542_v21 = vpop.xlane.xlu0 %8126  ;;  %v8854_v42 = vsel %vm7860_vm2, %v24571_v58, 0.0 }
 0xa81   : > { %v24549_v16 = vpop.xlane.xlu0 %8132 }
 0xa83   : > { %8147 = vmax.xlane.f32.xlu1 %v8146_v27  ;;  %v9205_v27 = vmul.f32 %v19756_v4, %v24265_v5 }
 0xa84   : > { %1779 = vrot.lane.b32.xlu0 %v24486_v18, %s20132_s11 }
 0xa85   : > { %v1714_v12 = vpop.permute.xlu0 %1713 }
 0xa86   : > { %v12254_v8 = vsel %vm9400_vm3, %v1714_v12, 0  ;;  %v9333_v12 = vpack.c.bf16 %v9205_v27, %v9205_v27 }
 0xa87   : > { %18896 = vmatpush3.bf16.msra.mxu0 %v12254_v8  ;;  %8852 = vadd.xlane.f32.xlu1 %v8851_v15 }
 0xa88   : > { %18907 = vmatprep.subr.bf16.mxu0 %v26609_v2 }
 0xa8a   : > { %18898 = vmatmul.mubr.msk.bf16.vlgmr.msra.gmra.mrb[152].mxu0 %vm7860_vm2, %v9331_v51  ;;  %v27046_v51 = vld [vmem:[#allocation42_spill] sm:$0xff] }
 0xa8b   : > { %18908 = vmatpush3.bf16.msra.mxu0 %v12346_v39  ;;  %8153 = vmax.xlane.f32.xlu1 %v8152_v34  ;;  %v24589_v4 = vpack.c.bf16 %v27046_v51, %v27046_v51  ;;  %v27047_v39 = vld [vmem:[#allocation131_spill] sm:$0xff] }
 0xa8c   : > { %18909 = vmatprep.mubr.msk.bf16.mxu0 %vm20129_vm0, %v26609_v2  ;;  %18919 = vmatprep.subr.bf16.mxu0 %v26609_v2  ;;  %v24593_v34 = vadd.f32 %v26850_v17, %v27047_v39 }
 0xa8e   : > { %27048 = vst [vmem:[#allocation118_spill] sm:$0xff] %v24593_v34  ;;  %v8149_v14 = vsel %vm7860_vm2, %v24593_v34, -inf }
 0xa8f   : > { %8855 = vadd.xlane.f32.xlu1 %v8854_v42  ;;  %v19760_v42 = vpop.eup %19759 }
 0xa92   : > { %v24579_v18 = vpop.f32.mrb[172].mxu1  ;;  %18910 = vmatmul.mubr.msk.bf16.vlgmr.msra.gmra.mrb[156].mxu0 %vm7860_vm2, %v9333_v12  ;;  %v27049_v12 = vld [vmem:[#allocation133_spill] sm:$0xff] }
 0xa93   : > { %27045 = vst [vmem:[#allocation116_spill] sm:$0xff] %v24579_v18  ;;  %v18845_v8 = vpop.f32.mrb[173].mxu1  ;;  %18921 = vmatprep.mubr.msk.bf16.mxu0 %vm20129_vm0, %v26609_v2 }
 0xa94   : > { %v11879_v5 = vpop.f32.mrb[174].mxu1  ;;  %v27050_v8 = vld [vmem:[#allocation76_spill] sm:$0xff] }
 0xa95   : > { %v18846_v15 = vpop.f32.mrb[175].mxu1  ;;  %v24599_v50 = vadd.f32 %v27050_v8, %v27049_v12 }
 0xa96   : > { %v9204_v15 = vmul.f32 %v19760_v42, %v24232_v28 }
 0xa97   : > { %27051 = vst [vmem:[#allocation27_spill] sm:$0xff] %v24599_v50  ;;  %v8155_v39 = vsel %vm7860_vm2, %v24599_v50, -inf }
 0xa98   : > { %v9332_v18 = vpack.c.bf16 %v9204_v15, %v9204_v15  ;;  %v27054_v15 = vld [vmem:[#allocation56_spill] sm:$0xff] }
 0xa9e   : > { %v8835_v27 = vpop.xlane.xlu1 %8834 }
 0xaa0   : > { %1653 = vrot.lane.b32.xlu1 %v24589_v4, %s20131_s10 }
 0xaa2   : > { %v24601_v5 = vpop.xlane.xlu1 %8837 }
 0xaa3   : > { %8150 = vmax.xlane.f32.xlu0 %v8149_v14  ;;  %v27053_v14 = vld [vmem:[#allocation103_spill] sm:$0xff] }
 0xaa6   : > { %v1778_v51 = vpop.permute.xlu1 %1777 }
 0xaa7   : > { %v12300_v19 = vsel %vm9400_vm3, %v1778_v51, 0  ;;  %8156 = vmax.xlane.f32.xlu0 %v8155_v39  ;;  %v8321_v51 = vsub.f32 %v27053_v14, %v24176_v53  ;;  %v8322_v39 = vsub.f32 %v27054_v15, %v24180_v52 }
 0xaa8   : > { %18902 = vmatpush3.bf16.msra.mxu1 %v12300_v19 }
 0xaa9   : > { %18913 = vmatprep.subr.bf16.mxu1 %v26609_v2  ;;  %v8525_v19 = vmul.f32 1.442695, %v8321_v51 }
 0xaaa   : > { %v24610_v12 = vpop.f32.mrb[136].mxu0 }
 0xaab   : > { %27052 = vst [vmem:[#allocation78_spill] sm:$0xff] %v24610_v12  ;;  %v18851_v34 = vpop.f32.mrb[137].mxu0  ;;  %18904 = vmatmul.mubr.msk.bf16.vlgmr.msra.gmra.mrb[192].mxu1 %vm7860_vm2, %v9332_v18  ;;  %19761 = vpow2.f32 %v8525_v19 }
 0xaac   : > { %v11925_v28 = vpop.f32.mrb[138].mxu0  ;;  %18915 = vmatprep.mubr.msk.bf16.mxu1 %vm20129_vm0, %v26609_v2  ;;  %v8527_v34 = vmul.f32 1.442695, %v8322_v39  ;;  %19763 = vrcp.f32 %v24482_v57 }
 0xaad   : > { %v18852_v42 = vpop.f32.mrb[139].mxu0 }
 0xaae   : > { %19765 = vpow2.f32 %v8527_v34 }
 0xaaf   : > { %19767 = vrcp.f32 %v24513_v35 }
 0xab0   : > { %19769 = vrcp.f32 %v8835_v27 }
 0xab2   : > { %v24621_v50 = vpop.f32.mrb[140].mxu0 }
 0xab3   : > { %v18863_v49 = vpop.f32.mrb[141].mxu0 }
 0xab4   : > { %v12017_v8 = vpop.f32.mrb[142].mxu0 }
 0xab5   : > { %v18864_v60 = vpop.f32.mrb[143].mxu0  ;;  %v24632_v52 = vpop.eup %19761 }
 0xab6   : > { %v24623_v18 = vpop.xlane.xlu0 %8135  ;;  %v19764_v42 = vpop.eup %19763  ;;  %v8857_v60 = vsel %vm7860_vm2, %v24632_v52, 0.0 }
 0xab7   : > { %v9206_v57 = vmul.f32 %v19764_v42, %v24300_v54 }
 0xab8   : > { %v24638_v8 = vpop.eup %19765 }
 0xab9   : > { %v8860_v19 = vsel %vm7860_vm2, %v24638_v8, 0.0  ;;  %v9334_v15 = vpack.c.bf16 %v9206_v57, %v9206_v57 }
 0xaba   : > { %v24626_v28 = vpop.xlane.xlu0 %8138 }
 0xabd   : > { %1717 = vrot.lane.b32.xlu0 %v24589_v4, %s20130_s19 }
 0xabe   : > { %v24630_v53 = vpop.xlane.xlu0 %8141 }
 0xac2   : > { %v24634_v49 = vpop.xlane.xlu0 %8843 }
 0xac4   : > { %8858 = vadd.xlane.f32.xlu1 %v8857_v60 }
 0xac6   : > { %v1652_v14 = vpop.permute.xlu0 %1651 }
 0xac7   : > { %v12392_v51 = vsel %vm9400_vm3, %v1652_v14, 0  ;;  %v27056_v14 = vld [vmem:[#allocation105_spill] sm:$0xff] }
 0xac8   : > { %18914 = vmatpush3.bf16.msra.mxu1 %v12392_v51  ;;  %8861 = vadd.xlane.f32.xlu1 %v8860_v19  ;;  %v8324_v57 = vsub.f32 %v27056_v14, %v24283_v56  ;;  %v27057_v19 = vld [vmem:[#allocation137_spill] sm:$0xff] }
 0xac9   : > { %18925 = vmatprep.subr.bf16.mxu1 %v26609_v2  ;;  %v24657_v59 = vadd.f32 %v21629_v23, %v27057_v19 }
 0xaca   : > { %v8531_v51 = vmul.f32 1.442695, %v8324_v57  ;;  %v27061_v57 = vld [vmem:[#allocation19_spill] sm:$0xff] }
 0xacb   : > { %v24645_v39 = vpop.f32.mrb[176].mxu1  ;;  %18916 = vmatmul.mubr.msk.bf16.vlgmr.msra.gmra.mrb[196].mxu1 %vm7860_vm2, %v9334_v15  ;;  %27058 = vst [vmem:[#allocation121_spill] sm:$0xff] %v24657_v59  ;;  %v8158_v56 = vsel %vm7860_vm2, %v24657_v59, -inf  ;;  %v24674_v27 = vadd.f32 %v21705_v40, %v27061_v57 }
 0xacc   : > { %27055 = vst [vmem:[#allocation72_spill] sm:$0xff] %v24645_v39  ;;  %v18857_v60 = vpop.f32.mrb[177].mxu1  ;;  %18927 = vmatprep.mubr.msk.bf16.mxu1 %vm20129_vm0, %v26609_v2  ;;  %19771 = vpow2.f32 %v8531_v51 }
 0xacd   : > { %v11971_v54 = vpop.f32.mrb[178].mxu1  ;;  %v19768_v60 = vpop.eup %19767  ;;  %27062 = vst [vmem:[#allocation123_spill] sm:$0xff] %v24674_v27 }
 0xace   : > { %v18858_v42 = vpop.f32.mrb[179].mxu1  ;;  %v27059_v54 = vld [vmem:[#allocation136_spill] sm:$0xff]  ;;  %v9207_v14 = vmul.f32 %v19768_v60, %v24328_v43  ;;  %v19770_v7 = vpop.eup %19769  ;;  %v12530_v60 = vsel %vm9400_vm3, %v24589_v4, 0 }
 0xacf   : > { %v24665_v42 = vadd.f32 %v21649_v11, %v27059_v54 }
 0xad0   : > { %v9335_v54 = vpack.c.bf16 %v9207_v14, %v9207_v14  ;;  %v27063_v14 = vld [vmem:[#allocation62_spill] sm:$0xff] }
 0xad1   : > { %27060 = vst [vmem:[#allocation120_spill] sm:$0xff] %v24665_v42  ;;  %v8161_v51 = vsel %vm7860_vm2, %v24665_v42, -inf  ;;  %v8323_v57 = vsub.f32 %v27063_v14, %v24253_v1 }
 0xad6   : > { %v24682_v43 = vpop.eup %19771 }
 0xad7   : > { %v24659_v15 = vpop.xlane.xlu1 %8840 }
 0xad9   : > { %1781 = vrot.lane.b32.xlu1 %v24589_v4, %s20132_s11 }
 0xadb   : > { %v24667_v35 = vpop.xlane.xlu1 %8846 }
 0xadc   : > { %8159 = vmax.xlane.f32.xlu0 %v8158_v56  ;;  %v8164_v56 = vsel %vm7860_vm2, %v24674_v27, -inf }
 0xadf   : > { %v1716_v19 = vpop.permute.xlu1 %1715 }
 0xae0   : > { %v12438_v34 = vsel %vm9400_vm3, %v1716_v19, 0  ;;  %8162 = vmax.xlane.f32.xlu0 %v8161_v51  ;;  %v8866_v19 = vsel %vm7860_vm2, %v24682_v43, 0.0 }
 0xae1   : > { %18920 = vmatpush3.bf16.msra.mxu0 %v12438_v34  ;;  %v9209_v34 = vmul.f32 %v19770_v7, %v24407_v13 }
 0xae2   : > { %18931 = vmatprep.subr.bf16.mxu0 %v26609_v2 }
 0xae3   : > { %v9337_v51 = vpack.c.bf16 %v9209_v34, %v9209_v34 }
 0xae4   : > { %18922 = vmatmul.mubr.msk.bf16.vlgmr.msra.gmra.mrb[160].mxu0 %vm7860_vm2, %v9335_v54  ;;  %8165 = vmax.xlane.f32.xlu0 %v8164_v56  ;;  %v8529_v54 = vmul.f32 1.442695, %v8323_v57  ;;  %v27064_v56 = vld [vmem:[#allocation135_spill] sm:$0xff] }
 0xae5   : > { %18932 = vmatpush3.bf16.msra.mxu0 %v12530_v60  ;;  %18933 = vmatprep.mubr.msk.bf16.mxu0 %vm20129_vm0, %v26609_v2  ;;  %v8325_v4 = vsub.f32 %v27064_v56, %v24317_v41 }
 0xae6   : > { %18943 = vmatprep.subr.bf16.mxu0 %v26609_v2  ;;  %19773 = vpow2.f32 %v8529_v54 }
 0xae7   : > { %v8533_v1 = vmul.f32 1.442695, %v8325_v4  ;;  %19775 = vrcp.f32 %v24521_v62 }
 0xae8   : > { %8867 = vadd.xlane.f32.xlu0 %v8866_v19 }
 0xae9   : > { %19777 = vpow2.f32 %v8533_v1 }
 0xaea   : > { %19779 = vrcp.f32 %v24601_v5 }
 0xaeb   : > { %v24697_v60 = vpop.f32.mrb[180].mxu1 }
 0xaec   : > { %27065 = vst [vmem:[#allocation93_spill] sm:$0xff] %v24697_v60  ;;  %v18869_v39 = vpop.f32.mrb[181].mxu1  ;;  %18934 = vmatmul.mubr.msk.bf16.vlgmr.msra.gmra.mrb[164].mxu0 %vm7860_vm2, %v9337_v51 }
 0xaed   : > { %v12063_v13 = vpop.f32.mrb[182].mxu1  ;;  %18945 = vmatprep.mubr.msk.bf16.mxu0 %vm20129_vm0, %v26609_v2  ;;  %v27066_v39 = vld [vmem:[#allocation39_spill] sm:$0xff] }
 0xaee   : > { %v18870_v7 = vpop.f32.mrb[183].mxu1  ;;  %v24711_v19 = vpack.c.bf16 %v27066_v39, %v27066_v39 }
 0xaf0   : > { %v24705_v14 = vpop.eup %19773 }
 0xaf1   : > { %v19776_v41 = vpop.eup %19775  ;;  %v8863_v51 = vsel %vm7860_vm2, %v24705_v14, 0.0 }
 0xaf2   : > { %v9208_v62 = vmul.f32 %v19776_v41, %v24346_v9 }
 0xaf3   : > { %v24715_v56 = vpop.eup %19777 }
 0xaf4   : > { %v8869_v13 = vsel %vm7860_vm2, %v24715_v56, 0.0  ;;  %v9336_v7 = vpack.c.bf16 %v9208_v62, %v9208_v62 }
 0xaf7   : > { %v24703_v34 = vpop.xlane.xlu0 %8144 }
 0xafb   : > { %v24707_v57 = vpop.xlane.xlu0 %8849 }
 0xafd   : > { %8864 = vadd.xlane.f32.xlu1 %v8863_v51  ;;  %v27068_v51 = vld [vmem:[#allocation108_spill] sm:$0xff] }
 0xafe   : > { %1655 = vrot.lane.b32.xlu0 %v24711_v19, %s20131_s10 }
 0xaff   : > { %v1780_v54 = vpop.permute.xlu0 %1779 }
 0xb00   : > { %v12484_v4 = vsel %vm9400_vm3, %v1780_v54, 0  ;;  %v8326_v54 = vsub.f32 %v27068_v51, %v24294_v22  ;;  %v27069_v22 = vld [vmem:[#allocation138_spill] sm:$0xff] }
 0xb01   : > { %18926 = vmatpush3.bf16.msra.mxu1 %v12484_v4  ;;  %8870 = vadd.xlane.f32.xlu1 %v8869_v13 }
 0xb02   : > { %18937 = vmatprep.subr.bf16.mxu1 %v26609_v2  ;;  %v8535_v27 = vmul.f32 1.442695, %v8326_v54 }
 0xb04   : > { %v24724_v1 = vpop.f32.mrb[144].mxu0  ;;  %18928 = vmatmul.mubr.msk.bf16.vlgmr.msra.gmra.mrb[200].mxu1 %vm7860_vm2, %v9336_v7  ;;  %19781 = vpow2.f32 %v8535_v27 }
 0xb05   : > { %27067 = vst [vmem:[#allocation67_spill] sm:$0xff] %v24724_v1  ;;  %v18875_v39 = vpop.f32.mrb[145].mxu0  ;;  %18939 = vmatprep.mubr.msk.bf16.mxu1 %vm20129_vm0, %v26609_v2  ;;  %19783 = vrcp.f32 %v24659_v15 }
 0xb06   : > { %v12109_v9 = vpop.f32.mrb[146].mxu0  ;;  %v24742_v39 = vadd.f32 %v26874_v25, %v27069_v22 }
 0xb07   : > { %v18876_v41 = vpop.f32.mrb[147].mxu0 }
 0xb08   : > { %27070 = vst [vmem:[#allocation35_spill] sm:$0xff] %v24742_v39 }
 0xb0c   : > { %v12198_v12 = vpop.f32.mrb[148].mxu0 }
 0xb0d   : > { %v16955_v4 = vpack.c.bf16 %v12198_v12, %v24621_v50  ;;  %v18887_v13 = vpop.f32.mrb[149].mxu0  ;;  %v19780_v12 = vpop.eup %19779 }
 0xb0e   : > { %v12201_v62 = vpop.f32.mrb[150].mxu0  ;;  %v24750_v41 = vpop.eup %19781  ;;  %v9210_v5 = vmul.f32 %v19780_v12, %v24413_v45  ;;  %v27071_v13 = vld [vmem:[#allocation31_spill] sm:$0xff] }
 0xb0f   : > { %15517 = vst.msk [vmem:[#allocation2 + $0x38] sm:$0xff] %vm1811_vm1, %v16955_v4  ;;  %v18888_v42 = vpop.f32.mrb[151].mxu0  ;;  %v8872_v51 = vsel %vm7860_vm2, %v24750_v41, 0.0  ;;  %v8327_v62 = vsub.f32 %v27071_v13, %v24324_v33  ;;  %v27074_v33 = vld [vmem:[#allocation140_spill] sm:$0xff] }
 0xb10   : > { %v24733_v59 = vpop.xlane.xlu1 %8147  ;;  %v8167_v42 = vsel %vm7860_vm2, %v24742_v39, -inf  ;;  %v9338_v4 = vpack.c.bf16 %v9210_v5, %v9210_v5  ;;  %v27073_v5 = vld [vmem:[#allocation65_spill] sm:$0xff] }
 0xb12   : > { %1719 = vrot.lane.b32.xlu1 %v24711_v19, %s20130_s19 }
 0xb14   : > { %v24738_v7 = vpop.xlane.xlu1 %8852 }
 0xb18   : > { %v24744_v50 = vpop.xlane.xlu1 %8153 }
 0xb1c   : > { %v24746_v9 = vpop.xlane.xlu1 %8855 }
 0xb1d   : > { %8168 = vmax.xlane.f32.xlu0 %v8167_v42  ;;  %v8537_v42 = vmul.f32 1.442695, %v8327_v62 }
 0xb1f   : > { %19785 = vpow2.f32 %v8537_v42 }
 0xb20   : > { %v1654_v27 = vpop.permute.xlu1 %1653  ;;  %19787 = vrcp.f32 %v24667_v35 }
 0xb21   : > { %v12576_v54 = vsel %vm9400_vm3, %v1654_v27, 0  ;;  %8873 = vadd.xlane.f32.xlu0 %v8872_v51  ;;  %v8328_v27 = vsub.f32 %v27073_v5, %v24398_v20 }
 0xb22   : > { %18938 = vmatpush3.bf16.msra.mxu1 %v12576_v54 }
 0xb23   : > { %18949 = vmatprep.subr.bf16.mxu1 %v26609_v2  ;;  %v8539_v51 = vmul.f32 1.442695, %v8328_v27 }
 0xb24   : > { %v24759_v22 = vpop.f32.mrb[184].mxu1 }
 0xb25   : > { %27072 = vst [vmem:[#allocation97_spill] sm:$0xff] %v24759_v22  ;;  %v18881_v39 = vpop.f32.mrb[185].mxu1  ;;  %18940 = vmatmul.mubr.msk.bf16.vlgmr.msra.gmra.mrb[204].mxu1 %vm7860_vm2, %v9338_v4  ;;  %v19784_v4 = vpop.eup %19783  ;;  %19789 = vpow2.f32 %v8539_v51 }
 0xb26   : > { %v12155_v45 = vpop.f32.mrb[186].mxu1  ;;  %18951 = vmatprep.mubr.msk.bf16.mxu1 %vm20129_vm0, %v26609_v2  ;;  %v24771_v39 = vadd.f32 %v21718_v30, %v27074_v33  ;;  %v9211_v20 = vmul.f32 %v19784_v4, %v24480_v32  ;;  %v12714_v32 = vsel %vm9400_vm3, %v24711_v19, 0  ;;  %19791 = vrcp.f32 %v24634_v49 }
 0xb27   : > { %v18882_v12 = vpop.f32.mrb[187].mxu1 }
 0xb28   : > { %27075 = vst [vmem:[#allocation122_spill] sm:$0xff] %v24771_v39  ;;  %v8170_v15 = vsel %vm7860_vm2, %v24771_v39, -inf  ;;  %v27076_v12 = vld [vmem:[#allocation142_spill] sm:$0xff]  ;;  %v9339_v27 = vpack.c.bf16 %v9211_v20, %v9211_v20 }
 0xb29   : > { %v24778_v62 = vpop.eup %19785  ;;  %v24785_v42 = vadd.f32 %v21756_v0, %v27076_v12 }
 0xb2a   : > { %v8875_v5 = vsel %vm7860_vm2, %v24778_v62, 0.0  ;;  %v19788_v51 = vpop.eup %19787 }
 0xb2b   : > { %27077 = vst [vmem:[#allocation70_spill] sm:$0xff] %v24785_v42  ;;  %v8176_v33 = vsel %vm7860_vm2, %v24785_v42, -inf }
 0xb2f   : > { %v24796_v4 = vpop.eup %19789 }
 0xb30   : > { %v24767_v54 = vpop.xlane.xlu0 %8150  ;;  %v8878_v20 = vsel %vm7860_vm2, %v24796_v4, 0.0 }
 0xb34   : > { %v24774_v13 = vpop.xlane.xlu0 %8156 }
 0xb36   : > { %8171 = vmax.xlane.f32.xlu1 %v8170_v15  ;;  %v9213_v15 = vmul.f32 %v19788_v51, %v24490_v48 }
 0xb37   : > { %1783 = vrot.lane.b32.xlu0 %v24711_v19, %s20132_s11 }
 0xb38   : > { %v1718_v45 = vpop.permute.xlu0 %1717 }
 0xb39   : > { %v12622_v35 = vsel %vm9400_vm3, %v1718_v45, 0  ;;  %v9341_v45 = vpack.c.bf16 %v9213_v15, %v9213_v15 }
 0xb3a   : > { %18944 = vmatpush3.bf16.msra.mxu0 %v12622_v35  ;;  %8876 = vadd.xlane.f32.xlu1 %v8875_v5 }
 0xb3b   : > { %18955 = vmatprep.subr.bf16.mxu0 %v26609_v2 }
 0xb3d   : > { %18946 = vmatmul.mubr.msk.bf16.vlgmr.msra.gmra.mrb[168].mxu0 %vm7860_vm2, %v9339_v27  ;;  %v27079_v27 = vld [vmem:[#allocation41_spill] sm:$0xff] }
 0xb3e   : > { %18956 = vmatpush3.bf16.msra.mxu0 %v12714_v32  ;;  %8177 = vmax.xlane.f32.xlu1 %v8176_v33  ;;  %v24814_v51 = vpack.c.bf16 %v27079_v27, %v27079_v27  ;;  %v27080_v32 = vld [vmem:[#allocation139_spill] sm:$0xff] }
 0xb3f   : > { %18957 = vmatprep.mubr.msk.bf16.mxu0 %vm20129_vm0, %v26609_v2  ;;  %18967 = vmatprep.subr.bf16.mxu0 %v26609_v2  ;;  %v24818_v33 = vadd.f32 %v21611_v61, %v27080_v32 }
 0xb41   : > { %27081 = vst [vmem:[#allocation124_spill] sm:$0xff] %v24818_v33  ;;  %v8173_v49 = vsel %vm7860_vm2, %v24818_v33, -inf }
 0xb42   : > { %8879 = vadd.xlane.f32.xlu1 %v8878_v20  ;;  %v19792_v20 = vpop.eup %19791 }
 0xb45   : > { %v24804_v19 = vpop.f32.mrb[188].mxu1  ;;  %18958 = vmatmul.mubr.msk.bf16.vlgmr.msra.gmra.mrb[172].mxu0 %vm7860_vm2, %v9341_v45  ;;  %v27082_v45 = vld [vmem:[#allocation141_spill] sm:$0xff] }
 0xb46   : > { %27078 = vst [vmem:[#allocation98_spill] sm:$0xff] %v24804_v19  ;;  %v18893_v35 = vpop.f32.mrb[189].mxu1  ;;  %18969 = vmatprep.mubr.msk.bf16.mxu0 %vm20129_vm0, %v26609_v2 }
 0xb47   : > { %v12247_v48 = vpop.f32.mrb[190].mxu1  ;;  %v24824_v35 = vadd.f32 %v21700_v26, %v27082_v45 }
 0xb48   : > { %v18894_v5 = vpop.f32.mrb[191].mxu1 }
 0xb49   : > { %27083 = vst [vmem:[#allocation126_spill] sm:$0xff] %v24824_v35  ;;  %v9212_v5 = vmul.f32 %v19792_v20, %v24457_v24  ;;  %v8179_v32 = vsel %vm7860_vm2, %v24824_v35, -inf }
 0xb4b   : > { %v9340_v60 = vpack.c.bf16 %v9212_v5, %v9212_v5  ;;  %v27086_v5 = vld [vmem:[#allocation17_spill] sm:$0xff] }
 0xb51   : > { %v8859_v15 = vpop.xlane.xlu1 %8858 }
 0xb53   : > { %1657 = vrot.lane.b32.xlu1 %v24814_v51, %s20131_s10 }
 0xb55   : > { %v24826_v48 = vpop.xlane.xlu1 %8861 }
 0xb56   : > { %8174 = vmax.xlane.f32.xlu0 %v8173_v49  ;;  %v27085_v49 = vld [vmem:[#allocation90_spill] sm:$0xff] }
 0xb59   : > { %v1782_v27 = vpop.permute.xlu1 %1781 }
 0xb5a   : > { %v12668_v12 = vsel %vm9400_vm3, %v1782_v27, 0  ;;  %8180 = vmax.xlane.f32.xlu0 %v8179_v32  ;;  %v8329_v27 = vsub.f32 %v27085_v49, %v24401_v10  ;;  %v8330_v32 = vsub.f32 %v27086_v5, %v24405_v46 }
 0xb5b   : > { %18950 = vmatpush3.bf16.msra.mxu1 %v12668_v12 }
 0xb5c   : > { %18961 = vmatprep.subr.bf16.mxu1 %v26609_v2  ;;  %v8541_v12 = vmul.f32 1.442695, %v8329_v27 }
 0xb5d   : > { %v24835_v45 = vpop.f32.mrb[152].mxu0 }
 0xb5e   : > { %27084 = vst [vmem:[#allocation37_spill] sm:$0xff] %v24835_v45  ;;  %v18899_v42 = vpop.f32.mrb[153].mxu0  ;;  %18952 = vmatmul.mubr.msk.bf16.vlgmr.msra.gmra.mrb[208].mxu1 %vm7860_vm2, %v9340_v60  ;;  %19793 = vpow2.f32 %v8541_v12 }
 0xb5f   : > { %v12293_v24 = vpop.f32.mrb[154].mxu0  ;;  %18963 = vmatprep.mubr.msk.bf16.mxu1 %vm20129_vm0, %v26609_v2  ;;  %v8543_v42 = vmul.f32 1.442695, %v8330_v32  ;;  %19795 = vrcp.f32 %v24707_v57 }
 0xb60   : > { %v18900_v20 = vpop.f32.mrb[155].mxu0 }
 0xb61   : > { %19797 = vpow2.f32 %v8543_v42 }
 0xb62   : > { %19799 = vrcp.f32 %v24738_v7 }
 0xb63   : > { %19801 = vrcp.f32 %v8859_v15 }
 0xb65   : > { %v24846_v35 = vpop.f32.mrb[156].mxu0 }
 0xb66   : > { %v18911_v33 = vpop.f32.mrb[157].mxu0 }
 0xb67   : > { %v12385_v39 = vpop.f32.mrb[158].mxu0 }
 0xb68   : > { %v18912_v19 = vpop.f32.mrb[159].mxu0  ;;  %v24857_v46 = vpop.eup %19793 }
 0xb69   : > { %v24848_v60 = vpop.xlane.xlu0 %8159  ;;  %v19796_v20 = vpop.eup %19795  ;;  %v8881_v39 = vsel %vm7860_vm2, %v24857_v46, 0.0 }
 0xb6a   : > { %v9214_v57 = vmul.f32 %v19796_v20, %v24525_v36 }
 0xb6b   : > { %v24863_v19 = vpop.eup %19797 }
 0xb6c   : > { %v8884_v12 = vsel %vm7860_vm2, %v24863_v19, 0.0  ;;  %v9342_v5 = vpack.c.bf16 %v9214_v57, %v9214_v57 }
 0xb6d   : > { %v24851_v24 = vpop.xlane.xlu0 %8162 }
 0xb70   : > { %1721 = vrot.lane.b32.xlu0 %v24814_v51, %s20130_s19 }
 0xb71   : > { %v24855_v10 = vpop.xlane.xlu0 %8165 }
 0xb75   : > { %v24859_v33 = vpop.xlane.xlu0 %8867 }
 0xb77   : > { %8882 = vadd.xlane.f32.xlu1 %v8881_v39 }
 0xb79   : > { %v1656_v49 = vpop.permute.xlu0 %1655 }
 0xb7a   : > { %v12760_v27 = vsel %vm9400_vm3, %v1656_v49, 0  ;;  %v27088_v49 = vld [vmem:[#allocation44_spill] sm:$0xff] }
 0xb7b   : > { %18962 = vmatpush3.bf16.msra.mxu1 %v12760_v27  ;;  %8885 = vadd.xlane.f32.xlu1 %v8884_v12  ;;  %v8332_v57 = vsub.f32 %v27088_v49, %v24508_v44  ;;  %v27089_v12 = vld [vmem:[#allocation144_spill] sm:$0xff] }
 0xb7c   : > { %18973 = vmatprep.subr.bf16.mxu1 %v26609_v2  ;;  %v24882_v1 = vadd.f32 %v26759_v63, %v27089_v12 }
 0xb7d   : > { %v8547_v27 = vmul.f32 1.442695, %v8332_v57  ;;  %v27093_v57 = vld [vmem:[#allocation146_spill] sm:$0xff] }
 0xb7e   : > { %v24870_v32 = vpop.f32.mrb[192].mxu1  ;;  %18964 = vmatmul.mubr.msk.bf16.vlgmr.msra.gmra.mrb[212].mxu1 %vm7860_vm2, %v9342_v5  ;;  %27090 = vst [vmem:[#allocation125_spill] sm:$0xff] %v24882_v1  ;;  %v8182_v44 = vsel %vm7860_vm2, %v24882_v1, -inf  ;;  %v24899_v15 = vadd.f32 %v26770_v29, %v27093_v57 }
 0xb7f   : > { %27087 = vst [vmem:[#allocation20_spill] sm:$0xff] %v24870_v32  ;;  %v18905_v39 = vpop.f32.mrb[193].mxu1  ;;  %18975 = vmatprep.mubr.msk.bf16.mxu1 %vm20129_vm0, %v26609_v2  ;;  %19803 = vpow2.f32 %v8547_v27 }
 0xb80   : > { %v12339_v36 = vpop.f32.mrb[194].mxu1  ;;  %v19800_v39 = vpop.eup %19799  ;;  %27094 = vst [vmem:[#allocation57_spill] sm:$0xff] %v24899_v15 }
 0xb81   : > { %v18906_v20 = vpop.f32.mrb[195].mxu1  ;;  %v27091_v36 = vld [vmem:[#allocation143_spill] sm:$0xff]  ;;  %v9215_v49 = vmul.f32 %v19800_v39, %v24553_v3  ;;  %v19802_v22 = vpop.eup %19801  ;;  %v12898_v39 = vsel %vm9400_vm3, %v24814_v51, 0 }
 0xb82   : > { %v24890_v20 = vadd.f32 %v26767_v31, %v27091_v36 }
 0xb83   : > { %v9343_v36 = vpack.c.bf16 %v9215_v49, %v9215_v49  ;;  %v27095_v49 = vld [vmem:[#allocation109_spill] sm:$0xff] }
 0xb84   : > { %27092 = vst [vmem:[#allocation100_spill] sm:$0xff] %v24890_v20  ;;  %v8185_v27 = vsel %vm7860_vm2, %v24890_v20, -inf  ;;  %v8331_v57 = vsub.f32 %v27095_v49, %v24478_v47 }
 0xb89   : > { %v24907_v3 = vpop.eup %19803 }
 0xb8a   : > { %v24884_v5 = vpop.xlane.xlu1 %8864 }
 0xb8c   : > { %1785 = vrot.lane.b32.xlu1 %v24814_v51, %s20132_s11 }
 0xb8e   : > { %v24892_v7 = vpop.xlane.xlu1 %8870 }
 0xb8f   : > { %8183 = vmax.xlane.f32.xlu0 %v8182_v44  ;;  %v8188_v44 = vsel %vm7860_vm2, %v24899_v15, -inf }
 0xb92   : > { %v1720_v12 = vpop.permute.xlu1 %1719 }
 0xb93   : > { %v12806_v42 = vsel %vm9400_vm3, %v1720_v12, 0  ;;  %8186 = vmax.xlane.f32.xlu0 %v8185_v27  ;;  %v8890_v12 = vsel %vm7860_vm2, %v24907_v3, 0.0 }
 0xb94   : > { %18968 = vmatpush3.bf16.msra.mxu0 %v12806_v42  ;;  %v9217_v42 = vmul.f32 %v19802_v22, %v24632_v52 }
 0xb95   : > { %18979 = vmatprep.subr.bf16.mxu0 %v26609_v2 }
 0xb96   : > { %v9345_v27 = vpack.c.bf16 %v9217_v42, %v9217_v42 }
 0xb97   : > { %18970 = vmatmul.mubr.msk.bf16.vlgmr.msra.gmra.mrb[176].mxu0 %vm7860_vm2, %v9343_v36  ;;  %8189 = vmax.xlane.f32.xlu0 %v8188_v44  ;;  %v8545_v36 = vmul.f32 1.442695, %v8331_v57  ;;  %v27096_v44 = vld [vmem:[#allocation112_spill] sm:$0xff] }
 0xb98   : > { %18980 = vmatpush3.bf16.msra.mxu0 %v12898_v39  ;;  %18981 = vmatprep.mubr.msk.bf16.mxu0 %vm20129_vm0, %v26609_v2  ;;  %v8333_v51 = vsub.f32 %v27096_v44, %v24542_v21 }
 0xb99   : > { %18991 = vmatprep.subr.bf16.mxu0 %v26609_v2  ;;  %19805 = vpow2.f32 %v8545_v36 }
 0xb9a   : > { %v8549_v47 = vmul.f32 1.442695, %v8333_v51  ;;  %19807 = vrcp.f32 %v24746_v9 }
 0xb9b   : > { %8891 = vadd.xlane.f32.xlu0 %v8890_v12 }
 0xb9c   : > { %19809 = vpow2.f32 %v8549_v47 }
 0xb9d   : > { %19811 = vrcp.f32 %v24826_v48 }
 0xb9e   : > { %v24922_v39 = vpop.f32.mrb[196].mxu1 }
 0xb9f   : > { %27097 = vst [vmem:[#allocation92_spill] sm:$0xff] %v24922_v39  ;;  %v18917_v32 = vpop.f32.mrb[197].mxu1  ;;  %18982 = vmatmul.mubr.msk.bf16.vlgmr.msra.gmra.mrb[180].mxu0 %vm7860_vm2, %v9345_v27 }
 0xba0   : > { %v12431_v52 = vpop.f32.mrb[198].mxu1  ;;  %18993 = vmatprep.mubr.msk.bf16.mxu0 %vm20129_vm0, %v26609_v2  ;;  %v27098_v32 = vld [vmem:[#allocation45_spill] sm:$0xff] }
 0xba1   : > { %v18918_v22 = vpop.f32.mrb[199].mxu1  ;;  %v24936_v12 = vpack.c.bf16 %v27098_v32, %v27098_v32 }
 0xba3   : > { %v24930_v49 = vpop.eup %19805 }
 0xba4   : > { %v19808_v21 = vpop.eup %19807  ;;  %v8887_v27 = vsel %vm7860_vm2, %v24930_v49, 0.0 }
 0xba5   : > { %v9216_v9 = vmul.f32 %v19808_v21, %v24571_v58 }
 0xba6   : > { %v24940_v44 = vpop.eup %19809 }
 0xba7   : > { %v8893_v52 = vsel %vm7860_vm2, %v24940_v44, 0.0  ;;  %v9344_v22 = vpack.c.bf16 %v9216_v9, %v9216_v9 }
 0xbaa   : > { %v24928_v42 = vpop.xlane.xlu0 %8168 }
 0xbae   : > { %v24932_v57 = vpop.xlane.xlu0 %8873 }
 0xbb0   : > { %8888 = vadd.xlane.f32.xlu1 %v8887_v27  ;;  %v27100_v27 = vld [vmem:[#allocation74_spill] sm:$0xff] }
 0xbb1   : > { %1659 = vrot.lane.b32.xlu0 %v24936_v12, %s20131_s10 }
 0xbb2   : > { %v1784_v36 = vpop.permute.xlu0 %1783 }
 0xbb3   : > { %v12852_v51 = vsel %vm9400_vm3, %v1784_v36, 0  ;;  %v8334_v36 = vsub.f32 %v27100_v27, %v24519_v6  ;;  %v27101_v6 = vld [vmem:[#allocation145_spill] sm:$0xff] }
 0xbb4   : > { %18974 = vmatpush3.bf16.msra.mxu1 %v12852_v51  ;;  %8894 = vadd.xlane.f32.xlu1 %v8893_v52 }
 0xbb5   : > { %18985 = vmatprep.subr.bf16.mxu1 %v26609_v2  ;;  %v8551_v15 = vmul.f32 1.442695, %v8334_v36 }
 0xbb7   : > { %v24949_v47 = vpop.f32.mrb[160].mxu0  ;;  %18976 = vmatmul.mubr.msk.bf16.vlgmr.msra.gmra.mrb[216].mxu1 %vm7860_vm2, %v9344_v22  ;;  %19813 = vpow2.f32 %v8551_v15 }
 0xbb8   : > { %27099 = vst [vmem:[#allocation128_spill] sm:$0xff] %v24949_v47  ;;  %v18923_v32 = vpop.f32.mrb[161].mxu0  ;;  %18987 = vmatprep.mubr.msk.bf16.mxu1 %vm20129_vm0, %v26609_v2  ;;  %19815 = vrcp.f32 %v24884_v5 }
 0xbb9   : > { %v12477_v58 = vpop.f32.mrb[162].mxu0  ;;  %v24967_v32 = vadd.f32 %v26971_v38, %v27101_v6 }
 0xbba   : > { %v18924_v21 = vpop.f32.mrb[163].mxu0 }
 0xbbb   : > { %27102 = vst [vmem:[#allocation127_spill] sm:$0xff] %v24967_v32 }
 0xbbf   : > { %v12566_v45 = vpop.f32.mrb[164].mxu0 }
 0xbc0   : > { %v16956_v51 = vpack.c.bf16 %v12566_v45, %v24846_v35  ;;  %v18935_v52 = vpop.f32.mrb[165].mxu0  ;;  %v19812_v45 = vpop.eup %19811 }
 0xbc1   : > { %v12569_v9 = vpop.f32.mrb[166].mxu0  ;;  %v24975_v21 = vpop.eup %19813  ;;  %v9218_v48 = vmul.f32 %v19812_v45, %v24638_v8  ;;  %v27103_v52 = vld [vmem:[#allocation115_spill] sm:$0xff] }
 0xbc2   : > { %15518 = vst.msk [vmem:[#allocation2 + $0x40] sm:$0xff] %vm1811_vm1, %v16956_v51  ;;  %v18936_v20 = vpop.f32.mrb[167].mxu0  ;;  %v8896_v27 = vsel %vm7860_vm2, %v24975_v21, 0.0  ;;  %v8335_v9 = vsub.f32 %v27103_v52, %v24549_v16  ;;  %v27106_v16 = vld [vmem:[#allocation149_spill] sm:$0xff] }
 0xbc3   : > { %v24958_v1 = vpop.xlane.xlu1 %8171  ;;  %v8191_v20 = vsel %vm7860_vm2, %v24967_v32, -inf  ;;  %v9346_v51 = vpack.c.bf16 %v9218_v48, %v9218_v48  ;;  %v27105_v48 = vld [vmem:[#allocation36_spill] sm:$0xff] }
 0xbc5   : > { %1723 = vrot.lane.b32.xlu1 %v24936_v12, %s20130_s19 }
 0xbc7   : > { %v24963_v22 = vpop.xlane.xlu1 %8876 }
 0xbcb   : > { %v24969_v35 = vpop.xlane.xlu1 %8177 }
 0xbcf   : > { %v24971_v58 = vpop.xlane.xlu1 %8879 }
 0xbd0   : > { %8192 = vmax.xlane.f32.xlu0 %v8191_v20  ;;  %v8553_v20 = vmul.f32 1.442695, %v8335_v9 }
 0xbd2   : > { %19817 = vpow2.f32 %v8553_v20 }
 0xbd3   : > { %v1658_v15 = vpop.permute.xlu1 %1657  ;;  %19819 = vrcp.f32 %v24892_v7 }
 0xbd4   : > { %v12944_v36 = vsel %vm9400_vm3, %v1658_v15, 0  ;;  %8897 = vadd.xlane.f32.xlu0 %v8896_v27  ;;  %v8336_v15 = vsub.f32 %v27105_v48, %v24623_v18 }
 0xbd5   : > { %18986 = vmatpush3.bf16.msra.mxu1 %v12944_v36 }
 0xbd6   : > { %18997 = vmatprep.subr.bf16.mxu1 %v26609_v2  ;;  %v8555_v27 = vmul.f32 1.442695, %v8336_v15 }
 0xbd7   : > { %v24984_v6 = vpop.f32.mrb[200].mxu1 }
 0xbd8   : > { %27104 = vst [vmem:[#allocation130_spill] sm:$0xff] %v24984_v6  ;;  %v18929_v32 = vpop.f32.mrb[201].mxu1  ;;  %18988 = vmatmul.mubr.msk.bf16.vlgmr.msra.gmra.mrb[220].mxu1 %vm7860_vm2, %v9346_v51  ;;  %v19816_v51 = vpop.eup %19815  ;;  %19821 = vpow2.f32 %v8555_v27 }
 0xbd9   : > { %v12523_v8 = vpop.f32.mrb[202].mxu1  ;;  %18999 = vmatprep.mubr.msk.bf16.mxu1 %vm20129_vm0, %v26609_v2  ;;  %v24996_v32 = vadd.f32 %v26842_v37, %v27106_v16  ;;  %v9219_v18 = vmul.f32 %v19816_v51, %v24705_v14  ;;  %v13082_v14 = vsel %vm9400_vm3, %v24936_v12, 0  ;;  %19823 = vrcp.f32 %v24859_v33 }
 0xbda   : > { %v18930_v45 = vpop.f32.mrb[203].mxu1 }
 0xbdb   : > { %v8194_v5 = vsel %vm7860_vm2, %v24996_v32, -inf  ;;  %v27107_v45 = vld [vmem:[#allocation150_spill] sm:$0xff]  ;;  %v9347_v15 = vpack.c.bf16 %v9219_v18, %v9219_v18 }
 0xbdc   : > { %v25003_v9 = vpop.eup %19817  ;;  %v25010_v20 = vadd.f32 %v26845_v55, %v27107_v45 }
 0xbdd   : > { %v8899_v48 = vsel %vm7860_vm2, %v25003_v9, 0.0  ;;  %v19820_v27 = vpop.eup %19819 }
 0xbde   : > { %27108 = vst [vmem:[#allocation32_spill] sm:$0xff] %v25010_v20  ;;  %v8200_v55 = vsel %vm7860_vm2, %v25010_v20, -inf  ;;  %v9221_v51 = vmul.f32 %v19820_v27, %v24715_v56  ;;  %v27111_v27 = vld [vmem:[#allocation147_spill] sm:$0xff] }
 0xbe0   : > { %v9349_v18 = vpack.c.bf16 %v9221_v51, %v9221_v51 }
 0xbe2   : > { %v25021_v16 = vpop.eup %19821 }
 0xbe3   : > { %v24992_v36 = vpop.xlane.xlu0 %8174  ;;  %v19824_v51 = vpop.eup %19823 }
 0xbe7   : > { %v24999_v52 = vpop.xlane.xlu0 %8180 }
 0xbe9   : > { %8195 = vmax.xlane.f32.xlu1 %v8194_v5  ;;  %v8902_v5 = vsel %vm7860_vm2, %v25021_v16, 0.0 }
 0xbea   : > { %1787 = vrot.lane.b32.xlu0 %v24936_v12, %s20132_s11 }
 0xbeb   : > { %v1722_v8 = vpop.permute.xlu0 %1721 }
 0xbec   : > { %v12990_v7 = vsel %vm9400_vm3, %v1722_v8, 0 }
 0xbed   : > { %18992 = vmatpush3.bf16.msra.mxu0 %v12990_v7  ;;  %8900 = vadd.xlane.f32.xlu1 %v8899_v48  ;;  %v27110_v48 = vld [vmem:[#allocation47_spill] sm:$0xff] }
 0xbee   : > { %19003 = vmatprep.subr.bf16.mxu0 %v26609_v2 }
 0xbf0   : > { %18994 = vmatmul.mubr.msk.bf16.vlgmr.msra.gmra.mrb[184].mxu0 %vm7860_vm2, %v9347_v15  ;;  %v25039_v15 = vpack.c.bf16 %v27110_v48, %v27110_v48 }
 0xbf1   : > { %19004 = vmatpush3.bf16.msra.mxu0 %v13082_v14  ;;  %8201 = vmax.xlane.f32.xlu1 %v8200_v55  ;;  %v25043_v14 = vadd.f32 %v26850_v17, %v27111_v27 }
 0xbf2   : > { %19005 = vmatprep.mubr.msk.bf16.mxu0 %vm20129_vm0, %v26609_v2  ;;  %19015 = vmatprep.subr.bf16.mxu0 %v26609_v2 }
 0xbf3   : > { %v8197_v33 = vsel %vm7860_vm2, %v25043_v14, -inf }
 0xbf5   : > { %8903 = vadd.xlane.f32.xlu1 %v8902_v5  ;;  %v27112_v5 = vld [vmem:[#allocation151_spill] sm:$0xff] }
 0xbf8   : > { %v25029_v12 = vpop.f32.mrb[204].mxu1  ;;  %19006 = vmatmul.mubr.msk.bf16.vlgmr.msra.gmra.mrb[188].mxu0 %vm7860_vm2, %v9349_v18  ;;  %v27113_v18 = vld [vmem:[#allocation76_spill] sm:$0xff] }
 0xbf9   : > { %27109 = vst [vmem:[#allocation12_spill] sm:$0xff] %v25029_v12  ;;  %v18941_v45 = vpop.f32.mrb[205].mxu1  ;;  %19017 = vmatprep.mubr.msk.bf16.mxu0 %vm20129_vm0, %v26609_v2 }
 0xbfa   : > { %v12615_v56 = vpop.f32.mrb[206].mxu1  ;;  %v25049_v45 = vadd.f32 %v27113_v18, %v27112_v5 }
 0xbfb   : > { %v18942_v7 = vpop.f32.mrb[207].mxu1 }
 0xbfc   : > { %27114 = vst [vmem:[#allocation40_spill] sm:$0xff] %v25049_v45  ;;  %v9220_v7 = vmul.f32 %v19824_v51, %v24682_v43  ;;  %v8203_v17 = vsel %vm7860_vm2, %v25049_v45, -inf }
 0xbfe   : > { %v9348_v8 = vpack.c.bf16 %v9220_v7, %v9220_v7  ;;  %v27117_v7 = vld [vmem:[#allocation114_spill] sm:$0xff] }
 0xc04   : > { %v8883_v55 = vpop.xlane.xlu1 %8882 }
 0xc06   : > { %1661 = vrot.lane.b32.xlu1 %v25039_v15, %s20131_s10 }
 0xc08   : > { %v25051_v56 = vpop.xlane.xlu1 %8885 }
 0xc09   : > { %8198 = vmax.xlane.f32.xlu0 %v8197_v33  ;;  %v27116_v33 = vld [vmem:[#allocation80_spill] sm:$0xff] }
 0xc0c   : > { %v1786_v48 = vpop.permute.xlu1 %1785 }
 0xc0d   : > { %v13036_v27 = vsel %vm9400_vm3, %v1786_v48, 0  ;;  %8204 = vmax.xlane.f32.xlu0 %v8203_v17  ;;  %v8337_v48 = vsub.f32 %v27116_v33, %v24626_v28 }
 0xc0e   : > { %18998 = vmatpush3.bf16.msra.mxu1 %v13036_v27  ;;  %v8338_v27 = vsub.f32 %v27117_v7, %v24630_v53 }
 0xc0f   : > { %19009 = vmatprep.subr.bf16.mxu1 %v26609_v2  ;;  %v8557_v17 = vmul.f32 1.442695, %v8337_v48 }
 0xc10   : > { %v25060_v5 = vpop.f32.mrb[168].mxu0 }
 0xc11   : > { %27115 = vst [vmem:[#allocation18_spill] sm:$0xff] %v25060_v5  ;;  %v18947_v39 = vpop.f32.mrb[169].mxu0  ;;  %19000 = vmatmul.mubr.msk.bf16.vlgmr.msra.gmra.mrb[224].mxu1 %vm7860_vm2, %v9348_v8  ;;  %19825 = vpow2.f32 %v8557_v17 }
 0xc12   : > { %v12661_v43 = vpop.f32.mrb[170].mxu0  ;;  %19011 = vmatprep.mubr.msk.bf16.mxu1 %vm20129_vm0, %v26609_v2  ;;  %v8559_v39 = vmul.f32 1.442695, %v8338_v27  ;;  %19827 = vrcp.f32 %v24932_v57 }
 0xc13   : > { %v18948_v51 = vpop.f32.mrb[171].mxu0 }
 0xc14   : > { %19829 = vpow2.f32 %v8559_v39 }
 0xc15   : > { %19831 = vrcp.f32 %v24963_v22 }
 0xc16   : > { %19833 = vrcp.f32 %v8883_v55 }
 0xc18   : > { %v25071_v12 = vpop.f32.mrb[172].mxu0 }
 0xc19   : > { %v18959_v45 = vpop.f32.mrb[173].mxu0 }
 0xc1a   : > { %v12753_v20 = vpop.f32.mrb[174].mxu0 }
 0xc1b   : > { %v18960_v18 = vpop.f32.mrb[175].mxu0  ;;  %v25082_v53 = vpop.eup %19825 }
 0xc1c   : > { %v25073_v8 = vpop.xlane.xlu0 %8183  ;;  %v19828_v51 = vpop.eup %19827  ;;  %v8905_v20 = vsel %vm7860_vm2, %v25082_v53, 0.0 }
 0xc1d   : > { %v9222_v57 = vmul.f32 %v19828_v51, %v24750_v41 }
 0xc1e   : > { %v25088_v18 = vpop.eup %19829 }
 0xc1f   : > { %v8908_v17 = vsel %vm7860_vm2, %v25088_v18, 0.0  ;;  %v9350_v7 = vpack.c.bf16 %v9222_v57, %v9222_v57 }
 0xc20   : > { %v25076_v43 = vpop.xlane.xlu0 %8186 }
 0xc23   : > { %1725 = vrot.lane.b32.xlu0 %v25039_v15, %s20130_s19 }
 0xc24   : > { %v25080_v28 = vpop.xlane.xlu0 %8189 }
 0xc28   : > { %v25084_v45 = vpop.xlane.xlu0 %8891 }
 0xc2a   : > { %8906 = vadd.xlane.f32.xlu1 %v8905_v20 }
 0xc2c   : > { %v1660_v33 = vpop.permute.xlu0 %1659 }
 0xc2d   : > { %v13128_v48 = vsel %vm9400_vm3, %v1660_v33, 0  ;;  %v27119_v33 = vld [vmem:[#allocation119_spill] sm:$0xff] }
 0xc2e   : > { %19010 = vmatpush3.bf16.msra.mxu1 %v13128_v48  ;;  %8909 = vadd.xlane.f32.xlu1 %v8908_v17  ;;  %v8340_v57 = vsub.f32 %v27119_v33, %v24733_v59  ;;  %v27120_v17 = vld [vmem:[#allocation152_spill] sm:$0xff]  ;;  %v27122_v33 = vld [vmem:[#allocation77_spill] sm:$0xff] }
 0xc2f   : > { %19021 = vmatprep.subr.bf16.mxu1 %v26609_v2  ;;  %v25107_v47 = vadd.f32 %v21629_v23, %v27120_v17  ;;  %v25124_v55 = vadd.f32 %v21705_v40, %v27122_v33  ;;  %v13266_v40 = vsel %vm9400_vm3, %v25039_v15, 0 }
 0xc30   : > { %v8563_v48 = vmul.f32 1.442695, %v8340_v57 }
 0xc31   : > { %v25095_v27 = vpop.f32.mrb[208].mxu1  ;;  %19012 = vmatmul.mubr.msk.bf16.vlgmr.msra.gmra.mrb[228].mxu1 %vm7860_vm2, %v9350_v7  ;;  %v8206_v59 = vsel %vm7860_vm2, %v25107_v47, -inf }
 0xc32   : > { %27118 = vst [vmem:[#allocation129_spill] sm:$0xff] %v25095_v27  ;;  %v18953_v20 = vpop.f32.mrb[209].mxu1  ;;  %19023 = vmatprep.mubr.msk.bf16.mxu1 %vm20129_vm0, %v26609_v2  ;;  %19835 = vpow2.f32 %v8563_v48 }
 0xc33   : > { %v12707_v41 = vpop.f32.mrb[210].mxu1  ;;  %v19832_v20 = vpop.eup %19831 }
 0xc34   : > { %v18954_v51 = vpop.f32.mrb[211].mxu1  ;;  %v27121_v41 = vld [vmem:[#allocation153_spill] sm:$0xff]  ;;  %v9223_v23 = vmul.f32 %v19832_v20, %v24778_v62 }
 0xc35   : > { %v25115_v51 = vadd.f32 %v21649_v11, %v27121_v41  ;;  %v19834_v41 = vpop.eup %19833 }
 0xc36   : > { %v9351_v11 = vpack.c.bf16 %v9223_v23, %v9223_v23  ;;  %v9225_v20 = vmul.f32 %v19834_v41, %v24857_v46  ;;  %v27123_v23 = vld [vmem:[#allocation21_spill] sm:$0xff] }
 0xc37   : > { %v8209_v48 = vsel %vm7860_vm2, %v25115_v51, -inf  ;;  %v8339_v33 = vsub.f32 %v27123_v23, %v24703_v34 }
 0xc3c   : > { %v25132_v62 = vpop.eup %19835 }
 0xc3d   : > { %v25109_v7 = vpop.xlane.xlu1 %8888 }
 0xc3f   : > { %1789 = vrot.lane.b32.xlu1 %v25039_v15, %s20132_s11 }
 0xc41   : > { %v25117_v22 = vpop.xlane.xlu1 %8894 }
 0xc42   : > { %8207 = vmax.xlane.f32.xlu0 %v8206_v59  ;;  %v8212_v59 = vsel %vm7860_vm2, %v25124_v55, -inf }
 0xc45   : > { %v1724_v57 = vpop.permute.xlu1 %1723 }
 0xc46   : > { %v13174_v17 = vsel %vm9400_vm3, %v1724_v57, 0  ;;  %8210 = vmax.xlane.f32.xlu0 %v8209_v48  ;;  %v8914_v57 = vsel %vm7860_vm2, %v25132_v62, 0.0  ;;  %v9353_v48 = vpack.c.bf16 %v9225_v20, %v9225_v20 }
 0xc47   : > { %19016 = vmatpush3.bf16.msra.mxu0 %v13174_v17  ;;  %v8561_v17 = vmul.f32 1.442695, %v8339_v33 }
 0xc48   : > { %19027 = vmatprep.subr.bf16.mxu0 %v26609_v2 }
 0xc49   : > { %19837 = vpow2.f32 %v8561_v17 }
 0xc4a   : > { %19018 = vmatmul.mubr.msk.bf16.vlgmr.msra.gmra.mrb[192].mxu0 %vm7860_vm2, %v9351_v11  ;;  %8213 = vmax.xlane.f32.xlu0 %v8212_v59  ;;  %v27124_v11 = vld [vmem:[#allocation118_spill] sm:$0xff]  ;;  %19839 = vrcp.f32 %v24971_v58 }
 0xc4b   : > { %19028 = vmatpush3.bf16.msra.mxu0 %v13266_v40  ;;  %19029 = vmatprep.mubr.msk.bf16.mxu0 %vm20129_vm0, %v26609_v2  ;;  %v8341_v15 = vsub.f32 %v27124_v11, %v24767_v54 }
 0xc4c   : > { %19039 = vmatprep.subr.bf16.mxu0 %v26609_v2 }
 0xc4d   : > { %v8565_v34 = vmul.f32 1.442695, %v8341_v15 }
 0xc4e   : > { %8915 = vadd.xlane.f32.xlu0 %v8914_v57  ;;  %v27126_v57 = vld [vmem:[#allocation43_spill] sm:$0xff] }
 0xc4f   : > { %19841 = vpow2.f32 %v8565_v34 }
 0xc50   : > { %19843 = vrcp.f32 %v25051_v56 }
 0xc51   : > { %v25147_v59 = vpop.f32.mrb[212].mxu1 }
 0xc52   : > { %27125 = vst [vmem:[#allocation102_spill] sm:$0xff] %v25147_v59  ;;  %v18965_v40 = vpop.f32.mrb[213].mxu1  ;;  %19030 = vmatmul.mubr.msk.bf16.vlgmr.msra.gmra.mrb[196].mxu0 %vm7860_vm2, %v9353_v48  ;;  %v25161_v48 = vpack.c.bf16 %v27126_v57, %v27126_v57 }
 0xc53   : > { %v12799_v46 = vpop.f32.mrb[214].mxu1  ;;  %19041 = vmatprep.mubr.msk.bf16.mxu0 %vm20129_vm0, %v26609_v2  ;;  %v25155_v23 = vpop.eup %19837 }
 0xc54   : > { %v18966_v41 = vpop.f32.mrb[215].mxu1  ;;  %v19840_v54 = vpop.eup %19839  ;;  %v8911_v11 = vsel %vm7860_vm2, %v25155_v23, 0.0 }
 0xc55   : > { %v9224_v58 = vmul.f32 %v19840_v54, %v24796_v4 }
 0xc57   : > { %v9352_v41 = vpack.c.bf16 %v9224_v58, %v9224_v58 }
 0xc59   : > { %v25165_v40 = vpop.eup %19841 }
 0xc5a   : > { %v8917_v46 = vsel %vm7860_vm2, %v25165_v40, 0.0 }
 0xc5d   : > { %v25153_v20 = vpop.xlane.xlu0 %8192 }
 0xc61   : > { %v25157_v33 = vpop.xlane.xlu0 %8897 }
 0xc63   : > { %8912 = vadd.xlane.f32.xlu1 %v8911_v11  ;;  %v27128_v11 = vld [vmem:[#allocation38_spill] sm:$0xff] }
 0xc64   : > { %1663 = vrot.lane.b32.xlu0 %v25161_v48, %s20131_s10 }
 0xc65   : > { %v1788_v17 = vpop.permute.xlu0 %1787 }
 0xc66   : > { %v13220_v15 = vsel %vm9400_vm3, %v1788_v17, 0  ;;  %v8342_v17 = vsub.f32 %v27128_v11, %v24744_v50  ;;  %v27129_v50 = vld [vmem:[#allocation22_spill] sm:$0xff] }
 0xc67   : > { %19022 = vmatpush3.bf16.msra.mxu1 %v13220_v15  ;;  %8918 = vadd.xlane.f32.xlu1 %v8917_v46 }
 0xc68   : > { %19033 = vmatprep.subr.bf16.mxu1 %v26609_v2  ;;  %v8567_v6 = vmul.f32 1.442695, %v8342_v17 }
 0xc6a   : > { %v25174_v34 = vpop.f32.mrb[176].mxu0  ;;  %19024 = vmatmul.mubr.msk.bf16.vlgmr.msra.gmra.mrb[232].mxu1 %vm7860_vm2, %v9352_v41  ;;  %19845 = vpow2.f32 %v8567_v6 }
 0xc6b   : > { %27127 = vst [vmem:[#allocation101_spill] sm:$0xff] %v25174_v34  ;;  %v18971_v57 = vpop.f32.mrb[177].mxu0  ;;  %19035 = vmatprep.mubr.msk.bf16.mxu1 %vm20129_vm0, %v26609_v2  ;;  %19847 = vrcp.f32 %v25109_v7 }
 0xc6c   : > { %v12845_v4 = vpop.f32.mrb[178].mxu0  ;;  %v25192_v57 = vadd.f32 %v26874_v25, %v27129_v50 }
 0xc6d   : > { %v18972_v54 = vpop.f32.mrb[179].mxu0 }
 0xc72   : > { %v12934_v39 = vpop.f32.mrb[180].mxu0 }
 0xc73   : > { %v16957_v15 = vpack.c.bf16 %v12934_v39, %v25071_v12  ;;  %v18983_v46 = vpop.f32.mrb[181].mxu0  ;;  %v19844_v39 = vpop.eup %19843 }
 0xc74   : > { %v12937_v58 = vpop.f32.mrb[182].mxu0  ;;  %v25200_v54 = vpop.eup %19845  ;;  %v9226_v56 = vmul.f32 %v19844_v39, %v24863_v19 }
 0xc75   : > { %15519 = vst.msk [vmem:[#allocation2 + $0x48] sm:$0xff] %vm1811_vm1, %v16957_v15  ;;  %v18984_v27 = vpop.f32.mrb[183].mxu0  ;;  %v8920_v11 = vsel %vm7860_vm2, %v25200_v54, 0.0  ;;  %v27130_v15 = vld [vmem:[#allocation27_spill] sm:$0xff] }
 0xc76   : > { %v25183_v5 = vpop.xlane.xlu1 %8195  ;;  %v8215_v27 = vsel %vm7860_vm2, %v25192_v57, -inf  ;;  %v9354_v17 = vpack.c.bf16 %v9226_v56, %v9226_v56  ;;  %v8343_v46 = vsub.f32 %v27130_v15, %v24774_v13  ;;  %v27132_v56 = vld [vmem:[#allocation121_spill] sm:$0xff]  ;;  %v27133_v13 = vld [vmem:[#allocation82_spill] sm:$0xff] }
 0xc77   : > { %v25221_v15 = vadd.f32 %v21718_v30, %v27133_v13  ;;  %v27134_v30 = vld [vmem:[#allocation85_spill] sm:$0xff] }
 0xc78   : > { %1727 = vrot.lane.b32.xlu1 %v25161_v48, %s20130_s19 }
 0xc79   : > { %v8218_v7 = vsel %vm7860_vm2, %v25221_v15, -inf }
 0xc7a   : > { %v25188_v41 = vpop.xlane.xlu1 %8900 }
 0xc7e   : > { %v25194_v12 = vpop.xlane.xlu1 %8201 }
 0xc82   : > { %v25196_v4 = vpop.xlane.xlu1 %8903 }
 0xc83   : > { %8216 = vmax.xlane.f32.xlu0 %v8215_v27  ;;  %v8569_v27 = vmul.f32 1.442695, %v8343_v46 }
 0xc85   : > { %19849 = vpow2.f32 %v8569_v27 }
 0xc86   : > { %v1662_v6 = vpop.permute.xlu1 %1661  ;;  %19851 = vrcp.f32 %v25117_v22 }
 0xc87   : > { %v13312_v25 = vsel %vm9400_vm3, %v1662_v6, 0  ;;  %8921 = vadd.xlane.f32.xlu0 %v8920_v11  ;;  %v8344_v6 = vsub.f32 %v27132_v56, %v24848_v60 }
 0xc88   : > { %19034 = vmatpush3.bf16.msra.mxu1 %v13312_v25 }
 0xc89   : > { %19045 = vmatprep.subr.bf16.mxu1 %v26609_v2  ;;  %v8571_v11 = vmul.f32 1.442695, %v8344_v6 }
 0xc8a   : > { %v25209_v58 = vpop.f32.mrb[216].mxu1 }
 0xc8b   : > { %27131 = vst [vmem:[#allocation132_spill] sm:$0xff] %v25209_v58  ;;  %v18977_v50 = vpop.f32.mrb[217].mxu1  ;;  %19036 = vmatmul.mubr.msk.bf16.vlgmr.msra.gmra.mrb[236].mxu1 %vm7860_vm2, %v9354_v17  ;;  %v19848_v17 = vpop.eup %19847  ;;  %19853 = vpow2.f32 %v8571_v11 }
 0xc8c   : > { %v12891_v19 = vpop.f32.mrb[218].mxu1  ;;  %19047 = vmatprep.mubr.msk.bf16.mxu1 %vm20129_vm0, %v26609_v2  ;;  %v9227_v60 = vmul.f32 %v19848_v17, %v24930_v49  ;;  %v13450_v49 = vsel %vm9400_vm3, %v25161_v48, 0  ;;  %19855 = vrcp.f32 %v25084_v45 }
 0xc8d   : > { %v18978_v39 = vpop.f32.mrb[219].mxu1 }
 0xc8e   : > { %v25235_v39 = vadd.f32 %v21756_v0, %v27134_v30  ;;  %v9355_v56 = vpack.c.bf16 %v9227_v60, %v9227_v60 }
 0xc8f   : > { %v25228_v46 = vpop.eup %19849 }
 0xc90   : > { %v8923_v27 = vsel %vm7860_vm2, %v25228_v46, 0.0  ;;  %v19852_v6 = vpop.eup %19851  ;;  %v8224_v0 = vsel %vm7860_vm2, %v25235_v39, -inf }
 0xc91   : > { %v9229_v13 = vmul.f32 %v19852_v6, %v24940_v44 }
 0xc95   : > { %v25246_v11 = vpop.eup %19853 }
 0xc96   : > { %v25217_v25 = vpop.xlane.xlu0 %8198  ;;  %v8926_v17 = vsel %vm7860_vm2, %v25246_v11, 0.0 }
 0xc9a   : > { %v25224_v50 = vpop.xlane.xlu0 %8204 }
 0xc9c   : > { %8219 = vmax.xlane.f32.xlu1 %v8218_v7  ;;  %v9357_v7 = vpack.c.bf16 %v9229_v13, %v9229_v13  ;;  %v27138_v13 = vld [vmem:[#allocation96_spill] sm:$0xff] }
 0xc9d   : > { %1791 = vrot.lane.b32.xlu0 %v25161_v48, %s20132_s11 }
 0xc9e   : > { %v1726_v19 = vpop.permute.xlu0 %1725 }
 0xc9f   : > { %v13358_v22 = vsel %vm9400_vm3, %v1726_v19, 0 }
 0xca0   : > { %19040 = vmatpush3.bf16.msra.mxu0 %v13358_v22  ;;  %8924 = vadd.xlane.f32.xlu1 %v8923_v27  ;;  %v27136_v22 = vld [vmem:[#allocation46_spill] sm:$0xff] }
 0xca1   : > { %19051 = vmatprep.subr.bf16.mxu0 %v26609_v2  ;;  %v25264_v27 = vpack.c.bf16 %v27136_v22, %v27136_v22 }
 0xca3   : > { %19042 = vmatmul.mubr.msk.bf16.vlgmr.msra.gmra.mrb[200].mxu0 %vm7860_vm2, %v9355_v56  ;;  %v27137_v56 = vld [vmem:[#allocation94_spill] sm:$0xff] }
 0xca4   : > { %19052 = vmatpush3.bf16.msra.mxu0 %v13450_v49  ;;  %8225 = vmax.xlane.f32.xlu1 %v8224_v0  ;;  %v25268_v6 = vadd.f32 %v21611_v61, %v27137_v56  ;;  %v19856_v0 = vpop.eup %19855 }
 0xca5   : > { %19053 = vmatprep.mubr.msk.bf16.mxu0 %vm20129_vm0, %v26609_v2  ;;  %19063 = vmatprep.subr.bf16.mxu0 %v26609_v2 }
 0xca6   : > { %v8221_v45 = vsel %vm7860_vm2, %v25268_v6, -inf }
 0xca8   : > { %8927 = vadd.xlane.f32.xlu1 %v8926_v17  ;;  %v25274_v17 = vadd.f32 %v21700_v26, %v27138_v13 }
 0xcaa   : > { %v8227_v61 = vsel %vm7860_vm2, %v25274_v17, -inf }
 0xcab   : > { %v25254_v48 = vpop.f32.mrb[220].mxu1  ;;  %19054 = vmatmul.mubr.msk.bf16.vlgmr.msra.gmra.mrb[204].mxu0 %vm7860_vm2, %v9357_v7 }
 0xcac   : > { %27135 = vst [vmem:[#allocation134_spill] sm:$0xff] %v25254_v48  ;;  %v18989_v19 = vpop.f32.mrb[221].mxu1  ;;  %19065 = vmatprep.mubr.msk.bf16.mxu0 %vm20129_vm0, %v26609_v2 }
 0xcad   : > { %v12983_v44 = vpop.f32.mrb[222].mxu1  ;;  %v9228_v19 = vmul.f32 %v19856_v0, %v24907_v3 }
 0xcae   : > { %v18990_v30 = vpop.f32.mrb[223].mxu1 }
 0xcaf   : > { %v9356_v22 = vpack.c.bf16 %v9228_v19, %v9228_v19  ;;  %v27141_v19 = vld [vmem:[#allocation123_spill] sm:$0xff] }
 0xcb7   : > { %v8907_v49 = vpop.xlane.xlu1 %8906 }
 0xcb9   : > { %1665 = vrot.lane.b32.xlu1 %v25264_v27, %s20131_s10 }
 0xcbb   : > { %v25276_v7 = vpop.xlane.xlu1 %8909 }
 0xcbc   : > { %8222 = vmax.xlane.f32.xlu0 %v8221_v45  ;;  %v27140_v45 = vld [vmem:[#allocation120_spill] sm:$0xff] }
 0xcbf   : > { %v1790_v44 = vpop.permute.xlu1 %1789 }
 0xcc0   : > { %v13404_v30 = vsel %vm9400_vm3, %v1790_v44, 0  ;;  %8228 = vmax.xlane.f32.xlu0 %v8227_v61  ;;  %v8345_v44 = vsub.f32 %v27140_v45, %v24851_v24 }
 0xcc1   : > { %19046 = vmatpush3.bf16.msra.mxu1 %v13404_v30  ;;  %v8346_v30 = vsub.f32 %v27141_v19, %v24855_v10 }
 0xcc2   : > { %19057 = vmatprep.subr.bf16.mxu1 %v26609_v2  ;;  %v8573_v61 = vmul.f32 1.442695, %v8345_v44 }
 0xcc3   : > { %v25285_v26 = vpop.f32.mrb[184].mxu0 }
 0xcc4   : > { %27139 = vst [vmem:[#allocation42_spill] sm:$0xff] %v25285_v26  ;;  %v18995_v13 = vpop.f32.mrb[185].mxu0  ;;  %19048 = vmatmul.mubr.msk.bf16.vlgmr.msra.gmra.mrb[240].mxu1 %vm7860_vm2, %v9356_v22  ;;  %19857 = vpow2.f32 %v8573_v61 }
 0xcc5   : > { %v13029_v3 = vpop.f32.mrb[186].mxu0  ;;  %19059 = vmatprep.mubr.msk.bf16.mxu1 %vm20129_vm0, %v26609_v2  ;;  %v8575_v13 = vmul.f32 1.442695, %v8346_v30  ;;  %19859 = vrcp.f32 %v25157_v33 }
 0xcc6   : > { %v18996_v0 = vpop.f32.mrb[187].mxu0 }
 0xcc7   : > { %19861 = vpow2.f32 %v8575_v13 }
 0xcc8   : > { %19863 = vrcp.f32 %v25188_v41 }
 0xcc9   : > { %19865 = vrcp.f32 %v8907_v49 }
 0xccb   : > { %v25296_v60 = vpop.f32.mrb[188].mxu0 }
 0xccc   : > { %v19007_v59 = vpop.f32.mrb[189].mxu0 }
 0xccd   : > { %v13121_v48 = vpop.f32.mrb[190].mxu0 }
 0xcce   : > { %v19008_v56 = vpop.f32.mrb[191].mxu0  ;;  %v25307_v10 = vpop.eup %19857 }
 0xccf   : > { %v25298_v22 = vpop.xlane.xlu0 %8207  ;;  %v19860_v0 = vpop.eup %19859  ;;  %v8929_v48 = vsel %vm7860_vm2, %v25307_v10, 0.0 }
 0xcd0   : > { %v9230_v33 = vmul.f32 %v19860_v0, %v24975_v21 }
 0xcd1   : > { %v25313_v56 = vpop.eup %19861 }
 0xcd2   : > { %v8932_v61 = vsel %vm7860_vm2, %v25313_v56, 0.0  ;;  %v9358_v19 = vpack.c.bf16 %v9230_v33, %v9230_v33 }
 0xcd3   : > { %v25301_v3 = vpop.xlane.xlu0 %8210 }
 0xcd6   : > { %1729 = vrot.lane.b32.xlu0 %v25264_v27, %s20130_s19 }
 0xcd7   : > { %v25305_v24 = vpop.xlane.xlu0 %8213 }
 0xcdb   : > { %v25309_v59 = vpop.xlane.xlu0 %8915 }
 0xcdd   : > { %8930 = vadd.xlane.f32.xlu1 %v8929_v48 }
 0xcdf   : > { %v1664_v45 = vpop.permute.xlu0 %1663 }
 0xce0   : > { %v13496_v44 = vsel %vm9400_vm3, %v1664_v45, 0  ;;  %v27143_v45 = vld [vmem:[#allocation122_spill] sm:$0xff] }
 0xce1   : > { %19058 = vmatpush3.bf16.msra.mxu1 %v13496_v44  ;;  %8933 = vadd.xlane.f32.xlu1 %v8932_v61  ;;  %v8348_v33 = vsub.f32 %v27143_v45, %v24958_v1  ;;  %v27144_v61 = vld [vmem:[#allocation91_spill] sm:$0xff]  ;;  %v27146_v45 = vld [vmem:[#allocation60_spill] sm:$0xff] }
 0xce2   : > { %19069 = vmatprep.subr.bf16.mxu1 %v26609_v2  ;;  %v25332_v34 = vadd.f32 %v26759_v63, %v27144_v61  ;;  %v25349_v49 = vadd.f32 %v26770_v29, %v27146_v45  ;;  %v13634_v29 = vsel %vm9400_vm3, %v25264_v27, 0 }
 0xce3   : > { %v8579_v44 = vmul.f32 1.442695, %v8348_v33 }
 0xce4   : > { %v25320_v30 = vpop.f32.mrb[224].mxu1  ;;  %19060 = vmatmul.mubr.msk.bf16.vlgmr.msra.gmra.mrb[244].mxu1 %vm7860_vm2, %v9358_v19  ;;  %v8230_v1 = vsel %vm7860_vm2, %v25332_v34, -inf }
 0xce5   : > { %27142 = vst [vmem:[#allocation131_spill] sm:$0xff] %v25320_v30  ;;  %v19001_v48 = vpop.f32.mrb[225].mxu1  ;;  %19071 = vmatprep.mubr.msk.bf16.mxu1 %vm20129_vm0, %v26609_v2  ;;  %19867 = vpow2.f32 %v8579_v44 }
 0xce6   : > { %v13075_v21 = vpop.f32.mrb[226].mxu1  ;;  %v19864_v48 = vpop.eup %19863 }
 0xce7   : > { %v19002_v0 = vpop.f32.mrb[227].mxu1  ;;  %v27145_v21 = vld [vmem:[#allocation95_spill] sm:$0xff]  ;;  %v9231_v63 = vmul.f32 %v19864_v48, %v25003_v9 }
 0xce8   : > { %v25340_v0 = vadd.f32 %v26767_v31, %v27145_v21  ;;  %v19866_v21 = vpop.eup %19865 }
 0xce9   : > { %v9359_v31 = vpack.c.bf16 %v9231_v63, %v9231_v63  ;;  %v9233_v48 = vmul.f32 %v19866_v21, %v25082_v53  ;;  %v27147_v63 = vld [vmem:[#allocation35_spill] sm:$0xff] }
 0xcea   : > { %v8233_v44 = vsel %vm7860_vm2, %v25340_v0, -inf  ;;  %v8347_v45 = vsub.f32 %v27147_v63, %v24928_v42 }
 0xcef   : > { %v25357_v9 = vpop.eup %19867 }
 0xcf0   : > { %v25334_v19 = vpop.xlane.xlu1 %8912 }
 0xcf2   : > { %1793 = vrot.lane.b32.xlu1 %v25264_v27, %s20132_s11 }
 0xcf4   : > { %v25342_v41 = vpop.xlane.xlu1 %8918 }
 0xcf5   : > { %8231 = vmax.xlane.f32.xlu0 %v8230_v1  ;;  %v8236_v1 = vsel %vm7860_vm2, %v25349_v49, -inf }
 0xcf8   : > { %v1728_v33 = vpop.permute.xlu1 %1727 }
 0xcf9   : > { %v13542_v61 = vsel %vm9400_vm3, %v1728_v33, 0  ;;  %8234 = vmax.xlane.f32.xlu0 %v8233_v44  ;;  %v8938_v33 = vsel %vm7860_vm2, %v25357_v9, 0.0  ;;  %v9361_v44 = vpack.c.bf16 %v9233_v48, %v9233_v48 }
 0xcfa   : > { %19064 = vmatpush3.bf16.msra.mxu0 %v13542_v61  ;;  %v8577_v61 = vmul.f32 1.442695, %v8347_v45 }
 0xcfb   : > { %19075 = vmatprep.subr.bf16.mxu0 %v26609_v2 }
 0xcfc   : > { %19869 = vpow2.f32 %v8577_v61 }
 0xcfd   : > { %19066 = vmatmul.mubr.msk.bf16.vlgmr.msra.gmra.mrb[208].mxu0 %vm7860_vm2, %v9359_v31  ;;  %8237 = vmax.xlane.f32.xlu0 %v8236_v1  ;;  %v27148_v31 = vld [vmem:[#allocation124_spill] sm:$0xff]  ;;  %19871 = vrcp.f32 %v25196_v4 }
 0xcfe   : > { %19076 = vmatpush3.bf16.msra.mxu0 %v13634_v29  ;;  %19077 = vmatprep.mubr.msk.bf16.mxu0 %vm20129_vm0, %v26609_v2  ;;  %v8349_v27 = vsub.f32 %v27148_v31, %v24992_v36 }
 0xcff   : > { %19087 = vmatprep.subr.bf16.mxu0 %v26609_v2 }
 0xd00   : > { %v8581_v42 = vmul.f32 1.442695, %v8349_v27 }
 0xd01   : > { %8939 = vadd.xlane.f32.xlu0 %v8938_v33  ;;  %v27150_v33 = vld [vmem:[#allocation49_spill] sm:$0xff] }
 0xd02   : > { %19873 = vpow2.f32 %v8581_v42 }
 0xd03   : > { %19875 = vrcp.f32 %v25276_v7 }
 0xd04   : > { %v25372_v1 = vpop.f32.mrb[228].mxu1 }
 0xd05   : > { %27149 = vst [vmem:[#allocation133_spill] sm:$0xff] %v25372_v1  ;;  %v19013_v29 = vpop.f32.mrb[229].mxu1  ;;  %19078 = vmatmul.mubr.msk.bf16.vlgmr.msra.gmra.mrb[212].mxu0 %vm7860_vm2, %v9361_v44  ;;  %v25386_v44 = vpack.c.bf16 %v27150_v33, %v27150_v33 }
 0xd06   : > { %v13167_v53 = vpop.f32.mrb[230].mxu1  ;;  %19089 = vmatprep.mubr.msk.bf16.mxu0 %vm20129_vm0, %v26609_v2  ;;  %v25380_v63 = vpop.eup %19869 }
 0xd07   : > { %v19014_v21 = vpop.f32.mrb[231].mxu1  ;;  %v19872_v36 = vpop.eup %19871  ;;  %v8935_v31 = vsel %vm7860_vm2, %v25380_v63, 0.0 }
 0xd08   : > { %v9232_v4 = vmul.f32 %v19872_v36, %v25021_v16 }
 0xd0a   : > { %v9360_v21 = vpack.c.bf16 %v9232_v4, %v9232_v4 }
 0xd0c   : > { %v25390_v29 = vpop.eup %19873 }
 0xd0d   : > { %v8941_v53 = vsel %vm7860_vm2, %v25390_v29, 0.0 }
 0xd10   : > { %v25378_v48 = vpop.xlane.xlu0 %8216 }
 0xd14   : > { %v25382_v45 = vpop.xlane.xlu0 %8921 }
 0xd16   : > { %8936 = vadd.xlane.f32.xlu1 %v8935_v31  ;;  %v27152_v31 = vld [vmem:[#allocation70_spill] sm:$0xff] }
 0xd17   : > { %1667 = vrot.lane.b32.xlu0 %v25386_v44, %s20131_s10 }
 0xd18   : > { %v1792_v61 = vpop.permute.xlu0 %1791 }
 0xd19   : > { %v13588_v27 = vsel %vm9400_vm3, %v1792_v61, 0  ;;  %v8350_v61 = vsub.f32 %v27152_v31, %v24969_v35  ;;  %v27153_v35 = vld [vmem:[#allocation24_spill] sm:$0xff] }
 0xd1a   : > { %19070 = vmatpush3.bf16.msra.mxu1 %v13588_v27  ;;  %8942 = vadd.xlane.f32.xlu1 %v8941_v53 }
 0xd1b   : > { %19081 = vmatprep.subr.bf16.mxu1 %v26609_v2  ;;  %v8583_v58 = vmul.f32 1.442695, %v8350_v61 }
 0xd1d   : > { %v25399_v42 = vpop.f32.mrb[192].mxu0  ;;  %19072 = vmatmul.mubr.msk.bf16.vlgmr.msra.gmra.mrb[248].mxu1 %vm7860_vm2, %v9360_v21  ;;  %19877 = vpow2.f32 %v8583_v58 }
 0xd1e   : > { %27151 = vst [vmem:[#allocation103_spill] sm:$0xff] %v25399_v42  ;;  %v19019_v33 = vpop.f32.mrb[193].mxu0  ;;  %19083 = vmatprep.mubr.msk.bf16.mxu1 %vm20129_vm0, %v26609_v2  ;;  %19879 = vrcp.f32 %v25334_v19 }
 0xd1f   : > { %v13213_v16 = vpop.f32.mrb[194].mxu0  ;;  %v25417_v33 = vadd.f32 %v26971_v38, %v27153_v35 }
 0xd20   : > { %v19020_v36 = vpop.f32.mrb[195].mxu0 }
 0xd25   : > { %v13302_v13 = vpop.f32.mrb[196].mxu0 }
 0xd26   : > { %v16958_v27 = vpack.c.bf16 %v13302_v13, %v25296_v60  ;;  %v19031_v53 = vpop.f32.mrb[197].mxu0  ;;  %v19876_v13 = vpop.eup %19875 }
 0xd27   : > { %v13305_v4 = vpop.f32.mrb[198].mxu0  ;;  %v25425_v36 = vpop.eup %19877  ;;  %v9234_v7 = vmul.f32 %v19876_v13, %v25088_v18 }
 0xd28   : > { %15520 = vst.msk [vmem:[#allocation2 + $0x50] sm:$0xff] %vm1811_vm1, %v16958_v27  ;;  %v19032_v30 = vpop.f32.mrb[199].mxu0  ;;  %v8944_v31 = vsel %vm7860_vm2, %v25425_v36, 0.0  ;;  %v27154_v27 = vld [vmem:[#allocation125_spill] sm:$0xff] }
 0xd29   : > { %v25408_v26 = vpop.xlane.xlu1 %8219  ;;  %v8239_v30 = vsel %vm7860_vm2, %v25417_v33, -inf  ;;  %v9362_v61 = vpack.c.bf16 %v9234_v7, %v9234_v7  ;;  %v8352_v53 = vsub.f32 %v27154_v27, %v25073_v8  ;;  %v19880_v8 = vpop.eup %19879 }
 0xd2a   : > { %v9235_v19 = vmul.f32 %v19880_v8, %v25155_v23  ;;  %v13818_v23 = vsel %vm9400_vm3, %v25386_v44, 0 }
 0xd2b   : > { %1731 = vrot.lane.b32.xlu1 %v25386_v44, %s20130_s19 }
 0xd2d   : > { %v25413_v21 = vpop.xlane.xlu1 %8924 }
 0xd31   : > { %v25419_v60 = vpop.xlane.xlu1 %8225 }
 0xd35   : > { %v25421_v16 = vpop.xlane.xlu1 %8927 }
 0xd36   : > { %8240 = vmax.xlane.f32.xlu0 %v8239_v30  ;;  %v8587_v30 = vmul.f32 1.442695, %v8352_v53 }
 0xd38   : > { %19881 = vpow2.f32 %v8587_v30  ;;  %v27156_v30 = vld [vmem:[#allocation126_spill] sm:$0xff] }
 0xd39   : > { %v1666_v58 = vpop.permute.xlu1 %1665  ;;  %19883 = vrcp.f32 %v25342_v41 }
 0xd3a   : > { %v13680_v38 = vsel %vm9400_vm3, %v1666_v58, 0  ;;  %8945 = vadd.xlane.f32.xlu0 %v8944_v31  ;;  %v27155_v58 = vld [vmem:[#allocation58_spill] sm:$0xff] }
 0xd3b   : > { %19082 = vmatpush3.bf16.msra.mxu1 %v13680_v38  ;;  %v25444_v31 = vadd.f32 %v26842_v37, %v27155_v58  ;;  %v8351_v58 = vsub.f32 %v27156_v30, %v24999_v52 }
 0xd3c   : > { %19093 = vmatprep.subr.bf16.mxu1 %v26609_v2 }
 0xd3d   : > { %v25434_v4 = vpop.f32.mrb[232].mxu1 }
 0xd3e   : > { %v19025_v35 = vpop.f32.mrb[233].mxu1  ;;  %19084 = vmatmul.mubr.msk.bf16.vlgmr.msra.gmra.mrb[252].mxu1 %vm7860_vm2, %v9362_v61  ;;  %v8242_v61 = vsel %vm7860_vm2, %v25444_v31, -inf }
 0xd3f   : > { %v13259_v18 = vpop.f32.mrb[234].mxu1  ;;  %19095 = vmatprep.mubr.msk.bf16.mxu1 %vm20129_vm0, %v26609_v2  ;;  %v9363_v35 = vpack.c.bf16 %v9235_v19, %v9235_v19 }
 0xd40   : > { %v19026_v13 = vpop.f32.mrb[235].mxu1 }
 0xd42   : > { %v25451_v27 = vpop.eup %19881 }
 0xd43   : > { %v8950_v41 = vsel %vm7860_vm2, %v25451_v27, 0.0  ;;  %v19884_v18 = vpop.eup %19883 }
 0xd44   : > { %v9237_v13 = vmul.f32 %v19884_v18, %v25165_v40 }
 0xd46   : > { %v9365_v8 = vpack.c.bf16 %v9237_v13, %v9237_v13 }
 0xd49   : > { %v25440_v7 = vpop.xlane.xlu0 %8222 }
 0xd4d   : > { %v25447_v38 = vpop.xlane.xlu0 %8228 }
 0xd4f   : > { %8243 = vmax.xlane.f32.xlu1 %v8242_v61  ;;  %v8585_v61 = vmul.f32 1.442695, %v8351_v58 }
 0xd50   : > { %1795 = vrot.lane.b32.xlu0 %v25386_v44, %s20132_s11 }
 0xd51   : > { %v1730_v53 = vpop.permute.xlu0 %1729  ;;  %19885 = vpow2.f32 %v8585_v61 }
 0xd52   : > { %v13726_v37 = vsel %vm9400_vm3, %v1730_v53, 0  ;;  %19887 = vrcp.f32 %v25309_v59 }
 0xd53   : > { %19088 = vmatpush3.bf16.msra.mxu0 %v13726_v37  ;;  %8951 = vadd.xlane.f32.xlu1 %v8950_v41  ;;  %v27158_v41 = vld [vmem:[#allocation51_spill] sm:$0xff] }
 0xd54   : > { %19099 = vmatprep.subr.bf16.mxu0 %v26609_v2 }
 0xd56   : > { %19090 = vmatmul.mubr.msk.bf16.vlgmr.msra.gmra.mrb[216].mxu0 %vm7860_vm2, %v9363_v35  ;;  %v25478_v35 = vpack.c.bf16 %v27158_v41, %v27158_v41 }
 0xd57   : > { %19100 = vmatpush3.bf16.msra.mxu0 %v13818_v23  ;;  %19101 = vmatprep.mubr.msk.bf16.mxu0 %vm20129_vm0, %v26609_v2 }
 0xd58   : > { %19111 = vmatprep.subr.bf16.mxu0 %v26609_v2 }
 0xd5b   : > { %v25483_v18 = vpop.eup %19885 }
 0xd5c   : > { %v19888_v23 = vpop.eup %19887  ;;  %v8947_v30 = vsel %vm7860_vm2, %v25483_v18, 0.0 }
 0xd5d   : > { %v9236_v58 = vmul.f32 %v19888_v23, %v25132_v62 }
 0xd5e   : > { %v25469_v19 = vpop.f32.mrb[236].mxu1  ;;  %19102 = vmatmul.mubr.msk.bf16.vlgmr.msra.gmra.mrb[220].mxu0 %vm7860_vm2, %v9365_v8  ;;  %v27159_v8 = vld [vmem:[#allocation100_spill] sm:$0xff] }
 0xd5f   : > { %27157 = vst [vmem:[#allocation56_spill] sm:$0xff] %v25469_v19  ;;  %v19037_v53 = vpop.f32.mrb[237].mxu1  ;;  %19113 = vmatprep.mubr.msk.bf16.mxu0 %vm20129_vm0, %v26609_v2  ;;  %v8353_v61 = vsub.f32 %v27159_v8, %v25076_v43 }
 0xd60   : > { %v13351_v37 = vpop.f32.mrb[238].mxu1 }
 0xd61   : > { %v19038_v40 = vpop.f32.mrb[239].mxu1  ;;  %v9364_v37 = vpack.c.bf16 %v9236_v58, %v9236_v58 }
 0xd62   : > { %v8589_v40 = vmul.f32 1.442695, %v8353_v61 }
 0xd64   : > { %1669 = vrot.lane.b32.xlu1 %v25478_v35, %s20131_s10  ;;  %19889 = vpow2.f32 %v8589_v40 }
 0xd65   : > { %19891 = vrcp.f32 %v25382_v45 }
 0xd6a   : > { %v8931_v52 = vpop.xlane.xlu1 %8930 }
 0xd6e   : > { %v25485_v13 = vpop.xlane.xlu1 %8933 }
 0xd6f   : > { %8948 = vadd.xlane.f32.xlu0 %v8947_v30 }
 0xd72   : > { %v1794_v53 = vpop.permute.xlu1 %1793 }
 0xd73   : > { %v13772_v59 = vsel %vm9400_vm3, %v1794_v53, 0  ;;  %v25505_v53 = vpop.eup %19889 }
 0xd74   : > { %19094 = vmatpush3.bf16.msra.mxu1 %v13772_v59  ;;  %v8953_v59 = vsel %vm7860_vm2, %v25505_v53, 0.0  ;;  %v19892_v40 = vpop.eup %19891 }
 0xd75   : > { %19105 = vmatprep.subr.bf16.mxu1 %v26609_v2 }
 0xd76   : > { %v25494_v41 = vpop.f32.mrb[200].mxu0 }
 0xd77   : > { %27160 = vst [vmem:[#allocation105_spill] sm:$0xff] %v25494_v41  ;;  %v19043_v1 = vpop.f32.mrb[201].mxu0  ;;  %19096 = vmatmul.mubr.msk.bf16.vlgmr.msra.gmra.mrb[0].mxu1 %vm7860_vm2, %v9364_v37 }
 0xd78   : > { %v13397_v62 = vpop.f32.mrb[202].mxu0  ;;  %19107 = vmatprep.mubr.msk.bf16.mxu1 %vm20129_vm0, %v26609_v2 }
 0xd79   : > { %v19044_v43 = vpop.f32.mrb[203].mxu0  ;;  %v27161_v62 = vld [vmem:[#allocation57_spill] sm:$0xff] }
 0xd7a   : > { %v8354_v43 = vsub.f32 %v27161_v62, %v25080_v28 }
 0xd7c   : > { %v8591_v45 = vmul.f32 1.442695, %v8354_v43  ;;  %v27162_v43 = vld [vmem:[#allocation127_spill] sm:$0xff] }
 0xd7e   : > { %v25501_v23 = vpop.f32.mrb[204].mxu0  ;;  %19893 = vpow2.f32 %v8591_v45 }
 0xd7f   : > { %v19055_v30 = vpop.f32.mrb[205].mxu0 }
 0xd80   : > { %v13489_v58 = vpop.f32.mrb[206].mxu0 }
 0xd81   : > { %v19056_v8 = vpop.f32.mrb[207].mxu0  ;;  %v9238_v58 = vmul.f32 %v19892_v40, %v25200_v54 }
 0xd82   : > { %v25503_v61 = vpop.xlane.xlu0 %8231  ;;  %v8356_v8 = vsub.f32 %v24996_v32, %v25183_v5 }
 0xd83   : > { %v9366_v41 = vpack.c.bf16 %v9238_v58, %v9238_v58  ;;  %v8355_v58 = vsub.f32 %v27162_v43, %v25153_v20  ;;  %v14002_v20 = vsel %vm9400_vm3, %v25478_v35, 0 }
 0xd85   : > { %1733 = vrot.lane.b32.xlu0 %v25478_v35, %s20130_s19 }
 0xd86   : > { %v25510_v1 = vpop.xlane.xlu0 %8234 }
 0xd88   : > { %8954 = vadd.xlane.f32.xlu1 %v8953_v59  ;;  %v8595_v59 = vmul.f32 1.442695, %v8356_v8 }
 0xd8a   : > { %v25514_v37 = vpop.xlane.xlu0 %8237  ;;  %19895 = vpow2.f32 %v8595_v59  ;;  %v8593_v59 = vmul.f32 1.442695, %v8355_v58 }
 0xd8b   : > { %19897 = vrcp.f32 %v25413_v21 }
 0xd8c   : > { %19899 = vrcp.f32 %v8931_v52 }
 0xd8d   : > { %19901 = vpow2.f32 %v8593_v59 }
 0xd8e   : > { %v25518_v30 = vpop.xlane.xlu0 %8939  ;;  %19903 = vrcp.f32 %v25421_v16 }
 0xd92   : > { %v1668_v44 = vpop.permute.xlu0 %1667 }
 0xd93   : > { %v13864_v42 = vsel %vm9400_vm3, %v1668_v44, 0 }
 0xd94   : > { %19106 = vmatpush3.bf16.msra.mxu1 %v13864_v42  ;;  %v25535_v42 = vpop.eup %19893 }
 0xd95   : > { %19117 = vmatprep.subr.bf16.mxu1 %v26609_v2  ;;  %v25541_v40 = vpop.eup %19895 }
 0xd96   : > { %v19898_v62 = vpop.eup %19897  ;;  %v8962_v21 = vsel %vm7860_vm2, %v25541_v40, 0.0 }
 0xd97   : > { %v25525_v19 = vpop.f32.mrb[240].mxu1  ;;  %19108 = vmatmul.mubr.msk.bf16.vlgmr.msra.gmra.mrb[4].mxu1 %vm7860_vm2, %v9366_v41  ;;  %v8956_v41 = vsel %vm7860_vm2, %v25535_v42, 0.0  ;;  %v9239_v8 = vmul.f32 %v19898_v62, %v25228_v46  ;;  %v19900_v52 = vpop.eup %19899 }
 0xd98   : > { %v17006_v28 = vpack.c.bf16 %v25525_v19, %v25434_v4  ;;  %v19049_v54 = vpop.f32.mrb[241].mxu1  ;;  %19119 = vmatprep.mubr.msk.bf16.mxu1 %vm20129_vm0, %v26609_v2  ;;  %v9241_v46 = vmul.f32 %v19900_v52, %v25307_v10  ;;  %v25562_v58 = vpop.eup %19901 }
 0xd99   : > { %1797 = vrot.lane.b32.xlu1 %v25478_v35, %s20132_s11  ;;  %v13443_v32 = vpop.f32.mrb[242].mxu1  ;;  %v8959_v10 = vsel %vm7860_vm2, %v25562_v58, 0.0 }
 0xd9a   : > { %v19050_v5 = vpop.f32.mrb[243].mxu1 }
 0xd9b   : > { %v9367_v5 = vpack.c.bf16 %v9239_v8, %v9239_v8  ;;  %v27163_v8 = vld [vmem:[#allocation48_spill] sm:$0xff] }
 0xd9c   : > { %v25568_v59 = vpack.c.bf16 %v27163_v8, %v27163_v8 }
 0xda3   : > { %v25537_v44 = vpop.xlane.xlu1 %8936 }
 0xda4   : > { %8957 = vadd.xlane.f32.xlu0 %v8956_v41  ;;  %v9369_v41 = vpack.c.bf16 %v9241_v46, %v9241_v46 }
 0xda7   : > { %v25545_v45 = vpop.xlane.xlu1 %8942 }
 0xda8   : > { %8963 = vadd.xlane.f32.xlu0 %v8962_v21 }
 0xdab   : > { %v1732_v54 = vpop.permute.xlu1 %1731 }
 0xdac   : > { %v13910_v32 = vsel %vm9400_vm3, %v1732_v54, 0 }
 0xdad   : > { %19112 = vmatpush3.bf16.msra.mxu0 %v13910_v32  ;;  %v19904_v32 = vpop.eup %19903 }
 0xdae   : > { %19123 = vmatprep.subr.bf16.mxu0 %v26609_v2 }
 0xdb0   : > { %19114 = vmatmul.mubr.msk.bf16.vlgmr.msra.gmra.mrb[224].mxu0 %vm7860_vm2, %v9367_v5  ;;  %v8357_v5 = vsub.f32 %v25043_v14, %v25217_v25 }
 0xdb1   : > { %19124 = vmatpush3.bf16.msra.mxu0 %v14002_v20  ;;  %19125 = vmatprep.mubr.msk.bf16.mxu0 %vm20129_vm0, %v26609_v2  ;;  %v9240_v20 = vmul.f32 %v19904_v32, %v25246_v11 }
 0xdb2   : > { %19135 = vmatprep.subr.bf16.mxu0 %v26609_v2  ;;  %v8597_v46 = vmul.f32 1.442695, %v8357_v5 }
 0xdb3   : > { %v9368_v16 = vpack.c.bf16 %v9240_v20, %v9240_v20 }
 0xdb4   : > { %19905 = vpow2.f32 %v8597_v46  ;;  %v27164_v46 = vld [vmem:[#allocation32_spill] sm:$0xff] }
 0xdb5   : > { %19907 = vrcp.f32 %v25485_v13 }
 0xdb7   : > { %v25559_v62 = vpop.f32.mrb[244].mxu1 }
 0xdb8   : > { %v19061_v43 = vpop.f32.mrb[245].mxu1  ;;  %19126 = vmatmul.mubr.msk.bf16.vlgmr.msra.gmra.mrb[228].mxu0 %vm7860_vm2, %v9369_v41 }
 0xdb9   : > { %v13535_v21 = vpop.f32.mrb[246].mxu1  ;;  %19137 = vmatprep.mubr.msk.bf16.mxu0 %vm20129_vm0, %v26609_v2 }
 0xdba   : > { %v19062_v35 = vpop.f32.mrb[247].mxu1 }
 0xdbd   : > { %8960 = vadd.xlane.f32.xlu1 %v8959_v10 }
 0xdbe   : > { %1671 = vrot.lane.b32.xlu0 %v25568_v59, %s20131_s10  ;;  %v25592_v8 = vpop.eup %19905 }
 0xdbf   : > { %v19908_v13 = vpop.eup %19907 }
 0xdc3   : > { %v25575_v54 = vpop.xlane.xlu0 %8240 }
 0xdc7   : > { %v25579_v52 = vpop.xlane.xlu0 %8945 }
 0xdcb   : > { %v1796_v41 = vpop.permute.xlu0 %1795 }
 0xdcc   : > { %v13956_v43 = vsel %vm9400_vm3, %v1796_v41, 0  ;;  %v8358_v41 = vsub.f32 %v27164_v46, %v25194_v12 }
 0xdcd   : > { %19118 = vmatpush3.bf16.msra.mxu1 %v13956_v43 }
 0xdce   : > { %1735 = vrot.lane.b32.xlu1 %v25568_v59, %s20130_s19  ;;  %19129 = vmatprep.subr.bf16.mxu1 %v26609_v2 }
 0xdd0   : > { %v25586_v21 = vpop.f32.mrb[208].mxu0  ;;  %19120 = vmatmul.mubr.msk.bf16.vlgmr.msra.gmra.mrb[8].mxu1 %vm7860_vm2, %v9368_v16  ;;  %v8965_v16 = vsel %vm7860_vm2, %v25592_v8, 0.0 }
 0xdd1   : > { %v19067_v14 = vpop.f32.mrb[209].mxu0  ;;  %19131 = vmatprep.mubr.msk.bf16.mxu1 %vm20129_vm0, %v26609_v2 }
 0xdd2   : > { %v13581_v25 = vpop.f32.mrb[210].mxu0  ;;  %v8599_v14 = vmul.f32 1.442695, %v8358_v41 }
 0xdd3   : > { %v19068_v11 = vpop.f32.mrb[211].mxu0  ;;  %v8360_v25 = vsub.f32 %v25107_v47, %v25298_v22 }
 0xdd4   : > { %v9242_v11 = vmul.f32 %v19908_v13, %v25313_v56  ;;  %19909 = vpow2.f32 %v8599_v14  ;;  %v27165_v14 = vld [vmem:[#allocation40_spill] sm:$0xff] }
 0xdd8   : > { %v13670_v35 = vpop.f32.mrb[212].mxu0 }
 0xdd9   : > { %v16959_v10 = vpack.c.bf16 %v13670_v35, %v25501_v23  ;;  %v19079_v32 = vpop.f32.mrb[213].mxu0  ;;  %v8603_v35 = vmul.f32 1.442695, %v8360_v25  ;;  %v8359_v25 = vsub.f32 %v27165_v14, %v25224_v50  ;;  %v14186_v50 = vsel %vm9400_vm3, %v25568_v59, 0 }
 0xdda   : > { %v13673_v5 = vpop.f32.mrb[214].mxu0  ;;  %v9370_v32 = vpack.c.bf16 %v9242_v11, %v9242_v11 }
 0xddb   : > { %15521 = vst.msk [vmem:[#allocation2 + $0x58] sm:$0xff] %vm1811_vm1, %v16959_v10  ;;  %v19080_v20 = vpop.f32.mrb[215].mxu0  ;;  %19911 = vpow2.f32 %v8603_v35  ;;  %v8601_v35 = vmul.f32 1.442695, %v8359_v25 }
 0xddc   : > { %v25598_v43 = vpop.xlane.xlu1 %8243  ;;  %19913 = vrcp.f32 %v25537_v44 }
 0xddd   : > { %8966 = vadd.xlane.f32.xlu0 %v8965_v16  ;;  %19915 = vrcp.f32 %v25545_v45 }
 0xdde   : > { %v25612_v47 = vpop.eup %19909  ;;  %19917 = vpow2.f32 %v8601_v35 }
 0xddf   : > { %v8968_v5 = vsel %vm7860_vm2, %v25612_v47, 0.0  ;;  %19919 = vrcp.f32 %v25518_v30 }
 0xde0   : > { %v25604_v23 = vpop.xlane.xlu1 %8951 }
 0xde4   : > { %v1670_v10 = vpop.permute.xlu1 %1669 }
 0xde5   : > { %v14048_v12 = vsel %vm9400_vm3, %v1670_v10, 0  ;;  %v25618_v20 = vpop.eup %19911 }
 0xde6   : > { %19130 = vmatpush3.bf16.msra.mxu1 %v14048_v12  ;;  %v8974_v16 = vsel %vm7860_vm2, %v25618_v20, 0.0  ;;  %v19914_v13 = vpop.eup %19913 }
 0xde7   : > { %19141 = vmatprep.subr.bf16.mxu1 %v26609_v2  ;;  %v9243_v44 = vmul.f32 %v19914_v13, %v25380_v63 }
 0xde9   : > { %19132 = vmatmul.mubr.msk.bf16.vlgmr.msra.gmra.mrb[12].mxu1 %vm7860_vm2, %v9370_v32  ;;  %v9371_v32 = vpack.c.bf16 %v9243_v44, %v9243_v44  ;;  %v8361_v44 = vsub.f32 %v25115_v51, %v25301_v3 }
 0xdea   : > { %19143 = vmatprep.mubr.msk.bf16.mxu1 %vm20129_vm0, %v26609_v2 }
 0xdf0   : > { %v25614_v22 = vpop.f32.mrb[248].mxu1 }
 0xdf1   : > { %v19073_v56 = vpop.f32.mrb[249].mxu1 }
 0xdf2   : > { %8969 = vadd.xlane.f32.xlu1 %v8968_v5  ;;  %v13627_v46 = vpop.f32.mrb[250].mxu1  ;;  %v19916_v56 = vpop.eup %19915  ;;  %v27166_v5 = vld [vmem:[#allocation50_spill] sm:$0xff] }
 0xdf3   : > { %1799 = vrot.lane.b32.xlu0 %v25568_v59, %s20132_s11  ;;  %v19074_v41 = vpop.f32.mrb[251].mxu1  ;;  %v25635_v45 = vpack.c.bf16 %v27166_v5, %v27166_v5  ;;  %v9245_v63 = vmul.f32 %v19916_v56, %v25390_v29 }
 0xdf4   : > { %v25648_v41 = vpop.eup %19917 }
 0xdf5   : > { %v9373_v46 = vpack.c.bf16 %v9245_v63, %v9245_v63  ;;  %v8971_v29 = vsel %vm7860_vm2, %v25648_v41, 0.0  ;;  %v19920_v25 = vpop.eup %19919 }
 0xdf6   : > { %8975 = vadd.xlane.f32.xlu1 %v8974_v16 }
 0xdfc   : > { %v25628_v11 = vpop.xlane.xlu0 %8948 }
 0xe00   : > { %v1734_v10 = vpop.permute.xlu0 %1733 }
 0xe01   : > { %v14094_v12 = vsel %vm9400_vm3, %v1734_v10, 0  ;;  %v9244_v10 = vmul.f32 %v19920_v25, %v25357_v9 }
 0xe02   : > { %19136 = vmatpush3.bf16.msra.mxu0 %v14094_v12  ;;  %v8605_v12 = vmul.f32 1.442695, %v8361_v44 }
 0xe03   : > { %19147 = vmatprep.subr.bf16.mxu0 %v26609_v2  ;;  %v9372_v5 = vpack.c.bf16 %v9244_v10, %v9244_v10 }
 0xe04   : > { %19921 = vpow2.f32 %v8605_v12 }
 0xe05   : > { %19138 = vmatmul.mubr.msk.bf16.vlgmr.msra.gmra.mrb[232].mxu0 %vm7860_vm2, %v9371_v32  ;;  %19923 = vrcp.f32 %v25579_v52 }
 0xe06   : > { %19148 = vmatpush3.bf16.msra.mxu0 %v14186_v50  ;;  %19149 = vmatprep.mubr.msk.bf16.mxu0 %vm20129_vm0, %v26609_v2 }
 0xe07   : > { %1673 = vrot.lane.b32.xlu1 %v25635_v45, %s20131_s10  ;;  %19159 = vmatprep.subr.bf16.mxu0 %v26609_v2 }
 0xe0d   : > { %19150 = vmatmul.mubr.msk.bf16.vlgmr.msra.gmra.mrb[236].mxu0 %vm7860_vm2, %v9373_v46 }
 0xe0e   : > { %19161 = vmatprep.mubr.msk.bf16.mxu0 %vm20129_vm0, %v26609_v2  ;;  %v25666_v50 = vpop.eup %19921 }
 0xe0f   : > { %v8977_v63 = vsel %vm7860_vm2, %v25666_v50, 0.0  ;;  %v19924_v12 = vpop.eup %19923 }
 0xe10   : > { %v9246_v52 = vmul.f32 %v19924_v12, %v25425_v36 }
 0xe11   : > { %v25652_v59 = vpop.f32.mrb[252].mxu1 }
 0xe12   : > { %v16975_v16 = vpack.c.bf16 %v25652_v59, %v25559_v62  ;;  %8972 = vadd.xlane.f32.xlu0 %v8971_v29  ;;  %v19085_v13 = vpop.f32.mrb[253].mxu1 }
 0xe13   : > { %v13719_v14 = vpop.f32.mrb[254].mxu1  ;;  %v8362_v13 = vsub.f32 %v25124_v55, %v25305_v24  ;;  %v9374_v24 = vpack.c.bf16 %v9246_v52, %v9246_v52 }
 0xe14   : > { %v19086_v30 = vpop.f32.mrb[255].mxu1 }
 0xe15   : > { %v8955_v35 = vpop.xlane.xlu1 %8954 }
 0xe19   : > { %v1798_v32 = vpop.permute.xlu1 %1797 }
 0xe1a   : > { %v14140_v56 = vsel %vm9400_vm3, %v1798_v32, 0  ;;  %v8607_v32 = vmul.f32 1.442695, %v8362_v13 }
 0xe1b   : > { %19142 = vmatpush3.bf16.msra.mxu1 %v14140_v56  ;;  %v8364_v56 = vsub.f32 %v25221_v15, %v25408_v26 }
 0xe1c   : > { %19153 = vmatprep.subr.bf16.mxu1 %v26609_v2  ;;  %19925 = vpow2.f32 %v8607_v32 }
 0xe1e   : > { %19144 = vmatmul.mubr.msk.bf16.vlgmr.msra.gmra.mrb[16].mxu1 %vm7860_vm2, %v9372_v5 }
 0xe1f   : > { %19155 = vmatprep.mubr.msk.bf16.mxu1 %vm20129_vm0, %v26609_v2 }
 0xe26   : > { %v25696_v15 = vpop.eup %19925 }
 0xe27   : > { %v8980_v26 = vsel %vm7860_vm2, %v25696_v15, 0.0 }
 0xe28   : > { %1737 = vrot.lane.b32.xlu0 %v25635_v45, %s20130_s19 }
 0xe29   : > { %v25670_v51 = vpop.f32.mrb[216].mxu0 }
 0xe2a   : > { %v16991_v3 = vpack.c.bf16 %v25670_v51, %v25586_v21  ;;  %v19091_v9 = vpop.f32.mrb[217].mxu0 }
 0xe2b   : > { %v13765_v46 = vpop.f32.mrb[218].mxu0  ;;  %8978 = vadd.xlane.f32.xlu1 %v8977_v63  ;;  %v8611_v9 = vmul.f32 1.442695, %v8364_v56 }
 0xe2c   : > { %v19092_v29 = vpop.f32.mrb[219].mxu0 }
 0xe2d   : > { %19927 = vpow2.f32 %v8611_v9  ;;  %v8363_v29 = vsub.f32 %v25192_v57, %v25378_v48 }
 0xe2e   : > { %19929 = vrcp.f32 %v25628_v11 }
 0xe2f   : > { %19931 = vrcp.f32 %v8955_v35  ;;  %v8609_v56 = vmul.f32 1.442695, %v8363_v29  ;;  %v8365_v29 = vsub.f32 %v25268_v6, %v25440_v7  ;;  %v8366_v7 = vsub.f32 %v25235_v39, %v25419_v60 }
 0xe31   : > { %v25679_v14 = vpop.f32.mrb[220].mxu0  ;;  %v25681_v30 = vpop.xlane.xlu0 %8957  ;;  %19933 = vpow2.f32 %v8609_v56 }
 0xe32   : > { %v19103_v25 = vpop.f32.mrb[221].mxu0  ;;  %19935 = vrcp.f32 %v25604_v23 }
 0xe33   : > { %v13857_v44 = vpop.f32.mrb[222].mxu0 }
 0xe34   : > { %v19104_v10 = vpop.f32.mrb[223].mxu0 }
 0xe35   : > { %v25685_v5 = vpop.xlane.xlu0 %8963 }
 0xe37   : > { %v25700_v36 = vpop.eup %19927 }
 0xe38   : > { %v19930_v46 = vpop.eup %19929  ;;  %v8986_v11 = vsel %vm7860_vm2, %v25700_v36, 0.0 }
 0xe39   : > { %v1672_v63 = vpop.permute.xlu0 %1671  ;;  %v9247_v32 = vmul.f32 %v19930_v46, %v25483_v18  ;;  %v19932_v9 = vpop.eup %19931 }
 0xe3a   : > { %v14232_v55 = vsel %vm9400_vm3, %v1672_v63, 0  ;;  %v14370_v63 = vsel %vm9400_vm3, %v25635_v45, 0  ;;  %v9249_v18 = vmul.f32 %v19932_v9, %v25505_v53 }
 0xe3b   : > { %19154 = vmatpush3.bf16.msra.mxu1 %v14232_v55  ;;  %v9375_v48 = vpack.c.bf16 %v9247_v32, %v9247_v32 }
 0xe3c   : > { %1801 = vrot.lane.b32.xlu1 %v25635_v45, %s20132_s11  ;;  %19165 = vmatprep.subr.bf16.mxu1 %v26609_v2  ;;  %v9377_v55 = vpack.c.bf16 %v9249_v18, %v9249_v18  ;;  %v8615_v18 = vmul.f32 1.442695, %v8366_v7 }
 0xe3e   : > { %19156 = vmatmul.mubr.msk.bf16.vlgmr.msra.gmra.mrb[20].mxu1 %vm7860_vm2, %v9374_v24  ;;  %v25723_v24 = vpop.eup %19933 }
 0xe3f   : > { %19167 = vmatprep.mubr.msk.bf16.mxu1 %vm20129_vm0, %v26609_v2  ;;  %v8983_v45 = vsel %vm7860_vm2, %v25723_v24, 0.0  ;;  %v19936_v53 = vpop.eup %19935 }
 0xe47   : > { %8981 = vadd.xlane.f32.xlu0 %v8980_v26  ;;  %v27167_v26 = vld [vmem:[#allocation53_spill] sm:$0xff] }
 0xe48   : > { %v25729_v46 = vpack.c.bf16 %v27167_v26, %v27167_v26 }
 0xe4a   : > { %v25704_v13 = vpop.xlane.xlu1 %8960  ;;  %v25706_v25 = vpop.f32.mrb[0].mxu1 }
 0xe4b   : > { %v17007_v44 = vpack.c.bf16 %v25706_v25, %v25614_v22  ;;  %8987 = vadd.xlane.f32.xlu0 %v8986_v11  ;;  %v19097_v10 = vpop.f32.mrb[1].mxu1 }
 0xe4c   : > { %v13811_v12 = vpop.f32.mrb[2].mxu1 }
 0xe4d   : > { %v19098_v35 = vpop.f32.mrb[3].mxu1 }
 0xe4e   : > { %v1736_v52 = vpop.permute.xlu1 %1735  ;;  %v9248_v35 = vmul.f32 %v19936_v53, %v25451_v27 }
 0xe4f   : > { %v14278_v57 = vsel %vm9400_vm3, %v1736_v52, 0  ;;  %v8613_v52 = vmul.f32 1.442695, %v8365_v29 }
 0xe50   : > { %19160 = vmatpush3.bf16.msra.mxu0 %v14278_v57 }
 0xe51   : > { %19171 = vmatprep.subr.bf16.mxu0 %v26609_v2  ;;  %19937 = vpow2.f32 %v8613_v52 }
 0xe52   : > { %19939 = vrcp.f32 %v25681_v30 }
 0xe53   : > { %19162 = vmatmul.mubr.msk.bf16.vlgmr.msra.gmra.mrb[240].mxu0 %vm7860_vm2, %v9375_v48  ;;  %v9376_v48 = vpack.c.bf16 %v9248_v35, %v9248_v35  ;;  %19941 = vpow2.f32 %v8615_v18 }
 0xe54   : > { %19172 = vmatpush3.bf16.msra.mxu0 %v14370_v63  ;;  %19173 = vmatprep.mubr.msk.bf16.mxu0 %vm20129_vm0, %v26609_v2 }
 0xe55   : > { %19183 = vmatprep.subr.bf16.mxu0 %v26609_v2 }
 0xe5b   : > { %19174 = vmatmul.mubr.msk.bf16.vlgmr.msra.gmra.mrb[244].mxu0 %vm7860_vm2, %v9377_v55  ;;  %v25749_v6 = vpop.eup %19937  ;;  %v8368_v55 = vsub.f32 %v25332_v34, %v25503_v61 }
 0xe5c   : > { %19185 = vmatprep.mubr.msk.bf16.mxu0 %vm20129_vm0, %v26609_v2  ;;  %v8989_v9 = vsel %vm7860_vm2, %v25749_v6, 0.0  ;;  %v19940_v63 = vpop.eup %19939 }
 0xe5d   : > { %v9250_v29 = vmul.f32 %v19940_v63, %v25535_v42  ;;  %v8619_v60 = vmul.f32 1.442695, %v8368_v55 }
 0xe5f   : > { %v9378_v35 = vpack.c.bf16 %v9250_v29, %v9250_v29  ;;  %19943 = vpow2.f32 %v8619_v60 }
 0xe60   : > { %8984 = vadd.xlane.f32.xlu1 %v8983_v45  ;;  %19945 = vrcp.f32 %v25704_v13 }
 0xe61   : > { %1675 = vrot.lane.b32.xlu0 %v25729_v46, %s20131_s10 }
 0xe6a   : > { %v8967_v11 = vpop.xlane.xlu0 %8966  ;;  %v25738_v10 = vpop.f32.mrb[4].mxu1 }
 0xe6b   : > { %v19109_v12 = vpop.f32.mrb[5].mxu1  ;;  %19947 = vrcp.f32 %v8967_v11 }
 0xe6c   : > { %v13903_v32 = vpop.f32.mrb[6].mxu1 }
 0xe6d   : > { %v19110_v56 = vpop.f32.mrb[7].mxu1 }
 0xe6e   : > { %v1800_v57 = vpop.permute.xlu0 %1799 }
 0xe6f   : > { %v14324_v23 = vsel %vm9400_vm3, %v1800_v57, 0  ;;  %v25771_v57 = vpop.eup %19941 }
 0xe70   : > { %19166 = vmatpush3.bf16.msra.mxu1 %v14324_v23  ;;  %v8992_v23 = vsel %vm7860_vm2, %v25771_v57, 0.0 }
 0xe71   : > { %1739 = vrot.lane.b32.xlu1 %v25729_v46, %s20130_s19  ;;  %19177 = vmatprep.subr.bf16.mxu1 %v26609_v2 }
 0xe73   : > { %19168 = vmatmul.mubr.msk.bf16.vlgmr.msra.gmra.mrb[24].mxu1 %vm7860_vm2, %v9376_v48  ;;  %v25775_v48 = vpop.eup %19943 }
 0xe74   : > { %19179 = vmatprep.mubr.msk.bf16.mxu1 %vm20129_vm0, %v26609_v2  ;;  %v19946_v7 = vpop.eup %19945 }
 0xe75   : > { %v9251_v18 = vmul.f32 %v19946_v7, %v25562_v58  ;;  %v19948_v11 = vpop.eup %19947  ;;  %v14554_v58 = vsel %vm9400_vm3, %v25729_v46, 0 }
 0xe77   : > { %v9379_v60 = vpack.c.bf16 %v9251_v18, %v9251_v18 }
 0xe7f   : > { %v25753_v27 = vpop.xlane.xlu1 %8969 }
 0xe80   : > { %8990 = vadd.xlane.f32.xlu0 %v8989_v9  ;;  %v8367_v9 = vsub.f32 %v25274_v17, %v25447_v38  ;;  %v27168_v17 = vld [vmem:[#allocation55_spill] sm:$0xff] }
 0xe81   : > { %v25793_v38 = vpack.c.bf16 %v27168_v17, %v27168_v17 }
 0xe82   : > { %v8617_v55 = vmul.f32 1.442695, %v8367_v9 }
 0xe83   : > { %v25759_v26 = vpop.f32.mrb[224].mxu0  ;;  %v25761_v45 = vpop.xlane.xlu1 %8975 }
 0xe84   : > { %v19115_v30 = vpop.f32.mrb[225].mxu0  ;;  %19949 = vpow2.f32 %v8617_v55 }
 0xe85   : > { %v13949_v53 = vpop.f32.mrb[226].mxu0  ;;  %19951 = vrcp.f32 %v25685_v5 }
 0xe86   : > { %v19116_v39 = vpop.f32.mrb[227].mxu0 }
 0xe87   : > { %v1674_v12 = vpop.permute.xlu1 %1673 }
 0xe88   : > { %v14416_v32 = vsel %vm9400_vm3, %v1674_v12, 0 }
 0xe89   : > { %19178 = vmatpush3.bf16.msra.mxu1 %v14416_v32  ;;  %v9253_v32 = vmul.f32 %v19948_v11, %v25592_v8 }
 0xe8a   : > { %19189 = vmatprep.subr.bf16.mxu1 %v26609_v2 }
 0xe8b   : > { %v14038_v34 = vpop.f32.mrb[228].mxu0 }
 0xe8c   : > { %v16960_v61 = vpack.c.bf16 %v14038_v34, %v25679_v14  ;;  %v19127_v56 = vpop.f32.mrb[229].mxu0  ;;  %19180 = vmatmul.mubr.msk.bf16.vlgmr.msra.gmra.mrb[28].mxu1 %vm7860_vm2, %v9378_v35  ;;  %v8998_v14 = vsel %vm7860_vm2, %v25775_v48, 0.0  ;;  %v9381_v35 = vpack.c.bf16 %v9253_v32, %v9253_v32 }
 0xe8d   : > { %v14041_v52 = vpop.f32.mrb[230].mxu0  ;;  %19191 = vmatprep.mubr.msk.bf16.mxu1 %vm20129_vm0, %v26609_v2 }
 0xe8e   : > { %15522 = vst.msk [vmem:[#allocation2 + $0x60] sm:$0xff] %vm1811_vm1, %v16960_v61  ;;  %v19128_v42 = vpop.f32.mrb[231].mxu0  ;;  %v25806_v34 = vpop.eup %19949  ;;  %v8369_v61 = vsub.f32 %v25340_v0, %v25510_v1 }
 0xe8f   : > { %v19952_v8 = vpop.eup %19951 }
 0xe90   : > { %v9252_v52 = vmul.f32 %v19952_v8, %v25541_v40  ;;  %v8621_v5 = vmul.f32 1.442695, %v8369_v61  ;;  %v8370_v40 = vsub.f32 %v25349_v49, %v25514_v37 }
 0xe92   : > { %v9380_v55 = vpack.c.bf16 %v9252_v52, %v9252_v52  ;;  %19953 = vpow2.f32 %v8621_v5 }
 0xe93   : > { %19955 = vrcp.f32 %v25753_v27 }
 0xe95   : > { %8993 = vadd.xlane.f32.xlu1 %v8992_v23 }
 0xe96   : > { %1803 = vrot.lane.b32.xlu0 %v25729_v46, %s20132_s11  ;;  %v8995_v46 = vsel %vm7860_vm2, %v25806_v34, 0.0 }
 0xe99   : > { %8999 = vadd.xlane.f32.xlu1 %v8998_v14 }
 0xe9c   : > { %v25824_v0 = vpop.eup %19953 }
 0xe9d   : > { %v9001_v1 = vsel %vm7860_vm2, %v25824_v0, 0.0 }
 0xe9f   : > { %v25784_v63 = vpop.xlane.xlu0 %8972 }
 0xea3   : > { %v1738_v30 = vpop.permute.xlu0 %1737  ;;  %v25787_v13 = vpop.f32.mrb[8].mxu1 }
 0xea4   : > { %v14462_v53 = vsel %vm9400_vm3, %v1738_v30, 0  ;;  %v19121_v29 = vpop.f32.mrb[9].mxu1 }
 0xea5   : > { %v13995_v39 = vpop.f32.mrb[10].mxu1  ;;  %19184 = vmatpush3.bf16.msra.mxu0 %v14462_v53  ;;  %v19956_v29 = vpop.eup %19955 }
 0xea6   : > { %v19122_v12 = vpop.f32.mrb[11].mxu1  ;;  %19195 = vmatprep.subr.bf16.mxu0 %v26609_v2  ;;  %v8623_v39 = vmul.f32 1.442695, %v8370_v40  ;;  %v9254_v32 = vmul.f32 %v19956_v29, %v25612_v47 }
 0xea8   : > { %19186 = vmatmul.mubr.msk.bf16.vlgmr.msra.gmra.mrb[248].mxu0 %vm7860_vm2, %v9379_v60  ;;  %v8372_v60 = vsub.f32 %v25444_v31, %v25598_v43  ;;  %19957 = vpow2.f32 %v8623_v39  ;;  %v9382_v8 = vpack.c.bf16 %v9254_v32, %v9254_v32 }
 0xea9   : > { %19196 = vmatpush3.bf16.msra.mxu0 %v14554_v58  ;;  %19197 = vmatprep.mubr.msk.bf16.mxu0 %vm20129_vm0, %v26609_v2 }
 0xeaa   : > { %1677 = vrot.lane.b32.xlu1 %v25793_v38, %s20131_s10  ;;  %19207 = vmatprep.subr.bf16.mxu0 %v26609_v2  ;;  %v8627_v49 = vmul.f32 1.442695, %v8372_v60 }
 0xeac   : > { %19959 = vpow2.f32 %v8627_v49  ;;  %v27169_v49 = vld [vmem:[#allocation52_spill] sm:$0xff] }
 0xead   : > { %19961 = vrcp.f32 %v25784_v63 }
 0xeb0   : > { %19198 = vmatmul.mubr.msk.bf16.vlgmr.msra.gmra.mrb[252].mxu0 %vm7860_vm2, %v9381_v35 }
 0xeb1   : > { %19209 = vmatprep.mubr.msk.bf16.mxu0 %vm20129_vm0, %v26609_v2 }
 0xeb2   : > { %v25854_v52 = vpop.eup %19957 }
 0xeb3   : > { %v9004_v5 = vsel %vm7860_vm2, %v25854_v52, 0.0 }
 0xeb5   : > { %8996 = vadd.xlane.f32.xlu0 %v8995_v46 }
 0xeb8   : > { %v8979_v56 = vpop.xlane.xlu1 %8978 }
 0xeb9   : > { %19963 = vrcp.f32 %v8979_v56 }
 0xebc   : > { %v1802_v42 = vpop.permute.xlu1 %1801  ;;  %v25815_v23 = vpop.f32.mrb[12].mxu1 }
 0xebd   : > { %v14508_v14 = vsel %vm9400_vm3, %v1802_v42, 0  ;;  %v16976_v7 = vpack.c.bf16 %v25815_v23, %v25738_v10  ;;  %v19133_v9 = vpop.f32.mrb[13].mxu1  ;;  %v25858_v42 = vpop.eup %19959 }
 0xebe   : > { %v14087_v18 = vpop.f32.mrb[14].mxu1  ;;  %19190 = vmatpush3.bf16.msra.mxu1 %v14508_v14  ;;  %v19962_v14 = vpop.eup %19961  ;;  %v8371_v9 = vsub.f32 %v25417_v33, %v25575_v54 }
 0xebf   : > { %v19134_v30 = vpop.f32.mrb[15].mxu1  ;;  %19201 = vmatprep.subr.bf16.mxu1 %v26609_v2  ;;  %v9255_v63 = vmul.f32 %v19962_v14, %v25648_v41  ;;  %v14738_v41 = vsel %vm9400_vm3, %v25793_v38, 0 }
 0xec0   : > { %v8625_v30 = vmul.f32 1.442695, %v8371_v9 }
 0xec1   : > { %19192 = vmatmul.mubr.msk.bf16.vlgmr.msra.gmra.mrb[32].mxu1 %vm7860_vm2, %v9380_v55  ;;  %v9010_v55 = vsel %vm7860_vm2, %v25858_v42, 0.0  ;;  %v9383_v33 = vpack.c.bf16 %v9255_v63, %v9255_v63 }
 0xec2   : > { %19203 = vmatprep.mubr.msk.bf16.mxu1 %vm20129_vm0, %v26609_v2  ;;  %19965 = vpow2.f32 %v8625_v30  ;;  %v27172_v30 = vld [vmem:[#allocation25_spill] sm:$0xff] }
 0xec3   : > { %19967 = vrcp.f32 %v25761_v45 }
 0xecb   : > { %1741 = vrot.lane.b32.xlu0 %v25793_v38, %s20130_s19 }
 0xece   : > { %9002 = vadd.xlane.f32.xlu1 %v9001_v1 }
 0xed4   : > { %v25833_v53 = vpop.xlane.xlu0 %8981 }
 0xed5   : > { %19969 = vrcp.f32 %v25833_v53 }
 0xed8   : > { %v25837_v12 = vpop.f32.mrb[232].mxu0  ;;  %v25839_v11 = vpop.xlane.xlu0 %8987 }
 0xed9   : > { %v16992_v17 = vpack.c.bf16 %v25837_v12, %v25759_v26  ;;  %v19139_v58 = vpop.f32.mrb[233].mxu0 }
 0xeda   : > { %v14133_v27 = vpop.f32.mrb[234].mxu0  ;;  %v19964_v58 = vpop.eup %19963 }
 0xedb   : > { %v19140_v35 = vpop.f32.mrb[235].mxu0  ;;  %v9257_v27 = vmul.f32 %v19964_v58, %v25666_v50 }
 0xedc   : > { %v1676_v37 = vpop.permute.xlu0 %1675  ;;  %v25881_v35 = vpop.eup %19965 }
 0xedd   : > { %v14600_v46 = vsel %vm9400_vm3, %v1676_v37, 0  ;;  %v9385_v32 = vpack.c.bf16 %v9257_v27, %v9257_v27  ;;  %v25887_v37 = vpack.c.bf16 %v27169_v49, %v27169_v49  ;;  %v19968_v50 = vpop.eup %19967  ;;  %v27181_v27 = vld [vmem:[#allocation15_spill] sm:$0xff] }
 0xede   : > { %19202 = vmatpush3.bf16.msra.mxu1 %v14600_v46  ;;  %v27183_v49 = vld [vmem:[#allocation71_spill] sm:$0xff] }
 0xedf   : > { %1805 = vrot.lane.b32.xlu1 %v25793_v38, %s20132_s11  ;;  %19213 = vmatprep.subr.bf16.mxu1 %v26609_v2  ;;  %v9007_v38 = vsel %vm7860_vm2, %v25881_v35, 0.0 }
 0xee0   : > { %v25848_v31 = vpop.f32.mrb[236].mxu0 }
 0xee1   : > { %v19151_v43 = vpop.f32.mrb[237].mxu0  ;;  %19204 = vmatmul.mubr.msk.bf16.vlgmr.msra.gmra.mrb[36].mxu1 %vm7860_vm2, %v9382_v8  ;;  %v27170_v8 = vld [vmem:[#allocation54_spill] sm:$0xff] }
 0xee2   : > { %v14225_v47 = vpop.f32.mrb[238].mxu0  ;;  %19215 = vmatprep.mubr.msk.bf16.mxu1 %vm20129_vm0, %v26609_v2  ;;  %v25900_v43 = vpack.c.bf16 %v27170_v8, %v27170_v8  ;;  %v27186_v8 = vld [vmem:[#allocation29_spill] sm:$0xff] }
 0xee3   : > { %v19152_v61 = vpop.f32.mrb[239].mxu0  ;;  %v9256_v47 = vmul.f32 %v19968_v50, %v25618_v20  ;;  %v27171_v20 = vld [vmem:[#allocation63_spill] sm:$0xff] }
 0xeea   : > { %9005 = vadd.xlane.f32.xlu0 %v9004_v5 }
 0xeed   : > { %v25862_v18 = vpop.xlane.xlu1 %8984 }
 0xeee   : > { %9011 = vadd.xlane.f32.xlu0 %v9010_v55  ;;  %v9384_v55 = vpack.c.bf16 %v9256_v47, %v9256_v47  ;;  %v27187_v47 = vld [vmem:[#allocation73_spill] sm:$0xff]  ;;  %19971 = vrcp.f32 %v25862_v18  ;;  %v27231_v18 = vld [vmem:[#allocation98_spill] sm:$0xff] }
 0xef1   : > { %v1740_v1 = vpop.permute.xlu1 %1739  ;;  %v25867_v40 = vpop.f32.mrb[16].mxu1 }
 0xef2   : > { %v14646_v29 = vsel %vm9400_vm3, %v1740_v1, 0  ;;  %v17008_v56 = vpack.c.bf16 %v25867_v40, %v25787_v13  ;;  %v19145_v39 = vpop.f32.mrb[17].mxu1  ;;  %v27173_v1 = vpack.c.bf16 %v27171_v20, %v27172_v30  ;;  %v19970_v30 = vpop.eup %19969 }
 0xef3   : > { %v14179_v60 = vpop.f32.mrb[18].mxu1  ;;  %19208 = vmatpush3.bf16.msra.mxu0 %v14646_v29  ;;  %v27174_v29 = vld [vmem:[#allocation148_spill] sm:$0xff]  ;;  %v27175_v39 = vld [vmem:[#allocation59_spill] sm:$0xff] }
 0xef4   : > { %v19146_v54 = vpop.f32.mrb[19].mxu1  ;;  %19219 = vmatprep.subr.bf16.mxu0 %v26609_v2  ;;  %v27176_v60 = vpack.c.bf16 %v27174_v29, %v27175_v39 }
 0xef5   : > { %v27178_v54 = vld [vmem:[#allocation28_spill] sm:$0xff] }
 0xef6   : > { %19210 = vmatmul.mubr.msk.bf16.vlgmr.msra.gmra.mrb[0].mxu0 %vm7860_vm2, %v9383_v33  ;;  %v27177_v33 = vld [vmem:[#allocation30_spill] sm:$0xff] }
 0xef7   : > { %19220 = vmatpush3.bf16.msra.mxu0 %v14738_v41  ;;  %19221 = vmatprep.mubr.msk.bf16.mxu0 %vm20129_vm0, %v26609_v2  ;;  %v27179_v58 = vpack.c.bf16 %v27177_v33, %v27178_v54  ;;  %v27180_v41 = vld [vmem:[#allocation87_spill] sm:$0xff]  ;;  %v27196_v54 = vld [vmem:[#allocation86_spill] sm:$0xff] }
 0xef8   : > { %19231 = vmatprep.subr.bf16.mxu0 %v26609_v2  ;;  %v27195_v33 = vld [vmem:[#allocation99_spill] sm:$0xff] }
 0xefe   : > { %19222 = vmatmul.mubr.msk.bf16.vlgmr.msra.gmra.mrb[4].mxu0 %vm7860_vm2, %v9385_v32  ;;  %v27182_v32 = vpack.c.bf16 %v27180_v41, %v27181_v27  ;;  %v27198_v41 = vld [vmem:[#allocation64_spill] sm:$0xff] }
 0xeff   : > { %19233 = vmatprep.mubr.msk.bf16.mxu0 %vm20129_vm0, %v26609_v2  ;;  %v27199_v27 = vld [vmem:[#allocation88_spill] sm:$0xff] }
 0xf03   : > { %9008 = vadd.xlane.f32.xlu1 %v9007_v38  ;;  %v27184_v38 = vld [vmem:[#allocation75_spill] sm:$0xff] }
 0xf04   : > { %1679 = vrot.lane.b32.xlu0 %v25887_v37, %s20131_s10  ;;  %v27185_v50 = vpack.c.bf16 %v27183_v49, %v27184_v38  ;;  %v9258_v49 = vmul.f32 %v19970_v30, %v25696_v15 }
 0xf08   : > { %1743 = vrot.lane.b32.xlu0 %v25887_v37, %s20130_s19 }
 0xf0c   : > { %1807 = vrot.lane.b32.xlu0 %v25887_v37, %s20132_s11 }
 0xf0d   : > { %v8991_v46 = vpop.xlane.xlu0 %8990 }
 0xf0e   : > { %19973 = vrcp.f32 %v8991_v46  ;;  %v27240_v46 = vld [vmem:[#allocation12_spill] sm:$0xff] }
 0xf0f   : > { %19975 = vrcp.f32 %v25839_v11 }
 0xf10   : > { %1745 = vrot.lane.b32.xlu0 %v25900_v43, %s20130_s19 }
 0xf11   : > { %v1804_v45 = vpop.permute.xlu0 %1803  ;;  %v25905_v61 = vpop.f32.mrb[20].mxu1 }
 0xf12   : > { %v14692_v5 = vsel %vm9400_vm3, %v1804_v45, 0  ;;  %v19157_v14 = vpop.f32.mrb[21].mxu1  ;;  %v27188_v45 = vpack.c.bf16 %v27186_v8, %v27187_v47  ;;  %v27201_v47 = vld [vmem:[#allocation104_spill] sm:$0xff] }
 0xf13   : > { %v14271_v9 = vpop.f32.mrb[22].mxu1  ;;  %19214 = vmatpush3.bf16.msra.mxu1 %v14692_v5  ;;  %v27189_v5 = vld [vmem:[#allocation84_spill] sm:$0xff]  ;;  %v27190_v14 = vld [vmem:[#allocation81_spill] sm:$0xff] }
 0xf14   : > { %1681 = vrot.lane.b32.xlu1 %v25900_v43, %s20131_s10  ;;  %1809 = vrot.lane.b32.xlu0 %v25900_v43, %s20132_s11  ;;  %v19158_v63 = vpop.f32.mrb[23].mxu1  ;;  %v27191_v9 = vpack.c.bf16 %v27189_v5, %v27190_v14  ;;  %v9386_v14 = vpack.c.bf16 %v9258_v49, %v9258_v49  ;;  %v27214_v49 = vld [vmem:[#allocation111_spill] sm:$0xff] }
 0xf15   : > { %19225 = vmatprep.subr.bf16.mxu1 %v26609_v2  ;;  %v27193_v63 = vld [vmem:[#allocation79_spill] sm:$0xff] }
 0xf16   : > { %19216 = vmatmul.mubr.msk.bf16.vlgmr.msra.gmra.mrb[40].mxu1 %vm7860_vm2, %v9384_v55  ;;  %v27192_v55 = vld [vmem:[#allocation26_spill] sm:$0xff] }
 0xf17   : > { %19227 = vmatprep.mubr.msk.bf16.mxu1 %vm20129_vm0, %v26609_v2  ;;  %v27194_v20 = vpack.c.bf16 %v27192_v55, %v27193_v63  ;;  %v27205_v55 = vld [vmem:[#allocation83_spill] sm:$0xff] }
 0xf18   : > { %15751 = vrot.lane.b32.xlu1 %v27173_v1, %s20130_s19  ;;  %15606 = vrot.lane.b32.xlu0 %v27176_v60, %s20132_s11 }
 0xf1c   : > { %15896 = vrot.lane.b32.xlu1 %v27179_v58, %s20131_s10  ;;  %15608 = vrot.lane.b32.xlu0 %v27182_v32, %s20132_s11  ;;  %v27197_v58 = vpack.c.bf16 %v27195_v33, %v27196_v54  ;;  %v27200_v32 = vpack.c.bf16 %v27198_v41, %v27199_v27  ;;  %v27208_v33 = vld [vmem:[#allocation23_spill] sm:$0xff]  ;;  %v27211_v41 = vld [vmem:[#allocation66_spill] sm:$0xff] }
 0xf20   : > { %15753 = vrot.lane.b32.xlu0 %v27185_v50, %s20130_s19  ;;  %15610 = vrot.lane.b32.xlu1 %v27188_v45, %s20132_s11  ;;  %v27202_v45 = vld [vmem:[#allocation14_spill] sm:$0xff] }
 0xf21   : > { %v27203_v5 = vpack.c.bf16 %v27201_v47, %v27202_v45  ;;  %v27219_v45 = vld [vmem:[#allocation16_spill] sm:$0xff] }
 0xf22   : > { %v25941_v53 = vpop.xlane.xlu1 %8993 }
 0xf23   : > { %19977 = vrcp.f32 %v25941_v53 }
 0xf24   : > { %15898 = vrot.lane.b32.xlu0 %v27191_v9, %s20131_s10  ;;  %15755 = vrot.lane.b32.xlu1 %v27194_v20, %s20130_s19  ;;  %v27204_v9 = vld [vmem:[#allocation13_spill] sm:$0xff] }
 0xf25   : > { %v27206_v63 = vpack.c.bf16 %v27204_v9, %v27205_v55  ;;  %v27222_v9 = vld [vmem:[#allocation116_spill] sm:$0xff]  ;;  %v27223_v55 = vld [vmem:[#allocation89_spill] sm:$0xff] }
 0xf26   : > { %v25951_v1 = vpop.f32.mrb[240].mxu0  ;;  %v25953_v29 = vpop.xlane.xlu1 %8999 }
 0xf27   : > { %v19163_v39 = vpop.f32.mrb[241].mxu0 }
 0xf28   : > { %v14317_v60 = vpop.f32.mrb[242].mxu0  ;;  %15900 = vrot.lane.b32.xlu1 %v27197_v58, %s20131_s10  ;;  %15612 = vrot.lane.b32.xlu0 %v27200_v32, %s20132_s11  ;;  %v27210_v58 = vld [vmem:[#allocation61_spill] sm:$0xff] }
 0xf29   : > { %v19164_v38 = vpop.f32.mrb[243].mxu0  ;;  %v27207_v60 = vld [vmem:[#allocation34_spill] sm:$0xff]  ;;  %v27212_v27 = vpack.c.bf16 %v27210_v58, %v27211_v41  ;;  %v27213_v32 = vld [vmem:[#allocation113_spill] sm:$0xff]  ;;  %v27234_v41 = vld [vmem:[#allocation72_spill] sm:$0xff] }
 0xf2a   : > { %v1678_v50 = vpop.permute.xlu1 %1677  ;;  %v27209_v54 = vpack.c.bf16 %v27207_v60, %v27208_v33  ;;  %v27215_v38 = vpack.c.bf16 %v27213_v32, %v27214_v49  ;;  %v27229_v60 = vld [vmem:[#allocation69_spill] sm:$0xff]  ;;  %v19972_v32 = vpop.eup %19971 }
 0xf2b   : > { %v14784_v8 = vsel %vm9400_vm3, %v1678_v50, 0  ;;  %v27216_v50 = vld [vmem:[#allocation107_spill] sm:$0xff] }
 0xf2c   : > { %19226 = vmatpush3.bf16.msra.mxu1 %v14784_v8  ;;  %15757 = vrot.lane.b32.xlu0 %v27203_v5, %s20130_s19  ;;  %v27217_v8 = vld [vmem:[#allocation106_spill] sm:$0xff]  ;;  %v27220_v5 = vld [vmem:[#allocation33_spill] sm:$0xff] }
 0xf2d   : > { %15614 = vrot.lane.b32.xlu1 %v27206_v63, %s20132_s11  ;;  %19237 = vmatprep.subr.bf16.mxu1 %v26609_v2  ;;  %v27218_v47 = vpack.c.bf16 %v27216_v50, %v27217_v8  ;;  %v27224_v63 = vpack.c.bf16 %v27222_v9, %v27223_v55  ;;  %v27238_v50 = vld [vmem:[#allocation67_spill] sm:$0xff] }
 0xf2e   : > { %v14406_v20 = vpop.f32.mrb[244].mxu0 }
 0xf2f   : > { %v16961_v15 = vpack.c.bf16 %v14406_v20, %v25848_v31  ;;  %v19175_v30 = vpop.f32.mrb[245].mxu0  ;;  %19228 = vmatmul.mubr.msk.bf16.vlgmr.msra.gmra.mrb[44].mxu1 %vm7860_vm2, %v9386_v14  ;;  %v27221_v14 = vpack.c.bf16 %v27219_v45, %v27220_v5  ;;  %v27225_v20 = vld [vmem:[#allocation68_spill] sm:$0xff] }
 0xf30   : > { %v14409_v39 = vpop.f32.mrb[246].mxu0  ;;  %15902 = vrot.lane.b32.xlu0 %v27209_v54, %s20131_s10  ;;  %19239 = vmatprep.mubr.msk.bf16.mxu1 %vm20129_vm0, %v26609_v2  ;;  %v27232_v54 = vld [vmem:[#allocation93_spill] sm:$0xff]  ;;  %v27241_v45 = vld [vmem:[#allocation92_spill] sm:$0xff] }
 0xf31   : > { %15523 = vst.msk [vmem:[#allocation2 + $0x68] sm:$0xff] %vm1811_vm1, %v16961_v15  ;;  %15759 = vrot.lane.b32.xlu1 %v27212_v27, %s20130_s19  ;;  %v19176_v31 = vpop.f32.mrb[247].mxu0  ;;  %v27226_v15 = vld [vmem:[#allocation110_spill] sm:$0xff]  ;;  %v27233_v58 = vpack.c.bf16 %v27231_v18, %v27232_v54  ;;  %v27235_v27 = vld [vmem:[#allocation117_spill] sm:$0xff]  ;;  %v27242_v5 = vpack.c.bf16 %v27240_v46, %v27241_v45 }
 0xf32   : > { %v27227_v30 = vpack.c.bf16 %v27225_v20, %v27226_v15  ;;  %v27228_v39 = vld [vmem:[#allocation78_spill] sm:$0xff]  ;;  %v27236_v31 = vpack.c.bf16 %v27234_v41, %v27235_v27  ;;  %v27243_v20 = vld [vmem:[#allocation20_spill] sm:$0xff]  ;;  %v27244_v15 = vld [vmem:[#allocation97_spill] sm:$0xff]  ;;  %v14922_v41 = vsel %vm9400_vm3, %v25887_v37, 0 }
 0xf33   : > { %v27230_v33 = vpack.c.bf16 %v27228_v39, %v27229_v60  ;;  %v27249_v27 = vld [vmem:[#allocation134_spill] sm:$0xff]  ;;  %v27256_v46 = vld [vmem:[#allocation101_spill] sm:$0xff] }
 0xf34   : > { %15616 = vrot.lane.b32.xlu0 %v27215_v38, %s20132_s11  ;;  %v27237_v38 = vld [vmem:[#allocation37_spill] sm:$0xff]  ;;  %v27255_v37 = vld [vmem:[#allocation42_spill] sm:$0xff] }
 0xf35   : > { %15904 = vrot.lane.b32.xlu1 %v27218_v47, %s20131_s10  ;;  %v27239_v8 = vpack.c.bf16 %v27237_v38, %v27238_v50  ;;  %v9259_v47 = vmul.f32 %v19972_v32, %v25723_v24  ;;  %v27246_v24 = vld [vmem:[#allocation18_spill] sm:$0xff]  ;;  %v27252_v50 = vld [vmem:[#allocation129_spill] sm:$0xff]  ;;  %v27257_v45 = vpack.c.bf16 %v27255_v37, %v27256_v46 }
 0xf37   : > { %v9387_v60 = vpack.c.bf16 %v9259_v47, %v9259_v47 }
 0xf38   : > { %15761 = vrot.lane.b32.xlu0 %v27221_v14, %s20130_s19 }
 0xf39   : > { %15618 = vrot.lane.b32.xlu1 %v27224_v63, %s20132_s11 }
 0xf3c   : > { %15906 = vrot.lane.b32.xlu0 %v27227_v30, %s20131_s10  ;;  %v27245_v30 = vpack.c.bf16 %v27243_v20, %v27244_v15  ;;  %v27262_v20 = vld [vmem:[#allocation132_spill] sm:$0xff] }
 0xf3d   : > { %15763 = vrot.lane.b32.xlu1 %v27230_v33, %s20130_s19  ;;  %v27247_v33 = vld [vmem:[#allocation128_spill] sm:$0xff] }
 0xf3e   : > { %v27248_v18 = vpack.c.bf16 %v27246_v24, %v27247_v33 }
 0xf40   : > { %15620 = vrot.lane.b32.xlu0 %v27233_v58, %s20132_s11  ;;  %v19974_v58 = vpop.eup %19973 }
 0xf41   : > { %15908 = vrot.lane.b32.xlu1 %v27236_v31, %s20131_s10  ;;  %v27250_v31 = vld [vmem:[#allocation102_spill] sm:$0xff]  ;;  %v9261_v38 = vmul.f32 %v19974_v58, %v25749_v6  ;;  %v27258_v6 = vld [vmem:[#allocation56_spill] sm:$0xff] }
 0xf42   : > { %v8997_v49 = vpop.xlane.xlu0 %8996  ;;  %v27251_v32 = vpack.c.bf16 %v27249_v27, %v27250_v31  ;;  %v15106_v31 = vsel %vm9400_vm3, %v25900_v43, 0  ;;  %v19471_v43 = vld [vmem:[%s26357_s4] sm:$0xff]  }
 0xf43   : > { %19979 = vrcp.f32 %v8997_v49 }
 0xf44   : > { %15765 = vrot.lane.b32.xlu0 %v27239_v8, %s20130_s19  ;;  %v27253_v8 = vld [vmem:[#allocation130_spill] sm:$0xff]  ;;  %19981 = vrcp.f32 %v25953_v29 }
 0xf45   : > { %15622 = vrot.lane.b32.xlu1 %v27242_v5, %s20132_s11  ;;  %v27254_v47 = vpack.c.bf16 %v27252_v50, %v27253_v8  ;;  %v9389_v5 = vpack.c.bf16 %v9261_v38, %v9261_v38 }
 0xf46   : > { %v1742_v14 = vpop.permute.xlu0 %1741  ;;  %v26029_v9 = vpop.f32.mrb[24].mxu1 }
 0xf47   : > { %v14830_v55 = vsel %vm9400_vm3, %v1742_v14, 0  ;;  %v19169_v63 = vpop.f32.mrb[25].mxu1  ;;  %v27259_v14 = vld [vmem:[#allocation133_spill] sm:$0xff] }
 0xf48   : > { %19232 = vmatpush3.bf16.msra.mxu0 %v14830_v55  ;;  %15910 = vrot.lane.b32.xlu0 %v27245_v30, %s20131_s10  ;;  %v14363_v39 = vpop.f32.mrb[26].mxu1  ;;  %v27260_v55 = vpack.c.bf16 %v27258_v6, %v27259_v14  ;;  %v27261_v63 = vld [vmem:[#allocation131_spill] sm:$0xff]  ;;  %v27264_v30 = vld [vmem:[#allocation105_spill] sm:$0xff] }
 0xf49   : > { %15767 = vrot.lane.b32.xlu1 %v27248_v18, %s20130_s19  ;;  %v19170_v54 = vpop.f32.mrb[27].mxu1  ;;  %19243 = vmatprep.subr.bf16.mxu0 %v26609_v2  ;;  %v27263_v15 = vpack.c.bf16 %v27261_v63, %v27262_v20  ;;  %v27265_v39 = vld [vmem:[#allocation103_spill] sm:$0xff] }
 0xf4a   : > { %v27266_v11 = vpack.c.bf16 %v27264_v30, %v27265_v39 }
 0xf4b   : > { %19234 = vmatmul.mubr.msk.bf16.vlgmr.msra.gmra.mrb[8].mxu0 %vm7860_vm2, %v9387_v60  ;;  %v19976_v60 = vpop.eup %19975 }
 0xf4c   : > { %19244 = vmatpush3.bf16.msra.mxu0 %v14922_v41  ;;  %15624 = vrot.lane.b32.xlu0 %v27251_v32, %s20132_s11  ;;  %v9260_v62 = vmul.f32 %v19976_v60, %v25700_v36 }
 0xf4d   : > { %15912 = vrot.lane.b32.xlu1 %v27254_v47, %s20131_s10  ;;  %19245 = vmatprep.mubr.msk.bf16.mxu0 %vm20129_vm0, %v26609_v2 }
 0xf4e   : > { %19255 = vmatprep.subr.bf16.mxu0 %v26609_v2  ;;  %v9388_v21 = vpack.c.bf16 %v9260_v62, %v9260_v62 }
 0xf50   : > { %15769 = vrot.lane.b32.xlu0 %v27257_v45, %s20130_s19 }
 0xf51   : > { %15626 = vrot.lane.b32.xlu1 %v27260_v55, %s20132_s11 }
 0xf53   : > { %19246 = vmatmul.mubr.msk.bf16.vlgmr.msra.gmra.mrb[12].mxu0 %vm7860_vm2, %v9389_v5 }
 0xf54   : > { %15914 = vrot.lane.b32.xlu0 %v27263_v15, %s20131_s10  ;;  %19257 = vmatprep.mubr.msk.bf16.mxu0 %vm20129_vm0, %v26609_v2 }
 0xf55   : > { %15771 = vrot.lane.b32.xlu1 %v27266_v11, %s20130_s19 }
 0xf58   : > { %15628 = vrot.lane.b32.xlu0 %v16975_v16, %s20132_s11 }
 0xf59   : > { %15916 = vrot.lane.b32.xlu1 %v17006_v28, %s20131_s10 }
 0xf5b   : > { %v9003_v24 = vpop.xlane.xlu1 %9002 }
 0xf5c   : > { %15773 = vrot.lane.b32.xlu0 %v16991_v3, %s20130_s19  ;;  %v19978_v3 = vpop.eup %19977  ;;  %19983 = vrcp.f32 %v9003_v24 }
 0xf5d   : > { %15630 = vrot.lane.b32.xlu1 %v16976_v7, %s20132_s11  ;;  %v9262_v13 = vmul.f32 %v19978_v3, %v25771_v57  ;;  %v19980_v7 = vpop.eup %19979 }
 0xf5f   : > { %v1806_v59 = vpop.permute.xlu1 %1805  ;;  %v14452_v16 = vpop.f32.mrb[28].mxu1  ;;  %v9390_v40 = vpack.c.bf16 %v9262_v13, %v9262_v13 }
 0xf60   : > { %v14876_v33 = vsel %vm9400_vm3, %v1806_v59, 0  ;;  %v16977_v4 = vpack.c.bf16 %v14452_v16, %v25905_v61  ;;  %15918 = vrot.lane.b32.xlu0 %v17007_v44, %s20131_s10  ;;  %v19181_v19 = vpop.f32.mrb[29].mxu1  ;;  %v19982_v61 = vpop.eup %19981 }
 0xf61   : > { %15775 = vrot.lane.b32.xlu1 %v16992_v17, %s20130_s19  ;;  %v14455_v28 = vpop.f32.mrb[30].mxu1  ;;  %19238 = vmatpush3.bf16.msra.mxu1 %v14876_v33  ;;  %v9264_v18 = vmul.f32 %v19982_v61, %v25775_v48 }
 0xf62   : > { %v19182_v51 = vpop.f32.mrb[31].mxu1  ;;  %19249 = vmatprep.subr.bf16.mxu1 %v26609_v2 }
 0xf63   : > { %v9392_v32 = vpack.c.bf16 %v9264_v18, %v9264_v18 }
 0xf64   : > { %19240 = vmatmul.mubr.msk.bf16.vlgmr.msra.gmra.mrb[48].mxu1 %vm7860_vm2, %v9388_v21  ;;  %15632 = vrot.lane.b32.xlu0 %v16977_v4, %s20132_s11  ;;  %v19472_v4 = vld [vmem:[%s26357_s4 + $0x8] sm:$0xff]  }
 0xf65   : > { %15920 = vrot.lane.b32.xlu1 %v17008_v56, %s20131_s10  ;;  %19251 = vmatprep.mubr.msk.bf16.mxu1 %vm20129_vm0, %v26609_v2  ;;  %v9263_v56 = vmul.f32 %v19980_v7, %v25806_v34  ;;  %v19477_v7 = vld [vmem:[%s26357_s4 + $0x30] sm:$0xff]  }
 0xf66   : > { %v19984_v58 = vpop.eup %19983 }
 0xf67   : > { %v9391_v54 = vpack.c.bf16 %v9263_v56, %v9263_v56  ;;  %v9265_v38 = vmul.f32 %v19984_v58, %v25824_v0 }
 0xf69   : > { %v9393_v50 = vpack.c.bf16 %v9265_v38, %v9265_v38 }
 0xf77   : > { %v9006_v22 = vpop.xlane.xlu0 %9005 }
 0xf78   : > { %19985 = vrcp.f32 %v9006_v22  ;;  %v19474_v22 = vld [vmem:[%s26357_s4 + $0x18] sm:$0xff]  }
 0xf7b   : > { %v9012_v36 = vpop.xlane.xlu0 %9011  ;;  %v14498_v25 = vpop.f32.mrb[248].mxu0 }
 0xf7c   : > { %v16993_v44 = vpack.c.bf16 %v14498_v25, %v25951_v1  ;;  %v19187_v10 = vpop.f32.mrb[249].mxu0  ;;  %19987 = vrcp.f32 %v9012_v36  ;;  %v19475_v25 = vld [vmem:[%s26357_s4 + $0x20] sm:$0xff]  }
 0xf7d   : > { %v14501_v26 = vpop.f32.mrb[250].mxu0 }
 0xf7e   : > { %v19188_v23 = vpop.f32.mrb[251].mxu0  ;;  %15777 = vrot.lane.b32.xlu0 %v16993_v44, %s20130_s19  ;;  %v19476_v26 = vld [vmem:[%s26357_s4 + $0x28] sm:$0xff]  }
 0xf7f   : > { %v1680_v12 = vpop.permute.xlu0 %1679 }
 0xf80   : > { %v14968_v17 = vsel %vm9400_vm3, %v1680_v12, 0 }
 0xf81   : > { %19250 = vmatpush3.bf16.msra.mxu1 %v14968_v17 }
 0xf82   : > { %19261 = vmatprep.subr.bf16.mxu1 %v26609_v2  ;;  %v19986_v8 = vpop.eup %19985 }
 0xf83   : > { %v1744_v53 = vpop.permute.xlu0 %1743  ;;  %v26120_v1 = vpop.f32.mrb[252].mxu0  ;;  %v9266_v46 = vmul.f32 %v19986_v8, %v25854_v52 }
 0xf84   : > { %v15014_v29 = vsel %vm9400_vm3, %v1744_v53, 0  ;;  %v19199_v57 = vpop.f32.mrb[253].mxu0  ;;  %19252 = vmatmul.mubr.msk.bf16.vlgmr.msra.gmra.mrb[52].mxu1 %vm7860_vm2, %v9390_v40  ;;  %v19478_v53 = vld [vmem:[%s26357_s4 + $0x38] sm:$0xff]  }
 0xf85   : > { %v14593_v49 = vpop.f32.mrb[254].mxu0  ;;  %19256 = vmatpush3.bf16.msra.mxu0 %v15014_v29  ;;  %19263 = vmatprep.mubr.msk.bf16.mxu1 %vm20129_vm0, %v26609_v2  ;;  %v9394_v15 = vpack.c.bf16 %v9266_v46, %v9266_v46 }
 0xf86   : > { %v19200_v34 = vpop.f32.mrb[255].mxu0  ;;  %19267 = vmatprep.subr.bf16.mxu0 %v26609_v2  ;;  %v19988_v52 = vpop.eup %19987 }
 0xf87   : > { %v1808_v41 = vpop.permute.xlu0 %1807  ;;  %v9268_v24 = vmul.f32 %v19988_v52, %v25858_v42  ;;  %v19473_v42 = vld [vmem:[%s26357_s4 + $0x10] sm:$0xff]  }
 0xf88   : > { %v15060_v27 = vsel %vm9400_vm3, %v1808_v41, 0  ;;  %19258 = vmatmul.mubr.msk.bf16.vlgmr.msra.gmra.mrb[16].mxu0 %vm7860_vm2, %v9391_v54 }
 0xf89   : > { %19262 = vmatpush3.bf16.msra.mxu1 %v15060_v27  ;;  %19268 = vmatpush3.bf16.msra.mxu0 %v15106_v31  ;;  %v9396_v19 = vpack.c.bf16 %v9268_v24, %v9268_v24 }
 0xf8a   : > { %19269 = vmatprep.mubr.msk.bf16.mxu0 %vm20129_vm0, %v26609_v2  ;;  %19279 = vmatprep.subr.bf16.mxu0 %v26609_v2 }
 0xf8b   : > { %v1746_v48 = vpop.permute.xlu0 %1745  ;;  %19273 = vmatprep.subr.bf16.mxu1 %v26609_v2 }
 0xf8c   : > { %19264 = vmatmul.mubr.msk.bf16.vlgmr.msra.gmra.mrb[56].mxu1 %vm7860_vm2, %v9392_v32  ;;  %v15198_v47 = vsel %vm9400_vm3, %v1746_v48, 0 }
 0xf8d   : > { %19275 = vmatprep.mubr.msk.bf16.mxu1 %vm20129_vm0, %v26609_v2 }
 0xf8f   : > { %v1810_v0 = vpop.permute.xlu0 %1809 }
 0xf90   : > { %19270 = vmatmul.mubr.msk.bf16.vlgmr.msra.gmra.mrb[20].mxu0 %vm7860_vm2, %v9393_v50  ;;  %v9009_v37 = vpop.xlane.xlu1 %9008  ;;  %v15244_v60 = vsel %vm9400_vm3, %v1810_v0, 0 }
 0xf91   : > { %19280 = vmatpush3.bf16.msra.mxu0 %v15198_v47  ;;  %19989 = vrcp.f32 %v9009_v37  ;;  %19281 = vmatprep.mubr.msk.bf16.mxu0 %vm20129_vm0, %v26609_v2 }
 0xf92   : > { %19291 = vmatprep.subr.bf16.mxu0 %v19471_v43 }
 0xf93   : > { %v15607_v45 = vpop.permute.xlu0 %15606 }
 0xf94   : > { %15655 = vst.msk [vmem:[#allocation2] sm:$0xff] %vm15654_vm4, %v15607_v45  ;;  %v1682_v5 = vpop.permute.xlu1 %1681  ;;  %v14544_v6 = vpop.f32.mrb[32].mxu1 }
 0xf95   : > { %v15152_v14 = vsel %vm9400_vm3, %v1682_v5, 0  ;;  %v17009_v55 = vpack.c.bf16 %v14544_v6, %v26029_v9  ;;  %v19193_v63 = vpop.f32.mrb[33].mxu1 }
 0xf96   : > { %v14547_v20 = vpop.f32.mrb[34].mxu1  ;;  %19274 = vmatpush3.bf16.msra.mxu1 %v15152_v14 }
 0xf97   : > { %v15609_v30 = vpop.permute.xlu0 %15608  ;;  %15922 = vrot.lane.b32.xlu0 %v17009_v55, %s20131_s10  ;;  %v19194_v39 = vpop.f32.mrb[35].mxu1  ;;  %19285 = vmatprep.subr.bf16.mxu1 %v26609_v2 }
 0xf98   : > { %15656 = vst.msk [vmem:[#allocation2 + $0x8] sm:$0xff] %vm15654_vm4, %v15609_v30  ;;  %v15752_v11 = vpop.permute.xlu1 %15751 }
 0xf99   : > { %15800 = vst.msk [vmem:[#allocation2] sm:$0xff] %vm15799_vm5, %v15752_v11  ;;  %19276 = vmatmul.mubr.msk.bf16.vlgmr.msra.gmra.mrb[60].mxu1 %vm7860_vm2, %v9394_v15 }
 0xf9a   : > { %19286 = vmatpush3.bf16.msra.mxu1 %v15244_v60  ;;  %19287 = vmatprep.mubr.msk.bf16.mxu1 %vm20129_vm0, %v26609_v2 }
 0xf9b   : > { %v19990_v9 = vpop.eup %19989  ;;  %v15754_v62 = vpop.permute.xlu0 %15753 }
 0xf9c   : > { %v9267_v59 = vmul.f32 %v19990_v9, %v25881_v35  ;;  %15801 = vst.msk [vmem:[#allocation2 + $0x8] sm:$0xff] %vm15799_vm5, %v15754_v62  ;;  %v15897_v16 = vpop.permute.xlu1 %15896 }
 0xf9d   : > { %15945 = vst.msk [vmem:[#allocation2] sm:$0xff] %vm15944_vm6, %v15897_v16 }
 0xf9e   : > { %v9395_v33 = vpack.c.bf16 %v9267_v59, %v9267_v59 }
 0xf9f   : > { %v15899_v28 = vpop.permute.xlu0 %15898 }
 0xfa0   : > { %15946 = vst.msk [vmem:[#allocation2 + $0x8] sm:$0xff] %vm15944_vm6, %v15899_v28  ;;  %19282 = vmatmul.mubr.msk.bf16.vlgmr.msra.gmra.mrb[24].mxu0 %vm7860_vm2, %v9395_v33  ;;  %v15611_v2 = vpop.permute.xlu1 %15610 }
 0xfa1   : > { %19292 = vmatpush3.bf16.msra.mxu0 %v19471_v43  ;;  %15657 = vst.msk [vmem:[#allocation2 + $0x10] sm:$0xff] %vm15654_vm4, %v15611_v2  ;;  %19288 = vmatmul.mubr.msk.bf16.vlgmr.msra.gmra.mrb[64].mxu1 %vm7860_vm2, %v9396_v19 }
 0xfa2   : > { %19293 = vmatprep.subr.bf16.mxu0 %v19472_v4 }
 0xfa3   : > { %v15613_v35 = vpop.permute.xlu0 %15612 }
 0xfa4   : > { %15658 = vst.msk [vmem:[#allocation2 + $0x18] sm:$0xff] %vm15654_vm4, %v15613_v35  ;;  %v15756_v21 = vpop.permute.xlu1 %15755  ;;  %v15961_v51 = vld [vmem:[#allocation2] sm:$0xff] }
 0xfa5   : > { %19294 = vmatpush3.bf16.msra.mxu0 %v19472_v4  ;;  %15802 = vst.msk [vmem:[#allocation2 + $0x10] sm:$0xff] %vm15799_vm5, %v15756_v21  ;;  %19307 = vmatprep.mubr.bf16.mxu0 %v15961_v51 }
 0xfa6   : > { %19295 = vmatprep.subr.bf16.mxu0 %v19473_v42 }
 0xfa7   : > { %v15758_v3 = vpop.permute.xlu0 %15757  ;;  %v15962_v34 = vld [vmem:[#allocation2 + $0x8] sm:$0xff] }
 0xfa8   : > { %15803 = vst.msk [vmem:[#allocation2 + $0x18] sm:$0xff] %vm15799_vm5, %v15758_v3  ;;  %v15901_v36 = vpop.permute.xlu1 %15900 }
 0xfa9   : > { %19296 = vmatpush3.bf16.msra.mxu0 %v19473_v42  ;;  %15947 = vst.msk [vmem:[#allocation2 + $0x10] sm:$0xff] %vm15944_vm6, %v15901_v36 }
 0xfaa   : > { %19297 = vmatprep.subr.bf16.mxu0 %v19474_v22 }
 0xfab   : > { %v15903_v44 = vpop.permute.xlu0 %15902 }
 0xfac   : > { %15948 = vst.msk [vmem:[#allocation2 + $0x18] sm:$0xff] %vm15944_vm6, %v15903_v44  ;;  %v15615_v10 = vpop.permute.xlu1 %15614 }
 0xfad   : > { %19298 = vmatpush3.bf16.msra.mxu0 %v19474_v22  ;;  %15659 = vst.msk [vmem:[#allocation2 + $0x20] sm:$0xff] %vm15654_vm4, %v15615_v10 }
 0xfae   : > { %19299 = vmatprep.subr.bf16.mxu0 %v19475_v25 }
 0xfaf   : > { %v15617_v13 = vpop.permute.xlu0 %15616 }
 0xfb0   : > { %15660 = vst.msk [vmem:[#allocation2 + $0x28] sm:$0xff] %vm15654_vm4, %v15617_v13  ;;  %v15760_v23 = vpop.permute.xlu1 %15759  ;;  %v15963_v41 = vld [vmem:[#allocation2 + $0x10] sm:$0xff] }
 0xfb1   : > { %19300 = vmatpush3.bf16.msra.mxu0 %v19475_v25  ;;  %15804 = vst.msk [vmem:[#allocation2 + $0x20] sm:$0xff] %vm15799_vm5, %v15760_v23 }
 0xfb2   : > { %19301 = vmatprep.subr.bf16.mxu0 %v19476_v26 }
 0xfb3   : > { %v15762_v12 = vpop.permute.xlu0 %15761  ;;  %v15964_v38 = vld [vmem:[#allocation2 + $0x18] sm:$0xff] }
 0xfb4   : > { %15805 = vst.msk [vmem:[#allocation2 + $0x28] sm:$0xff] %vm15799_vm5, %v15762_v12  ;;  %v15905_v17 = vpop.permute.xlu1 %15904  ;;  %v26194_v40 = vpop.f32.mrb[36].mxu1 }
 0xfb5   : > { %19302 = vmatpush3.bf16.msra.mxu0 %v19476_v26  ;;  %15949 = vst.msk [vmem:[#allocation2 + $0x20] sm:$0xff] %vm15944_vm6, %v15905_v17  ;;  %v19205_v56 = vpop.f32.mrb[37].mxu1 }
 0xfb6   : > { %v14639_v61 = vpop.f32.mrb[38].mxu1  ;;  %19303 = vmatprep.subr.bf16.mxu0 %v19477_v7 }
 0xfb7   : > { %v15907_v29 = vpop.permute.xlu0 %15906  ;;  %v19206_v57 = vpop.f32.mrb[39].mxu1 }
 0xfb8   : > { %15950 = vst.msk [vmem:[#allocation2 + $0x28] sm:$0xff] %vm15944_vm6, %v15907_v29  ;;  %v15619_v49 = vpop.permute.xlu1 %15618 }
 0xfb9   : > { %19304 = vmatpush3.bf16.msra.mxu0 %v19477_v7  ;;  %15661 = vst.msk [vmem:[#allocation2 + $0x30] sm:$0xff] %vm15654_vm4, %v15619_v49 }
 0xfba   : > { %19305 = vmatprep.subr.bf16.mxu0 %v19478_v53 }
 0xfbb   : > { %v15621_v18 = vpop.permute.xlu0 %15620 }
 0xfbc   : > { %15662 = vst.msk [vmem:[#allocation2 + $0x38] sm:$0xff] %vm15654_vm4, %v15621_v18  ;;  %v15764_v54 = vpop.permute.xlu1 %15763  ;;  %v15965_v50 = vld [vmem:[#allocation2 + $0x20] sm:$0xff] }
 0xfbd   : > { %19306 = vmatpush3.bf16.msra.mxu0 %v19478_v53  ;;  %15806 = vst.msk [vmem:[#allocation2 + $0x30] sm:$0xff] %vm15799_vm5, %v15764_v54 }
 0xfbf   : > { %v15766_v58 = vpop.permute.xlu0 %15765  ;;  %v15966_v5 = vld [vmem:[#allocation2 + $0x28] sm:$0xff] }
 0xfc0   : > { %19308 = vmatmul.mubr.bf16.vlgmr.msra.gmra.mrb[28].mxu0 %v15962_v34  ;;  %15807 = vst.msk [vmem:[#allocation2 + $0x38] sm:$0xff] %vm15799_vm5, %v15766_v58  ;;  %v15909_v27 = vpop.permute.xlu1 %15908 }
 0xfc1   : > { %19311 = vmatprep.mubr.bf16.mxu0 %v15963_v41  ;;  %15951 = vst.msk [vmem:[#allocation2 + $0x30] sm:$0xff] %vm15944_vm6, %v15909_v27 }
 0xfc3   : > { %v15911_v31 = vpop.permute.xlu0 %15910 }
 0xfc4   : > { %15952 = vst.msk [vmem:[#allocation2 + $0x38] sm:$0xff] %vm15944_vm6, %v15911_v31  ;;  %v15623_v32 = vpop.permute.xlu1 %15622 }
 0xfc5   : > { %15663 = vst.msk [vmem:[#allocation2 + $0x40] sm:$0xff] %vm15654_vm4, %v15623_v32 }
 0xfc7   : > { %v15625_v48 = vpop.permute.xlu0 %15624 }
 0xfc8   : > { %19312 = vmatmul.mubr.bf16.gmra.mrb[32].mxu0 %v15964_v38  ;;  %15664 = vst.msk [vmem:[#allocation2 + $0x48] sm:$0xff] %vm15654_vm4, %v15625_v48  ;;  %v15768_v43 = vpop.permute.xlu1 %15767  ;;  %v15967_v14 = vld [vmem:[#allocation2 + $0x30] sm:$0xff] }
 0xfc9   : > { %19315 = vmatprep.mubr.bf16.mxu0 %v15965_v50  ;;  %15808 = vst.msk [vmem:[#allocation2 + $0x40] sm:$0xff] %vm15799_vm5, %v15768_v43  ;;  %v26210_v0 = vpop.f32.mrb[0].mxu0 }
 0xfca   : > { %v19211_v8 = vpop.f32.mrb[1].mxu0 }
 0xfcb   : > { %v14685_v47 = vpop.f32.mrb[2].mxu0  ;;  %v15770_v37 = vpop.permute.xlu0 %15769  ;;  %v15968_v60 = vld [vmem:[#allocation2 + $0x38] sm:$0xff] }
 0xfcc   : > { %15809 = vst.msk [vmem:[#allocation2 + $0x48] sm:$0xff] %vm15799_vm5, %v15770_v37  ;;  %v19212_v46 = vpop.f32.mrb[3].mxu0  ;;  %v15913_v45 = vpop.permute.xlu1 %15912 }
 0xfcd   : > { %15953 = vst.msk [vmem:[#allocation2 + $0x40] sm:$0xff] %vm15944_vm6, %v15913_v45 }
 0xfcf   : > { %v15915_v6 = vpop.permute.xlu0 %15914 }
 0xfd0   : > { %19316 = vmatmul.mubr.bf16.gmra.mrb[36].mxu0 %v15966_v5  ;;  %15954 = vst.msk [vmem:[#allocation2 + $0x48] sm:$0xff] %vm15944_vm6, %v15915_v6  ;;  %v15627_v55 = vpop.permute.xlu1 %15626 }
 0xfd1   : > { %19319 = vmatprep.mubr.bf16.mxu0 %v15967_v14  ;;  %15665 = vst.msk [vmem:[#allocation2 + $0x50] sm:$0xff] %vm15654_vm4, %v15627_v55  ;;  %v14774_v63 = vpop.f32.mrb[4].mxu0 }
 0xfd2   : > { %v16962_v20 = vpack.c.bf16 %v14774_v63, %v26120_v1  ;;  %v19223_v15 = vpop.f32.mrb[5].mxu0 }
 0xfd3   : > { %v14777_v30 = vpop.f32.mrb[6].mxu0  ;;  %v15629_v39 = vpop.permute.xlu0 %15628 }
 0xfd4   : > { %15524 = vst.msk [vmem:[#allocation2 + $0x70] sm:$0xff] %vm1811_vm1, %v16962_v20  ;;  %v19224_v52 = vpop.f32.mrb[7].mxu0  ;;  %v15772_v11 = vpop.permute.xlu1 %15771  ;;  %v15969_v24 = vld [vmem:[#allocation2 + $0x40] sm:$0xff] }
 0xfd5   : > { %15666 = vst.msk [vmem:[#allocation2 + $0x58] sm:$0xff] %vm15654_vm4, %v15629_v39 }
 0xfd6   : > { %15810 = vst.msk [vmem:[#allocation2 + $0x50] sm:$0xff] %vm15799_vm5, %v15772_v11 }
 0xfd7   : > { %v15774_v9 = vpop.permute.xlu0 %15773  ;;  %v15970_v16 = vld [vmem:[#allocation2 + $0x48] sm:$0xff] }
 0xfd8   : > { %19320 = vmatmul.mubr.bf16.gmra.mrb[40].mxu0 %v15968_v60  ;;  %15811 = vst.msk [vmem:[#allocation2 + $0x58] sm:$0xff] %vm15799_vm5, %v15774_v9  ;;  %v15917_v62 = vpop.permute.xlu1 %15916 }
 0xfd9   : > { %19323 = vmatprep.mubr.bf16.mxu0 %v15969_v24  ;;  %15955 = vst.msk [vmem:[#allocation2 + $0x50] sm:$0xff] %vm15944_vm6, %v15917_v62 }
 0xfdb   : > { %v15919_v1 = vpop.permute.xlu0 %15918 }
 0xfdc   : > { %15956 = vst.msk [vmem:[#allocation2 + $0x58] sm:$0xff] %vm15944_vm6, %v15919_v1  ;;  %v15631_v59 = vpop.permute.xlu1 %15630 }
 0xfdd   : > { %15667 = vst.msk [vmem:[#allocation2 + $0x60] sm:$0xff] %vm15654_vm4, %v15631_v59 }
 0xfdf   : > { %v15633_v33 = vpop.permute.xlu0 %15632 }
 0xfe0   : > { %19324 = vmatmul.mubr.bf16.gmra.mrb[44].mxu0 %v15970_v16  ;;  %15668 = vst.msk [vmem:[#allocation2 + $0x68] sm:$0xff] %vm15654_vm4, %v15633_v33  ;;  %v15776_v4 = vpop.permute.xlu1 %15775  ;;  %v15971_v19 = vld [vmem:[#allocation2 + $0x50] sm:$0xff] }
 0xfe1   : > { %15812 = vst.msk [vmem:[#allocation2 + $0x60] sm:$0xff] %vm15799_vm5, %v15776_v4  ;;  %19327 = vmatprep.mubr.bf16.mxu0 %v15971_v19  ;;  %v26242_v19 = vld [vmem:[%s26358_s5] ss:$0 sm:$0xff] }
 0xfe3   : > { %v15972_v2 = vld [vmem:[#allocation2 + $0x58] sm:$0xff] }
 0xfe4   : > { %v15921_v28 = vpop.permute.xlu1 %15920 }
 0xfe5   : > { %15957 = vst.msk [vmem:[#allocation2 + $0x60] sm:$0xff] %vm15944_vm6, %v15921_v28 }
 0xfe8   : > { %19328 = vmatmul.mubr.bf16.gmra.mrb[48].mxu0 %v15972_v2 }
 0xfe9   : > { %v14728_v42 = vpop.f32.mrb[40].mxu1 }
 0xfea   : > { %v19217_v35 = vpop.f32.mrb[41].mxu1 }
 0xfeb   : > { %v14731_v21 = vpop.f32.mrb[42].mxu1 }
 0xfec   : > { %v19218_v51 = vpop.f32.mrb[43].mxu1  ;;  %v15973_v22 = vld [vmem:[#allocation2 + $0x60] sm:$0xff] }
 0xfed   : > { %19331 = vmatprep.mubr.bf16.mxu0 %v15973_v22 }
 0xff0   : > { %v15778_v3 = vpop.permute.xlu0 %15777 }
 0xff1   : > { %15813 = vst.msk [vmem:[#allocation2 + $0x68] sm:$0xff] %vm15799_vm5, %v15778_v3 }
0x1002   : > { %v14820_v36 = vpop.f32.mrb[44].mxu1 }
0x1003   : > { %v16978_v25 = vpack.c.bf16 %v14820_v36, %v26194_v40  ;;  %v19229_v44 = vpop.f32.mrb[45].mxu1 }
0x1004   : > { %v14823_v10 = vpop.f32.mrb[46].mxu1 }
0x1005   : > { %15634 = vrot.lane.b32.xlu1 %v16978_v25, %s20132_s11  ;;  %v19230_v26 = vpop.f32.mrb[47].mxu1 }
0x1009   : > { %v15923_v13 = vpop.permute.xlu0 %15922 }
0x100a   : > { %15958 = vst.msk [vmem:[#allocation2 + $0x68] sm:$0xff] %vm15944_vm6, %v15923_v13 }
0x1011   : > { %v15974_v23 = vld [vmem:[#allocation2 + $0x68] sm:$0xff] }
0x1012   : > { %19332 = vmatmul.mubr.bf16.gmra.mrb[52].mxu0 %v15974_v23 }
0x101e   : > { %v14866_v7 = vpop.f32.mrb[8].mxu0 }
0x101f   : > { %v16994_v12 = vpack.c.bf16 %v14866_v7, %v26210_v0  ;;  %v19235_v17 = vpop.f32.mrb[9].mxu0 }
0x1020   : > { %v14869_v56 = vpop.f32.mrb[10].mxu0 }
0x1021   : > { %v19236_v61 = vpop.f32.mrb[11].mxu0  ;;  %15779 = vrot.lane.b32.xlu1 %v16994_v12, %s20130_s19 }
0x1026   : > { %v14958_v53 = vpop.f32.mrb[12].mxu0 }
0x1027   : > { %v19247_v40 = vpop.f32.mrb[13].mxu0 }
0x1028   : > { %v14961_v29 = vpop.f32.mrb[14].mxu0 }
0x1029   : > { %v19248_v57 = vpop.f32.mrb[15].mxu0 }
0x1037   : > { %v14912_v49 = vpop.f32.mrb[48].mxu1 }
0x1038   : > { %v17010_v18 = vpack.c.bf16 %v14912_v49, %v14728_v42  ;;  %v19241_v54 = vpop.f32.mrb[49].mxu1 }
0x1039   : > { %v14915_v34 = vpop.f32.mrb[50].mxu1 }
0x103a   : > { %15924 = vrot.lane.b32.xlu1 %v17010_v18, %s20131_s10  ;;  %v19242_v58 = vpop.f32.mrb[51].mxu1 }
0x1057   : > { %v15004_v41 = vpop.f32.mrb[52].mxu1 }
0x1058   : > { %v19253_v27 = vpop.f32.mrb[53].mxu1 }
0x1059   : > { %v15007_v31 = vpop.f32.mrb[54].mxu1 }
0x105a   : > { %v19254_v32 = vpop.f32.mrb[55].mxu1 }
0x105b   : > { %v15050_v38 = vpop.f32.mrb[16].mxu0 }
0x105c   : > { %v19259_v48 = vpop.f32.mrb[17].mxu0 }
0x105d   : > { %v15053_v50 = vpop.f32.mrb[18].mxu0 }
0x105e   : > { %v19260_v43 = vpop.f32.mrb[19].mxu0 }
0x105f   : > { %v15096_v0 = vpop.f32.mrb[56].mxu1 }
0x1060   : > { %v19265_v8 = vpop.f32.mrb[57].mxu1 }
0x1061   : > { %v15099_v47 = vpop.f32.mrb[58].mxu1 }
0x1062   : > { %v19266_v37 = vpop.f32.mrb[59].mxu1 }
0x1063   : > { %v15142_v46 = vpop.f32.mrb[20].mxu0 }
0x1064   : > { %v16963_v45 = vpack.c.bf16 %v15142_v46, %v14958_v53  ;;  %v19271_v5 = vpop.f32.mrb[21].mxu0 }
0x1065   : > { %v15145_v6 = vpop.f32.mrb[22].mxu0 }
0x1066   : > { %15525 = vst.msk [vmem:[#allocation2 + $0x78] sm:$0xff] %vm1811_vm1, %v16963_v45  ;;  %v19272_v14 = vpop.f32.mrb[23].mxu0 }
0x106c   : > { %v15188_v55 = vpop.f32.mrb[60].mxu1 }
0x106d   : > { %v16979_v63 = vpack.c.bf16 %v15188_v55, %v15004_v41  ;;  %v19277_v20 = vpop.f32.mrb[61].mxu1 }
0x106e   : > { %v15191_v15 = vpop.f32.mrb[62].mxu1 }
0x106f   : > { %15636 = vrot.lane.b32.xlu0 %v16979_v63, %s20132_s11  ;;  %v19278_v30 = vpop.f32.mrb[63].mxu1 }
0x1073   : > { %v15234_v39 = vpop.f32.mrb[24].mxu0 }
0x1074   : > { %v16995_v52 = vpack.c.bf16 %v15234_v39, %v15050_v38  ;;  %v19283_v11 = vpop.f32.mrb[25].mxu0  ;;  %v15280_v60 = vpop.f32.mrb[64].mxu1 }
0x1075   : > { %v17011_v9 = vpack.c.bf16 %v15280_v60, %v15096_v0  ;;  %v15237_v24 = vpop.f32.mrb[26].mxu0  ;;  %v19289_v62 = vpop.f32.mrb[65].mxu1 }
0x1076   : > { %v19284_v1 = vpop.f32.mrb[27].mxu0  ;;  %15781 = vrot.lane.b32.xlu0 %v16995_v52, %s20130_s19  ;;  %v15283_v59 = vpop.f32.mrb[66].mxu1 }
0x1077   : > { %v15635_v16 = vpop.permute.xlu1 %15634  ;;  %v19290_v33 = vpop.f32.mrb[67].mxu1 }
0x1078   : > { %15669 = vst.msk [vmem:[#allocation2 + $0x70] sm:$0xff] %vm15654_vm4, %v15635_v16 }
0x107a   : > { %15926 = vrot.lane.b32.xlu0 %v17011_v9, %s20131_s10  ;;  %s26251_s10 = scalar_lea.vmem [#allocation8], %s16378_s17  ;;  %s17012_s17 = sshll.u32 %s20191_s25, 11 }
0x107b   : > { %s16287_s30 = sshll.u32 %s26251_s10, 4  ;;  %s26304_s8 = scalar_lea.hbm %s26359_s6, %s17012_s17  ;;  %s26306_s30 = int_to_ptr.vmem [resolvable:$true] %s16287_s30 }
0x107c   : > { %s16274_s25 = scalar_lea.sflag [#allocation5], %s20301_s16  ;;  %s20049_s15 = scalar_lea.vmem %s26306_s30, 2048 }
0x107d   : > { %p20050_p1 = scmp.ne.s32.totalorder %s26306_s30, %s20049_s15  ;;  %p20056_p8 = scmp.lt.s32.totalorder %s26306_s30, %s20054_s29 }
0x107e   : > { %p20057_p13 = scmp.lt.s32.totalorder %s20055_s20, %s20049_s15 }
0x107f   : > { %p20051_p4 = pnand %p20050_p1, %p20253_p12 }
0x1080   : > { %p20058_p3 = por %p20057_p13, %p20056_p8 }
0x1081   : > { %p20052_p6 = pneg %p20051_p4 }
0x1083   : > { %p20059_p7 = pnand %p20058_p3, %p20052_p6 }
0x1093   : > { %v19309_v4 = vpop.f32.mrb[28].mxu0  ;;  %v15780_v28 = vpop.permute.xlu1 %15779 }
0x1094   : > { %v16082_v2 = vpop.f32.mrb[29].mxu0  ;;  %15814 = vst.msk [vmem:[#allocation2 + $0x70] sm:$0xff] %vm15799_vm5, %v15780_v28  ;;  %v16091_v35 = vadd.f32 %v19309_v4, %v26242_v19 }
0x1095   : > { %v19310_v42 = vpop.f32.mrb[30].mxu0  ;;  %v16083_v22 = vadd.f32 %v26242_v19, %v16082_v2 }
0x1096   : > { %v16094_v21 = vadd.f32 %v19310_v42, %v26242_v19  ;;  %v16085_v51 = vpop.f32.mrb[31].mxu0 }
0x1097   : > { %v16086_v3 = vadd.f32 %v26242_v19, %v16085_v51 }
0x1098   : > { %v17053_v36 = vpack.c.bf16 %v16094_v21, %v16091_v35 }
0x1099   : > { %v17048_v25 = vpack.c.bf16 %v16086_v3, %v16083_v22 }
0x109a   : > { %17132 = vst [vmem:[%s26251_s10 + $0x8] sm:$0xff] %v17053_v36  }
0x109b   : > { %17049 = vst [vmem:[%s26251_s10] sm:$0xff] %v17048_v25   ;;  %v19313_v44 = vpop.f32.mrb[32].mxu0 }
0x109c   : > { %v16098_v10 = vpop.f32.mrb[33].mxu0  ;;  %v16107_v13 = vadd.f32 %v19313_v44, %v26242_v19 }
0x109d   : > { %v19314_v26 = vpop.f32.mrb[34].mxu0  ;;  %v16099_v12 = vadd.f32 %v26242_v19, %v16098_v10 }
0x109e   : > { %v16110_v23 = vadd.f32 %v19314_v26, %v26242_v19  ;;  %v16101_v7 = vpop.f32.mrb[35].mxu0 }
0x109f   : > { %v16102_v17 = vadd.f32 %v26242_v19, %v16101_v7 }
0x10a0   : > { %v17063_v56 = vpack.c.bf16 %v16110_v23, %v16107_v13 }
0x10a1   : > { %v17058_v61 = vpack.c.bf16 %v16102_v17, %v16099_v12 }
0x10a2   : > { %17134 = vst [vmem:[%s26251_s10 + $0x18] sm:$0xff] %v17063_v56  }
0x10a3   : > { %17133 = vst [vmem:[%s26251_s10 + $0x10] sm:$0xff] %v17058_v61   ;;  %v19317_v53 = vpop.f32.mrb[36].mxu0 }
0x10a4   : > { %v16114_v40 = vpop.f32.mrb[37].mxu0  ;;  %v16123_v57 = vadd.f32 %v19317_v53, %v26242_v19 }
0x10a5   : > { %v19318_v29 = vpop.f32.mrb[38].mxu0  ;;  %v16115_v54 = vadd.f32 %v26242_v19, %v16114_v40 }
0x10a6   : > { %v16126_v49 = vadd.f32 %v19318_v29, %v26242_v19  ;;  %v16117_v18 = vpop.f32.mrb[39].mxu0 }
0x10a7   : > { %v16118_v34 = vadd.f32 %v26242_v19, %v16117_v18 }
0x10a8   : > { %v17073_v58 = vpack.c.bf16 %v16126_v49, %v16123_v57 }
0x10a9   : > { %v17068_v41 = vpack.c.bf16 %v16118_v34, %v16115_v54 }
0x10aa   : > { %17136 = vst [vmem:[%s26251_s10 + $0x28] sm:$0xff] %v17073_v58  }
0x10ab   : > { %17135 = vst [vmem:[%s26251_s10 + $0x20] sm:$0xff] %v17068_v41   ;;  %v19321_v27 = vpop.f32.mrb[40].mxu0 }
0x10ac   : > { %v16130_v31 = vpop.f32.mrb[41].mxu0  ;;  %v15925_v32 = vpop.permute.xlu1 %15924  ;;  %v16139_v48 = vadd.f32 %v19321_v27, %v26242_v19 }
0x10ad   : > { %v19322_v38 = vpop.f32.mrb[42].mxu0  ;;  %15959 = vst.msk [vmem:[#allocation2 + $0x70] sm:$0xff] %vm15944_vm6, %v15925_v32  ;;  %v16131_v0 = vadd.f32 %v26242_v19, %v16130_v31 }
0x10ae   : > { %v16142_v50 = vadd.f32 %v19322_v38, %v26242_v19  ;;  %v16133_v43 = vpop.f32.mrb[43].mxu0 }
0x10af   : > { %v16134_v8 = vadd.f32 %v26242_v19, %v16133_v43 }
0x10b0   : > { %v17083_v47 = vpack.c.bf16 %v16142_v50, %v16139_v48 }
0x10b1   : > { %v17078_v37 = vpack.c.bf16 %v16134_v8, %v16131_v0 }
0x10b2   : > { %17138 = vst [vmem:[%s26251_s10 + $0x38] sm:$0xff] %v17083_v47  }
0x10b3   : > { %17137 = vst [vmem:[%s26251_s10 + $0x30] sm:$0xff] %v17078_v37   ;;  %v19325_v46 = vpop.f32.mrb[44].mxu0 }
0x10b4   : > { %v16146_v45 = vpop.f32.mrb[45].mxu0  ;;  %v15975_v5 = vld [vmem:[#allocation2 + $0x70] sm:$0xff]  ;;  %v16155_v14 = vadd.f32 %v19325_v46, %v26242_v19 }
0x10b5   : > { %v19326_v6 = vpop.f32.mrb[46].mxu0  ;;  %19335 = vmatprep.mubr.bf16.mxu0 %v15975_v5  ;;  %v16147_v20 = vadd.f32 %v26242_v19, %v16146_v45 }
0x10b6   : > { %v16158_v55 = vadd.f32 %v19326_v6, %v26242_v19  ;;  %v16149_v63 = vpop.f32.mrb[47].mxu0 }
0x10b7   : > { %v16150_v15 = vadd.f32 %v26242_v19, %v16149_v63 }
0x10b8   : > { %v17093_v30 = vpack.c.bf16 %v16158_v55, %v16155_v14 }
0x10b9   : > { %v17088_v39 = vpack.c.bf16 %v16150_v15, %v16147_v20 }
0x10ba   : > { %17140 = vst [vmem:[%s26251_s10 + $0x48] sm:$0xff] %v17093_v30  }
0x10bb   : > { %17139 = vst [vmem:[%s26251_s10 + $0x40] sm:$0xff] %v17088_v39   ;;  %v19329_v52 = vpop.f32.mrb[48].mxu0 }
0x10bc   : > { %v16162_v11 = vpop.f32.mrb[49].mxu0  ;;  %v16171_v9 = vadd.f32 %v19329_v52, %v26242_v19 }
0x10bd   : > { %v19330_v60 = vpop.f32.mrb[50].mxu0  ;;  %v16163_v1 = vadd.f32 %v26242_v19, %v16162_v11 }
0x10be   : > { %v16174_v24 = vadd.f32 %v19330_v60, %v26242_v19  ;;  %v16165_v62 = vpop.f32.mrb[51].mxu0 }
0x10bf   : > { %v16166_v59 = vadd.f32 %v26242_v19, %v16165_v62 }
0x10c0   : > { %v17103_v16 = vpack.c.bf16 %v16174_v24, %v16171_v9 }
0x10c1   : > { %v17098_v33 = vpack.c.bf16 %v16166_v59, %v16163_v1 }
0x10c2   : > { %17142 = vst [vmem:[%s26251_s10 + $0x58] sm:$0xff] %v17103_v16  }
0x10c3   : > { %17141 = vst [vmem:[%s26251_s10 + $0x50] sm:$0xff] %v17098_v33  }
0x10e1   : > { %v15637_v4 = vpop.permute.xlu0 %15636 }
0x10e2   : > { %15670 = vst.msk [vmem:[#allocation2 + $0x78] sm:$0xff] %vm15654_vm4, %v15637_v4 }
0x10e5   : > { %v19333_v28 = vpop.f32.mrb[52].mxu0 }
0x10e6   : > { %v16178_v2 = vpop.f32.mrb[53].mxu0  ;;  %v16187_v35 = vadd.f32 %v19333_v28, %v26242_v19 }
0x10e7   : > { %v19334_v42 = vpop.f32.mrb[54].mxu0  ;;  %v16179_v3 = vadd.f32 %v26242_v19, %v16178_v2 }
0x10e8   : > { %v16190_v21 = vadd.f32 %v19334_v42, %v26242_v19  ;;  %v16181_v51 = vpop.f32.mrb[55].mxu0  ;;  %v15782_v22 = vpop.permute.xlu0 %15781 }
0x10e9   : > { %v16182_v36 = vadd.f32 %v26242_v19, %v16181_v51  ;;  %15815 = vst.msk [vmem:[#allocation2 + $0x78] sm:$0xff] %vm15799_vm5, %v15782_v22 }
0x10ea   : > { %v17113_v25 = vpack.c.bf16 %v16190_v21, %v16187_v35 }
0x10eb   : > { %v17108_v44 = vpack.c.bf16 %v16182_v36, %v16179_v3 }
0x10ec   : > { %17144 = vst [vmem:[%s26251_s10 + $0x68] sm:$0xff] %v17113_v25   ;;  %v15927_v10 = vpop.permute.xlu0 %15926 }
0x10ed   : > { %17143 = vst [vmem:[%s26251_s10 + $0x60] sm:$0xff] %v17108_v44   ;;  %15960 = vst.msk [vmem:[#allocation2 + $0x78] sm:$0xff] %vm15944_vm6, %v15927_v10 }
0x10f4   : > { %v15976_v26 = vld [vmem:[#allocation2 + $0x78] sm:$0xff] }
0x10f5   : > { %19336 = vmatmul.mubr.bf16.gmra.mrb[56].mxu0 %v15976_v26 }
0x11c8   : > { %v19337_v13 = vpop.f32.mrb[56].mxu0 }
0x11c9   : > { %v16194_v23 = vpop.f32.mrb[57].mxu0  ;;  %v16203_v12 = vadd.f32 %v19337_v13, %v26242_v19 }
0x11ca   : > { %v19338_v7 = vpop.f32.mrb[58].mxu0  ;;  %v16195_v61 = vadd.f32 %v26242_v19, %v16194_v23 }
0x11cb   : > { %v16206_v17 = vadd.f32 %v19338_v7, %v26242_v19  ;;  %v16197_v56 = vpop.f32.mrb[59].mxu0 }
0x11cc   : > { %v16198_v53 = vadd.f32 %v26242_v19, %v16197_v56 }
0x11cd   : > { %v17123_v40 = vpack.c.bf16 %v16206_v17, %v16203_v12 }
0x11ce   : > { %v17118_v29 = vpack.c.bf16 %v16198_v53, %v16195_v61 }
0x11cf   : > { %17146 = vst [vmem:[%s26251_s10 + $0x78] sm:$0xff] %v17123_v40  }
0x11d0   : > { %17145 = vst [vmem:[%s26251_s10 + $0x70] sm:$0xff] %v17118_v29  }
0x11d1   : > { %20062 = shalt.err (!%p20059_p7)
}
0x11d2   : > { %s20063_s18 = scalar_lea.hbm %s26304_s8, 2048  ;;  %s20067_s10 = scalar_lea.hbm %s26359_s6, 16384 }
0x11d3   : > { %p20064_p9 = scmp.ne.s32.totalorder %s26304_s8, %s20063_s18  ;;  %p20068_p5 = scmp.lt.u32.totalorder %s26304_s8, %s26359_s6 }
0x11d4   : > { %p20069_p10 = scmp.lt.u32.totalorder %s20067_s10, %s20063_s18  ;;  %p20071_p1 = scmp.lt.u32.totalorder %s20063_s18, %s26304_s8 }
0x11d5   : > { %p20065_p11 = pnand %p20064_p9, %p20253_p12 }
0x11d6   : > { %p20070_p2 = por %p20069_p10, %p20068_p5 }
0x11d7   : > { %p20066_p0 = pneg %p20065_p11 }
0x11d8   : > { %p20072_p4 = por %p20071_p1, %p20070_p2 }
0x11da   : > { %p20073_p6 = pnand %p20072_p4, %p20066_p0 }
0x11dc   : > { %20076 = shalt.err (!%p20073_p6)
}
0x11dd   : > { %s20134_s12 = smov 4  }
0x11de   : > { %19361 = dma.vmem_to_hbm [thread:$0]  (%p20253_p12), %s26306_s30, 2048, %s26304_s8, %s16274_s25, %s20130_s19, %s20130_s19, %s20134_s12  }
0x11df PF: > { %p19378_p8 = scmp.ge.s32.totalorder %s20119_s24, 2  ;;  %s16302_s15 = sand.u32 1, %s20107_s21  }
0x11e0   : > { %p27267_p13 = scmp.ne.s32.totalorder %s26552_s28, 0  ;;  %s16303_s27 = scalar_lea.sflag [#allocation5], %s16302_s15 }
0x11e2   : > { %p19372_p3 = pnand %p19378_p8, %p27267_p13 }
0x11e4   : > { %20102 = dma.done.wait (!%p19372_p3), %s16303_s27, 2048  }
0x11e5   : > { %20104 = vsyncadd (!%p19372_p3), %s16303_s27, 4294965248  ;;  %p20_p7 = scmp.ge.s32.totalorder %s20223_s9, 10   ;;  %s27268_s21 = smov %s20111_s22 }
0x11e6   : > { %s27269_s22 = smov %s20115_s23  ;;  %s27270_s23 = smov %s20249_s13 }
0x11e7   : > { %s27271_s24 = smov %s20223_s9  ;;  %22 = sbr.rel (!%p20_p7) target bundleno = 6 (0x6), region = 93 }
0x11ee   :  { %16308 = vsyncpa [#allocation4], 1 }
0x11ef   :  { %16310 = vsyncpa [#allocation4 + $0x1], 1 }
0x11f0   :  { %16311 = vsyncpa [#allocation7], 1 }
0x11f1   :  { %16312 = vsyncpa [#allocation5], 1 }
0x11f2   :  { %16314 = vsyncpa [#allocation5 + $0x1], 1 }

</bundles_post_ra>
